<compile_context>
chip_gen: v7x
topology: tpu7x:2x2x1
jax: 0.10.0
libtpu: 0.0.40
codegen_flags: <defaults>
</compile_context>

<pallas_src>
import functools

import jax
import jax.numpy as jnp
from jax import lax
from jax.experimental import pallas as pl
from jax.experimental.pallas import tpu as pltpu

EPS = 1e-5          # nn.BatchNorm2d default
NEG_SLOPE = 0.01    # nn.LeakyReLU default negative_slope


# --------------------------------------------------------------------------
# helpers
# --------------------------------------------------------------------------
def _f32_bytes(*shapes):
    total = 0
    for s in shapes:
        n = 1
        for d in s:
            n *= int(d)
        total += 4 * n
    return total


def _vmem_limit(block_bytes):
    # blocks are double-buffered by the pipeline; add headroom, stay < v7x VMEM.
    return int(min(96 * 1024 * 1024, 2 * block_bytes + (8 << 20)))


def _auto_block_n(N, H, W, C, budget_bytes=8 << 20):
    """Largest divisor of N whose per-tile activations fit a VMEM budget."""
    per_image = 4 * (H + 2) * (W + 2) * C * 4  # rough: in + pad + out + slack
    bn = max(1, min(N, budget_bytes // max(per_image, 1)))
    while N % bn:
        bn -= 1
    return int(bn)


def _bn_affine(stats_sum, count, gamma, beta):
    """stats_sum: (2, C) = [sum, sumsq] over the whole batch -> (scale, shift)."""
    mean = stats_sum[0] / count
    var = stats_sum[1] / count - mean * mean          # biased batch variance
    scale = gamma * jax.lax.rsqrt(var + EPS)
    shift = beta - mean * scale
    return scale.reshape(1, -1), shift.reshape(1, -1)


# --------------------------------------------------------------------------
# kernels
# --------------------------------------------------------------------------
def _conv3x3_bn_kernel(x_ref, scale_ref, shift_ref, w_ref, b_ref,
                       y_ref, stats_ref, pad_ref, *, apply_act):
    """[affine(+LeakyReLU)] -> 3x3 same-pad conv -> bias, with fused BN stats."""
    bn, H, W, Cin = x_ref.shape
    Cout = y_ref.shape[-1]
    Hp, Wp = H + 2, W + 2

    # pre-activation: previous layer's BatchNorm (scale/shift) + LeakyReLU.
    a = x_ref[...] * scale_ref[...] + shift_ref[...]
    if apply_act:
        a = jnp.where(a > 0, a, NEG_SLOPE * a)

    # zero only the 1-px halo (every step -> megacore-safe), write interior once.
    zrow = jnp.zeros((bn, 1, Wp, Cin), jnp.float32)
    zcol = jnp.zeros((bn, Hp, 1, Cin), jnp.float32)
    pad_ref[:, 0:1, :, :] = zrow
    pad_ref[:, Hp - 1:Hp, :, :] = zrow
    pad_ref[:, :, 0:1, :] = zcol
    pad_ref[:, :, Wp - 1:Wp, :] = zcol
    pad_ref[:, 1:H + 1, 1:W + 1, :] = a

    # 3x3 conv: one (bn*H*W, Cin) x (Cin, Cout) MXU matmul per tap, f32 accum.
    M = bn * H * W
    acc = jnp.zeros((M, Cout), jnp.float32)
    for ky in range(3):
        for kx in range(3):
            patch = pad_ref[:, ky:ky + H, kx:kx + W, :].reshape(M, Cin)
            acc = acc + jnp.dot(patch, w_ref[ky * 3 + kx],
                                preferred_element_type=jnp.float32)
    acc = acc + b_ref[...]

    # fused BatchNorm statistics: single pass, no re-read of the activation.
    stats_ref[:, 0:1, :] = jnp.sum(acc, axis=0, keepdims=True).reshape(1, 1, Cout)
    stats_ref[:, 1:2, :] = jnp.sum(acc * acc, axis=0, keepdims=True).reshape(1, 1, Cout)

    y_ref[...] = acc.reshape(bn, H, W, Cout)


def _deconv_bn_kernel(x_ref, scale_ref, shift_ref, w_ref, b_ref,
                      u_ref, stats_ref, pad_ref):
    """BN+LeakyReLU -> ConvTranspose2d(k=3, s=2, p=1, op=1) via 4 output parities.

    Output channels are parity-blocked: [ee | eo | oe | oo], each Cup wide, where
    out[2i+ry, 2j+rx, c] = u[i, j, (ry*2+rx)*Cup + c].
    """
    bn, H, W, Cmid = x_ref.shape
    Cup4 = u_ref.shape[-1]

    a = x_ref[...] * scale_ref[...] + shift_ref[...]
    a = jnp.where(a > 0, a, NEG_SLOPE * a)

    # zero-pad one row (bottom) and one column (right) only.
    pad_ref[:, H:H + 1, :, :] = jnp.zeros((bn, 1, W + 1, Cmid), jnp.float32)
    pad_ref[:, :, W:W + 1, :] = jnp.zeros((bn, H + 1, 1, Cmid), jnp.float32)
    pad_ref[:, 0:H, 0:W, :] = a

    M = bn * H * W

    def mm(s, tap):
        return jnp.dot(s, w_ref[tap], preferred_element_type=jnp.float32)

    s00 = a.reshape(M, Cmid)                                # in[i,   j  ]
    s01 = pad_ref[:, 0:H, 1:W + 1, :].reshape(M, Cmid)      # in[i,   j+1]
    s10 = pad_ref[:, 1:H + 1, 0:W, :].reshape(M, Cmid)      # in[i+1, j  ]
    s11 = pad_ref[:, 1:H + 1, 1:W + 1, :].reshape(M, Cmid)  # in[i+1, j+1]

    # tap index t = ky*3 + kx of the (ci, co) weight matrices.
    ee = mm(s00, 4)                                              # w[1,1]
    eo = mm(s00, 5) + mm(s01, 3)                                 # w[1,2], w[1,0]
    oe = mm(s00, 7) + mm(s10, 1)                                 # w[2,1], w[0,1]
    oo = mm(s00, 8) + mm(s01, 6) + mm(s10, 2) + mm(s11, 0)       # w[2,2],[2,0],[0,2],[0,0]

    u = jnp.concatenate([ee, eo, oe, oo], axis=-1) + b_ref[...]

    stats_ref[:, 0:1, :] = jnp.sum(u, axis=0, keepdims=True).reshape(1, 1, Cup4)
    stats_ref[:, 1:2, :] = jnp.sum(u * u, axis=0, keepdims=True).reshape(1, 1, Cup4)

    u_ref[...] = u.reshape(bn, H, W, Cup4)


def _bn_act_kernel(x_ref, scale_ref, shift_ref, o_ref):
    a = x_ref[...] * scale_ref[...] + shift_ref[...]
    o_ref[...] = jnp.where(a > 0, a, NEG_SLOPE * a)


# --------------------------------------------------------------------------
# pallas_call builders (grid over batch tiles, "parallel" semantics)
# --------------------------------------------------------------------------
def _conv_stage(x, scale, shift, w9, bias, *, block_n, apply_act):
    N, H, W, Cin = x.shape
    Cout = w9.shape[-1]
    T = N // block_n

    blk = _f32_bytes((block_n, H, W, Cin), (block_n, H, W, Cout),
                     (block_n, H + 2, W + 2, Cin), (9, Cin, Cout),
                     (1, Cin), (1, Cin), (1, Cout), (1, 2, Cout))

    return pl.pallas_call(
        functools.partial(_conv3x3_bn_kernel, apply_act=apply_act),
        grid=(T,),
        in_specs=[
            pl.BlockSpec((block_n, H, W, Cin), lambda i: (i, 0, 0, 0)),
            pl.BlockSpec((1, Cin), lambda i: (0, 0)),
            pl.BlockSpec((1, Cin), lambda i: (0, 0)),
            pl.BlockSpec((9, Cin, Cout), lambda i: (0, 0, 0)),
            pl.BlockSpec((1, Cout), lambda i: (0, 0)),
        ],
        out_specs=[
            pl.BlockSpec((block_n, H, W, Cout), lambda i: (i, 0, 0, 0)),
            pl.BlockSpec((1, 2, Cout), lambda i: (i, 0, 0)),
        ],
        out_shape=[
            jax.ShapeDtypeStruct((N, H, W, Cout), jnp.float32),
            jax.ShapeDtypeStruct((T, 2, Cout), jnp.float32),
        ],
        scratch_shapes=[pltpu.VMEM((block_n, H + 2, W + 2, Cin), jnp.float32)],
        compiler_params=pltpu.CompilerParams(
            dimension_semantics=("parallel",),
            vmem_limit_bytes=_vmem_limit(blk)),
    )(x, scale, shift, w9, bias)


def _deconv_stage(x, scale, shift, w9, bias4, *, block_n):
    N, H, W, Cmid = x.shape
    Cup4 = bias4.shape[-1]
    T = N // block_n

    blk = _f32_bytes((block_n, H, W, Cmid), (block_n, H, W, Cup4),
                     (block_n, H + 1, W + 1, Cmid), (9, Cmid, Cup4 // 4),
                     (1, Cmid), (1, Cmid), (1, Cup4), (1, 2, Cup4))

    return pl.pallas_call(
        _deconv_bn_kernel,
        grid=(T,),
        in_specs=[
            pl.BlockSpec((block_n, H, W, Cmid), lambda i: (i, 0, 0, 0)),
            pl.BlockSpec((1, Cmid), lambda i: (0, 0)),
            pl.BlockSpec((1, Cmid), lambda i: (0, 0)),
            pl.BlockSpec((9, Cmid, Cup4 // 4), lambda i: (0, 0, 0)),
            pl.BlockSpec((1, Cup4), lambda i: (0, 0)),
        ],
        out_specs=[
            pl.BlockSpec((block_n, H, W, Cup4), lambda i: (i, 0, 0, 0)),
            pl.BlockSpec((1, 2, Cup4), lambda i: (i, 0, 0)),
        ],
        out_shape=[
            jax.ShapeDtypeStruct((N, H, W, Cup4), jnp.float32),
            jax.ShapeDtypeStruct((T, 2, Cup4), jnp.float32),
        ],
        scratch_shapes=[pltpu.VMEM((block_n, H + 1, W + 1, Cmid), jnp.float32)],
        compiler_params=pltpu.CompilerParams(
            dimension_semantics=("parallel",),
            vmem_limit_bytes=_vmem_limit(blk)),
    )(x, scale, shift, w9, bias4)


def _bn_act_stage(x, scale, shift, *, block_n):
    N, H, W, C = x.shape
    T = N // block_n
    blk = _f32_bytes((block_n, H, W, C), (block_n, H, W, C), (1, C), (1, C))

    return pl.pallas_call(
        _bn_act_kernel,
        grid=(T,),
        in_specs=[
            pl.BlockSpec((block_n, H, W, C), lambda i: (i, 0, 0, 0)),
            pl.BlockSpec((1, C), lambda i: (0, 0)),
            pl.BlockSpec((1, C), lambda i: (0, 0)),
        ],
        out_specs=pl.BlockSpec((block_n, H, W, C), lambda i: (i, 0, 0, 0)),
        out_shape=jax.ShapeDtypeStruct((N, H, W, C), jnp.float32),
        compiler_params=pltpu.CompilerParams(
            dimension_semantics=("parallel",),
            vmem_limit_bytes=_vmem_limit(blk)),
    )(x, scale, shift)


# --------------------------------------------------------------------------
# full forward (matches UpSampleLayer.forward(x, out))
# --------------------------------------------------------------------------
@functools.partial(jax.jit, static_argnames=("block_n",))
def upsample_layer_forward(x_nchw, skip_nchw,
                           w1, b1, g1, be1,
                           w2, b2, g2, be2,
                           wt, bt, gt, bet,
                           *, block_n=None):
    N, Cin, H, W = x_nchw.shape
    Cmid = w1.shape[0]          # out_ch * 2
    Cup = wt.shape[1]           # out_ch

    if block_n is None:
        block_n = _auto_block_n(N, H, W, max(Cin, Cmid, 4 * Cup))
    assert N % block_n == 0, (N, block_n)

    count12 = float(N * H * W)
    count3 = float(N * H * W * 4)      # upsampled spatial is (2H, 2W)

    # layout glue: NCHW -> NHWC (channels on lanes inside the kernels)
    x = jnp.transpose(x_nchw, (0, 2, 3, 1)).astype(jnp.float32)

    # weights: OIHW -> (9, Cin, Cout); ConvTranspose weight is (Cin, Cout, kh, kw)
    w1p = jnp.transpose(w1, (2, 3, 1, 0)).reshape(9, Cin, Cmid)
    w2p = jnp.transpose(w2, (2, 3, 1, 0)).reshape(9, Cmid, Cmid)
    wtp = jnp.transpose(wt, (2, 3, 0, 1)).reshape(9, Cmid, Cup)

    one_cin = jnp.ones((1, Cin), jnp.float32)
    zero_cin = jnp.zeros((1, Cin), jnp.float32)

    # stage 1: conv1 + bias (+ fused BN1 stats)
    y1, s1 = _conv_stage(x, one_cin, zero_cin, w1p, b1.reshape(1, Cmid),
                         block_n=block_n, apply_act=False)
    sc1, sh1 = _bn_affine(s1.sum(0), count12, g1, be1)

    # stage 2: BN1 + LeakyReLU + conv2 + bias (+ fused BN2 stats)
    y2, s2 = _conv_stage(y1, sc1, sh1, w2p, b2.reshape(1, Cmid),
                         block_n=block_n, apply_act=True)
    sc2, sh2 = _bn_affine(s2.sum(0), count12, g2, be2)

    # stage 3: BN2 + LeakyReLU + ConvTranspose(stride 2) (+ fused BN3 stats)
    bt4 = jnp.tile(bt.reshape(1, Cup), (1, 4))
    u, s3 = _deconv_stage(y2, sc2, sh2, wtp, bt4, block_n=block_n)
    s3 = s3.sum(0).reshape(2, 4, Cup).sum(axis=1)      # fold the 4 parity groups
    sc3, sh3 = _bn_affine(s3, count3, gt, bet)

    # stage 4: BN3 + LeakyReLU (elementwise, parity-blocked channels)
    u = _bn_act_stage(u, jnp.tile(sc3, (1, 4)), jnp.tile(sh3, (1, 4)),
                      block_n=block_n)

    # interleave parities -> NCHW, then channel-concat with the skip tensor.
    up = u.reshape(N, H, W, 2, 2, Cup)
    up = jnp.transpose(up, (0, 5, 1, 3, 2, 4)).reshape(N, Cup, 2 * H, 2 * W)
    return jnp.concatenate([up, skip_nchw.astype(jnp.float32)], axis=1)


# --------------------------------------------------------------------------
# pure-JAX reference (mirrors the PyTorch graph) for validation
# --------------------------------------------------------------------------
def upsample_layer_ref(x, skip, w1, b1, g1, be1, w2, b2, g2, be2, wt, bt, gt, bet):
    def conv(x, w, b):
        y = lax.conv_general_dilated(
            x, w, window_strides=(1, 1), padding=((1, 1), (1, 1)),
            dimension_numbers=("NCHW", "OIHW", "NCHW"),
            precision=lax.Precision.HIGHEST)
        return y + b[None, :, None, None]

    def deconv(x, w, b):  # ConvTranspose2d(k=3, s=2, p=1, output_padding=1)
        k = jnp.transpose(jnp.flip(w, (2, 3)), (1, 0, 2, 3))
        y = lax.conv_general_dilated(
            x, k, window_strides=(1, 1), padding=((1, 2), (1, 2)),
            lhs_dilation=(2, 2), dimension_numbers=("NCHW", "OIHW", "NCHW"),
            precision=lax.Precision.HIGHEST)
        return y + b[None, :, None, None]

    def bn_lrelu(y, g, be):
        mean = jnp.mean(y, axis=(0, 2, 3), keepdims=True)
        var = jnp.mean((y - mean) ** 2, axis=(0, 2, 3), keepdims=True)
        yn = (y - mean) * jax.lax.rsqrt(var + EPS)
        yn = yn * g[None, :, None, None] + be[None, :, None, None]
        return jnp.where(yn > 0, yn, NEG_SLOPE * yn)

    h = bn_lrelu(conv(x, w1, b1), g1, be1)
    h = bn_lrelu(conv(h, w2, b2), g2, be2)
    h = bn_lrelu(deconv(h, wt, bt), gt, bet)
    return jnp.concatenate([h, skip], axis=1)


if __name__ == "__main__":
    N, in_ch, out_ch, H, W = 2, 4, 4, 16, 16
    Cmid, Cup = out_ch * 2, out_ch

    key = jax.random.PRNGKey(0)
    ks = jax.random.split(key, 8)

    x = jax.random.normal(ks[0], (N, in_ch, H, W), dtype=jnp.float32)
    skip = jax.random.normal(ks[1], (N, out_ch, 2 * H, 2 * W), dtype=jnp.float32)

    w1 = 0.1 * jax.random.normal(ks[2], (Cmid, in_ch, 3, 3), dtype=jnp.float32)
    b1 = 0.1 * jax.random.normal(ks[3], (Cmid,), dtype=jnp.float32)
    w2 = 0.1 * jax.random.normal(ks[4], (Cmid, Cmid, 3, 3), dtype=jnp.float32)
    b2 = 0.1 * jax.random.normal(ks[5], (Cmid,), dtype=jnp.float32)
    wt = 0.1 * jax.random.normal(ks[6], (Cmid, Cup, 3, 3), dtype=jnp.float32)
    bt = 0.1 * jax.random.normal(ks[7], (Cup,), dtype=jnp.float32)

    g1, be1 = jnp.ones((Cmid,), jnp.float32), jnp.zeros((Cmid,), jnp.float32)
    g2, be2 = jnp.ones((Cmid,), jnp.float32), jnp.zeros((Cmid,), jnp.float32)
    gt, bet = jnp.ones((Cup,), jnp.float32), jnp.zeros((Cup,), jnp.float32)

    out = upsample_layer_forward(x, skip, w1, b1, g1, be1, w2, b2, g2, be2,
                                 wt, bt, gt, bet, block_n=1)
    out = jax.block_until_ready(out)

    ref = jax.block_until_ready(
        upsample_layer_ref(x, skip, w1, b1, g1, be1, w2, b2, g2, be2,
                           wt, bt, gt, bet))

    assert out.shape == (N, 2 * out_ch, 2 * H, 2 * W), out.shape
    max_err = float(jnp.max(jnp.abs(out - ref)))
    assert max_err < 1e-3, f"mismatch vs reference: {max_err}"

    print("KERNEL_OK")
</pallas_src>

<mosaic_0001>
module attributes {stable_mosaic.version = 11 : i64} {
  func.func @_conv3x3_bn_kernel(%arg0: i32, %arg1: memref<1x16x16x4xf32, #tpu.memory_space<vmem>>, %arg2: memref<1x4xf32, #tpu.memory_space<vmem>>, %arg3: memref<1x4xf32, #tpu.memory_space<vmem>>, %arg4: memref<9x4x8xf32, #tpu.memory_space<vmem>>, %arg5: memref<1x8xf32, #tpu.memory_space<vmem>>, %arg6: memref<1x16x16x8xf32, #tpu.memory_space<vmem>>, %arg7: memref<1x2x8xf32, #tpu.memory_space<vmem>>, %arg8: memref<1x18x18x4xf32, #tpu.memory_space<vmem>>) attributes {dimension_semantics = [#tpu.dimension_semantics<parallel>], iteration_bounds = array<i64: 2>, scalar_prefetch = 0 : i64, scratch_operands = 1 : i64, tpu.core_type = #tpu.core_type<tc>, window_params = [{transform_indices = @transform_0, window_bounds = array<i64: 1, 16, 16, 4>}, {pipeline_mode = #tpu.pipeline_mode<synchronous>, transform_indices = @transform_1, window_bounds = array<i64: 1, 4>}, {pipeline_mode = #tpu.pipeline_mode<synchronous>, transform_indices = @transform_2, window_bounds = array<i64: 1, 4>}, {pipeline_mode = #tpu.pipeline_mode<synchronous>, transform_indices = @transform_3, window_bounds = array<i64: 9, 4, 8>}, {pipeline_mode = #tpu.pipeline_mode<synchronous>, transform_indices = @transform_4, window_bounds = array<i64: 1, 8>}, {transform_indices = @transform_5, window_bounds = array<i64: 1, 16, 16, 8>}, {transform_indices = @transform_6, window_bounds = array<i64: 1, 2, 8>}]} {
    %c0 = arith.constant 0 : index
    %c0_0 = arith.constant 0 : index
    %c0_1 = arith.constant 0 : index
    %c0_2 = arith.constant 0 : index
    %0 = vector.load %arg1[%c0, %c0_0, %c0_1, %c0_2] : memref<1x16x16x4xf32, #tpu.memory_space<vmem>>, vector<1x16x16x4xf32>
    %c0_3 = arith.constant 0 : index
    %c0_4 = arith.constant 0 : index
    %1 = vector.load %arg2[%c0_3, %c0_4] : memref<1x4xf32, #tpu.memory_space<vmem>>, vector<1x4xf32>
    %2 = vector.shape_cast %1 : vector<1x4xf32> to vector<1x1x1x4xf32>
    %3 = vector.broadcast %2 : vector<1x1x1x4xf32> to vector<1x16x16x4xf32>
    %4 = arith.mulf %0, %3 : vector<1x16x16x4xf32>
    %c0_5 = arith.constant 0 : index
    %c0_6 = arith.constant 0 : index
    %5 = vector.load %arg3[%c0_5, %c0_6] : memref<1x4xf32, #tpu.memory_space<vmem>>, vector<1x4xf32>
    %6 = vector.shape_cast %5 : vector<1x4xf32> to vector<1x1x1x4xf32>
    %7 = vector.broadcast %6 : vector<1x1x1x4xf32> to vector<1x16x16x4xf32>
    %8 = arith.addf %4, %7 : vector<1x16x16x4xf32>
    %cst = arith.constant 0.000000e+00 : f32
    %9 = vector.broadcast %cst : f32 to vector<1x1x18x4xf32>
    %cst_7 = arith.constant 0.000000e+00 : f32
    %10 = vector.broadcast %cst_7 : f32 to vector<1x18x1x4xf32>
    %c0_8 = arith.constant 0 : index
    %c0_9 = arith.constant 0 : index
    %c0_10 = arith.constant 0 : index
    %c0_11 = arith.constant 0 : index
    %11 = vector.load %arg8[%c0_8, %c0_9, %c0_10, %c0_11] : memref<1x18x18x4xf32, #tpu.memory_space<vmem>>, vector<1x1x18x4xf32>
    tpu.vector_store %arg8[%c0_8, %c0_9, %c0_10, %c0_11], %9 {strides = array<i32>} : memref<1x18x18x4xf32, #tpu.memory_space<vmem>>, vector<1x1x18x4xf32>,
    %c0_12 = arith.constant 0 : index
    %c17 = arith.constant 17 : index
    %c0_13 = arith.constant 0 : index
    %c0_14 = arith.constant 0 : index
    %12 = vector.load %arg8[%c0_12, %c17, %c0_13, %c0_14] : memref<1x18x18x4xf32, #tpu.memory_space<vmem>>, vector<1x1x18x4xf32>
    tpu.vector_store %arg8[%c0_12, %c17, %c0_13, %c0_14], %9 {strides = array<i32>} : memref<1x18x18x4xf32, #tpu.memory_space<vmem>>, vector<1x1x18x4xf32>,
    %c0_15 = arith.constant 0 : index
    %c0_16 = arith.constant 0 : index
    %c0_17 = arith.constant 0 : index
    %c0_18 = arith.constant 0 : index
    %13 = vector.load %arg8[%c0_15, %c0_16, %c0_17, %c0_18] : memref<1x18x18x4xf32, #tpu.memory_space<vmem>>, vector<1x18x1x4xf32>
    tpu.vector_store %arg8[%c0_15, %c0_16, %c0_17, %c0_18], %10 {strides = array<i32>} : memref<1x18x18x4xf32, #tpu.memory_space<vmem>>, vector<1x18x1x4xf32>,
    %c0_19 = arith.constant 0 : index
    %c0_20 = arith.constant 0 : index
    %c17_21 = arith.constant 17 : index
    %c0_22 = arith.constant 0 : index
    %14 = vector.load %arg8[%c0_19, %c0_20, %c17_21, %c0_22] : memref<1x18x18x4xf32, #tpu.memory_space<vmem>>, vector<1x18x1x4xf32>
    tpu.vector_store %arg8[%c0_19, %c0_20, %c17_21, %c0_22], %10 {strides = array<i32>} : memref<1x18x18x4xf32, #tpu.memory_space<vmem>>, vector<1x18x1x4xf32>,
    %c0_23 = arith.constant 0 : index
    %c1 = arith.constant 1 : index
    %c1_24 = arith.constant 1 : index
    %c0_25 = arith.constant 0 : index
    %15 = vector.load %arg8[%c0_23, %c1, %c1_24, %c0_25] : memref<1x18x18x4xf32, #tpu.memory_space<vmem>>, vector<1x16x16x4xf32>
    tpu.vector_store %arg8[%c0_23, %c1, %c1_24, %c0_25], %8 {strides = array<i32>} : memref<1x18x18x4xf32, #tpu.memory_space<vmem>>, vector<1x16x16x4xf32>,
    %cst_26 = arith.constant 0.000000e+00 : f32
    %16 = vector.broadcast %cst_26 : f32 to vector<256x8xf32>
    %c0_27 = arith.constant 0 : index
    %c0_28 = arith.constant 0 : index
    %c0_29 = arith.constant 0 : index
    %c0_30 = arith.constant 0 : index
    %17 = vector.load %arg8[%c0_27, %c0_28, %c0_29, %c0_30] : memref<1x18x18x4xf32, #tpu.memory_space<vmem>>, vector<1x16x16x4xf32>
    %18 = vector.shape_cast %17 : vector<1x16x16x4xf32> to vector<256x4xf32>
    %c0_31 = arith.constant 0 : index
    %c0_32 = arith.constant 0 : index
    %c0_33 = arith.constant 0 : index
    %19 = vector.load %arg4[%c0_31, %c0_32, %c0_33] : memref<9x4x8xf32, #tpu.memory_space<vmem>>, vector<1x4x8xf32>
    %20 = vector.shape_cast %19 : vector<1x4x8xf32> to vector<4x8xf32>
    %cst_34 = arith.constant dense<0.000000e+00> : vector<256x8xf32>
    %21 = tpu.matmul %18, %20, %cst_34 {dimension_numbers = #tpu.dot_dimension_numbers<[1], [0], [0], [1], [0, 0, 1, 1], [], []>} : vector<256x4xf32>, vector<4x8xf32>, vector<256x8xf32> -> vector<256x8xf32>
    %22 = arith.addf %16, %21 : vector<256x8xf32>
    %c0_35 = arith.constant 0 : index
    %c0_36 = arith.constant 0 : index
    %c1_37 = arith.constant 1 : index
    %c0_38 = arith.constant 0 : index
    %23 = vector.load %arg8[%c0_35, %c0_36, %c1_37, %c0_38] : memref<1x18x18x4xf32, #tpu.memory_space<vmem>>, vector<1x16x16x4xf32>
    %24 = vector.shape_cast %23 : vector<1x16x16x4xf32> to vector<256x4xf32>
    %c1_39 = arith.constant 1 : index
    %c0_40 = arith.constant 0 : index
    %c0_41 = arith.constant 0 : index
    %25 = vector.load %arg4[%c1_39, %c0_40, %c0_41] : memref<9x4x8xf32, #tpu.memory_space<vmem>>, vector<1x4x8xf32>
    %26 = vector.shape_cast %25 : vector<1x4x8xf32> to vector<4x8xf32>
    %cst_42 = arith.constant dense<0.000000e+00> : vector<256x8xf32>
    %27 = tpu.matmul %24, %26, %cst_42 {dimension_numbers = #tpu.dot_dimension_numbers<[1], [0], [0], [1], [0, 0, 1, 1], [], []>} : vector<256x4xf32>, vector<4x8xf32>, vector<256x8xf32> -> vector<256x8xf32>
    %28 = arith.addf %22, %27 : vector<256x8xf32>
    %c0_43 = arith.constant 0 : index
    %c0_44 = arith.constant 0 : index
    %c2 = arith.constant 2 : index
    %c0_45 = arith.constant 0 : index
    %29 = vector.load %arg8[%c0_43, %c0_44, %c2, %c0_45] : memref<1x18x18x4xf32, #tpu.memory_space<vmem>>, vector<1x16x16x4xf32>
    %30 = vector.shape_cast %29 : vector<1x16x16x4xf32> to vector<256x4xf32>
    %c2_46 = arith.constant 2 : index
    %c0_47 = arith.constant 0 : index
    %c0_48 = arith.constant 0 : index
    %31 = vector.load %arg4[%c2_46, %c0_47, %c0_48] : memref<9x4x8xf32, #tpu.memory_space<vmem>>, vector<1x4x8xf32>
    %32 = vector.shape_cast %31 : vector<1x4x8xf32> to vector<4x8xf32>
    %cst_49 = arith.constant dense<0.000000e+00> : vector<256x8xf32>
    %33 = tpu.matmul %30, %32, %cst_49 {dimension_numbers = #tpu.dot_dimension_numbers<[1], [0], [0], [1], [0, 0, 1, 1], [], []>} : vector<256x4xf32>, vector<4x8xf32>, vector<256x8xf32> -> vector<256x8xf32>
    %34 = arith.addf %28, %33 : vector<256x8xf32>
    %c0_50 = arith.constant 0 : index
    %c1_51 = arith.constant 1 : index
    %c0_52 = arith.constant 0 : index
    %c0_53 = arith.constant 0 : index
    %35 = vector.load %arg8[%c0_50, %c1_51, %c0_52, %c0_53] : memref<1x18x18x4xf32, #tpu.memory_space<vmem>>, vector<1x16x16x4xf32>
    %36 = vector.shape_cast %35 : vector<1x16x16x4xf32> to vector<256x4xf32>
    %c3 = arith.constant 3 : index
    %c0_54 = arith.constant 0 : index
    %c0_55 = arith.constant 0 : index
    %37 = vector.load %arg4[%c3, %c0_54, %c0_55] : memref<9x4x8xf32, #tpu.memory_space<vmem>>, vector<1x4x8xf32>
    %38 = vector.shape_cast %37 : vector<1x4x8xf32> to vector<4x8xf32>
    %cst_56 = arith.constant dense<0.000000e+00> : vector<256x8xf32>
    %39 = tpu.matmul %36, %38, %cst_56 {dimension_numbers = #tpu.dot_dimension_numbers<[1], [0], [0], [1], [0, 0, 1, 1], [], []>} : vector<256x4xf32>, vector<4x8xf32>, vector<256x8xf32> -> vector<256x8xf32>
    %40 = arith.addf %34, %39 : vector<256x8xf32>
    %c0_57 = arith.constant 0 : index
    %c1_58 = arith.constant 1 : index
    %c1_59 = arith.constant 1 : index
    %c0_60 = arith.constant 0 : index
    %41 = vector.load %arg8[%c0_57, %c1_58, %c1_59, %c0_60] : memref<1x18x18x4xf32, #tpu.memory_space<vmem>>, vector<1x16x16x4xf32>
    %42 = vector.shape_cast %41 : vector<1x16x16x4xf32> to vector<256x4xf32>
    %c4 = arith.constant 4 : index
    %c0_61 = arith.constant 0 : index
    %c0_62 = arith.constant 0 : index
    %43 = vector.load %arg4[%c4, %c0_61, %c0_62] : memref<9x4x8xf32, #tpu.memory_space<vmem>>, vector<1x4x8xf32>
    %44 = vector.shape_cast %43 : vector<1x4x8xf32> to vector<4x8xf32>
    %cst_63 = arith.constant dense<0.000000e+00> : vector<256x8xf32>
    %45 = tpu.matmul %42, %44, %cst_63 {dimension_numbers = #tpu.dot_dimension_numbers<[1], [0], [0], [1], [0, 0, 1, 1], [], []>} : vector<256x4xf32>, vector<4x8xf32>, vector<256x8xf32> -> vector<256x8xf32>
    %46 = arith.addf %40, %45 : vector<256x8xf32>
    %c0_64 = arith.constant 0 : index
    %c1_65 = arith.constant 1 : index
    %c2_66 = arith.constant 2 : index
    %c0_67 = arith.constant 0 : index
    %47 = vector.load %arg8[%c0_64, %c1_65, %c2_66, %c0_67] : memref<1x18x18x4xf32, #tpu.memory_space<vmem>>, vector<1x16x16x4xf32>
    %48 = vector.shape_cast %47 : vector<1x16x16x4xf32> to vector<256x4xf32>
    %c5 = arith.constant 5 : index
    %c0_68 = arith.constant 0 : index
    %c0_69 = arith.constant 0 : index
    %49 = vector.load %arg4[%c5, %c0_68, %c0_69] : memref<9x4x8xf32, #tpu.memory_space<vmem>>, vector<1x4x8xf32>
    %50 = vector.shape_cast %49 : vector<1x4x8xf32> to vector<4x8xf32>
    %cst_70 = arith.constant dense<0.000000e+00> : vector<256x8xf32>
    %51 = tpu.matmul %48, %50, %cst_70 {dimension_numbers = #tpu.dot_dimension_numbers<[1], [0], [0], [1], [0, 0, 1, 1], [], []>} : vector<256x4xf32>, vector<4x8xf32>, vector<256x8xf32> -> vector<256x8xf32>
    %52 = arith.addf %46, %51 : vector<256x8xf32>
    %c0_71 = arith.constant 0 : index
    %c2_72 = arith.constant 2 : index
    %c0_73 = arith.constant 0 : index
    %c0_74 = arith.constant 0 : index
    %53 = vector.load %arg8[%c0_71, %c2_72, %c0_73, %c0_74] : memref<1x18x18x4xf32, #tpu.memory_space<vmem>>, vector<1x16x16x4xf32>
    %54 = vector.shape_cast %53 : vector<1x16x16x4xf32> to vector<256x4xf32>
    %c6 = arith.constant 6 : index
    %c0_75 = arith.constant 0 : index
    %c0_76 = arith.constant 0 : index
    %55 = vector.load %arg4[%c6, %c0_75, %c0_76] : memref<9x4x8xf32, #tpu.memory_space<vmem>>, vector<1x4x8xf32>
    %56 = vector.shape_cast %55 : vector<1x4x8xf32> to vector<4x8xf32>
    %cst_77 = arith.constant dense<0.000000e+00> : vector<256x8xf32>
    %57 = tpu.matmul %54, %56, %cst_77 {dimension_numbers = #tpu.dot_dimension_numbers<[1], [0], [0], [1], [0, 0, 1, 1], [], []>} : vector<256x4xf32>, vector<4x8xf32>, vector<256x8xf32> -> vector<256x8xf32>
    %58 = arith.addf %52, %57 : vector<256x8xf32>
    %c0_78 = arith.constant 0 : index
    %c2_79 = arith.constant 2 : index
    %c1_80 = arith.constant 1 : index
    %c0_81 = arith.constant 0 : index
    %59 = vector.load %arg8[%c0_78, %c2_79, %c1_80, %c0_81] : memref<1x18x18x4xf32, #tpu.memory_space<vmem>>, vector<1x16x16x4xf32>
    %60 = vector.shape_cast %59 : vector<1x16x16x4xf32> to vector<256x4xf32>
    %c7 = arith.constant 7 : index
    %c0_82 = arith.constant 0 : index
    %c0_83 = arith.constant 0 : index
    %61 = vector.load %arg4[%c7, %c0_82, %c0_83] : memref<9x4x8xf32, #tpu.memory_space<vmem>>, vector<1x4x8xf32>
    %62 = vector.shape_cast %61 : vector<1x4x8xf32> to vector<4x8xf32>
    %cst_84 = arith.constant dense<0.000000e+00> : vector<256x8xf32>
    %63 = tpu.matmul %60, %62, %cst_84 {dimension_numbers = #tpu.dot_dimension_numbers<[1], [0], [0], [1], [0, 0, 1, 1], [], []>} : vector<256x4xf32>, vector<4x8xf32>, vector<256x8xf32> -> vector<256x8xf32>
    %64 = arith.addf %58, %63 : vector<256x8xf32>
    %c0_85 = arith.constant 0 : index
    %c2_86 = arith.constant 2 : index
    %c2_87 = arith.constant 2 : index
    %c0_88 = arith.constant 0 : index
    %65 = vector.load %arg8[%c0_85, %c2_86, %c2_87, %c0_88] : memref<1x18x18x4xf32, #tpu.memory_space<vmem>>, vector<1x16x16x4xf32>
    %66 = vector.shape_cast %65 : vector<1x16x16x4xf32> to vector<256x4xf32>
    %c8 = arith.constant 8 : index
    %c0_89 = arith.constant 0 : index
    %c0_90 = arith.constant 0 : index
    %67 = vector.load %arg4[%c8, %c0_89, %c0_90] : memref<9x4x8xf32, #tpu.memory_space<vmem>>, vector<1x4x8xf32>
    %68 = vector.shape_cast %67 : vector<1x4x8xf32> to vector<4x8xf32>
    %cst_91 = arith.constant dense<0.000000e+00> : vector<256x8xf32>
    %69 = tpu.matmul %66, %68, %cst_91 {dimension_numbers = #tpu.dot_dimension_numbers<[1], [0], [0], [1], [0, 0, 1, 1], [], []>} : vector<256x4xf32>, vector<4x8xf32>, vector<256x8xf32> -> vector<256x8xf32>
    %70 = arith.addf %64, %69 : vector<256x8xf32>
    %c0_92 = arith.constant 0 : index
    %c0_93 = arith.constant 0 : index
    %71 = vector.load %arg5[%c0_92, %c0_93] : memref<1x8xf32, #tpu.memory_space<vmem>>, vector<1x8xf32>
    %72 = vector.broadcast %71 : vector<1x8xf32> to vector<256x8xf32>
    %73 = arith.addf %70, %72 : vector<256x8xf32>
    %cst_94 = arith.constant dense<0.000000e+00> : vector<8xf32>
    %74 = vector.multi_reduction <add>, %73, %cst_94 [0] : vector<256x8xf32> to vector<8xf32>
    %75 = vector.shape_cast %74 : vector<8xf32> to vector<1x8xf32>
    %76 = vector.shape_cast %75 : vector<1x8xf32> to vector<1x1x8xf32>
    %c0_95 = arith.constant 0 : index
    %c0_96 = arith.constant 0 : index
    %c0_97 = arith.constant 0 : index
    %77 = vector.load %arg7[%c0_95, %c0_96, %c0_97] : memref<1x2x8xf32, #tpu.memory_space<vmem>>, vector<1x1x8xf32>
    tpu.vector_store %arg7[%c0_95, %c0_96, %c0_97], %76 {strides = array<i32>} : memref<1x2x8xf32, #tpu.memory_space<vmem>>, vector<1x1x8xf32>,
    %78 = arith.mulf %73, %73 : vector<256x8xf32>
    %cst_98 = arith.constant dense<0.000000e+00> : vector<8xf32>
    %79 = vector.multi_reduction <add>, %78, %cst_98 [0] : vector<256x8xf32> to vector<8xf32>
    %80 = vector.shape_cast %79 : vector<8xf32> to vector<1x8xf32>
    %81 = vector.shape_cast %80 : vector<1x8xf32> to vector<1x1x8xf32>
    %c0_99 = arith.constant 0 : index
    %c1_100 = arith.constant 1 : index
    %c0_101 = arith.constant 0 : index
    %82 = vector.load %arg7[%c0_99, %c1_100, %c0_101] : memref<1x2x8xf32, #tpu.memory_space<vmem>>, vector<1x1x8xf32>
    tpu.vector_store %arg7[%c0_99, %c1_100, %c0_101], %81 {strides = array<i32>} : memref<1x2x8xf32, #tpu.memory_space<vmem>>, vector<1x1x8xf32>,
    %83 = vector.shape_cast %73 : vector<256x8xf32> to vector<1x16x16x8xf32>
    %c0_102 = arith.constant 0 : index
    %c0_103 = arith.constant 0 : index
    %c0_104 = arith.constant 0 : index
    %c0_105 = arith.constant 0 : index
    %84 = vector.load %arg6[%c0_102, %c0_103, %c0_104, %c0_105] : memref<1x16x16x8xf32, #tpu.memory_space<vmem>>, vector<1x16x16x8xf32>
    tpu.vector_store %arg6[%c0_102, %c0_103, %c0_104, %c0_105], %83 {strides = array<i32>} : memref<1x16x16x8xf32, #tpu.memory_space<vmem>>, vector<1x16x16x8xf32>,
    return
  }
  func.func @transform_0(%arg0: i32) -> (i32, i32, i32, i32) {
    %c0_i32 = arith.constant 0 : i32
    %c0_i32_0 = arith.constant 0 : i32
    %c0_i32_1 = arith.constant 0 : i32
    %c0_i32_2 = arith.constant 0 : i32
    return %arg0, %c0_i32, %c0_i32_0, %c0_i32_1 : i32, i32, i32, i32
  }
  func.func @transform_1(%arg0: i32) -> (i32, i32) {
    %c0_i32 = arith.constant 0 : i32
    %c0_i32_0 = arith.constant 0 : i32
    %c0_i32_1 = arith.constant 0 : i32
    return %c0_i32, %c0_i32_0 : i32, i32
  }
  func.func @transform_2(%arg0: i32) -> (i32, i32) {
    %c0_i32 = arith.constant 0 : i32
    %c0_i32_0 = arith.constant 0 : i32
    %c0_i32_1 = arith.constant 0 : i32
    return %c0_i32, %c0_i32_0 : i32, i32
  }
  func.func @transform_3(%arg0: i32) -> (i32, i32, i32) {
    %c0_i32 = arith.constant 0 : i32
    %c0_i32_0 = arith.constant 0 : i32
    %c0_i32_1 = arith.constant 0 : i32
    %c0_i32_2 = arith.constant 0 : i32
    return %c0_i32, %c0_i32_0, %c0_i32_1 : i32, i32, i32
  }
  func.func @transform_4(%arg0: i32) -> (i32, i32) {
    %c0_i32 = arith.constant 0 : i32
    %c0_i32_0 = arith.constant 0 : i32
    %c0_i32_1 = arith.constant 0 : i32
    return %c0_i32, %c0_i32_0 : i32, i32
  }
  func.func @transform_5(%arg0: i32) -> (i32, i32, i32, i32) {
    %c0_i32 = arith.constant 0 : i32
    %c0_i32_0 = arith.constant 0 : i32
    %c0_i32_1 = arith.constant 0 : i32
    %c0_i32_2 = arith.constant 0 : i32
    return %arg0, %c0_i32, %c0_i32_0, %c0_i32_1 : i32, i32, i32, i32
  }
  func.func @transform_6(%arg0: i32) -> (i32, i32, i32) {
    %c0_i32 = arith.constant 0 : i32
    %c0_i32_0 = arith.constant 0 : i32
    %c0_i32_1 = arith.constant 0 : i32
    return %arg0, %c0_i32, %c0_i32_0 : i32, i32, i32
  }
}

module attributes {stable_mosaic.version = 11 : i64} {
  func.func @_conv3x3_bn_kernel(%arg0: i32, %arg1: memref<1x16x16x8xf32, #tpu.memory_space<vmem>>, %arg2: memref<1x8xf32, #tpu.memory_space<vmem>>, %arg3: memref<1x8xf32, #tpu.memory_space<vmem>>, %arg4: memref<9x8x8xf32, #tpu.memory_space<vmem>>, %arg5: memref<1x8xf32, #tpu.memory_space<vmem>>, %arg6: memref<1x16x16x8xf32, #tpu.memory_space<vmem>>, %arg7: memref<1x2x8xf32, #tpu.memory_space<vmem>>, %arg8: memref<1x18x18x8xf32, #tpu.memory_space<vmem>>) attributes {dimension_semantics = [#tpu.dimension_semantics<parallel>], iteration_bounds = array<i64: 2>, scalar_prefetch = 0 : i64, scratch_operands = 1 : i64, tpu.core_type = #tpu.core_type<tc>, window_params = [{transform_indices = @transform_0, window_bounds = array<i64: 1, 16, 16, 8>}, {pipeline_mode = #tpu.pipeline_mode<synchronous>, transform_indices = @transform_1, window_bounds = array<i64: 1, 8>}, {pipeline_mode = #tpu.pipeline_mode<synchronous>, transform_indices = @transform_2, window_bounds = array<i64: 1, 8>}, {pipeline_mode = #tpu.pipeline_mode<synchronous>, transform_indices = @transform_3, window_bounds = array<i64: 9, 8, 8>}, {pipeline_mode = #tpu.pipeline_mode<synchronous>, transform_indices = @transform_4, window_bounds = array<i64: 1, 8>}, {transform_indices = @transform_5, window_bounds = array<i64: 1, 16, 16, 8>}, {transform_indices = @transform_6, window_bounds = array<i64: 1, 2, 8>}]} {
    %c0 = arith.constant 0 : index
    %c0_0 = arith.constant 0 : index
    %c0_1 = arith.constant 0 : index
    %c0_2 = arith.constant 0 : index
    %0 = vector.load %arg1[%c0, %c0_0, %c0_1, %c0_2] : memref<1x16x16x8xf32, #tpu.memory_space<vmem>>, vector<1x16x16x8xf32>
    %c0_3 = arith.constant 0 : index
    %c0_4 = arith.constant 0 : index
    %1 = vector.load %arg2[%c0_3, %c0_4] : memref<1x8xf32, #tpu.memory_space<vmem>>, vector<1x8xf32>
    %2 = vector.shape_cast %1 : vector<1x8xf32> to vector<1x1x1x8xf32>
    %3 = vector.broadcast %2 : vector<1x1x1x8xf32> to vector<1x16x16x8xf32>
    %4 = arith.mulf %0, %3 : vector<1x16x16x8xf32>
    %c0_5 = arith.constant 0 : index
    %c0_6 = arith.constant 0 : index
    %5 = vector.load %arg3[%c0_5, %c0_6] : memref<1x8xf32, #tpu.memory_space<vmem>>, vector<1x8xf32>
    %6 = vector.shape_cast %5 : vector<1x8xf32> to vector<1x1x1x8xf32>
    %7 = vector.broadcast %6 : vector<1x1x1x8xf32> to vector<1x16x16x8xf32>
    %8 = arith.addf %4, %7 : vector<1x16x16x8xf32>
    %cst = arith.constant 0.000000e+00 : f32
    %9 = vector.broadcast %cst : f32 to vector<1x16x16x8xf32>
    %10 = arith.cmpf ogt, %8, %9 : vector<1x16x16x8xf32>
    %cst_7 = arith.constant 0.00999999977 : f32
    %11 = vector.broadcast %cst_7 : f32 to vector<1x16x16x8xf32>
    %12 = arith.mulf %11, %8 : vector<1x16x16x8xf32>
    %13 = arith.select %10, %8, %12 : vector<1x16x16x8xi1>, vector<1x16x16x8xf32>
    %cst_8 = arith.constant 0.000000e+00 : f32
    %14 = vector.broadcast %cst_8 : f32 to vector<1x1x18x8xf32>
    %cst_9 = arith.constant 0.000000e+00 : f32
    %15 = vector.broadcast %cst_9 : f32 to vector<1x18x1x8xf32>
    %c0_10 = arith.constant 0 : index
    %c0_11 = arith.constant 0 : index
    %c0_12 = arith.constant 0 : index
    %c0_13 = arith.constant 0 : index
    %16 = vector.load %arg8[%c0_10, %c0_11, %c0_12, %c0_13] : memref<1x18x18x8xf32, #tpu.memory_space<vmem>>, vector<1x1x18x8xf32>
    tpu.vector_store %arg8[%c0_10, %c0_11, %c0_12, %c0_13], %14 {strides = array<i32>} : memref<1x18x18x8xf32, #tpu.memory_space<vmem>>, vector<1x1x18x8xf32>,
    %c0_14 = arith.constant 0 : index
    %c17 = arith.constant 17 : index
    %c0_15 = arith.constant 0 : index
    %c0_16 = arith.constant 0 : index
    %17 = vector.load %arg8[%c0_14, %c17, %c0_15, %c0_16] : memref<1x18x18x8xf32, #tpu.memory_space<vmem>>, vector<1x1x18x8xf32>
    tpu.vector_store %arg8[%c0_14, %c17, %c0_15, %c0_16], %14 {strides = array<i32>} : memref<1x18x18x8xf32, #tpu.memory_space<vmem>>, vector<1x1x18x8xf32>,
    %c0_17 = arith.constant 0 : index
    %c0_18 = arith.constant 0 : index
    %c0_19 = arith.constant 0 : index
    %c0_20 = arith.constant 0 : index
    %18 = vector.load %arg8[%c0_17, %c0_18, %c0_19, %c0_20] : memref<1x18x18x8xf32, #tpu.memory_space<vmem>>, vector<1x18x1x8xf32>
    tpu.vector_store %arg8[%c0_17, %c0_18, %c0_19, %c0_20], %15 {strides = array<i32>} : memref<1x18x18x8xf32, #tpu.memory_space<vmem>>, vector<1x18x1x8xf32>,
    %c0_21 = arith.constant 0 : index
    %c0_22 = arith.constant 0 : index
    %c17_23 = arith.constant 17 : index
    %c0_24 = arith.constant 0 : index
    %19 = vector.load %arg8[%c0_21, %c0_22, %c17_23, %c0_24] : memref<1x18x18x8xf32, #tpu.memory_space<vmem>>, vector<1x18x1x8xf32>
    tpu.vector_store %arg8[%c0_21, %c0_22, %c17_23, %c0_24], %15 {strides = array<i32>} : memref<1x18x18x8xf32, #tpu.memory_space<vmem>>, vector<1x18x1x8xf32>,
    %c0_25 = arith.constant 0 : index
    %c1 = arith.constant 1 : index
    %c1_26 = arith.constant 1 : index
    %c0_27 = arith.constant 0 : index
    %20 = vector.load %arg8[%c0_25, %c1, %c1_26, %c0_27] : memref<1x18x18x8xf32, #tpu.memory_space<vmem>>, vector<1x16x16x8xf32>
    tpu.vector_store %arg8[%c0_25, %c1, %c1_26, %c0_27], %13 {strides = array<i32>} : memref<1x18x18x8xf32, #tpu.memory_space<vmem>>, vector<1x16x16x8xf32>,
    %cst_28 = arith.constant 0.000000e+00 : f32
    %21 = vector.broadcast %cst_28 : f32 to vector<256x8xf32>
    %c0_29 = arith.constant 0 : index
    %c0_30 = arith.constant 0 : index
    %c0_31 = arith.constant 0 : index
    %c0_32 = arith.constant 0 : index
    %22 = vector.load %arg8[%c0_29, %c0_30, %c0_31, %c0_32] : memref<1x18x18x8xf32, #tpu.memory_space<vmem>>, vector<1x16x16x8xf32>
    %23 = vector.shape_cast %22 : vector<1x16x16x8xf32> to vector<256x8xf32>
    %c0_33 = arith.constant 0 : index
    %c0_34 = arith.constant 0 : index
    %c0_35 = arith.constant 0 : index
    %24 = vector.load %arg4[%c0_33, %c0_34, %c0_35] : memref<9x8x8xf32, #tpu.memory_space<vmem>>, vector<1x8x8xf32>
    %25 = vector.shape_cast %24 : vector<1x8x8xf32> to vector<8x8xf32>
    %cst_36 = arith.constant dense<0.000000e+00> : vector<256x8xf32>
    %26 = tpu.matmul %23, %25, %cst_36 {dimension_numbers = #tpu.dot_dimension_numbers<[1], [0], [0], [1], [0, 0, 1, 1], [], []>} : vector<256x8xf32>, vector<8x8xf32>, vector<256x8xf32> -> vector<256x8xf32>
    %27 = arith.addf %21, %26 : vector<256x8xf32>
    %c0_37 = arith.constant 0 : index
    %c0_38 = arith.constant 0 : index
    %c1_39 = arith.constant 1 : index
    %c0_40 = arith.constant 0 : index
    %28 = vector.load %arg8[%c0_37, %c0_38, %c1_39, %c0_40] : memref<1x18x18x8xf32, #tpu.memory_space<vmem>>, vector<1x16x16x8xf32>
    %29 = vector.shape_cast %28 : vector<1x16x16x8xf32> to vector<256x8xf32>
    %c1_41 = arith.constant 1 : index
    %c0_42 = arith.constant 0 : index
    %c0_43 = arith.constant 0 : index
    %30 = vector.load %arg4[%c1_41, %c0_42, %c0_43] : memref<9x8x8xf32, #tpu.memory_space<vmem>>, vector<1x8x8xf32>
    %31 = vector.shape_cast %30 : vector<1x8x8xf32> to vector<8x8xf32>
    %cst_44 = arith.constant dense<0.000000e+00> : vector<256x8xf32>
    %32 = tpu.matmul %29, %31, %cst_44 {dimension_numbers = #tpu.dot_dimension_numbers<[1], [0], [0], [1], [0, 0, 1, 1], [], []>} : vector<256x8xf32>, vector<8x8xf32>, vector<256x8xf32> -> vector<256x8xf32>
    %33 = arith.addf %27, %32 : vector<256x8xf32>
    %c0_45 = arith.constant 0 : index
    %c0_46 = arith.constant 0 : index
    %c2 = arith.constant 2 : index
    %c0_47 = arith.constant 0 : index
    %34 = vector.load %arg8[%c0_45, %c0_46, %c2, %c0_47] : memref<1x18x18x8xf32, #tpu.memory_space<vmem>>, vector<1x16x16x8xf32>
    %35 = vector.shape_cast %34 : vector<1x16x16x8xf32> to vector<256x8xf32>
    %c2_48 = arith.constant 2 : index
    %c0_49 = arith.constant 0 : index
    %c0_50 = arith.constant 0 : index
    %36 = vector.load %arg4[%c2_48, %c0_49, %c0_50] : memref<9x8x8xf32, #tpu.memory_space<vmem>>, vector<1x8x8xf32>
    %37 = vector.shape_cast %36 : vector<1x8x8xf32> to vector<8x8xf32>
    %cst_51 = arith.constant dense<0.000000e+00> : vector<256x8xf32>
    %38 = tpu.matmul %35, %37, %cst_51 {dimension_numbers = #tpu.dot_dimension_numbers<[1], [0], [0], [1], [0, 0, 1, 1], [], []>} : vector<256x8xf32>, vector<8x8xf32>, vector<256x8xf32> -> vector<256x8xf32>
    %39 = arith.addf %33, %38 : vector<256x8xf32>
    %c0_52 = arith.constant 0 : index
    %c1_53 = arith.constant 1 : index
    %c0_54 = arith.constant 0 : index
    %c0_55 = arith.constant 0 : index
    %40 = vector.load %arg8[%c0_52, %c1_53, %c0_54, %c0_55] : memref<1x18x18x8xf32, #tpu.memory_space<vmem>>, vector<1x16x16x8xf32>
    %41 = vector.shape_cast %40 : vector<1x16x16x8xf32> to vector<256x8xf32>
    %c3 = arith.constant 3 : index
    %c0_56 = arith.constant 0 : index
    %c0_57 = arith.constant 0 : index
    %42 = vector.load %arg4[%c3, %c0_56, %c0_57] : memref<9x8x8xf32, #tpu.memory_space<vmem>>, vector<1x8x8xf32>
    %43 = vector.shape_cast %42 : vector<1x8x8xf32> to vector<8x8xf32>
    %cst_58 = arith.constant dense<0.000000e+00> : vector<256x8xf32>
    %44 = tpu.matmul %41, %43, %cst_58 {dimension_numbers = #tpu.dot_dimension_numbers<[1], [0], [0], [1], [0, 0, 1, 1], [], []>} : vector<256x8xf32>, vector<8x8xf32>, vector<256x8xf32> -> vector<256x8xf32>
    %45 = arith.addf %39, %44 : vector<256x8xf32>
    %c0_59 = arith.constant 0 : index
    %c1_60 = arith.constant 1 : index
    %c1_61 = arith.constant 1 : index
    %c0_62 = arith.constant 0 : index
    %46 = vector.load %arg8[%c0_59, %c1_60, %c1_61, %c0_62] : memref<1x18x18x8xf32, #tpu.memory_space<vmem>>, vector<1x16x16x8xf32>
    %47 = vector.shape_cast %46 : vector<1x16x16x8xf32> to vector<256x8xf32>
    %c4 = arith.constant 4 : index
    %c0_63 = arith.constant 0 : index
    %c0_64 = arith.constant 0 : index
    %48 = vector.load %arg4[%c4, %c0_63, %c0_64] : memref<9x8x8xf32, #tpu.memory_space<vmem>>, vector<1x8x8xf32>
    %49 = vector.shape_cast %48 : vector<1x8x8xf32> to vector<8x8xf32>
    %cst_65 = arith.constant dense<0.000000e+00> : vector<256x8xf32>
    %50 = tpu.matmul %47, %49, %cst_65 {dimension_numbers = #tpu.dot_dimension_numbers<[1], [0], [0], [1], [0, 0, 1, 1], [], []>} : vector<256x8xf32>, vector<8x8xf32>, vector<256x8xf32> -> vector<256x8xf32>
    %51 = arith.addf %45, %50 : vector<256x8xf32>
    %c0_66 = arith.constant 0 : index
    %c1_67 = arith.constant 1 : index
    %c2_68 = arith.constant 2 : index
    %c0_69 = arith.constant 0 : index
    %52 = vector.load %arg8[%c0_66, %c1_67, %c2_68, %c0_69] : memref<1x18x18x8xf32, #tpu.memory_space<vmem>>, vector<1x16x16x8xf32>
    %53 = vector.shape_cast %52 : vector<1x16x16x8xf32> to vector<256x8xf32>
    %c5 = arith.constant 5 : index
    %c0_70 = arith.constant 0 : index
    %c0_71 = arith.constant 0 : index
    %54 = vector.load %arg4[%c5, %c0_70, %c0_71] : memref<9x8x8xf32, #tpu.memory_space<vmem>>, vector<1x8x8xf32>
    %55 = vector.shape_cast %54 : vector<1x8x8xf32> to vector<8x8xf32>
    %cst_72 = arith.constant dense<0.000000e+00> : vector<256x8xf32>
    %56 = tpu.matmul %53, %55, %cst_72 {dimension_numbers = #tpu.dot_dimension_numbers<[1], [0], [0], [1], [0, 0, 1, 1], [], []>} : vector<256x8xf32>, vector<8x8xf32>, vector<256x8xf32> -> vector<256x8xf32>
    %57 = arith.addf %51, %56 : vector<256x8xf32>
    %c0_73 = arith.constant 0 : index
    %c2_74 = arith.constant 2 : index
    %c0_75 = arith.constant 0 : index
    %c0_76 = arith.constant 0 : index
    %58 = vector.load %arg8[%c0_73, %c2_74, %c0_75, %c0_76] : memref<1x18x18x8xf32, #tpu.memory_space<vmem>>, vector<1x16x16x8xf32>
    %59 = vector.shape_cast %58 : vector<1x16x16x8xf32> to vector<256x8xf32>
    %c6 = arith.constant 6 : index
    %c0_77 = arith.constant 0 : index
    %c0_78 = arith.constant 0 : index
    %60 = vector.load %arg4[%c6, %c0_77, %c0_78] : memref<9x8x8xf32, #tpu.memory_space<vmem>>, vector<1x8x8xf32>
    %61 = vector.shape_cast %60 : vector<1x8x8xf32> to vector<8x8xf32>
    %cst_79 = arith.constant dense<0.000000e+00> : vector<256x8xf32>
    %62 = tpu.matmul %59, %61, %cst_79 {dimension_numbers = #tpu.dot_dimension_numbers<[1], [0], [0], [1], [0, 0, 1, 1], [], []>} : vector<256x8xf32>, vector<8x8xf32>, vector<256x8xf32> -> vector<256x8xf32>
    %63 = arith.addf %57, %62 : vector<256x8xf32>
    %c0_80 = arith.constant 0 : index
    %c2_81 = arith.constant 2 : index
    %c1_82 = arith.constant 1 : index
    %c0_83 = arith.constant 0 : index
    %64 = vector.load %arg8[%c0_80, %c2_81, %c1_82, %c0_83] : memref<1x18x18x8xf32, #tpu.memory_space<vmem>>, vector<1x16x16x8xf32>
    %65 = vector.shape_cast %64 : vector<1x16x16x8xf32> to vector<256x8xf32>
    %c7 = arith.constant 7 : index
    %c0_84 = arith.constant 0 : index
    %c0_85 = arith.constant 0 : index
    %66 = vector.load %arg4[%c7, %c0_84, %c0_85] : memref<9x8x8xf32, #tpu.memory_space<vmem>>, vector<1x8x8xf32>
    %67 = vector.shape_cast %66 : vector<1x8x8xf32> to vector<8x8xf32>
    %cst_86 = arith.constant dense<0.000000e+00> : vector<256x8xf32>
    %68 = tpu.matmul %65, %67, %cst_86 {dimension_numbers = #tpu.dot_dimension_numbers<[1], [0], [0], [1], [0, 0, 1, 1], [], []>} : vector<256x8xf32>, vector<8x8xf32>, vector<256x8xf32> -> vector<256x8xf32>
    %69 = arith.addf %63, %68 : vector<256x8xf32>
    %c0_87 = arith.constant 0 : index
    %c2_88 = arith.constant 2 : index
    %c2_89 = arith.constant 2 : index
    %c0_90 = arith.constant 0 : index
    %70 = vector.load %arg8[%c0_87, %c2_88, %c2_89, %c0_90] : memref<1x18x18x8xf32, #tpu.memory_space<vmem>>, vector<1x16x16x8xf32>
    %71 = vector.shape_cast %70 : vector<1x16x16x8xf32> to vector<256x8xf32>
    %c8 = arith.constant 8 : index
    %c0_91 = arith.constant 0 : index
    %c0_92 = arith.constant 0 : index
    %72 = vector.load %arg4[%c8, %c0_91, %c0_92] : memref<9x8x8xf32, #tpu.memory_space<vmem>>, vector<1x8x8xf32>
    %73 = vector.shape_cast %72 : vector<1x8x8xf32> to vector<8x8xf32>
    %cst_93 = arith.constant dense<0.000000e+00> : vector<256x8xf32>
    %74 = tpu.matmul %71, %73, %cst_93 {dimension_numbers = #tpu.dot_dimension_numbers<[1], [0], [0], [1], [0, 0, 1, 1], [], []>} : vector<256x8xf32>, vector<8x8xf32>, vector<256x8xf32> -> vector<256x8xf32>
    %75 = arith.addf %69, %74 : vector<256x8xf32>
    %c0_94 = arith.constant 0 : index
    %c0_95 = arith.constant 0 : index
    %76 = vector.load %arg5[%c0_94, %c0_95] : memref<1x8xf32, #tpu.memory_space<vmem>>, vector<1x8xf32>
    %77 = vector.broadcast %76 : vector<1x8xf32> to vector<256x8xf32>
    %78 = arith.addf %75, %77 : vector<256x8xf32>
    %cst_96 = arith.constant dense<0.000000e+00> : vector<8xf32>
    %79 = vector.multi_reduction <add>, %78, %cst_96 [0] : vector<256x8xf32> to vector<8xf32>
    %80 = vector.shape_cast %79 : vector<8xf32> to vector<1x8xf32>
    %81 = vector.shape_cast %80 : vector<1x8xf32> to vector<1x1x8xf32>
    %c0_97 = arith.constant 0 : index
    %c0_98 = arith.constant 0 : index
    %c0_99 = arith.constant 0 : index
    %82 = vector.load %arg7[%c0_97, %c0_98, %c0_99] : memref<1x2x8xf32, #tpu.memory_space<vmem>>, vector<1x1x8xf32>
    tpu.vector_store %arg7[%c0_97, %c0_98, %c0_99], %81 {strides = array<i32>} : memref<1x2x8xf32, #tpu.memory_space<vmem>>, vector<1x1x8xf32>,
    %83 = arith.mulf %78, %78 : vector<256x8xf32>
    %cst_100 = arith.constant dense<0.000000e+00> : vector<8xf32>
    %84 = vector.multi_reduction <add>, %83, %cst_100 [0] : vector<256x8xf32> to vector<8xf32>
    %85 = vector.shape_cast %84 : vector<8xf32> to vector<1x8xf32>
    %86 = vector.shape_cast %85 : vector<1x8xf32> to vector<1x1x8xf32>
    %c0_101 = arith.constant 0 : index
    %c1_102 = arith.constant 1 : index
    %c0_103 = arith.constant 0 : index
    %87 = vector.load %arg7[%c0_101, %c1_102, %c0_103] : memref<1x2x8xf32, #tpu.memory_space<vmem>>, vector<1x1x8xf32>
    tpu.vector_store %arg7[%c0_101, %c1_102, %c0_103], %86 {strides = array<i32>} : memref<1x2x8xf32, #tpu.memory_space<vmem>>, vector<1x1x8xf32>,
    %88 = vector.shape_cast %78 : vector<256x8xf32> to vector<1x16x16x8xf32>
    %c0_104 = arith.constant 0 : index
    %c0_105 = arith.constant 0 : index
    %c0_106 = arith.constant 0 : index
    %c0_107 = arith.constant 0 : index
    %89 = vector.load %arg6[%c0_104, %c0_105, %c0_106, %c0_107] : memref<1x16x16x8xf32, #tpu.memory_space<vmem>>, vector<1x16x16x8xf32>
    tpu.vector_store %arg6[%c0_104, %c0_105, %c0_106, %c0_107], %88 {strides = array<i32>} : memref<1x16x16x8xf32, #tpu.memory_space<vmem>>, vector<1x16x16x8xf32>,
    return
  }
  func.func @transform_0(%arg0: i32) -> (i32, i32, i32, i32) {
    %c0_i32 = arith.constant 0 : i32
    %c0_i32_0 = arith.constant 0 : i32
    %c0_i32_1 = arith.constant 0 : i32
    %c0_i32_2 = arith.constant 0 : i32
    return %arg0, %c0_i32, %c0_i32_0, %c0_i32_1 : i32, i32, i32, i32
  }
  func.func @transform_1(%arg0: i32) -> (i32, i32) {
    %c0_i32 = arith.constant 0 : i32
    %c0_i32_0 = arith.constant 0 : i32
    %c0_i32_1 = arith.constant 0 : i32
    return %c0_i32, %c0_i32_0 : i32, i32
  }
  func.func @transform_2(%arg0: i32) -> (i32, i32) {
    %c0_i32 = arith.constant 0 : i32
    %c0_i32_0 = arith.constant 0 : i32
    %c0_i32_1 = arith.constant 0 : i32
    return %c0_i32, %c0_i32_0 : i32, i32
  }
  func.func @transform_3(%arg0: i32) -> (i32, i32, i32) {
    %c0_i32 = arith.constant 0 : i32
    %c0_i32_0 = arith.constant 0 : i32
    %c0_i32_1 = arith.constant 0 : i32
    %c0_i32_2 = arith.constant 0 : i32
    return %c0_i32, %c0_i32_0, %c0_i32_1 : i32, i32, i32
  }
  func.func @transform_4(%arg0: i32) -> (i32, i32) {
    %c0_i32 = arith.constant 0 : i32
    %c0_i32_0 = arith.constant 0 : i32
    %c0_i32_1 = arith.constant 0 : i32
    return %c0_i32, %c0_i32_0 : i32, i32
  }
  func.func @transform_5(%arg0: i32) -> (i32, i32, i32, i32) {
    %c0_i32 = arith.constant 0 : i32
    %c0_i32_0 = arith.constant 0 : i32
    %c0_i32_1 = arith.constant 0 : i32
    %c0_i32_2 = arith.constant 0 : i32
    return %arg0, %c0_i32, %c0_i32_0, %c0_i32_1 : i32, i32, i32, i32
  }
  func.func @transform_6(%arg0: i32) -> (i32, i32, i32) {
    %c0_i32 = arith.constant 0 : i32
    %c0_i32_0 = arith.constant 0 : i32
    %c0_i32_1 = arith.constant 0 : i32
    return %arg0, %c0_i32, %c0_i32_0 : i32, i32, i32
  }
}

module attributes {stable_mosaic.version = 11 : i64} {
  func.func @_deconv_bn_kernel(%arg0: i32, %arg1: memref<1x16x16x8xf32, #tpu.memory_space<vmem>>, %arg2: memref<1x8xf32, #tpu.memory_space<vmem>>, %arg3: memref<1x8xf32, #tpu.memory_space<vmem>>, %arg4: memref<9x8x4xf32, #tpu.memory_space<vmem>>, %arg5: memref<1x16xf32, #tpu.memory_space<vmem>>, %arg6: memref<1x16x16x16xf32, #tpu.memory_space<vmem>>, %arg7: memref<1x2x16xf32, #tpu.memory_space<vmem>>, %arg8: memref<1x17x17x8xf32, #tpu.memory_space<vmem>>) attributes {dimension_semantics = [#tpu.dimension_semantics<parallel>], iteration_bounds = array<i64: 2>, scalar_prefetch = 0 : i64, scratch_operands = 1 : i64, tpu.core_type = #tpu.core_type<tc>, window_params = [{transform_indices = @transform_0, window_bounds = array<i64: 1, 16, 16, 8>}, {pipeline_mode = #tpu.pipeline_mode<synchronous>, transform_indices = @transform_1, window_bounds = array<i64: 1, 8>}, {pipeline_mode = #tpu.pipeline_mode<synchronous>, transform_indices = @transform_2, window_bounds = array<i64: 1, 8>}, {pipeline_mode = #tpu.pipeline_mode<synchronous>, transform_indices = @transform_3, window_bounds = array<i64: 9, 8, 4>}, {pipeline_mode = #tpu.pipeline_mode<synchronous>, transform_indices = @transform_4, window_bounds = array<i64: 1, 16>}, {transform_indices = @transform_5, window_bounds = array<i64: 1, 16, 16, 16>}, {transform_indices = @transform_6, window_bounds = array<i64: 1, 2, 16>}]} {
    %c0 = arith.constant 0 : index
    %c0_0 = arith.constant 0 : index
    %c0_1 = arith.constant 0 : index
    %c0_2 = arith.constant 0 : index
    %0 = vector.load %arg1[%c0, %c0_0, %c0_1, %c0_2] : memref<1x16x16x8xf32, #tpu.memory_space<vmem>>, vector<1x16x16x8xf32>
    %c0_3 = arith.constant 0 : index
    %c0_4 = arith.constant 0 : index
    %1 = vector.load %arg2[%c0_3, %c0_4] : memref<1x8xf32, #tpu.memory_space<vmem>>, vector<1x8xf32>
    %2 = vector.shape_cast %1 : vector<1x8xf32> to vector<1x1x1x8xf32>
    %3 = vector.broadcast %2 : vector<1x1x1x8xf32> to vector<1x16x16x8xf32>
    %4 = arith.mulf %0, %3 : vector<1x16x16x8xf32>
    %c0_5 = arith.constant 0 : index
    %c0_6 = arith.constant 0 : index
    %5 = vector.load %arg3[%c0_5, %c0_6] : memref<1x8xf32, #tpu.memory_space<vmem>>, vector<1x8xf32>
    %6 = vector.shape_cast %5 : vector<1x8xf32> to vector<1x1x1x8xf32>
    %7 = vector.broadcast %6 : vector<1x1x1x8xf32> to vector<1x16x16x8xf32>
    %8 = arith.addf %4, %7 : vector<1x16x16x8xf32>
    %cst = arith.constant 0.000000e+00 : f32
    %9 = vector.broadcast %cst : f32 to vector<1x16x16x8xf32>
    %10 = arith.cmpf ogt, %8, %9 : vector<1x16x16x8xf32>
    %cst_7 = arith.constant 0.00999999977 : f32
    %11 = vector.broadcast %cst_7 : f32 to vector<1x16x16x8xf32>
    %12 = arith.mulf %11, %8 : vector<1x16x16x8xf32>
    %13 = arith.select %10, %8, %12 : vector<1x16x16x8xi1>, vector<1x16x16x8xf32>
    %cst_8 = arith.constant 0.000000e+00 : f32
    %14 = vector.broadcast %cst_8 : f32 to vector<1x1x17x8xf32>
    %c0_9 = arith.constant 0 : index
    %c16 = arith.constant 16 : index
    %c0_10 = arith.constant 0 : index
    %c0_11 = arith.constant 0 : index
    %15 = vector.load %arg8[%c0_9, %c16, %c0_10, %c0_11] : memref<1x17x17x8xf32, #tpu.memory_space<vmem>>, vector<1x1x17x8xf32>
    tpu.vector_store %arg8[%c0_9, %c16, %c0_10, %c0_11], %14 {strides = array<i32>} : memref<1x17x17x8xf32, #tpu.memory_space<vmem>>, vector<1x1x17x8xf32>,
    %cst_12 = arith.constant 0.000000e+00 : f32
    %16 = vector.broadcast %cst_12 : f32 to vector<1x17x1x8xf32>
    %c0_13 = arith.constant 0 : index
    %c0_14 = arith.constant 0 : index
    %c16_15 = arith.constant 16 : index
    %c0_16 = arith.constant 0 : index
    %17 = vector.load %arg8[%c0_13, %c0_14, %c16_15, %c0_16] : memref<1x17x17x8xf32, #tpu.memory_space<vmem>>, vector<1x17x1x8xf32>
    tpu.vector_store %arg8[%c0_13, %c0_14, %c16_15, %c0_16], %16 {strides = array<i32>} : memref<1x17x17x8xf32, #tpu.memory_space<vmem>>, vector<1x17x1x8xf32>,
    %c0_17 = arith.constant 0 : index
    %c0_18 = arith.constant 0 : index
    %c0_19 = arith.constant 0 : index
    %c0_20 = arith.constant 0 : index
    %18 = vector.load %arg8[%c0_17, %c0_18, %c0_19, %c0_20] : memref<1x17x17x8xf32, #tpu.memory_space<vmem>>, vector<1x16x16x8xf32>
    tpu.vector_store %arg8[%c0_17, %c0_18, %c0_19, %c0_20], %13 {strides = array<i32>} : memref<1x17x17x8xf32, #tpu.memory_space<vmem>>, vector<1x16x16x8xf32>,
    %19 = vector.shape_cast %13 : vector<1x16x16x8xf32> to vector<256x8xf32>
    %c0_21 = arith.constant 0 : index
    %c0_22 = arith.constant 0 : index
    %c1 = arith.constant 1 : index
    %c0_23 = arith.constant 0 : index
    %20 = vector.load %arg8[%c0_21, %c0_22, %c1, %c0_23] : memref<1x17x17x8xf32, #tpu.memory_space<vmem>>, vector<1x16x16x8xf32>
    %21 = vector.shape_cast %20 : vector<1x16x16x8xf32> to vector<256x8xf32>
    %c0_24 = arith.constant 0 : index
    %c1_25 = arith.constant 1 : index
    %c0_26 = arith.constant 0 : index
    %c0_27 = arith.constant 0 : index
    %22 = vector.load %arg8[%c0_24, %c1_25, %c0_26, %c0_27] : memref<1x17x17x8xf32, #tpu.memory_space<vmem>>, vector<1x16x16x8xf32>
    %23 = vector.shape_cast %22 : vector<1x16x16x8xf32> to vector<256x8xf32>
    %c0_28 = arith.constant 0 : index
    %c1_29 = arith.constant 1 : index
    %c1_30 = arith.constant 1 : index
    %c0_31 = arith.constant 0 : index
    %24 = vector.load %arg8[%c0_28, %c1_29, %c1_30, %c0_31] : memref<1x17x17x8xf32, #tpu.memory_space<vmem>>, vector<1x16x16x8xf32>
    %25 = vector.shape_cast %24 : vector<1x16x16x8xf32> to vector<256x8xf32>
    %c4 = arith.constant 4 : index
    %c0_32 = arith.constant 0 : index
    %c0_33 = arith.constant 0 : index
    %26 = vector.load %arg4[%c4, %c0_32, %c0_33] : memref<9x8x4xf32, #tpu.memory_space<vmem>>, vector<1x8x4xf32>
    %27 = vector.shape_cast %26 : vector<1x8x4xf32> to vector<8x4xf32>
    %cst_34 = arith.constant dense<0.000000e+00> : vector<256x4xf32>
    %28 = tpu.matmul %19, %27, %cst_34 {dimension_numbers = #tpu.dot_dimension_numbers<[1], [0], [0], [1], [0, 0, 1, 1], [], []>} : vector<256x8xf32>, vector<8x4xf32>, vector<256x4xf32> -> vector<256x4xf32>
    %c5 = arith.constant 5 : index
    %c0_35 = arith.constant 0 : index
    %c0_36 = arith.constant 0 : index
    %29 = vector.load %arg4[%c5, %c0_35, %c0_36] : memref<9x8x4xf32, #tpu.memory_space<vmem>>, vector<1x8x4xf32>
    %30 = vector.shape_cast %29 : vector<1x8x4xf32> to vector<8x4xf32>
    %cst_37 = arith.constant dense<0.000000e+00> : vector<256x4xf32>
    %31 = tpu.matmul %19, %30, %cst_37 {dimension_numbers = #tpu.dot_dimension_numbers<[1], [0], [0], [1], [0, 0, 1, 1], [], []>} : vector<256x8xf32>, vector<8x4xf32>, vector<256x4xf32> -> vector<256x4xf32>
    %c3 = arith.constant 3 : index
    %c0_38 = arith.constant 0 : index
    %c0_39 = arith.constant 0 : index
    %32 = vector.load %arg4[%c3, %c0_38, %c0_39] : memref<9x8x4xf32, #tpu.memory_space<vmem>>, vector<1x8x4xf32>
    %33 = vector.shape_cast %32 : vector<1x8x4xf32> to vector<8x4xf32>
    %cst_40 = arith.constant dense<0.000000e+00> : vector<256x4xf32>
    %34 = tpu.matmul %21, %33, %cst_40 {dimension_numbers = #tpu.dot_dimension_numbers<[1], [0], [0], [1], [0, 0, 1, 1], [], []>} : vector<256x8xf32>, vector<8x4xf32>, vector<256x4xf32> -> vector<256x4xf32>
    %35 = arith.addf %31, %34 : vector<256x4xf32>
    %c7 = arith.constant 7 : index
    %c0_41 = arith.constant 0 : index
    %c0_42 = arith.constant 0 : index
    %36 = vector.load %arg4[%c7, %c0_41, %c0_42] : memref<9x8x4xf32, #tpu.memory_space<vmem>>, vector<1x8x4xf32>
    %37 = vector.shape_cast %36 : vector<1x8x4xf32> to vector<8x4xf32>
    %cst_43 = arith.constant dense<0.000000e+00> : vector<256x4xf32>
    %38 = tpu.matmul %19, %37, %cst_43 {dimension_numbers = #tpu.dot_dimension_numbers<[1], [0], [0], [1], [0, 0, 1, 1], [], []>} : vector<256x8xf32>, vector<8x4xf32>, vector<256x4xf32> -> vector<256x4xf32>
    %c1_44 = arith.constant 1 : index
    %c0_45 = arith.constant 0 : index
    %c0_46 = arith.constant 0 : index
    %39 = vector.load %arg4[%c1_44, %c0_45, %c0_46] : memref<9x8x4xf32, #tpu.memory_space<vmem>>, vector<1x8x4xf32>
    %40 = vector.shape_cast %39 : vector<1x8x4xf32> to vector<8x4xf32>
    %cst_47 = arith.constant dense<0.000000e+00> : vector<256x4xf32>
    %41 = tpu.matmul %23, %40, %cst_47 {dimension_numbers = #tpu.dot_dimension_numbers<[1], [0], [0], [1], [0, 0, 1, 1], [], []>} : vector<256x8xf32>, vector<8x4xf32>, vector<256x4xf32> -> vector<256x4xf32>
    %42 = arith.addf %38, %41 : vector<256x4xf32>
    %c8 = arith.constant 8 : index
    %c0_48 = arith.constant 0 : index
    %c0_49 = arith.constant 0 : index
    %43 = vector.load %arg4[%c8, %c0_48, %c0_49] : memref<9x8x4xf32, #tpu.memory_space<vmem>>, vector<1x8x4xf32>
    %44 = vector.shape_cast %43 : vector<1x8x4xf32> to vector<8x4xf32>
    %cst_50 = arith.constant dense<0.000000e+00> : vector<256x4xf32>
    %45 = tpu.matmul %19, %44, %cst_50 {dimension_numbers = #tpu.dot_dimension_numbers<[1], [0], [0], [1], [0, 0, 1, 1], [], []>} : vector<256x8xf32>, vector<8x4xf32>, vector<256x4xf32> -> vector<256x4xf32>
    %c6 = arith.constant 6 : index
    %c0_51 = arith.constant 0 : index
    %c0_52 = arith.constant 0 : index
    %46 = vector.load %arg4[%c6, %c0_51, %c0_52] : memref<9x8x4xf32, #tpu.memory_space<vmem>>, vector<1x8x4xf32>
    %47 = vector.shape_cast %46 : vector<1x8x4xf32> to vector<8x4xf32>
    %cst_53 = arith.constant dense<0.000000e+00> : vector<256x4xf32>
    %48 = tpu.matmul %21, %47, %cst_53 {dimension_numbers = #tpu.dot_dimension_numbers<[1], [0], [0], [1], [0, 0, 1, 1], [], []>} : vector<256x8xf32>, vector<8x4xf32>, vector<256x4xf32> -> vector<256x4xf32>
    %49 = arith.addf %45, %48 : vector<256x4xf32>
    %c2 = arith.constant 2 : index
    %c0_54 = arith.constant 0 : index
    %c0_55 = arith.constant 0 : index
    %50 = vector.load %arg4[%c2, %c0_54, %c0_55] : memref<9x8x4xf32, #tpu.memory_space<vmem>>, vector<1x8x4xf32>
    %51 = vector.shape_cast %50 : vector<1x8x4xf32> to vector<8x4xf32>
    %cst_56 = arith.constant dense<0.000000e+00> : vector<256x4xf32>
    %52 = tpu.matmul %23, %51, %cst_56 {dimension_numbers = #tpu.dot_dimension_numbers<[1], [0], [0], [1], [0, 0, 1, 1], [], []>} : vector<256x8xf32>, vector<8x4xf32>, vector<256x4xf32> -> vector<256x4xf32>
    %53 = arith.addf %49, %52 : vector<256x4xf32>
    %c0_57 = arith.constant 0 : index
    %c0_58 = arith.constant 0 : index
    %c0_59 = arith.constant 0 : index
    %54 = vector.load %arg4[%c0_57, %c0_58, %c0_59] : memref<9x8x4xf32, #tpu.memory_space<vmem>>, vector<1x8x4xf32>
    %55 = vector.shape_cast %54 : vector<1x8x4xf32> to vector<8x4xf32>
    %cst_60 = arith.constant dense<0.000000e+00> : vector<256x4xf32>
    %56 = tpu.matmul %25, %55, %cst_60 {dimension_numbers = #tpu.dot_dimension_numbers<[1], [0], [0], [1], [0, 0, 1, 1], [], []>} : vector<256x8xf32>, vector<8x4xf32>, vector<256x4xf32> -> vector<256x4xf32>
    %57 = arith.addf %53, %56 : vector<256x4xf32>
    %58 = tpu.concatenate %28, %35, %42, %57 in 1 : vector<256x4xf32>, vector<256x4xf32>, vector<256x4xf32>, vector<256x4xf32> -> vector<256x16xf32>
    %c0_61 = arith.constant 0 : index
    %c0_62 = arith.constant 0 : index
    %59 = vector.load %arg5[%c0_61, %c0_62] : memref<1x16xf32, #tpu.memory_space<vmem>>, vector<1x16xf32>
    %60 = vector.broadcast %59 : vector<1x16xf32> to vector<256x16xf32>
    %61 = arith.addf %58, %60 : vector<256x16xf32>
    %cst_63 = arith.constant dense<0.000000e+00> : vector<16xf32>
    %62 = vector.multi_reduction <add>, %61, %cst_63 [0] : vector<256x16xf32> to vector<16xf32>
    %63 = vector.shape_cast %62 : vector<16xf32> to vector<1x16xf32>
    %64 = vector.shape_cast %63 : vector<1x16xf32> to vector<1x1x16xf32>
    %c0_64 = arith.constant 0 : index
    %c0_65 = arith.constant 0 : index
    %c0_66 = arith.constant 0 : index
    %65 = vector.load %arg7[%c0_64, %c0_65, %c0_66] : memref<1x2x16xf32, #tpu.memory_space<vmem>>, vector<1x1x16xf32>
    tpu.vector_store %arg7[%c0_64, %c0_65, %c0_66], %64 {strides = array<i32>} : memref<1x2x16xf32, #tpu.memory_space<vmem>>, vector<1x1x16xf32>,
    %66 = arith.mulf %61, %61 : vector<256x16xf32>
    %cst_67 = arith.constant dense<0.000000e+00> : vector<16xf32>
    %67 = vector.multi_reduction <add>, %66, %cst_67 [0] : vector<256x16xf32> to vector<16xf32>
    %68 = vector.shape_cast %67 : vector<16xf32> to vector<1x16xf32>
    %69 = vector.shape_cast %68 : vector<1x16xf32> to vector<1x1x16xf32>
    %c0_68 = arith.constant 0 : index
    %c1_69 = arith.constant 1 : index
    %c0_70 = arith.constant 0 : index
    %70 = vector.load %arg7[%c0_68, %c1_69, %c0_70] : memref<1x2x16xf32, #tpu.memory_space<vmem>>, vector<1x1x16xf32>
    tpu.vector_store %arg7[%c0_68, %c1_69, %c0_70], %69 {strides = array<i32>} : memref<1x2x16xf32, #tpu.memory_space<vmem>>, vector<1x1x16xf32>,
    %71 = vector.shape_cast %61 : vector<256x16xf32> to vector<1x16x16x16xf32>
    %c0_71 = arith.constant 0 : index
    %c0_72 = arith.constant 0 : index
    %c0_73 = arith.constant 0 : index
    %c0_74 = arith.constant 0 : index
    %72 = vector.load %arg6[%c0_71, %c0_72, %c0_73, %c0_74] : memref<1x16x16x16xf32, #tpu.memory_space<vmem>>, vector<1x16x16x16xf32>
    tpu.vector_store %arg6[%c0_71, %c0_72, %c0_73, %c0_74], %71 {strides = array<i32>} : memref<1x16x16x16xf32, #tpu.memory_space<vmem>>, vector<1x16x16x16xf32>,
    return
  }
  func.func @transform_0(%arg0: i32) -> (i32, i32, i32, i32) {
    %c0_i32 = arith.constant 0 : i32
    %c0_i32_0 = arith.constant 0 : i32
    %c0_i32_1 = arith.constant 0 : i32
    %c0_i32_2 = arith.constant 0 : i32
    return %arg0, %c0_i32, %c0_i32_0, %c0_i32_1 : i32, i32, i32, i32
  }
  func.func @transform_1(%arg0: i32) -> (i32, i32) {
    %c0_i32 = arith.constant 0 : i32
    %c0_i32_0 = arith.constant 0 : i32
    %c0_i32_1 = arith.constant 0 : i32
    return %c0_i32, %c0_i32_0 : i32, i32
  }
  func.func @transform_2(%arg0: i32) -> (i32, i32) {
    %c0_i32 = arith.constant 0 : i32
    %c0_i32_0 = arith.constant 0 : i32
    %c0_i32_1 = arith.constant 0 : i32
    return %c0_i32, %c0_i32_0 : i32, i32
  }
  func.func @transform_3(%arg0: i32) -> (i32, i32, i32) {
    %c0_i32 = arith.constant 0 : i32
    %c0_i32_0 = arith.constant 0 : i32
    %c0_i32_1 = arith.constant 0 : i32
    %c0_i32_2 = arith.constant 0 : i32
    return %c0_i32, %c0_i32_0, %c0_i32_1 : i32, i32, i32
  }
  func.func @transform_4(%arg0: i32) -> (i32, i32) {
    %c0_i32 = arith.constant 0 : i32
    %c0_i32_0 = arith.constant 0 : i32
    %c0_i32_1 = arith.constant 0 : i32
    return %c0_i32, %c0_i32_0 : i32, i32
  }
  func.func @transform_5(%arg0: i32) -> (i32, i32, i32, i32) {
    %c0_i32 = arith.constant 0 : i32
    %c0_i32_0 = arith.constant 0 : i32
    %c0_i32_1 = arith.constant 0 : i32
    %c0_i32_2 = arith.constant 0 : i32
    return %arg0, %c0_i32, %c0_i32_0, %c0_i32_1 : i32, i32, i32, i32
  }
  func.func @transform_6(%arg0: i32) -> (i32, i32, i32) {
    %c0_i32 = arith.constant 0 : i32
    %c0_i32_0 = arith.constant 0 : i32
    %c0_i32_1 = arith.constant 0 : i32
    return %arg0, %c0_i32, %c0_i32_0 : i32, i32, i32
  }
}

module attributes {stable_mosaic.version = 11 : i64} {
  func.func @_bn_act_kernel(%arg0: i32, %arg1: memref<1x16x16x16xf32, #tpu.memory_space<vmem>>, %arg2: memref<1x16xf32, #tpu.memory_space<vmem>>, %arg3: memref<1x16xf32, #tpu.memory_space<vmem>>, %arg4: memref<1x16x16x16xf32, #tpu.memory_space<vmem>>) attributes {dimension_semantics = [#tpu.dimension_semantics<parallel>], iteration_bounds = array<i64: 2>, scalar_prefetch = 0 : i64, scratch_operands = 0 : i64, tpu.core_type = #tpu.core_type<tc>, window_params = [{transform_indices = @transform_0, window_bounds = array<i64: 1, 16, 16, 16>}, {pipeline_mode = #tpu.pipeline_mode<synchronous>, transform_indices = @transform_1, window_bounds = array<i64: 1, 16>}, {pipeline_mode = #tpu.pipeline_mode<synchronous>, transform_indices = @transform_2, window_bounds = array<i64: 1, 16>}, {transform_indices = @transform_3, window_bounds = array<i64: 1, 16, 16, 16>}]} {
    %c0 = arith.constant 0 : index
    %c0_0 = arith.constant 0 : index
    %c0_1 = arith.constant 0 : index
    %c0_2 = arith.constant 0 : index
    %0 = vector.load %arg1[%c0, %c0_0, %c0_1, %c0_2] : memref<1x16x16x16xf32, #tpu.memory_space<vmem>>, vector<1x16x16x16xf32>
    %c0_3 = arith.constant 0 : index
    %c0_4 = arith.constant 0 : index
    %1 = vector.load %arg2[%c0_3, %c0_4] : memref<1x16xf32, #tpu.memory_space<vmem>>, vector<1x16xf32>
    %2 = vector.shape_cast %1 : vector<1x16xf32> to vector<1x1x1x16xf32>
    %3 = vector.broadcast %2 : vector<1x1x1x16xf32> to vector<1x16x16x16xf32>
    %4 = arith.mulf %0, %3 : vector<1x16x16x16xf32>
    %c0_5 = arith.constant 0 : index
    %c0_6 = arith.constant 0 : index
    %5 = vector.load %arg3[%c0_5, %c0_6] : memref<1x16xf32, #tpu.memory_space<vmem>>, vector<1x16xf32>
    %6 = vector.shape_cast %5 : vector<1x16xf32> to vector<1x1x1x16xf32>
    %7 = vector.broadcast %6 : vector<1x1x1x16xf32> to vector<1x16x16x16xf32>
    %8 = arith.addf %4, %7 : vector<1x16x16x16xf32>
    %cst = arith.constant 0.000000e+00 : f32
    %9 = vector.broadcast %cst : f32 to vector<1x16x16x16xf32>
    %10 = arith.cmpf ogt, %8, %9 : vector<1x16x16x16xf32>
    %cst_7 = arith.constant 0.00999999977 : f32
    %11 = vector.broadcast %cst_7 : f32 to vector<1x16x16x16xf32>
    %12 = arith.mulf %11, %8 : vector<1x16x16x16xf32>
    %13 = arith.select %10, %8, %12 : vector<1x16x16x16xi1>, vector<1x16x16x16xf32>
    %c0_8 = arith.constant 0 : index
    %c0_9 = arith.constant 0 : index
    %c0_10 = arith.constant 0 : index
    %c0_11 = arith.constant 0 : index
    %14 = vector.load %arg4[%c0_8, %c0_9, %c0_10, %c0_11] : memref<1x16x16x16xf32, #tpu.memory_space<vmem>>, vector<1x16x16x16xf32>
    tpu.vector_store %arg4[%c0_8, %c0_9, %c0_10, %c0_11], %13 {strides = array<i32>} : memref<1x16x16x16xf32, #tpu.memory_space<vmem>>, vector<1x16x16x16xf32>,
    return
  }
  func.func @transform_0(%arg0: i32) -> (i32, i32, i32, i32) {
    %c0_i32 = arith.constant 0 : i32
    %c0_i32_0 = arith.constant 0 : i32
    %c0_i32_1 = arith.constant 0 : i32
    %c0_i32_2 = arith.constant 0 : i32
    return %arg0, %c0_i32, %c0_i32_0, %c0_i32_1 : i32, i32, i32, i32
  }
  func.func @transform_1(%arg0: i32) -> (i32, i32) {
    %c0_i32 = arith.constant 0 : i32
    %c0_i32_0 = arith.constant 0 : i32
    %c0_i32_1 = arith.constant 0 : i32
    return %c0_i32, %c0_i32_0 : i32, i32
  }
  func.func @transform_2(%arg0: i32) -> (i32, i32) {
    %c0_i32 = arith.constant 0 : i32
    %c0_i32_0 = arith.constant 0 : i32
    %c0_i32_1 = arith.constant 0 : i32
    return %c0_i32, %c0_i32_0 : i32, i32
  }
  func.func @transform_3(%arg0: i32) -> (i32, i32, i32, i32) {
    %c0_i32 = arith.constant 0 : i32
    %c0_i32_0 = arith.constant 0 : i32
    %c0_i32_1 = arith.constant 0 : i32
    %c0_i32_2 = arith.constant 0 : i32
    return %arg0, %c0_i32, %c0_i32_0, %c0_i32_1 : i32, i32, i32, i32
  }
}

</mosaic_0001>

<bundles_post_ra>
// kernel: upsample_layer_forward.7
= control target key start
LH: loop header
LB: loop body
LE: loop exit
PB: predicated region body
PF: predicated region fallthrough
CT: control target
= control target key end

     0   :  { %s516_s12 = smov 0   ;;  %s710_s0 = inlined_call_operand.vmem [shape: f32[2,16,16,16], index: 0, kind: input, shape index: {}]   ;;  %s711_s1 = inlined_call_operand.vmem [shape: f32[1,16], index: 1, kind: input, shape index: {}]   ;;  %s712_s2 = inlined_call_operand.vmem [shape: f32[1,16], index: 2, kind: input, shape index: {}]   ;;  %s713_s3 = inlined_call_operand.vmem [shape: f32[2,16,16,16], index: 3, kind: output, shape index: {}]  }
   0x1 LB: > { %s465_s13 = sadd.s32 4294967295, %s494_s12   ;;  %p469_p0 = scmp.ge.s32.totalorder %s494_s12, 1  ;;  %s494_s12 = sphi %s516_s12, %s13_s12  }
   0x2   : > { %p137_p1 = scmp.lt.s32.totalorder %s494_s12, 3 }
   0x4   : > { %p138_p2 = pnand %p469_p0, %p137_p1 }
   0x5   : > { %p161_p3 = scmp.lt.s32.totalorder (!%p138_p2), %s465_s13, 1  ;;  %v530_v0 = vld [vmem:[%s711_s1] ss:$0 sm:$0xff] (!%p138_p2)  ;;  %vm377_vm0 = vcmask (!%p138_p2), 130048  }
   0x6   : > { %141 = sbr.rel (%p138_p2) target bundleno = 62 (0x3e), region = 32  ;;  %v540_v1 = vld [vmem:[%s712_s2] ss:$0 sm:$0xff] (!%p138_p2) }
   0xd   : > { %s715_s13 = smov (!%p161_p3, %s465_s13), 1 }
   0xe   : > { %s478_s14 = sshll.u32 %s715_s13, 8 }
   0xf   : > { %s535_s19 = scalar_lea.vmem %s710_s0, %s478_s14  ;;  %s568_s24 = scalar_lea.vmem %s713_s3, %s478_s14 }
  0x10   : > { %v171_v2 = vld [vmem:[%s535_s19] sm:$0xff]  ;;  %v172_v3 = vld [vmem:[%s535_s19 + $0x8] sm:$0xff]  ;;  %v173_v4 = vld [vmem:[%s535_s19 + $0x10] sm:$0xff] }
  0x11   : > { %v210_v5 = vmul.f32 %v530_v0, %v171_v2  ;;  %v211_v6 = vmul.f32 %v530_v0, %v172_v3  ;;  %v212_v7 = vmul.f32 %v530_v0, %v173_v4  ;;  %v174_v8 = vld [vmem:[%s535_s19 + $0x18] sm:$0xff]  ;;  %v175_v9 = vld [vmem:[%s535_s19 + $0x20] sm:$0xff]  ;;  %v176_v10 = vld [vmem:[%s535_s19 + $0x28] sm:$0xff] }
  0x12   : > { %v213_v11 = vmul.f32 %v530_v0, %v174_v8  ;;  %v214_v12 = vmul.f32 %v530_v0, %v175_v9  ;;  %v215_v13 = vmul.f32 %v530_v0, %v176_v10  ;;  %v177_v14 = vld [vmem:[%s535_s19 + $0x30] sm:$0xff]  ;;  %v178_v15 = vld [vmem:[%s535_s19 + $0x38] sm:$0xff]  ;;  %v179_v24 = vld [vmem:[%s535_s19 + $0x40] sm:$0xff] }
  0x13   : > { %v249_v16 = vadd.f32 %v540_v1, %v210_v5  ;;  %v250_v17 = vadd.f32 %v540_v1, %v211_v6  ;;  %v251_v18 = vadd.f32 %v540_v1, %v212_v7  ;;  %v216_v19 = vmul.f32 %v530_v0, %v177_v14  ;;  %v180_v32 = vld [vmem:[%s535_s19 + $0x48] sm:$0xff]  ;;  %v181_v33 = vld [vmem:[%s535_s19 + $0x50] sm:$0xff]  ;;  %v182_v34 = vld [vmem:[%s535_s19 + $0x58] sm:$0xff] }
  0x14   : > { %v252_v20 = vadd.f32 %v540_v1, %v213_v11  ;;  %v253_v21 = vadd.f32 %v540_v1, %v214_v12  ;;  %v254_v22 = vadd.f32 %v540_v1, %v215_v13  ;;  %v217_v23 = vmul.f32 %v530_v0, %v178_v15  ;;  %v183_v46 = vld [vmem:[%s535_s19 + $0x60] sm:$0xff]  ;;  %v184_v47 = vld [vmem:[%s535_s19 + $0x68] sm:$0xff]  ;;  %v185_v58 = vld [vmem:[%s535_s19 + $0x70] sm:$0xff] }
  0x15   : > { %vm281_vm1 = vcmp.gt.f32.partialorder %v249_v16, 0.0  ;;  %v313_v25 = vmul.f32 0.01, %v249_v16  ;;  %vm282_vm2 = vcmp.gt.f32.partialorder %v250_v17, 0.0  ;;  %v314_v26 = vmul.f32 0.01, %v250_v17 }
  0x16   : > { %vm283_vm3 = vcmp.gt.f32.partialorder %v251_v18, 0.0  ;;  %v315_v27 = vmul.f32 0.01, %v251_v18  ;;  %vm284_vm4 = vcmp.gt.f32.partialorder %v252_v20, 0.0  ;;  %v316_v28 = vmul.f32 0.01, %v252_v20 }
  0x17   : > { %v345_v29 = vsel %vm281_vm1, %v249_v16, %v313_v25  ;;  %v346_v30 = vsel %vm282_vm2, %v250_v17, %v314_v26  ;;  %vm285_vm5 = vcmp.gt.f32.partialorder %v253_v21, 0.0  ;;  %v317_v31 = vmul.f32 0.01, %v253_v21  ;;  %v186_v59 = vld [vmem:[%s535_s19 + $0x78] sm:$0xff]  ;;  %v187_v6 = vld [vmem:[%s535_s19 + $0x80] sm:$0xff]  ;;  %v188_v7 = vld [vmem:[%s535_s19 + $0x88] sm:$0xff] }
  0x18   : > { %378 = vst.msk [vmem:[%s568_s24] sm:$0xff] %vm377_vm0, %v345_v29  ;;  %379 = vst.msk [vmem:[%s568_s24 + $0x8] sm:$0xff] %vm377_vm0, %v346_v30  ;;  %v347_v35 = vsel %vm283_vm3, %v251_v18, %v315_v27  ;;  %v348_v36 = vsel %vm284_vm4, %v252_v20, %v316_v28  ;;  %vm286_vm6 = vcmp.gt.f32.partialorder %v254_v22, 0.0  ;;  %v318_v37 = vmul.f32 0.01, %v254_v22  ;;  %v189_v12 = vld [vmem:[%s535_s19 + $0x90] sm:$0xff] }
  0x19   : > { %380 = vst.msk [vmem:[%s568_s24 + $0x10] sm:$0xff] %vm377_vm0, %v347_v35  ;;  %381 = vst.msk [vmem:[%s568_s24 + $0x18] sm:$0xff] %vm377_vm0, %v348_v36  ;;  %v349_v38 = vsel %vm285_vm5, %v253_v21, %v317_v31  ;;  %v255_v39 = vadd.f32 %v540_v1, %v216_v19  ;;  %v256_v40 = vadd.f32 %v540_v1, %v217_v23  ;;  %v190_v13 = vld [vmem:[%s535_s19 + $0x98] sm:$0xff]  ;;  %v192_v25 = vld [vmem:[%s535_s19 + $0xa8] sm:$0xff] }
  0x1a   : > { %v218_v41 = vmul.f32 %v530_v0, %v179_v24  ;;  %382 = vst.msk [vmem:[%s568_s24 + $0x20] sm:$0xff] %vm377_vm0, %v349_v38  ;;  %v350_v42 = vsel %vm286_vm6, %v254_v22, %v318_v37  ;;  %v219_v43 = vmul.f32 %v530_v0, %v180_v32  ;;  %v220_v44 = vmul.f32 %v530_v0, %v181_v33  ;;  %v191_v24 = vld [vmem:[%s535_s19 + $0xa0] sm:$0xff]  ;;  %v193_v36 = vld [vmem:[%s535_s19 + $0xb0] sm:$0xff]  ;;  %v194_v37 = vld [vmem:[%s535_s19 + $0xb8] sm:$0xff] }
  0x1b   : > { %v221_v45 = vmul.f32 %v530_v0, %v182_v34  ;;  %383 = vst.msk [vmem:[%s568_s24 + $0x28] sm:$0xff] %vm377_vm0, %v350_v42  ;;  %vm287_vm7 = vcmp.gt.f32.partialorder %v255_v39, 0.0  ;;  %v319_v48 = vmul.f32 0.01, %v255_v39  ;;  %vm288_vm8 = vcmp.gt.f32.partialorder %v256_v40, 0.0 }
  0x1c   : > { %v320_v49 = vmul.f32 0.01, %v256_v40  ;;  %v257_v50 = vadd.f32 %v540_v1, %v218_v41  ;;  %v258_v51 = vadd.f32 %v540_v1, %v219_v43  ;;  %v259_v52 = vadd.f32 %v540_v1, %v220_v44 }
  0x1d   : > { %v260_v53 = vadd.f32 %v540_v1, %v221_v45  ;;  %v351_v54 = vsel %vm287_vm7, %v255_v39, %v319_v48  ;;  %v222_v56 = vmul.f32 %v530_v0, %v183_v46  ;;  %v223_v57 = vmul.f32 %v530_v0, %v184_v47  ;;  %v195_v46 = vld [vmem:[%s535_s19 + $0xc0] sm:$0xff]  ;;  %v196_v47 = vld [vmem:[%s535_s19 + $0xc8] sm:$0xff] }
  0x1e   : > { %v352_v55 = vsel %vm288_vm8, %v256_v40, %v320_v49  ;;  %384 = vst.msk [vmem:[%s568_s24 + $0x30] sm:$0xff] %vm377_vm0, %v351_v54  ;;  %vm289_vm9 = vcmp.gt.f32.partialorder %v257_v50, 0.0  ;;  %v321_v60 = vmul.f32 0.01, %v257_v50  ;;  %vm290_vm10 = vcmp.gt.f32.partialorder %v258_v51, 0.0 }
  0x1f   : > { %385 = vst.msk [vmem:[%s568_s24 + $0x38] sm:$0xff] %vm377_vm0, %v352_v55  ;;  %v322_v61 = vmul.f32 0.01, %v258_v51  ;;  %vm291_vm11 = vcmp.gt.f32.partialorder %v259_v52, 0.0  ;;  %v323_v62 = vmul.f32 0.01, %v259_v52  ;;  %v261_v4 = vadd.f32 %v540_v1, %v222_v56 }
  0x20   : > { %vm292_vm12 = vcmp.gt.f32.partialorder %v260_v53, 0.0  ;;  %v324_v63 = vmul.f32 0.01, %v260_v53  ;;  %v353_v2 = vsel %vm289_vm9, %v257_v50, %v321_v60  ;;  %v262_v5 = vadd.f32 %v540_v1, %v223_v57 }
  0x21   : > { %v354_v3 = vsel %vm290_vm10, %v258_v51, %v322_v61  ;;  %386 = vst.msk [vmem:[%s568_s24 + $0x40] sm:$0xff] %vm377_vm0, %v353_v2  ;;  %v355_v8 = vsel %vm291_vm11, %v259_v52, %v323_v62  ;;  %v224_v10 = vmul.f32 %v530_v0, %v185_v58  ;;  %v225_v11 = vmul.f32 %v530_v0, %v186_v59  ;;  %v197_v52 = vld [vmem:[%s535_s19 + $0xd0] sm:$0xff]  ;;  %v199_v2 = vld [vmem:[%s535_s19 + $0xe0] sm:$0xff] }
  0x22   : > { %387 = vst.msk [vmem:[%s568_s24 + $0x48] sm:$0xff] %vm377_vm0, %v354_v3  ;;  %v356_v9 = vsel %vm292_vm12, %v260_v53, %v324_v63  ;;  %388 = vst.msk [vmem:[%s568_s24 + $0x50] sm:$0xff] %vm377_vm0, %v355_v8  ;;  %vm293_vm13 = vcmp.gt.f32.partialorder %v261_v4, 0.0  ;;  %v325_v14 = vmul.f32 0.01, %v261_v4  ;;  %vm294_vm14 = vcmp.gt.f32.partialorder %v262_v5, 0.0 }
  0x23   : > { %389 = vst.msk [vmem:[%s568_s24 + $0x58] sm:$0xff] %vm377_vm0, %v356_v9  ;;  %v326_v15 = vmul.f32 0.01, %v262_v5  ;;  %v263_v16 = vadd.f32 %v540_v1, %v224_v10  ;;  %v264_v17 = vadd.f32 %v540_v1, %v225_v11  ;;  %v226_v18 = vmul.f32 %v530_v0, %v187_v6  ;;  %v198_v53 = vld [vmem:[%s535_s19 + $0xd8] sm:$0xff]  ;;  %v200_v3 = vld [vmem:[%s535_s19 + $0xe8] sm:$0xff] }
  0x24   : > { %v227_v19 = vmul.f32 %v530_v0, %v188_v7  ;;  %v357_v20 = vsel %vm293_vm13, %v261_v4, %v325_v14  ;;  %v228_v22 = vmul.f32 %v530_v0, %v189_v12  ;;  %v229_v23 = vmul.f32 %v530_v0, %v190_v13  ;;  %v201_v14 = vld [vmem:[%s535_s19 + $0xf0] sm:$0xff] }
  0x25   : > { %v358_v21 = vsel %vm294_vm14, %v262_v5, %v326_v15  ;;  %390 = vst.msk [vmem:[%s568_s24 + $0x60] sm:$0xff] %vm377_vm0, %v357_v20  ;;  %vm295_vm15 = vcmp.gt.f32.partialorder %v263_v16, 0.0  ;;  %v327_v26 = vmul.f32 0.01, %v263_v16  ;;  %vm296_vm1 = vcmp.gt.f32.partialorder %v264_v17, 0.0  ;;  %v202_v15 = vld [vmem:[%s535_s19 + $0xf8] sm:$0xff] }
  0x26   : > { %391 = vst.msk [vmem:[%s568_s24 + $0x68] sm:$0xff] %vm377_vm0, %v358_v21  ;;  %v328_v27 = vmul.f32 0.01, %v264_v17  ;;  %v265_v28 = vadd.f32 %v540_v1, %v226_v18  ;;  %v266_v29 = vadd.f32 %v540_v1, %v227_v19  ;;  %v267_v30 = vadd.f32 %v540_v1, %v228_v22 }
  0x27   : > { %v268_v31 = vadd.f32 %v540_v1, %v229_v23  ;;  %v359_v32 = vsel %vm295_vm15, %v263_v16, %v327_v26  ;;  %v230_v34 = vmul.f32 %v530_v0, %v191_v24  ;;  %v231_v35 = vmul.f32 %v530_v0, %v192_v25 }
  0x28   : > { %v360_v33 = vsel %vm296_vm1, %v264_v17, %v328_v27  ;;  %392 = vst.msk [vmem:[%s568_s24 + $0x70] sm:$0xff] %vm377_vm0, %v359_v32  ;;  %vm297_vm2 = vcmp.gt.f32.partialorder %v265_v28, 0.0  ;;  %v329_v38 = vmul.f32 0.01, %v265_v28  ;;  %vm298_vm3 = vcmp.gt.f32.partialorder %v266_v29, 0.0 }
  0x29   : > { %393 = vst.msk [vmem:[%s568_s24 + $0x78] sm:$0xff] %vm377_vm0, %v360_v33  ;;  %v330_v39 = vmul.f32 0.01, %v266_v29  ;;  %vm299_vm4 = vcmp.gt.f32.partialorder %v267_v30, 0.0  ;;  %v331_v40 = vmul.f32 0.01, %v267_v30  ;;  %v269_v44 = vadd.f32 %v540_v1, %v230_v34 }
  0x2a   : > { %vm300_vm5 = vcmp.gt.f32.partialorder %v268_v31, 0.0  ;;  %v332_v41 = vmul.f32 0.01, %v268_v31  ;;  %v361_v42 = vsel %vm297_vm2, %v265_v28, %v329_v38  ;;  %v270_v45 = vadd.f32 %v540_v1, %v231_v35 }
  0x2b   : > { %v362_v43 = vsel %vm298_vm3, %v266_v29, %v330_v39  ;;  %394 = vst.msk [vmem:[%s568_s24 + $0x80] sm:$0xff] %vm377_vm0, %v361_v42  ;;  %v363_v48 = vsel %vm299_vm4, %v267_v30, %v331_v40  ;;  %v232_v50 = vmul.f32 %v530_v0, %v193_v36  ;;  %v233_v51 = vmul.f32 %v530_v0, %v194_v37 }
  0x2c   : > { %395 = vst.msk [vmem:[%s568_s24 + $0x88] sm:$0xff] %vm377_vm0, %v362_v43  ;;  %v364_v49 = vsel %vm300_vm5, %v268_v31, %v332_v41  ;;  %396 = vst.msk [vmem:[%s568_s24 + $0x90] sm:$0xff] %vm377_vm0, %v363_v48  ;;  %vm301_vm6 = vcmp.gt.f32.partialorder %v269_v44, 0.0  ;;  %v333_v54 = vmul.f32 0.01, %v269_v44  ;;  %vm302_vm7 = vcmp.gt.f32.partialorder %v270_v45, 0.0 }
  0x2d   : > { %397 = vst.msk [vmem:[%s568_s24 + $0x98] sm:$0xff] %vm377_vm0, %v364_v49  ;;  %v334_v55 = vmul.f32 0.01, %v270_v45  ;;  %v271_v56 = vadd.f32 %v540_v1, %v232_v50  ;;  %v272_v57 = vadd.f32 %v540_v1, %v233_v51  ;;  %v234_v58 = vmul.f32 %v530_v0, %v195_v46 }
  0x2e   : > { %v235_v59 = vmul.f32 %v530_v0, %v196_v47  ;;  %v365_v60 = vsel %vm301_vm6, %v269_v44, %v333_v54  ;;  %v236_v62 = vmul.f32 %v530_v0, %v197_v52  ;;  %v237_v63 = vmul.f32 %v530_v0, %v198_v53 }
  0x2f   : > { %v366_v61 = vsel %vm302_vm7, %v270_v45, %v334_v55  ;;  %398 = vst.msk [vmem:[%s568_s24 + $0xa0] sm:$0xff] %vm377_vm0, %v365_v60  ;;  %vm303_vm8 = vcmp.gt.f32.partialorder %v271_v56, 0.0  ;;  %v335_v4 = vmul.f32 0.01, %v271_v56  ;;  %vm304_vm9 = vcmp.gt.f32.partialorder %v272_v57, 0.0 }
  0x30   : > { %399 = vst.msk [vmem:[%s568_s24 + $0xa8] sm:$0xff] %vm377_vm0, %v366_v61  ;;  %v336_v5 = vmul.f32 0.01, %v272_v57  ;;  %v273_v6 = vadd.f32 %v540_v1, %v234_v58  ;;  %v274_v7 = vadd.f32 %v540_v1, %v235_v59  ;;  %v275_v8 = vadd.f32 %v540_v1, %v236_v62 }
  0x31   : > { %v276_v9 = vadd.f32 %v540_v1, %v237_v63  ;;  %v367_v10 = vsel %vm303_vm8, %v271_v56, %v335_v4  ;;  %v238_v12 = vmul.f32 %v530_v0, %v199_v2  ;;  %v239_v13 = vmul.f32 %v530_v0, %v200_v3 }
  0x32   : > { %v368_v11 = vsel %vm304_vm9, %v272_v57, %v336_v5  ;;  %400 = vst.msk [vmem:[%s568_s24 + $0xb0] sm:$0xff] %vm377_vm0, %v367_v10  ;;  %vm305_vm10 = vcmp.gt.f32.partialorder %v273_v6, 0.0  ;;  %v337_v16 = vmul.f32 0.01, %v273_v6  ;;  %vm306_vm11 = vcmp.gt.f32.partialorder %v274_v7, 0.0 }
  0x33   : > { %401 = vst.msk [vmem:[%s568_s24 + $0xb8] sm:$0xff] %vm377_vm0, %v368_v11  ;;  %v338_v17 = vmul.f32 0.01, %v274_v7  ;;  %vm307_vm12 = vcmp.gt.f32.partialorder %v275_v8, 0.0  ;;  %v339_v18 = vmul.f32 0.01, %v275_v8  ;;  %v277_v22 = vadd.f32 %v540_v1, %v238_v12 }
  0x34   : > { %vm308_vm13 = vcmp.gt.f32.partialorder %v276_v9, 0.0  ;;  %v340_v19 = vmul.f32 0.01, %v276_v9  ;;  %v369_v20 = vsel %vm305_vm10, %v273_v6, %v337_v16  ;;  %v278_v23 = vadd.f32 %v540_v1, %v239_v13 }
  0x35   : > { %v370_v21 = vsel %vm306_vm11, %v274_v7, %v338_v17  ;;  %402 = vst.msk [vmem:[%s568_s24 + $0xc0] sm:$0xff] %vm377_vm0, %v369_v20  ;;  %v371_v24 = vsel %vm307_vm12, %v275_v8, %v339_v18  ;;  %v240_v26 = vmul.f32 %v530_v0, %v201_v14  ;;  %v241_v27 = vmul.f32 %v530_v0, %v202_v15 }
  0x36   : > { %403 = vst.msk [vmem:[%s568_s24 + $0xc8] sm:$0xff] %vm377_vm0, %v370_v21  ;;  %v372_v25 = vsel %vm308_vm13, %v276_v9, %v340_v19  ;;  %404 = vst.msk [vmem:[%s568_s24 + $0xd0] sm:$0xff] %vm377_vm0, %v371_v24  ;;  %vm309_vm14 = vcmp.gt.f32.partialorder %v277_v22, 0.0  ;;  %v341_v28 = vmul.f32 0.01, %v277_v22  ;;  %vm310_vm15 = vcmp.gt.f32.partialorder %v278_v23, 0.0 }
  0x37   : > { %405 = vst.msk [vmem:[%s568_s24 + $0xd8] sm:$0xff] %vm377_vm0, %v372_v25  ;;  %v342_v29 = vmul.f32 0.01, %v278_v23  ;;  %v279_v30 = vadd.f32 %v540_v1, %v240_v26  ;;  %v280_v31 = vadd.f32 %v540_v1, %v241_v27 }
  0x38   : > { %v373_v32 = vsel %vm309_vm14, %v277_v22, %v341_v28 }
  0x39   : > { %v374_v33 = vsel %vm310_vm15, %v278_v23, %v342_v29  ;;  %406 = vst.msk [vmem:[%s568_s24 + $0xe0] sm:$0xff] %vm377_vm0, %v373_v32  ;;  %vm311_vm1 = vcmp.gt.f32.partialorder %v279_v30, 0.0  ;;  %v343_v0 = vmul.f32 0.01, %v279_v30  ;;  %vm312_vm2 = vcmp.gt.f32.partialorder %v280_v31, 0.0 }
  0x3a   : > { %407 = vst.msk [vmem:[%s568_s24 + $0xe8] sm:$0xff] %vm377_vm0, %v374_v33  ;;  %v344_v34 = vmul.f32 0.01, %v280_v31 }
  0x3b   : > { %v375_v35 = vsel %vm311_vm1, %v279_v30, %v343_v0 }
  0x3c   : > { %v376_v36 = vsel %vm312_vm2, %v280_v31, %v344_v34  ;;  %408 = vst.msk [vmem:[%s568_s24 + $0xf0] sm:$0xff] %vm377_vm0, %v375_v35 }
  0x3d   : > { %409 = vst.msk [vmem:[%s568_s24 + $0xf8] sm:$0xff] %vm377_vm0, %v376_v36 }
  0x3e PF: > { %s13_s12 = sadd.s32 1, %s494_s12  }
  0x3f   : > { %p10_p4 = scmp.ge.s32.totalorder %s13_s12, 4  }
  0x41   :  { %12 = sbr.rel (!%p10_p4) target bundleno = 1 (0x1), region = 62 }

// kernel: upsample_layer_forward.6
= control target key start
LH: loop header
LB: loop body
LE: loop exit
PB: predicated region body
PF: predicated region fallthrough
CT: control target
= control target key end

     0   :  { %s5205_s21 = smov 0   ;;  %s6718_s0 = inlined_call_operand.vmem [shape: f32[2,16,16,8], index: 0, kind: input, shape index: {}]   ;;  %s6719_s1 = inlined_call_operand.vmem [shape: f32[1,8], index: 1, kind: input, shape index: {}]   ;;  %s6720_s2 = inlined_call_operand.vmem [shape: f32[1,8], index: 2, kind: input, shape index: {}]   ;;  %s6721_s3 = inlined_call_operand.vmem [shape: f32[9,8,4], index: 3, kind: input, shape index: {}]   ;;  %s6722_s4 = inlined_call_operand.vmem [shape: f32[1,16], index: 4, kind: input, shape index: {}]   ;;  %s6723_s5 = inlined_call_operand.vmem [shape: f32[2,16,16,16], index: 5, kind: output, shape index: {0}]   ;;  %s6724_s6 = inlined_call_operand.vmem [shape: f32[2,2,16], index: 6, kind: output, shape index: {1}]  }
   0x1 LB: > { %s3924_s22 = sadd.s32 4294967295, %s5164_s21   ;;  %p3928_p0 = scmp.ge.s32.totalorder %s5164_s21, 1  ;;  %s5164_s21 = sphi %s5205_s21, %s17_s21  }
   0x2   : > { %p215_p1 = scmp.lt.s32.totalorder %s5164_s21, 3 }
   0x4   : > { %p216_p2 = pnand %p3928_p0, %p215_p1 }
   0x6   : > { %219 = sbr.rel (%p216_p2) target bundleno = 739 (0x2e3), region = 40 }
   0xd   : > { %v3936_v0 = vld [vmem:[%s6721_s3 + $0x20] sm:$0xff]  ;;  %v5219_v1 = vld [vmem:[%s6721_s3 + $0x28] sm:$0xff]  ;;  %p249_p3 = scmp.lt.s32.totalorder %s3924_s22, 1  ;;  %vm470_vm0 = vcmask 64512   ;;  %v5225_v2 = vld [vmem:[%s6721_s3 + $0x18] sm:$0xff]  ;;  %vm473_vm1 = vcmask 57344  }
   0xe   : > { %4534 = vmatprep.subr.mxu0 %v3936_v0  ;;  %4984 = vmatprep.subr.mxu1 %v5219_v1  ;;  %v5230_v3 = vld [vmem:[%s6721_s3 + $0x30] sm:$0xff]  ;;  %v5166_v4 = vmov 0.0   ;;  %v5261_v5 = vld [vmem:[%s6719_s1] ss:$0 sm:$0xff]  ;;  %s5167_s27 = smov 4   ;;  %s5168_s28 = smov 8  }
   0xf   : > { %4535 = vmatpush3.msra.mxu0 %v3936_v0  ;;  %s6785_s22 = smov (!%p249_p3, %s3924_s22), 1  ;;  %4985 = vmatpush3.msra.mxu1 %v5219_v1  ;;  %475 = vst.msk [vmem:[#allocation2 + $0x10] sm:$0x1] %vm473_vm1, %v5166_v4  ;;  %474 = vst.msk [vmem:[#allocation2 + $0x190] sm:$0x1] %vm473_vm1, %v5166_v4  ;;  %v5333_v46 = vld [vmem:[%s6721_s3 + $0x40] sm:$0xff] }
  0x10   : > { %471 = vst.msk [vmem:[#allocation2 + $0x180] sm:$0xff] %vm470_vm0, %v5166_v4  ;;  %472 = vst.msk [vmem:[#allocation2 + $0x188] sm:$0xff] %vm470_vm0, %v5166_v4  ;;  %4584 = vmatprep.subr.mxu0 %v5225_v2  ;;  %4784 = vmatprep.subr.mxu1 %v5230_v3  ;;  %s4235_s7 = sshll.u32 %s6785_s22, 8  ;;  %v5273_v6 = vld [vmem:[%s6720_s2] ss:$0 sm:$0xff]  ;;  %s5169_s29 = smov 12  }
  0x11   : > { %476 = vst.msk [vmem:[#allocation2 + $0x28] sm:$0x1] %vm473_vm1, %v5166_v4  ;;  %477 = vst.msk [vmem:[#allocation2 + $0x40] sm:$0x1] %vm473_vm1, %v5166_v4  ;;  %s5268_s12 = scalar_lea.vmem %s6718_s0, %s4235_s7  ;;  %s6425_s11 = scalar_lea.vmem %s6723_s5, %s4235_s7 }
  0x12   : > { %478 = vst.msk [vmem:[#allocation2 + $0x58] sm:$0x1] %vm473_vm1, %v5166_v4  ;;  %479 = vst.msk [vmem:[#allocation2 + $0x70] sm:$0x1] %vm473_vm1, %v5166_v4  ;;  %v263_v7 = vld [vmem:[%s5268_s12] sm:$0xff]  ;;  %v264_v9 = vld [vmem:[%s5268_s12 + $0x8] sm:$0xff] }
  0x13   : > { %480 = vst.msk [vmem:[#allocation2 + $0x88] sm:$0x1] %vm473_vm1, %v5166_v4  ;;  %481 = vst.msk [vmem:[#allocation2 + $0xa0] sm:$0x1] %vm473_vm1, %v5166_v4  ;;  %v279_v8 = vld [vmem:[%s5268_s12 + $0x80] sm:$0xff]  ;;  %v302_v10 = vmul.f32 %v5261_v5, %v263_v7  ;;  %v303_v12 = vmul.f32 %v5261_v5, %v264_v9  ;;  %v280_v13 = vld [vmem:[%s5268_s12 + $0x88] sm:$0xff] }
  0x14   : > { %482 = vst.msk [vmem:[#allocation2 + $0xb8] sm:$0x1] %vm473_vm1, %v5166_v4  ;;  %483 = vst.msk [vmem:[#allocation2 + $0xd0] sm:$0x1] %vm473_vm1, %v5166_v4  ;;  %v318_v11 = vmul.f32 %v5261_v5, %v279_v8  ;;  %v265_v14 = vld [vmem:[%s5268_s12 + $0x10] sm:$0xff]  ;;  %v319_v16 = vmul.f32 %v5261_v5, %v280_v13  ;;  %v266_v19 = vld [vmem:[%s5268_s12 + $0x18] sm:$0xff] }
  0x15   : > { %484 = vst.msk [vmem:[#allocation2 + $0xe8] sm:$0x1] %vm473_vm1, %v5166_v4  ;;  %485 = vst.msk [vmem:[#allocation2 + $0x100] sm:$0x1] %vm473_vm1, %v5166_v4  ;;  %v281_v15 = vld [vmem:[%s5268_s12 + $0x90] sm:$0xff]  ;;  %v304_v17 = vmul.f32 %v5261_v5, %v265_v14  ;;  %v282_v20 = vld [vmem:[%s5268_s12 + $0x98] sm:$0xff]  ;;  %v341_v21 = vadd.f32 %v5273_v6, %v302_v10  ;;  %v342_v23 = vadd.f32 %v5273_v6, %v303_v12 }
  0x16   : > { %486 = vst.msk [vmem:[#allocation2 + $0x118] sm:$0x1] %vm473_vm1, %v5166_v4  ;;  %487 = vst.msk [vmem:[#allocation2 + $0x130] sm:$0x1] %vm473_vm1, %v5166_v4  ;;  %v320_v18 = vmul.f32 %v5261_v5, %v281_v15  ;;  %v357_v22 = vadd.f32 %v5273_v6, %v318_v11  ;;  %v305_v24 = vmul.f32 %v5261_v5, %v266_v19  ;;  %v267_v36 = vld [vmem:[%s5268_s12 + $0x20] sm:$0xff]  ;;  %v268_v44 = vld [vmem:[%s5268_s12 + $0x28] sm:$0xff] }
  0x17   : > { %488 = vst.msk [vmem:[#allocation2 + $0x148] sm:$0x1] %vm473_vm1, %v5166_v4  ;;  %489 = vst.msk [vmem:[#allocation2 + $0x160] sm:$0x1] %vm473_vm1, %v5166_v4  ;;  %v358_v25 = vadd.f32 %v5273_v6, %v319_v16  ;;  %v343_v26 = vadd.f32 %v5273_v6, %v304_v17  ;;  %v321_v28 = vmul.f32 %v5261_v5, %v282_v20  ;;  %vm373_vm2 = vcmp.gt.f32.partialorder %v341_v21, 0.0  ;;  %v283_v37 = vld [vmem:[%s5268_s12 + $0xa0] sm:$0xff] }
  0x18   : > { %490 = vst.msk [vmem:[#allocation2 + $0x178] sm:$0x1] %vm473_vm1, %v5166_v4  ;;  %491 = vst.msk [vmem:[#allocation2 + $0x190] sm:$0x1] %vm473_vm1, %v5166_v4  ;;  %v359_v27 = vadd.f32 %v5273_v6, %v320_v18  ;;  %v405_v29 = vmul.f32 0.01, %v341_v21  ;;  %v344_v42 = vadd.f32 %v5273_v6, %v305_v24  ;;  %v306_v48 = vmul.f32 %v5261_v5, %v267_v36 }
  0x19   : > { %vm389_vm3 = vcmp.gt.f32.partialorder %v357_v22, 0.0  ;;  %v421_v30 = vmul.f32 0.01, %v357_v22  ;;  %vm374_vm4 = vcmp.gt.f32.partialorder %v342_v23, 0.0  ;;  %v406_v31 = vmul.f32 0.01, %v342_v23 }
  0x1a   : > { %vm390_vm5 = vcmp.gt.f32.partialorder %v358_v25, 0.0  ;;  %v422_v32 = vmul.f32 0.01, %v358_v25  ;;  %v5297_v33 = vsel %vm373_vm2, %v341_v21, %v405_v29  ;;  %vm375_vm6 = vcmp.gt.f32.partialorder %v343_v26, 0.0  ;;  %v284_v45 = vld [vmem:[%s5268_s12 + $0xa8] sm:$0xff]  ;;  %v269_v50 = vld [vmem:[%s5268_s12 + $0x30] sm:$0xff] }
  0x1b   : > { %v5299_v34 = vsel %vm389_vm3, %v357_v22, %v421_v30  ;;  %v407_v35 = vmul.f32 0.01, %v343_v26  ;;  %492 = vst.msk [vmem:[#allocation2] sm:$0xff] %vm470_vm0, %v5297_v33  ;;  %4536 = vmatprep.mubr.msk.f32.mxu0 %vm470_vm0, %v5297_v33  ;;  %v5311_v38 = vsel %vm374_vm4, %v342_v23, %v406_v31  ;;  %vm391_vm7 = vcmp.gt.f32.partialorder %v359_v27, 0.0  ;;  %v285_v51 = vld [vmem:[%s5268_s12 + $0xb0] sm:$0xff]  ;;  %v270_v62 = vld [vmem:[%s5268_s12 + $0x38] sm:$0xff] }
  0x1c   : > { %508 = vst.msk [vmem:[#allocation2 + $0xc0] sm:$0xff] %vm470_vm0, %v5299_v34  ;;  %4660 = vmatprep.mubr.msk.f32.mxu1 %vm470_vm0, %v5299_v34  ;;  %v5313_v39 = vsel %vm390_vm5, %v358_v25, %v422_v32  ;;  %v423_v40 = vmul.f32 0.01, %v359_v27  ;;  %493 = vst.msk [vmem:[#allocation2 + $0x8] sm:$0xff] %vm470_vm0, %v5311_v38  ;;  %4537 = vmatmul.mubr.msk.f32.vlgmr.msra.gmra.mrb[0].mxu0 %vm470_vm0, %v5311_v38  ;;  %v360_v43 = vadd.f32 %v5273_v6, %v321_v28  ;;  %v286_v63 = vld [vmem:[%s5268_s12 + $0xb8] sm:$0xff]  ;;  %v271_v13 = vld [vmem:[%s5268_s12 + $0x40] sm:$0xff] }
  0x1d   : > { %509 = vst.msk [vmem:[#allocation2 + $0xc8] sm:$0xff] %vm470_vm0, %v5313_v39  ;;  %4661 = vmatmul.mubr.msk.f32.vlgmr.msra.gmra.mrb[0].mxu1 %vm470_vm0, %v5313_v39  ;;  %v5324_v41 = vsel %vm375_vm6, %v343_v26, %v407_v35  ;;  %4585 = vmatpush3.msra.mxu0 %v5225_v2  ;;  %v322_v49 = vmul.f32 %v5261_v5, %v283_v37  ;;  %vm376_vm8 = vcmp.gt.f32.partialorder %v344_v42, 0.0  ;;  %v408_v52 = vmul.f32 0.01, %v344_v42  ;;  %v287_v22 = vld [vmem:[%s5268_s12 + $0xc0] sm:$0xff]  ;;  %v272_v23 = vld [vmem:[%s5268_s12 + $0x48] sm:$0xff] }
  0x1e   : > { %494 = vst.msk [vmem:[#allocation2 + $0x18] sm:$0xff] %vm470_vm0, %v5324_v41  ;;  %4539 = vmatprep.mubr.msk.f32.mxu0 %vm470_vm0, %v5324_v41  ;;  %v5340_v47 = vsel %vm391_vm7, %v359_v27, %v423_v40  ;;  %vm392_vm9 = vcmp.gt.f32.partialorder %v360_v43, 0.0  ;;  %v424_v53 = vmul.f32 0.01, %v360_v43  ;;  %4785 = vmatpush3.msra.mxu1 %v5230_v3  ;;  %v345_v54 = vadd.f32 %v5273_v6, %v306_v48  ;;  %v288_v24 = vld [vmem:[%s5268_s12 + $0xc8] sm:$0xff]  ;;  %v273_v28 = vld [vmem:[%s5268_s12 + $0x50] sm:$0xff] }
  0x1f   : > { %510 = vst.msk [vmem:[#allocation2 + $0xd8] sm:$0xff] %vm470_vm0, %v5340_v47  ;;  %4663 = vmatprep.mubr.msk.f32.mxu1 %vm470_vm0, %v5340_v47  ;;  %v361_v55 = vadd.f32 %v5273_v6, %v322_v49  ;;  %v307_v56 = vmul.f32 %v5261_v5, %v268_v44  ;;  %v323_v57 = vmul.f32 %v5261_v5, %v284_v45  ;;  %v289_v29 = vld [vmem:[%s5268_s12 + $0xd0] sm:$0xff]  ;;  %v274_v40 = vld [vmem:[%s5268_s12 + $0x58] sm:$0xff]  ;;  %s3933_s7 = sshll.u32 %s6785_s22, 1 }
  0x20   : > { %4834 = vmatprep.subr.mxu1 %v5333_v46  ;;  %v5356_v58 = vsel %vm376_vm8, %v344_v42, %v408_v52  ;;  %v5358_v59 = vsel %vm392_vm9, %v360_v43, %v424_v53  ;;  %v308_v60 = vmul.f32 %v5261_v5, %v269_v50  ;;  %v324_v61 = vmul.f32 %v5261_v5, %v285_v51  ;;  %s262_s14 = scalar_lea.vmem %s6724_s6, %s3933_s7 }
  0x21   : > { %4634 = vmatprep.subr.mxu0 %v5219_v1  ;;  %495 = vst.msk [vmem:[#allocation2 + $0x20] sm:$0xff] %vm470_vm0, %v5356_v58  ;;  %4540 = vmatmul.mubr.msk.f32.gmra.mrb[2].mxu0 %vm470_vm0, %v5356_v58  ;;  %511 = vst.msk [vmem:[#allocation2 + $0xe0] sm:$0xff] %vm470_vm0, %v5358_v59  ;;  %vm377_vm10 = vcmp.gt.f32.partialorder %v345_v54, 0.0  ;;  %v409_v0 = vmul.f32 0.01, %v345_v54  ;;  %vm393_vm11 = vcmp.gt.f32.partialorder %v361_v55, 0.0  ;;  %v346_v3 = vadd.f32 %v5273_v6, %v307_v56 }
  0x22   : > { %4664 = vmatmul.mubr.msk.f32.gmra.mrb[2].mxu1 %vm470_vm0, %v5358_v59  ;;  %v425_v2 = vmul.f32 0.01, %v361_v55  ;;  %v362_v4 = vadd.f32 %v5273_v6, %v323_v57  ;;  %v347_v7 = vadd.f32 %v5273_v6, %v308_v60  ;;  %v363_v8 = vadd.f32 %v5273_v6, %v324_v61  ;;  %v290_v57 = vld [vmem:[%s5268_s12 + $0xd8] sm:$0xff]  ;;  %v275_v60 = vld [vmem:[%s5268_s12 + $0x60] sm:$0xff] }
  0x23   : > { %v5377_v9 = vsel %vm377_vm10, %v345_v54, %v409_v0  ;;  %v309_v11 = vmul.f32 %v5261_v5, %v270_v62  ;;  %v325_v12 = vmul.f32 %v5261_v5, %v286_v63  ;;  %vm378_vm12 = vcmp.gt.f32.partialorder %v346_v3, 0.0 }
  0x24   : > { %v5379_v10 = vsel %vm393_vm11, %v361_v55, %v425_v2  ;;  %496 = vst.msk [vmem:[#allocation2 + $0x30] sm:$0xff] %vm470_vm0, %v5377_v9  ;;  %4542 = vmatprep.mubr.msk.f32.mxu0 %vm470_vm0, %v5377_v9  ;;  %v410_v14 = vmul.f32 0.01, %v346_v3  ;;  %vm394_vm13 = vcmp.gt.f32.partialorder %v362_v4, 0.0  ;;  %v426_v15 = vmul.f32 0.01, %v362_v4 }
  0x25   : > { %512 = vst.msk [vmem:[#allocation2 + $0xf0] sm:$0xff] %vm470_vm0, %v5379_v10  ;;  %4666 = vmatprep.mubr.msk.f32.mxu1 %vm470_vm0, %v5379_v10  ;;  %vm379_vm14 = vcmp.gt.f32.partialorder %v347_v7, 0.0  ;;  %v411_v16 = vmul.f32 0.01, %v347_v7  ;;  %vm395_vm15 = vcmp.gt.f32.partialorder %v363_v8, 0.0  ;;  %v348_v20 = vadd.f32 %v5273_v6, %v309_v11 }
  0x26   : > { %v427_v17 = vmul.f32 0.01, %v363_v8  ;;  %v5392_v18 = vsel %vm378_vm12, %v346_v3, %v410_v14  ;;  %v5394_v19 = vsel %vm394_vm13, %v362_v4, %v426_v15  ;;  %v364_v21 = vadd.f32 %v5273_v6, %v325_v12  ;;  %v291_v3 = vld [vmem:[%s5268_s12 + $0xe0] sm:$0xff]  ;;  %v276_v12 = vld [vmem:[%s5268_s12 + $0x68] sm:$0xff]  ;;  %v277_v14 = vld [vmem:[%s5268_s12 + $0x70] sm:$0xff] }
  0x27   : > { %497 = vst.msk [vmem:[#allocation2 + $0x38] sm:$0xff] %vm470_vm0, %v5392_v18  ;;  %4543 = vmatmul.mubr.msk.f32.gmra.mrb[4].mxu0 %vm470_vm0, %v5392_v18  ;;  %513 = vst.msk [vmem:[#allocation2 + $0xf8] sm:$0xff] %vm470_vm0, %v5394_v19  ;;  %4667 = vmatmul.mubr.msk.f32.gmra.mrb[4].mxu1 %vm470_vm0, %v5394_v19  ;;  %v5409_v25 = vsel %vm379_vm14, %v347_v7, %v411_v16  ;;  %v310_v27 = vmul.f32 %v5261_v5, %v271_v13  ;;  %vm380_vm1 = vcmp.gt.f32.partialorder %v348_v20, 0.0  ;;  %v292_v13 = vld [vmem:[%s5268_s12 + $0xe8] sm:$0xff] }
  0x28   : > { %v5411_v26 = vsel %vm395_vm15, %v363_v8, %v427_v17  ;;  %498 = vst.msk [vmem:[#allocation2 + $0x48] sm:$0xff] %vm470_vm0, %v5409_v25  ;;  %4545 = vmatprep.mubr.msk.f32.mxu0 %vm470_vm0, %v5409_v25  ;;  %v412_v30 = vmul.f32 0.01, %v348_v20  ;;  %vm396_vm2 = vcmp.gt.f32.partialorder %v364_v21, 0.0  ;;  %v428_v31 = vmul.f32 0.01, %v364_v21 }
  0x29   : > { %514 = vst.msk [vmem:[#allocation2 + $0x108] sm:$0xff] %vm470_vm0, %v5411_v26  ;;  %4669 = vmatprep.mubr.msk.f32.mxu1 %vm470_vm0, %v5411_v26  ;;  %v349_v32 = vadd.f32 %v5273_v6, %v310_v27  ;;  %v326_v35 = vmul.f32 %v5261_v5, %v287_v22  ;;  %v311_v36 = vmul.f32 %v5261_v5, %v272_v23 }
  0x2a   : > { %v327_v37 = vmul.f32 %v5261_v5, %v288_v24  ;;  %v5429_v42 = vsel %vm380_vm1, %v348_v20, %v412_v30  ;;  %v5431_v43 = vsel %vm396_vm2, %v364_v21, %v428_v31  ;;  %v312_v44 = vmul.f32 %v5261_v5, %v273_v28 }
  0x2b   : > { %v328_v45 = vmul.f32 %v5261_v5, %v289_v29  ;;  %499 = vst.msk [vmem:[#allocation2 + $0x50] sm:$0xff] %vm470_vm0, %v5429_v42  ;;  %4546 = vmatmul.mubr.msk.f32.gmra.mrb[6].mxu0 %vm470_vm0, %v5429_v42  ;;  %515 = vst.msk [vmem:[#allocation2 + $0x110] sm:$0xff] %vm470_vm0, %v5431_v43  ;;  %4670 = vmatmul.mubr.msk.f32.gmra.mrb[6].mxu1 %vm470_vm0, %v5431_v43  ;;  %vm381_vm3 = vcmp.gt.f32.partialorder %v349_v32, 0.0  ;;  %v413_v48 = vmul.f32 0.01, %v349_v32 }
  0x2c   : > { %v365_v49 = vadd.f32 %v5273_v6, %v326_v35  ;;  %v350_v50 = vadd.f32 %v5273_v6, %v311_v36  ;;  %v366_v51 = vadd.f32 %v5273_v6, %v327_v37  ;;  %v351_v52 = vadd.f32 %v5273_v6, %v312_v44 }
  0x2d   : > { %v367_v53 = vadd.f32 %v5273_v6, %v328_v45  ;;  %v313_v54 = vmul.f32 %v5261_v5, %v274_v40  ;;  %v5449_v55 = vsel %vm381_vm3, %v349_v32, %v413_v48  ;;  %v329_v11 = vmul.f32 %v5261_v5, %v290_v57  ;;  %v293_v45 = vld [vmem:[%s5268_s12 + $0xf0] sm:$0xff]  ;;  %v278_v48 = vld [vmem:[%s5268_s12 + $0x78] sm:$0xff] }
  0x2e   : > { %vm397_vm4 = vcmp.gt.f32.partialorder %v365_v49, 0.0  ;;  %v429_v56 = vmul.f32 0.01, %v365_v49  ;;  %vm382_vm5 = vcmp.gt.f32.partialorder %v350_v50, 0.0  ;;  %500 = vst.msk [vmem:[#allocation2 + $0x60] sm:$0xff] %vm470_vm0, %v5449_v55  ;;  %4548 = vmatprep.mubr.msk.f32.mxu0 %vm470_vm0, %v5449_v55  ;;  %vm398_vm6 = vcmp.gt.f32.partialorder %v366_v51, 0.0 }
  0x2f   : > { %v414_v61 = vmul.f32 0.01, %v350_v50  ;;  %v430_v62 = vmul.f32 0.01, %v366_v51  ;;  %vm383_vm7 = vcmp.gt.f32.partialorder %v351_v52, 0.0  ;;  %vm399_vm8 = vcmp.gt.f32.partialorder %v367_v53, 0.0 }
  0x30   : > { %v5457_v63 = vsel %vm397_vm4, %v365_v49, %v429_v56  ;;  %v415_v0 = vmul.f32 0.01, %v351_v52  ;;  %v431_v2 = vmul.f32 0.01, %v367_v53  ;;  %v352_v8 = vadd.f32 %v5273_v6, %v313_v54  ;;  %v294_v49 = vld [vmem:[%s5268_s12 + $0xf8] sm:$0xff] }
  0x31   : > { %516 = vst.msk [vmem:[#allocation2 + $0x120] sm:$0xff] %vm470_vm0, %v5457_v63  ;;  %4672 = vmatprep.mubr.msk.f32.mxu1 %vm470_vm0, %v5457_v63  ;;  %v5465_v4 = vsel %vm382_vm5, %v350_v50, %v414_v61  ;;  %v5467_v7 = vsel %vm398_vm6, %v366_v51, %v430_v62  ;;  %v314_v17 = vmul.f32 %v5261_v5, %v275_v60  ;;  %vm3495_vm4 = vcmask 31744  }
  0x32   : > { %501 = vst.msk [vmem:[#allocation2 + $0x68] sm:$0xff] %vm470_vm0, %v5465_v4  ;;  %4549 = vmatmul.mubr.msk.f32.gmra.mrb[8].mxu0 %vm470_vm0, %v5465_v4  ;;  %517 = vst.msk [vmem:[#allocation2 + $0x128] sm:$0xff] %vm470_vm0, %v5467_v7  ;;  %4673 = vmatmul.mubr.msk.f32.gmra.mrb[8].mxu1 %vm470_vm0, %v5467_v7  ;;  %v5483_v15 = vsel %vm383_vm7, %v351_v52, %v415_v0  ;;  %v5486_v16 = vsel %vm399_vm8, %v367_v53, %v431_v2  ;;  %vm384_vm9 = vcmp.gt.f32.partialorder %v352_v8, 0.0  ;;  %vm3560_vm5 = vcmask 97280  }
  0x33   : > { %502 = vst.msk [vmem:[#allocation2 + $0x78] sm:$0xff] %vm470_vm0, %v5483_v15  ;;  %4551 = vmatprep.mubr.msk.f32.mxu0 %vm470_vm0, %v5483_v15  ;;  %518 = vst.msk [vmem:[#allocation2 + $0x138] sm:$0xff] %vm470_vm0, %v5486_v16  ;;  %4675 = vmatprep.mubr.msk.f32.mxu1 %vm470_vm0, %v5486_v16  ;;  %v416_v20 = vmul.f32 0.01, %v352_v8  ;;  %v368_v21 = vadd.f32 %v5273_v6, %v329_v11  ;;  %v330_v22 = vmul.f32 %v5261_v5, %v291_v3  ;;  %vm3632_vm6 = vcmask 130048  }
  0x34   : > { %v353_v23 = vadd.f32 %v5273_v6, %v314_v17  ;;  %v315_v24 = vmul.f32 %v5261_v5, %v276_v12  ;;  %v331_v27 = vmul.f32 %v5261_v5, %v292_v13  ;;  %v316_v28 = vmul.f32 %v5261_v5, %v277_v14  ;;  %v524_v17 = vld [vmem:[#allocation2 + $0x1] sm:$0xff] }
  0x35   : > { %v5503_v29 = vsel %vm384_vm9, %v352_v8, %v416_v20  ;;  %vm400_vm10 = vcmp.gt.f32.partialorder %v368_v21, 0.0  ;;  %v432_v30 = vmul.f32 0.01, %v368_v21  ;;  %v369_v31 = vadd.f32 %v5273_v6, %v330_v22  ;;  %v525_v20 = vld [vmem:[#allocation2 + $0x9] sm:$0xff] }
  0x36   : > { %503 = vst.msk [vmem:[#allocation2 + $0x80] sm:$0xff] %vm470_vm0, %v5503_v29  ;;  %4552 = vmatmul.mubr.msk.f32.gmra.mrb[10].mxu0 %vm470_vm0, %v5503_v29  ;;  %vm385_vm11 = vcmp.gt.f32.partialorder %v353_v23, 0.0  ;;  %v417_v32 = vmul.f32 0.01, %v353_v23  ;;  %v354_v35 = vadd.f32 %v5273_v6, %v315_v24  ;;  %v370_v36 = vadd.f32 %v5273_v6, %v331_v27  ;;  %v5586_v22 = vld [vmem:[%s6721_s3 + $0x10] sm:$0xff]  ;;  %v5607_v27 = vld [vmem:[#allocation2 + $0x39] sm:$0xff] }
  0x37   : > { %v5512_v37 = vsel %vm400_vm10, %v368_v21, %v432_v30  ;;  %vm401_vm12 = vcmp.gt.f32.partialorder %v369_v31, 0.0  ;;  %v433_v40 = vmul.f32 0.01, %v369_v31  ;;  %v355_v44 = vadd.f32 %v5273_v6, %v316_v28  ;;  %v5579_v21 = vld [vmem:[#allocation2 + $0x19] sm:$0xff]  ;;  %v5596_v24 = vld [vmem:[#allocation2 + $0x31] sm:$0xff]  ;;  %v5609_v28 = vld [vmem:[#allocation2 + $0x49] sm:$0xff] }
  0x38   : > { %519 = vst.msk [vmem:[#allocation2 + $0x140] sm:$0xff] %vm470_vm0, %v5512_v37  ;;  %4676 = vmatmul.mubr.msk.f32.gmra.mrb[10].mxu1 %vm470_vm0, %v5512_v37  ;;  %v5522_v50 = vsel %vm385_vm11, %v353_v23, %v417_v32  ;;  %vm386_vm13 = vcmp.gt.f32.partialorder %v354_v35, 0.0  ;;  %v418_v51 = vmul.f32 0.01, %v354_v35  ;;  %vm402_vm14 = vcmp.gt.f32.partialorder %v370_v36, 0.0  ;;  %v5593_v23 = vld [vmem:[#allocation2 + $0x21] sm:$0xff] }
  0x39   : > { %504 = vst.msk [vmem:[#allocation2 + $0x90] sm:$0xff] %vm470_vm0, %v5522_v50  ;;  %4554 = vmatprep.mubr.msk.f32.mxu0 %vm470_vm0, %v5522_v50  ;;  %v5528_v52 = vsel %vm401_vm12, %v369_v31, %v433_v40  ;;  %v434_v53 = vmul.f32 0.01, %v370_v36  ;;  %vm387_vm15 = vcmp.gt.f32.partialorder %v355_v44, 0.0  ;;  %v419_v54 = vmul.f32 0.01, %v355_v44 }
  0x3a   : > { %6732 = vst [vmem:[#allocation3_spill] sm:$0xff] %v5528_v52  ;;  %520 = vst.msk [vmem:[#allocation2 + $0x150] sm:$0xff] %vm470_vm0, %v5528_v52  ;;  %4678 = vmatprep.mubr.msk.f32.mxu1 %vm470_vm0, %v5528_v52  ;;  %v5534_v56 = vsel %vm386_vm13, %v354_v35, %v418_v51  ;;  %v332_v57 = vmul.f32 %v5261_v5, %v293_v45  ;;  %v317_v60 = vmul.f32 %v5261_v5, %v278_v48  ;;  %v5621_v30 = vld [vmem:[#allocation2 + $0x61] sm:$0xff]  ;;  %v5631_v31 = vld [vmem:[#allocation2 + $0x69] sm:$0xff] }
  0x3b   : > { %v333_v61 = vmul.f32 %v5261_v5, %v294_v49  ;;  %505 = vst.msk [vmem:[#allocation2 + $0x98] sm:$0xff] %vm470_vm0, %v5534_v56  ;;  %4555 = vmatmul.mubr.msk.f32.gmra.mrb[12].mxu0 %vm470_vm0, %v5534_v56  ;;  %v5543_v62 = vsel %vm402_vm14, %v370_v36, %v434_v53  ;;  %v5545_v0 = vsel %vm387_vm15, %v355_v44, %v419_v54  ;;  %v5669_v48 = vld [vmem:[#allocation2 + $0xc1] sm:$0xff]  ;;  %v5678_v49 = vld [vmem:[#allocation2 + $0xc9] sm:$0xff]  ;;  %v5680_v51 = vld [vmem:[#allocation2 + $0xd9] sm:$0xff] }
  0x3c   : > { %6733 = vst [vmem:[#allocation4_spill] sm:$0xff] %v5543_v62  ;;  %521 = vst.msk [vmem:[#allocation2 + $0x158] sm:$0xff] %vm470_vm0, %v5543_v62  ;;  %4679 = vmatmul.mubr.msk.f32.gmra.mrb[12].mxu1 %vm470_vm0, %v5543_v62  ;;  %4557 = vmatprep.mubr.msk.f32.mxu0 %vm470_vm0, %v5545_v0  ;;  %v371_v5 = vadd.f32 %v5273_v6, %v332_v57  ;;  %v356_v2 = vadd.f32 %v5273_v6, %v317_v60  ;;  %v5686_v53 = vld [vmem:[%s6721_s3 + $0x8] sm:$0xff]  ;;  %v5697_v57 = vld [vmem:[#allocation2 + $0xf1] sm:$0xff] }
  0x3d   : > { %506 = vst.msk [vmem:[#allocation2 + $0xa8] sm:$0xff] %vm470_vm0, %v5545_v0  ;;  %v372_v3 = vadd.f32 %v5273_v6, %v333_v61  ;;  %v5633_v32 = vld [vmem:[#allocation2 + $0x79] sm:$0xff]  ;;  %v5643_v35 = vld [vmem:[#allocation2 + $0x81] sm:$0xff]  ;;  %v5710_v60 = vld [vmem:[#allocation2 + $0x109] sm:$0xff] }
  0x3e   : > { %vm403_vm1 = vcmp.gt.f32.partialorder %v371_v5, 0.0  ;;  %v435_v8 = vmul.f32 0.01, %v371_v5  ;;  %vm388_vm2 = vcmp.gt.f32.partialorder %v356_v2, 0.0  ;;  %v420_v11 = vmul.f32 0.01, %v356_v2 }
  0x3f   : > { %vm404_vm3 = vcmp.gt.f32.partialorder %v372_v3, 0.0  ;;  %v436_v12 = vmul.f32 0.01, %v372_v3  ;;  %v5695_v54 = vld [vmem:[#allocation2 + $0xe1] sm:$0xff]  ;;  %v5720_v61 = vld [vmem:[#allocation2 + $0x111] sm:$0xff] }
  0x40   : > { %v5558_v13 = vsel %vm403_vm1, %v371_v5, %v435_v8  ;;  %v5560_v14 = vsel %vm388_vm2, %v356_v2, %v420_v11  ;;  %v5722_v5 = vld [vmem:[#allocation2 + $0x121] sm:$0xff]  ;;  %v5732_v2 = vld [vmem:[#allocation2 + $0x129] sm:$0xff] }
  0x41   : > { %6734 = vst [vmem:[#allocation5_spill] sm:$0xff] %v5558_v13  ;;  %522 = vst.msk [vmem:[#allocation2 + $0x168] sm:$0xff] %vm470_vm0, %v5558_v13  ;;  %4681 = vmatprep.mubr.msk.f32.mxu1 %vm470_vm0, %v5558_v13  ;;  %4558 = vmatmul.mubr.msk.f32.gmra.mrb[14].mxu0 %vm470_vm0, %v5560_v14  ;;  %v5570_v6 = vsel %vm404_vm3, %v372_v3, %v436_v12  ;;  %v5734_v3 = vld [vmem:[#allocation2 + $0x139] sm:$0xff]  ;;  %v5744_v8 = vld [vmem:[#allocation2 + $0x141] sm:$0xff] }
  0x42   : > { %507 = vst.msk [vmem:[#allocation2 + $0xb0] sm:$0xff] %vm470_vm0, %v5560_v14  ;;  %6735 = vst [vmem:[#allocation6_spill] sm:$0xff] %v5570_v6  ;;  %4682 = vmatmul.mubr.msk.f32.gmra.mrb[14].mxu1 %vm470_vm0, %v5570_v6  ;;  %4560 = vmatprep.mubr.msk.f32.mxu0 %vm470_vm0, %v5299_v34  ;;  %v5645_v36 = vld [vmem:[#allocation2 + $0x91] sm:$0xff]  ;;  %v5655_v40 = vld [vmem:[#allocation2 + $0x99] sm:$0xff] }
  0x43   : > { %523 = vst.msk [vmem:[#allocation2 + $0x170] sm:$0xff] %vm470_vm0, %v5570_v6  ;;  %4786 = vmatprep.mubr.msk.f32.mxu1 %vm470_vm0, %v524_v17  ;;  %v5746_v11 = vld [vmem:[#allocation2 + $0x151] sm:$0xff]  ;;  %v5756_v12 = vld [vmem:[#allocation2 + $0x159] sm:$0xff] }
  0x45   : > { %4561 = vmatmul.mubr.msk.f32.gmra.mrb[16].mxu0 %vm470_vm0, %v5313_v39 }
  0x46   : > { %4787 = vmatmul.mubr.msk.f32.vlgmr.msra.gmra.mrb[16].mxu1 %vm470_vm0, %v525_v20  ;;  %4563 = vmatprep.mubr.msk.f32.mxu0 %vm470_vm0, %v5340_v47 }
  0x47   : > { %4789 = vmatprep.mubr.msk.f32.mxu1 %vm470_vm0, %v5579_v21  ;;  %4835 = vmatpush3.msra.mxu1 %v5333_v46  ;;  %v5619_v46 = vld [vmem:[#allocation2 + $0x51] sm:$0xff] }
  0x48   : > { %4884 = vmatprep.subr.mxu1 %v5586_v22 }
  0x49   : > { %4564 = vmatmul.mubr.msk.f32.gmra.mrb[18].mxu0 %vm470_vm0, %v5358_v59  ;;  %v5657_v44 = vld [vmem:[#allocation2 + $0xa9] sm:$0xff]  ;;  %v5667_v45 = vld [vmem:[#allocation2 + $0xb1] sm:$0xff] }
  0x4a   : > { %4790 = vmatmul.mubr.msk.f32.gmra.mrb[18].mxu1 %vm470_vm0, %v5593_v23  ;;  %4566 = vmatprep.mubr.msk.f32.mxu0 %vm470_vm0, %v5379_v10  ;;  %6736 = vst [vmem:[#allocation7_spill] sm:$0xff] %v5657_v44 }
  0x4b   : > { %4792 = vmatprep.mubr.msk.f32.mxu1 %vm470_vm0, %v5596_v24 }
  0x4d   : > { %4567 = vmatmul.mubr.msk.f32.gmra.mrb[20].mxu0 %vm470_vm0, %v5394_v19 }
  0x4e   : > { %4793 = vmatmul.mubr.msk.f32.gmra.mrb[20].mxu1 %vm470_vm0, %v5607_v27  ;;  %4569 = vmatprep.mubr.msk.f32.mxu0 %vm470_vm0, %v5411_v26 }
  0x4f   : > { %4795 = vmatprep.mubr.msk.f32.mxu1 %vm470_vm0, %v5609_v28 }
  0x51   : > { %4570 = vmatmul.mubr.msk.f32.gmra.mrb[22].mxu0 %vm470_vm0, %v5431_v43 }
  0x52   : > { %4796 = vmatmul.mubr.msk.f32.gmra.mrb[22].mxu1 %vm470_vm0, %v5619_v46  ;;  %4572 = vmatprep.mubr.msk.f32.mxu0 %vm470_vm0, %v5457_v63 }
  0x53   : > { %4798 = vmatprep.mubr.msk.f32.mxu1 %vm470_vm0, %v5621_v30 }
  0x55   : > { %4573 = vmatmul.mubr.msk.f32.gmra.mrb[24].mxu0 %vm470_vm0, %v5467_v7 }
  0x56   : > { %4799 = vmatmul.mubr.msk.f32.gmra.mrb[24].mxu1 %vm470_vm0, %v5631_v31  ;;  %4575 = vmatprep.mubr.msk.f32.mxu0 %vm470_vm0, %v5486_v16 }
  0x57   : > { %4801 = vmatprep.mubr.msk.f32.mxu1 %vm470_vm0, %v5633_v32 }
  0x59   : > { %4576 = vmatmul.mubr.msk.f32.gmra.mrb[26].mxu0 %vm470_vm0, %v5512_v37 }
  0x5a   : > { %4802 = vmatmul.mubr.msk.f32.gmra.mrb[26].mxu1 %vm470_vm0, %v5643_v35  ;;  %4578 = vmatprep.mubr.msk.f32.mxu0 %vm470_vm0, %v5528_v52 }
  0x5b   : > { %4804 = vmatprep.mubr.msk.f32.mxu1 %vm470_vm0, %v5645_v36 }
  0x5d   : > { %4579 = vmatmul.mubr.msk.f32.gmra.mrb[28].mxu0 %vm470_vm0, %v5543_v62 }
  0x5e   : > { %4805 = vmatmul.mubr.msk.f32.gmra.mrb[28].mxu1 %vm470_vm0, %v5655_v40  ;;  %4581 = vmatprep.mubr.msk.f32.mxu0 %vm470_vm0, %v5558_v13 }
  0x5f   : > { %4807 = vmatprep.mubr.msk.f32.mxu1 %vm470_vm0, %v5657_v44 }
  0x61   : > { %4582 = vmatmul.mubr.msk.f32.gmra.mrb[30].mxu0 %vm470_vm0, %v5570_v6 }
  0x62   : > { %4808 = vmatmul.mubr.msk.f32.gmra.mrb[30].mxu1 %vm470_vm0, %v5667_v45  ;;  %4586 = vmatprep.mubr.msk.f32.mxu0 %vm470_vm0, %v524_v17  ;;  %v5758_v17 = vld [vmem:[#allocation2 + $0x169] sm:$0xff] }
  0x63   : > { %4810 = vmatprep.mubr.msk.f32.mxu1 %vm470_vm0, %v5669_v48  ;;  %6737 = vst [vmem:[#allocation8_spill] sm:$0xff] %v5758_v17 }
  0x65   : > { %4587 = vmatmul.mubr.msk.f32.vlgmr.msra.gmra.mrb[32].mxu0 %vm470_vm0, %v525_v20  ;;  %v5768_v20 = vld [vmem:[#allocation2 + $0x171] sm:$0xff] }
  0x66   : > { %4635 = vmatpush3.msra.mxu0 %v5219_v1  ;;  %4811 = vmatmul.mubr.msk.f32.gmra.mrb[32].mxu1 %vm470_vm0, %v5678_v49  ;;  %v5708_v1 = vld [vmem:[#allocation2 + $0xf9] sm:$0xff]  ;;  %6738 = vst [vmem:[#allocation9_spill] sm:$0xff] %v5768_v20 }
  0x67   : > { %4589 = vmatprep.mubr.msk.f32.mxu0 %vm470_vm0, %v5579_v21  ;;  %4813 = vmatprep.mubr.msk.f32.mxu1 %vm470_vm0, %v5680_v51 }
  0x68   : > { %4684 = vmatprep.subr.mxu0 %v5686_v53 }
  0x69   : > { %4590 = vmatmul.mubr.msk.f32.gmra.mrb[34].mxu0 %vm470_vm0, %v5593_v23 }
  0x6a   : > { %4814 = vmatmul.mubr.msk.f32.gmra.mrb[34].mxu1 %vm470_vm0, %v5695_v54  ;;  %4592 = vmatprep.mubr.msk.f32.mxu0 %vm470_vm0, %v5596_v24 }
  0x6b   : > { %4816 = vmatprep.mubr.msk.f32.mxu1 %vm470_vm0, %v5697_v57 }
  0x6d   : > { %4593 = vmatmul.mubr.msk.f32.gmra.mrb[36].mxu0 %vm470_vm0, %v5607_v27 }
  0x6e   : > { %4817 = vmatmul.mubr.msk.f32.gmra.mrb[36].mxu1 %vm470_vm0, %v5708_v1  ;;  %4595 = vmatprep.mubr.msk.f32.mxu0 %vm470_vm0, %v5609_v28 }
  0x6f   : > { %4819 = vmatprep.mubr.msk.f32.mxu1 %vm470_vm0, %v5710_v60 }
  0x71   : > { %4596 = vmatmul.mubr.msk.f32.gmra.mrb[38].mxu0 %vm470_vm0, %v5619_v46 }
  0x72   : > { %4820 = vmatmul.mubr.msk.f32.gmra.mrb[38].mxu1 %vm470_vm0, %v5720_v61  ;;  %4598 = vmatprep.mubr.msk.f32.mxu0 %vm470_vm0, %v5621_v30 }
  0x73   : > { %4822 = vmatprep.mubr.msk.f32.mxu1 %vm470_vm0, %v5722_v5 }
  0x75   : > { %4599 = vmatmul.mubr.msk.f32.gmra.mrb[40].mxu0 %vm470_vm0, %v5631_v31 }
  0x76   : > { %4823 = vmatmul.mubr.msk.f32.gmra.mrb[40].mxu1 %vm470_vm0, %v5732_v2  ;;  %4601 = vmatprep.mubr.msk.f32.mxu0 %vm470_vm0, %v5633_v32 }
  0x77   : > { %4825 = vmatprep.mubr.msk.f32.mxu1 %vm470_vm0, %v5734_v3 }
  0x79   : > { %4602 = vmatmul.mubr.msk.f32.gmra.mrb[42].mxu0 %vm470_vm0, %v5643_v35 }
  0x7a   : > { %4826 = vmatmul.mubr.msk.f32.gmra.mrb[42].mxu1 %vm470_vm0, %v5744_v8  ;;  %4604 = vmatprep.mubr.msk.f32.mxu0 %vm470_vm0, %v5645_v36 }
  0x7b   : > { %4828 = vmatprep.mubr.msk.f32.mxu1 %vm470_vm0, %v5746_v11 }
  0x7d   : > { %4605 = vmatmul.mubr.msk.f32.gmra.mrb[44].mxu0 %vm470_vm0, %v5655_v40 }
  0x7e   : > { %4829 = vmatmul.mubr.msk.f32.gmra.mrb[44].mxu1 %vm470_vm0, %v5756_v12  ;;  %4607 = vmatprep.mubr.msk.f32.mxu0 %vm470_vm0, %v5657_v44  ;;  %v5783_v44 = vld [vmem:[%s6721_s3] sm:$0xff] }
  0x7f   : > { %4831 = vmatprep.mubr.msk.f32.mxu1 %vm470_vm0, %v5758_v17 }
  0x81   : > { %4608 = vmatmul.mubr.msk.f32.gmra.mrb[46].mxu0 %vm470_vm0, %v5667_v45 }
  0x82   : > { %4832 = vmatmul.mubr.msk.f32.gmra.mrb[46].mxu1 %vm470_vm0, %v5768_v20  ;;  %4610 = vmatprep.mubr.msk.f32.mxu0 %vm470_vm0, %v5669_v48 }
  0x83   : > { %4836 = vmatprep.mubr.msk.f32.mxu1 %vm470_vm0, %v5297_v33 }
  0x85   : > { %4611 = vmatmul.mubr.msk.f32.gmra.mrb[48].mxu0 %vm470_vm0, %v5678_v49 }
  0x86   : > { %4837 = vmatmul.mubr.msk.f32.vlgmr.msra.gmra.mrb[16].mxu1 %vm470_vm0, %v5311_v38  ;;  %4613 = vmatprep.mubr.msk.f32.mxu0 %vm470_vm0, %v5680_v51 }
  0x87   : > { %4839 = vmatprep.mubr.msk.f32.mxu1 %vm470_vm0, %v5324_v41  ;;  %4885 = vmatpush3.msra.mxu1 %v5586_v22  ;;  %v4035_v22 = vld [vmem:[%s6721_s3 + $0x38] sm:$0xff] }
  0x88   : > { %4934 = vmatprep.subr.mxu1 %v5783_v44 }
  0x89   : > { %4614 = vmatmul.mubr.msk.f32.gmra.mrb[50].mxu0 %vm470_vm0, %v5695_v54 }
  0x8a   : > { %4840 = vmatmul.mubr.msk.f32.gmra.mrb[18].mxu1 %vm470_vm0, %v5356_v58  ;;  %4616 = vmatprep.mubr.msk.f32.mxu0 %vm470_vm0, %v5697_v57 }
  0x8b   : > { %4842 = vmatprep.mubr.msk.f32.mxu1 %vm470_vm0, %v5377_v9 }
  0x8d   : > { %4617 = vmatmul.mubr.msk.f32.gmra.mrb[52].mxu0 %vm470_vm0, %v5708_v1 }
  0x8e   : > { %4843 = vmatmul.mubr.msk.f32.gmra.mrb[20].mxu1 %vm470_vm0, %v5392_v18  ;;  %4619 = vmatprep.mubr.msk.f32.mxu0 %vm470_vm0, %v5710_v60 }
  0x8f   : > { %4845 = vmatprep.mubr.msk.f32.mxu1 %vm470_vm0, %v5409_v25 }
  0x91   : > { %4620 = vmatmul.mubr.msk.f32.gmra.mrb[54].mxu0 %vm470_vm0, %v5720_v61 }
  0x92   : > { %4846 = vmatmul.mubr.msk.f32.gmra.mrb[22].mxu1 %vm470_vm0, %v5429_v42  ;;  %4622 = vmatprep.mubr.msk.f32.mxu0 %vm470_vm0, %v5722_v5 }
  0x93   : > { %4848 = vmatprep.mubr.msk.f32.mxu1 %vm470_vm0, %v5449_v55 }
  0x95   : > { %4623 = vmatmul.mubr.msk.f32.gmra.mrb[56].mxu0 %vm470_vm0, %v5732_v2 }
  0x96   : > { %4849 = vmatmul.mubr.msk.f32.gmra.mrb[24].mxu1 %vm470_vm0, %v5465_v4  ;;  %4625 = vmatprep.mubr.msk.f32.mxu0 %vm470_vm0, %v5734_v3 }
  0x97   : > { %4851 = vmatprep.mubr.msk.f32.mxu1 %vm470_vm0, %v5483_v15 }
  0x99   : > { %4626 = vmatmul.mubr.msk.f32.gmra.mrb[58].mxu0 %vm470_vm0, %v5744_v8 }
  0x9a   : > { %4852 = vmatmul.mubr.msk.f32.gmra.mrb[26].mxu1 %vm470_vm0, %v5503_v29  ;;  %4628 = vmatprep.mubr.msk.f32.mxu0 %vm470_vm0, %v5746_v11 }
  0x9b   : > { %4854 = vmatprep.mubr.msk.f32.mxu1 %vm470_vm0, %v5522_v50 }
  0x9d   : > { %4629 = vmatmul.mubr.msk.f32.gmra.mrb[60].mxu0 %vm470_vm0, %v5756_v12 }
  0x9e   : > { %4855 = vmatmul.mubr.msk.f32.gmra.mrb[28].mxu1 %vm470_vm0, %v5534_v56  ;;  %4631 = vmatprep.mubr.msk.f32.mxu0 %vm470_vm0, %v5758_v17  ;;  %v559_v17 = vld [vmem:[#allocation2 + $0x30] sm:$0xff] }
  0x9f   : > { %4857 = vmatprep.mubr.msk.f32.mxu1 %vm470_vm0, %v5545_v0 }
  0xa1   : > { %4632 = vmatmul.mubr.msk.f32.gmra.mrb[62].mxu0 %vm470_vm0, %v5768_v20  ;;  %v558_v20 = vld [vmem:[#allocation2 + $0x20] sm:$0xff] }
  0xa2   : > { %4858 = vmatmul.mubr.msk.f32.gmra.mrb[30].mxu1 %vm470_vm0, %v5560_v14  ;;  %4636 = vmatprep.mubr.msk.f32.mxu0 %vm470_vm0, %v5297_v33 }
  0xa3   : > { %4860 = vmatprep.mubr.msk.f32.mxu1 %vm470_vm0, %v5299_v34 }
  0xa5   : > { %4637 = vmatmul.mubr.msk.f32.vlgmr.msra.gmra.mrb[32].mxu0 %vm470_vm0, %v5311_v38 }
  0xa6   : > { %4685 = vmatpush3.msra.mxu0 %v5686_v53  ;;  %4861 = vmatmul.mubr.msk.f32.gmra.mrb[32].mxu1 %vm470_vm0, %v5313_v39  ;;  %v557_v53 = vld [vmem:[#allocation2 + $0x18] sm:$0xff] }
  0xa7   : > { %4639 = vmatprep.mubr.msk.f32.mxu0 %vm470_vm0, %v5324_v41  ;;  %4863 = vmatprep.mubr.msk.f32.mxu1 %vm470_vm0, %v5340_v47 }
  0xa8   : > { %4734 = vmatprep.subr.mxu0 %v4035_v22 }
  0xa9   : > { %4640 = vmatmul.mubr.msk.f32.gmra.mrb[34].mxu0 %vm470_vm0, %v5356_v58 }
  0xaa   : > { %4864 = vmatmul.mubr.msk.f32.gmra.mrb[34].mxu1 %vm470_vm0, %v5358_v59  ;;  %4642 = vmatprep.mubr.msk.f32.mxu0 %vm470_vm0, %v5377_v9 }
  0xab   : > { %4866 = vmatprep.mubr.msk.f32.mxu1 %vm470_vm0, %v5379_v10 }
  0xad   : > { %4643 = vmatmul.mubr.msk.f32.gmra.mrb[36].mxu0 %vm470_vm0, %v5392_v18 }
  0xae   : > { %4867 = vmatmul.mubr.msk.f32.gmra.mrb[36].mxu1 %vm470_vm0, %v5394_v19  ;;  %4645 = vmatprep.mubr.msk.f32.mxu0 %vm470_vm0, %v5409_v25 }
  0xaf   : > { %4869 = vmatprep.mubr.msk.f32.mxu1 %vm470_vm0, %v5411_v26 }
  0xb1   : > { %4646 = vmatmul.mubr.msk.f32.gmra.mrb[38].mxu0 %vm470_vm0, %v5429_v42 }
  0xb2   : > { %4870 = vmatmul.mubr.msk.f32.gmra.mrb[38].mxu1 %vm470_vm0, %v5431_v43  ;;  %4648 = vmatprep.mubr.msk.f32.mxu0 %vm470_vm0, %v5449_v55 }
  0xb3   : > { %4872 = vmatprep.mubr.msk.f32.mxu1 %vm470_vm0, %v5457_v63 }
  0xb5   : > { %4649 = vmatmul.mubr.msk.f32.gmra.mrb[40].mxu0 %vm470_vm0, %v5465_v4 }
  0xb6   : > { %4873 = vmatmul.mubr.msk.f32.gmra.mrb[40].mxu1 %vm470_vm0, %v5467_v7  ;;  %4651 = vmatprep.mubr.msk.f32.mxu0 %vm470_vm0, %v5483_v15 }
  0xb7   : > { %4875 = vmatprep.mubr.msk.f32.mxu1 %vm470_vm0, %v5486_v16 }
  0xb9   : > { %4652 = vmatmul.mubr.msk.f32.gmra.mrb[42].mxu0 %vm470_vm0, %v5503_v29 }
  0xba   : > { %4876 = vmatmul.mubr.msk.f32.gmra.mrb[42].mxu1 %vm470_vm0, %v5512_v37  ;;  %4654 = vmatprep.mubr.msk.f32.mxu0 %vm470_vm0, %v5522_v50 }
  0xbb   : > { %4878 = vmatprep.mubr.msk.f32.mxu1 %vm470_vm0, %v5528_v52  ;;  %v583_v52 = vld [vmem:[#allocation2 + $0x150] sm:$0xff] }
  0xbd   : > { %4655 = vmatmul.mubr.msk.f32.gmra.mrb[44].mxu0 %vm470_vm0, %v5534_v56 }
  0xbe   : > { %4879 = vmatmul.mubr.msk.f32.gmra.mrb[44].mxu1 %vm470_vm0, %v5543_v62  ;;  %4657 = vmatprep.mubr.msk.f32.mxu0 %vm470_vm0, %v5545_v0  ;;  %v560_v62 = vld [vmem:[#allocation2 + $0x38] sm:$0xff] }
  0xbf   : > { %4881 = vmatprep.mubr.msk.f32.mxu1 %vm470_vm0, %v5558_v13  ;;  %v561_v13 = vld [vmem:[#allocation2 + $0x48] sm:$0xff] }
  0xc1   : > { %4658 = vmatmul.mubr.msk.f32.gmra.mrb[46].mxu0 %vm470_vm0, %v5560_v14 }
  0xc2   : > { %4882 = vmatmul.mubr.msk.f32.gmra.mrb[46].mxu1 %vm470_vm0, %v5570_v6  ;;  %4686 = vmatprep.mubr.msk.f32.mxu0 %vm470_vm0, %v557_v53 }
  0xc3   : > { %4886 = vmatprep.mubr.msk.f32.mxu1 %vm470_vm0, %v557_v53  ;;  %v562_v53 = vld [vmem:[#allocation2 + $0x50] sm:$0xff] }
  0xc5   : > { %4687 = vmatmul.mubr.msk.f32.vlgmr.msra.gmra.mrb[64].mxu0 %vm470_vm0, %v558_v20 }
  0xc6   : > { %4735 = vmatpush3.msra.mxu0 %v4035_v22  ;;  %4887 = vmatmul.mubr.msk.f32.vlgmr.msra.gmra.mrb[16].mxu1 %vm470_vm0, %v558_v20  ;;  %v563_v22 = vld [vmem:[#allocation2 + $0x60] sm:$0xff]  ;;  %v568_v20 = vld [vmem:[#allocation2 + $0x98] sm:$0xff] }
  0xc7   : > { %4689 = vmatprep.mubr.msk.f32.mxu0 %vm470_vm0, %v559_v17  ;;  %4889 = vmatprep.mubr.msk.f32.mxu1 %vm470_vm0, %v559_v17  ;;  %v564_v17 = vld [vmem:[#allocation2 + $0x68] sm:$0xff] }
  0xc8   : > { %4935 = vmatpush3.msra.mxu1 %v5783_v44  ;;  %v565_v44 = vld [vmem:[#allocation2 + $0x78] sm:$0xff] }
  0xc9   : > { %4690 = vmatmul.mubr.msk.f32.gmra.mrb[66].mxu0 %vm470_vm0, %v560_v62 }
  0xca   : > { %4890 = vmatmul.mubr.msk.f32.gmra.mrb[18].mxu1 %vm470_vm0, %v560_v62  ;;  %4692 = vmatprep.mubr.msk.f32.mxu0 %vm470_vm0, %v561_v13  ;;  %v566_v62 = vld [vmem:[#allocation2 + $0x80] sm:$0xff] }
  0xcb   : > { %4892 = vmatprep.mubr.msk.f32.mxu1 %vm470_vm0, %v561_v13  ;;  %v567_v13 = vld [vmem:[#allocation2 + $0x90] sm:$0xff] }
  0xcd   : > { %4693 = vmatmul.mubr.msk.f32.gmra.mrb[68].mxu0 %vm470_vm0, %v562_v53 }
  0xce   : > { %4893 = vmatmul.mubr.msk.f32.gmra.mrb[20].mxu1 %vm470_vm0, %v562_v53  ;;  %4695 = vmatprep.mubr.msk.f32.mxu0 %vm470_vm0, %v563_v22  ;;  %v569_v53 = vld [vmem:[#allocation2 + $0xa8] sm:$0xff] }
  0xcf   : > { %4895 = vmatprep.mubr.msk.f32.mxu1 %vm470_vm0, %v563_v22  ;;  %v570_v22 = vld [vmem:[#allocation2 + $0xb0] sm:$0xff] }
  0xd1   : > { %4696 = vmatmul.mubr.msk.f32.gmra.mrb[70].mxu0 %vm470_vm0, %v564_v17 }
  0xd2   : > { %4896 = vmatmul.mubr.msk.f32.gmra.mrb[22].mxu1 %vm470_vm0, %v564_v17  ;;  %4698 = vmatprep.mubr.msk.f32.mxu0 %vm470_vm0, %v565_v44  ;;  %v571_v17 = vld [vmem:[#allocation2 + $0xc0] sm:$0xff] }
  0xd3   : > { %4898 = vmatprep.mubr.msk.f32.mxu1 %vm470_vm0, %v565_v44  ;;  %v572_v44 = vld [vmem:[#allocation2 + $0xc8] sm:$0xff] }
  0xd5   : > { %4699 = vmatmul.mubr.msk.f32.gmra.mrb[72].mxu0 %vm470_vm0, %v566_v62 }
  0xd6   : > { %4899 = vmatmul.mubr.msk.f32.gmra.mrb[24].mxu1 %vm470_vm0, %v566_v62  ;;  %4701 = vmatprep.mubr.msk.f32.mxu0 %vm470_vm0, %v567_v13  ;;  %v573_v62 = vld [vmem:[#allocation2 + $0xd8] sm:$0xff] }
  0xd7   : > { %4901 = vmatprep.mubr.msk.f32.mxu1 %vm470_vm0, %v567_v13  ;;  %v574_v13 = vld [vmem:[#allocation2 + $0xe0] sm:$0xff] }
  0xd9   : > { %4702 = vmatmul.mubr.msk.f32.gmra.mrb[74].mxu0 %vm470_vm0, %v568_v20 }
  0xda   : > { %4902 = vmatmul.mubr.msk.f32.gmra.mrb[26].mxu1 %vm470_vm0, %v568_v20  ;;  %4704 = vmatprep.mubr.msk.f32.mxu0 %vm470_vm0, %v569_v53  ;;  %v575_v20 = vld [vmem:[#allocation2 + $0xf0] sm:$0xff] }
  0xdb   : > { %4904 = vmatprep.mubr.msk.f32.mxu1 %vm470_vm0, %v569_v53  ;;  %v576_v53 = vld [vmem:[#allocation2 + $0xf8] sm:$0xff] }
  0xdd   : > { %4705 = vmatmul.mubr.msk.f32.gmra.mrb[76].mxu0 %vm470_vm0, %v570_v22 }
  0xde   : > { %4905 = vmatmul.mubr.msk.f32.gmra.mrb[28].mxu1 %vm470_vm0, %v570_v22  ;;  %4707 = vmatprep.mubr.msk.f32.mxu0 %vm470_vm0, %v571_v17  ;;  %v577_v22 = vld [vmem:[#allocation2 + $0x108] sm:$0xff] }
  0xdf   : > { %4907 = vmatprep.mubr.msk.f32.mxu1 %vm470_vm0, %v571_v17  ;;  %v578_v17 = vld [vmem:[#allocation2 + $0x110] sm:$0xff] }
  0xe1   : > { %4708 = vmatmul.mubr.msk.f32.gmra.mrb[78].mxu0 %vm470_vm0, %v572_v44 }
  0xe2   : > { %4908 = vmatmul.mubr.msk.f32.gmra.mrb[30].mxu1 %vm470_vm0, %v572_v44  ;;  %4710 = vmatprep.mubr.msk.f32.mxu0 %vm470_vm0, %v573_v62  ;;  %v579_v44 = vld [vmem:[#allocation2 + $0x120] sm:$0xff] }
  0xe3   : > { %4910 = vmatprep.mubr.msk.f32.mxu1 %vm470_vm0, %v573_v62  ;;  %v580_v62 = vld [vmem:[#allocation2 + $0x128] sm:$0xff] }
  0xe5   : > { %4711 = vmatmul.mubr.msk.f32.gmra.mrb[80].mxu0 %vm470_vm0, %v574_v13 }
  0xe6   : > { %4911 = vmatmul.mubr.msk.f32.gmra.mrb[32].mxu1 %vm470_vm0, %v574_v13  ;;  %4713 = vmatprep.mubr.msk.f32.mxu0 %vm470_vm0, %v575_v20  ;;  %v581_v13 = vld [vmem:[#allocation2 + $0x138] sm:$0xff] }
  0xe7   : > { %4913 = vmatprep.mubr.msk.f32.mxu1 %vm470_vm0, %v575_v20 }
  0xe9   : > { %4714 = vmatmul.mubr.msk.f32.gmra.mrb[82].mxu0 %vm470_vm0, %v576_v53 }
  0xea   : > { %4914 = vmatmul.mubr.msk.f32.gmra.mrb[34].mxu1 %vm470_vm0, %v576_v53  ;;  %4716 = vmatprep.mubr.msk.f32.mxu0 %vm470_vm0, %v577_v22 }
  0xeb   : > { %4916 = vmatprep.mubr.msk.f32.mxu1 %vm470_vm0, %v577_v22 }
  0xed   : > { %4717 = vmatmul.mubr.msk.f32.gmra.mrb[84].mxu0 %vm470_vm0, %v578_v17 }
  0xee   : > { %4917 = vmatmul.mubr.msk.f32.gmra.mrb[36].mxu1 %vm470_vm0, %v578_v17  ;;  %4719 = vmatprep.mubr.msk.f32.mxu0 %vm470_vm0, %v579_v44  ;;  %v582_v17 = vld [vmem:[#allocation2 + $0x140] sm:$0xff] }
  0xef   : > { %4919 = vmatprep.mubr.msk.f32.mxu1 %vm470_vm0, %v579_v44  ;;  %v5960_v20 = vpop.f32.mrb[0].mxu0 }
  0xf0   : > { %6739 = vst [vmem:[#allocation10_spill] sm:$0xff] %v5960_v20  ;;  %v5962_v6 = vpop.f32.mrb[0].mxu1  ;;  %v5965_v53 = vpop.f32.mrb[1].mxu0 }
  0xf1   : > { %6740 = vst [vmem:[#allocation11_spill] sm:$0xff] %v5962_v6  ;;  %4720 = vmatmul.mubr.msk.f32.gmra.mrb[86].mxu0 %vm470_vm0, %v580_v62  ;;  %6741 = vst [vmem:[#allocation12_spill] sm:$0xff] %v5965_v53  ;;  %v5967_v22 = vpop.f32.mrb[1].mxu1  ;;  %v584_v53 = vld [vmem:[#allocation2 + $0x158] sm:$0xff]  ;;  %v585_v6 = vld [vmem:[#allocation2 + $0x168] sm:$0xff] }
  0xf2   : > { %6742 = vst [vmem:[#allocation13_spill] sm:$0xff] %v5967_v22  ;;  %4920 = vmatmul.mubr.msk.f32.gmra.mrb[38].mxu1 %vm470_vm0, %v580_v62  ;;  %4722 = vmatprep.mubr.msk.f32.mxu0 %vm470_vm0, %v581_v13 }
  0xf3   : > { %4922 = vmatprep.mubr.msk.f32.mxu1 %vm470_vm0, %v581_v13  ;;  %v586_v13 = vld [vmem:[#allocation2 + $0x170] sm:$0xff] }
  0xf4   : > { %v5973_v44 = vpop.f32.mrb[2].mxu0 }
  0xf5   : > { %4723 = vmatmul.mubr.msk.f32.gmra.mrb[88].mxu0 %vm470_vm0, %v582_v17  ;;  %6743 = vst [vmem:[#allocation14_spill] sm:$0xff] %v5973_v44  ;;  %v5975_v20 = vpop.f32.mrb[2].mxu1  ;;  %v5979_v22 = vpop.f32.mrb[3].mxu0  ;;  %v587_v44 = vld [vmem:[#allocation2 + $0x180] sm:$0xff] }
  0xf6   : > { %6744 = vst [vmem:[#allocation15_spill] sm:$0xff] %v5975_v20  ;;  %4923 = vmatmul.mubr.msk.f32.gmra.mrb[40].mxu1 %vm470_vm0, %v582_v17  ;;  %4725 = vmatprep.mubr.msk.f32.mxu0 %vm470_vm0, %v583_v52  ;;  %6745 = vst [vmem:[#allocation16_spill] sm:$0xff] %v5979_v22  ;;  %v5981_v62 = vpop.f32.mrb[3].mxu1 }
  0xf7   : > { %6746 = vst [vmem:[#allocation17_spill] sm:$0xff] %v5981_v62  ;;  %4925 = vmatprep.mubr.msk.f32.mxu1 %vm470_vm0, %v583_v52  ;;  %v588_v52 = vld [vmem:[#allocation2 + $0x188] sm:$0xff] }
  0xf9   : > { %4726 = vmatmul.mubr.msk.f32.gmra.mrb[90].mxu0 %vm470_vm0, %v584_v53 }
  0xfa   : > { %4926 = vmatmul.mubr.msk.f32.gmra.mrb[42].mxu1 %vm470_vm0, %v584_v53  ;;  %4728 = vmatprep.mubr.msk.f32.mxu0 %vm470_vm0, %v585_v6  ;;  %v5988_v17 = vpop.f32.mrb[4].mxu0  ;;  %v5990_v20 = vpop.f32.mrb[4].mxu1 }
  0xfb   : > { %4928 = vmatprep.mubr.msk.f32.mxu1 %vm470_vm0, %v585_v6  ;;  %6747 = vst [vmem:[#allocation18_spill] sm:$0xff] %v5988_v17  ;;  %6748 = vst [vmem:[#allocation19_spill] sm:$0xff] %v5990_v20  ;;  %v5992_v22 = vpop.f32.mrb[5].mxu0  ;;  %v5994_v62 = vpop.f32.mrb[5].mxu1 }
  0xfd   : > { %4729 = vmatmul.mubr.msk.f32.gmra.mrb[92].mxu0 %vm470_vm0, %v586_v13 }
  0xfe   : > { %4929 = vmatmul.mubr.msk.f32.gmra.mrb[44].mxu1 %vm470_vm0, %v586_v13  ;;  %4731 = vmatprep.mubr.msk.f32.mxu0 %vm470_vm0, %v587_v44  ;;  %v6000_v53 = vpop.f32.mrb[6].mxu0  ;;  %v6002_v6 = vpop.f32.mrb[6].mxu1 }
  0xff   : > { %4931 = vmatprep.mubr.msk.f32.mxu1 %vm470_vm0, %v587_v44  ;;  %v6004_v17 = vpop.f32.mrb[7].mxu0  ;;  %v6006_v20 = vpop.f32.mrb[7].mxu1 }
 0x100   : > { %6749 = vst [vmem:[#allocation20_spill] sm:$0xff] %v6004_v17 }
 0x101   : > { %4732 = vmatmul.mubr.msk.f32.gmra.mrb[94].mxu0 %vm470_vm0, %v588_v52 }
 0x102   : > { %4932 = vmatmul.mubr.msk.f32.gmra.mrb[46].mxu1 %vm470_vm0, %v588_v52  ;;  %4736 = vmatprep.mubr.msk.f32.mxu0 %vm470_vm0, %v5297_v33 }
 0x103   : > { %4936 = vmatprep.mubr.msk.f32.mxu1 %vm470_vm0, %v5579_v21 }
 0x105   : > { %4737 = vmatmul.mubr.msk.f32.vlgmr.msra.gmra.mrb[64].mxu0 %vm470_vm0, %v5311_v38  ;;  %v6016_v44 = vpop.f32.mrb[8].mxu0  ;;  %v6018_v13 = vpop.f32.mrb[8].mxu1 }
 0x106   : > { %4937 = vmatmul.mubr.msk.f32.vlgmr.msra.gmra.mrb[16].mxu1 %vm470_vm0, %v5593_v23  ;;  %4739 = vmatprep.mubr.msk.f32.mxu0 %vm470_vm0, %v5324_v41  ;;  %v6024_v52 = vpop.f32.mrb[9].mxu0  ;;  %v6026_v17 = vpop.f32.mrb[9].mxu1 }
 0x107   : > { %4939 = vmatprep.mubr.msk.f32.mxu1 %vm470_vm0, %v5596_v24 }
 0x109   : > { %4740 = vmatmul.mubr.msk.f32.gmra.mrb[66].mxu0 %vm470_vm0, %v5356_v58  ;;  %v6032_v33 = vpop.f32.mrb[10].mxu0 }
 0x10a   : > { %4940 = vmatmul.mubr.msk.f32.gmra.mrb[18].mxu1 %vm470_vm0, %v5607_v27  ;;  %4742 = vmatprep.mubr.msk.f32.mxu0 %vm470_vm0, %v5377_v9  ;;  %v6038_v38 = vpop.f32.mrb[11].mxu0 }
 0x10b   : > { %4942 = vmatprep.mubr.msk.f32.mxu1 %vm470_vm0, %v5609_v28  ;;  %v6042_v41 = vpop.f32.mrb[10].mxu1 }
 0x10c   : > { %v6044_v21 = vpop.f32.mrb[11].mxu1 }
 0x10d   : > { %4743 = vmatmul.mubr.msk.f32.gmra.mrb[68].mxu0 %vm470_vm0, %v5392_v18 }
 0x10e   : > { %4943 = vmatmul.mubr.msk.f32.gmra.mrb[20].mxu1 %vm470_vm0, %v5619_v46  ;;  %v6050_v58 = vpop.f32.mrb[12].mxu0  ;;  %4745 = vmatprep.mubr.msk.f32.mxu0 %vm470_vm0, %v5409_v25 }
 0x10f   : > { %4945 = vmatprep.mubr.msk.f32.mxu1 %vm470_vm0, %v5621_v30  ;;  %v6056_v9 = vpop.f32.mrb[13].mxu0  ;;  %v6058_v23 = vpop.f32.mrb[12].mxu1  ;;  %v6753_v30 = vld [vmem:[#allocation4_spill] sm:$0xff] }
 0x110   : > { %v6060_v24 = vpop.f32.mrb[13].mxu1 }
 0x111   : > { %4746 = vmatmul.mubr.msk.f32.gmra.mrb[70].mxu0 %vm470_vm0, %v5429_v42 }
 0x112   : > { %4946 = vmatmul.mubr.msk.f32.gmra.mrb[22].mxu1 %vm470_vm0, %v5631_v31  ;;  %4748 = vmatprep.mubr.msk.f32.mxu0 %vm470_vm0, %v5449_v55  ;;  %v6755_v31 = vld [vmem:[#allocation5_spill] sm:$0xff] }
 0x113   : > { %4948 = vmatprep.mubr.msk.f32.mxu1 %vm470_vm0, %v5633_v32  ;;  %v6756_v32 = vld [vmem:[#allocation6_spill] sm:$0xff] }
 0x114   : > { %v6070_v18 = vpop.f32.mrb[14].mxu0 }
 0x115   : > { %v6072_v25 = vpop.f32.mrb[15].mxu0  ;;  %4749 = vmatmul.mubr.msk.f32.gmra.mrb[72].mxu0 %vm470_vm0, %v5465_v4  ;;  %v6076_v27 = vpop.f32.mrb[14].mxu1  ;;  %v6750_v4 = vld [vmem:[#allocation7_spill] sm:$0xff] }
 0x116   : > { %4949 = vmatmul.mubr.msk.f32.gmra.mrb[24].mxu1 %vm470_vm0, %v5643_v35  ;;  %v6080_v42 = vpop.f32.mrb[15].mxu1  ;;  %4751 = vmatprep.mubr.msk.f32.mxu0 %vm470_vm0, %v5483_v15 }
 0x117   : > { %4951 = vmatprep.mubr.msk.f32.mxu1 %vm470_vm0, %v5645_v36  ;;  %v6757_v36 = vld [vmem:[#allocation11_spill] sm:$0xff] }
 0x118   : > { %v6086_v55 = vpop.f32.mrb[16].mxu0 }
 0x119   : > { %v6088_v28 = vpop.f32.mrb[17].mxu0  ;;  %4752 = vmatmul.mubr.msk.f32.gmra.mrb[74].mxu0 %vm470_vm0, %v5503_v29 }
 0x11a   : > { %4952 = vmatmul.mubr.msk.f32.gmra.mrb[26].mxu1 %vm470_vm0, %v5655_v40  ;;  %4754 = vmatprep.mubr.msk.f32.mxu0 %vm470_vm0, %v5522_v50 }
 0x11b   : > { %4954 = vmatprep.mubr.msk.f32.mxu1 %vm470_vm0, %v6750_v4 }
 0x11c   : > { %v6098_v15 = vpop.f32.mrb[18].mxu0 }
 0x11d   : > { %v6100_v46 = vpop.f32.mrb[19].mxu0  ;;  %4755 = vmatmul.mubr.msk.f32.gmra.mrb[76].mxu0 %vm470_vm0, %v5534_v56 }
 0x11e   : > { %4955 = vmatmul.mubr.msk.f32.gmra.mrb[28].mxu1 %vm470_vm0, %v5667_v45  ;;  %4757 = vmatprep.mubr.msk.f32.mxu0 %vm470_vm0, %v5545_v0 }
 0x11f   : > { %4957 = vmatprep.mubr.msk.f32.mxu1 %vm470_vm0, %v5669_v48  ;;  %v6758_v48 = vld [vmem:[#allocation13_spill] sm:$0xff] }
 0x120   : > { %v6110_v29 = vpop.f32.mrb[20].mxu0 }
 0x121   : > { %v6112_v50 = vpop.f32.mrb[21].mxu0  ;;  %4758 = vmatmul.mubr.msk.f32.gmra.mrb[78].mxu0 %vm470_vm0, %v5560_v14 }
 0x122   : > { %4958 = vmatmul.mubr.msk.f32.gmra.mrb[30].mxu1 %vm470_vm0, %v5678_v49  ;;  %4760 = vmatprep.mubr.msk.f32.mxu0 %vm470_vm0, %v5299_v34 }
 0x123   : > { %4960 = vmatprep.mubr.msk.f32.mxu1 %vm470_vm0, %v5680_v51 }
 0x124   : > { %v6122_v56 = vpop.f32.mrb[22].mxu0 }
 0x125   : > { %v6124_v0 = vpop.f32.mrb[23].mxu0  ;;  %4761 = vmatmul.mubr.msk.f32.gmra.mrb[80].mxu0 %vm470_vm0, %v5313_v39 }
 0x126   : > { %4961 = vmatmul.mubr.msk.f32.gmra.mrb[32].mxu1 %vm470_vm0, %v5695_v54  ;;  %4763 = vmatprep.mubr.msk.f32.mxu0 %vm470_vm0, %v5340_v47  ;;  %v6759_v54 = vld [vmem:[#allocation15_spill] sm:$0xff] }
 0x127   : > { %4963 = vmatprep.mubr.msk.f32.mxu1 %vm470_vm0, %v5697_v57 }
 0x128   : > { %v6134_v34 = vpop.f32.mrb[24].mxu0 }
 0x129   : > { %v6136_v14 = vpop.f32.mrb[25].mxu0  ;;  %4764 = vmatmul.mubr.msk.f32.gmra.mrb[82].mxu0 %vm470_vm0, %v5358_v59 }
 0x12a   : > { %4964 = vmatmul.mubr.msk.f32.gmra.mrb[34].mxu1 %vm470_vm0, %v5708_v1  ;;  %4766 = vmatprep.mubr.msk.f32.mxu0 %vm470_vm0, %v5379_v10 }
 0x12b   : > { %4966 = vmatprep.mubr.msk.f32.mxu1 %vm470_vm0, %v5710_v60  ;;  %v6760_v60 = vld [vmem:[#allocation17_spill] sm:$0xff] }
 0x12c   : > { %v6146_v39 = vpop.f32.mrb[26].mxu0 }
 0x12d   : > { %v6148_v47 = vpop.f32.mrb[27].mxu0  ;;  %4767 = vmatmul.mubr.msk.f32.gmra.mrb[84].mxu0 %vm470_vm0, %v5394_v19 }
 0x12e   : > { %4967 = vmatmul.mubr.msk.f32.gmra.mrb[36].mxu1 %vm470_vm0, %v5720_v61  ;;  %4769 = vmatprep.mubr.msk.f32.mxu0 %vm470_vm0, %v5411_v26 }
 0x12f   : > { %4969 = vmatprep.mubr.msk.f32.mxu1 %vm470_vm0, %v5722_v5 }
 0x130   : > { %v6158_v59 = vpop.f32.mrb[28].mxu0 }
 0x131   : > { %v6160_v10 = vpop.f32.mrb[29].mxu0  ;;  %4770 = vmatmul.mubr.msk.f32.gmra.mrb[86].mxu0 %vm470_vm0, %v5431_v43  ;;  %v6751_v43 = vld [vmem:[#allocation3_spill] sm:$0xff] }
 0x132   : > { %4970 = vmatmul.mubr.msk.f32.gmra.mrb[38].mxu1 %vm470_vm0, %v5732_v2  ;;  %4772 = vmatprep.mubr.msk.f32.mxu0 %vm470_vm0, %v5457_v63  ;;  %v6752_v63 = vld [vmem:[#allocation8_spill] sm:$0xff]  ;;  %v6761_v2 = vld [vmem:[#allocation19_spill] sm:$0xff] }
 0x133   : > { %4972 = vmatprep.mubr.msk.f32.mxu1 %vm470_vm0, %v5734_v3 }
 0x134   : > { %v6170_v19 = vpop.f32.mrb[30].mxu0 }
 0x135   : > { %v6172_v26 = vpop.f32.mrb[31].mxu0  ;;  %4773 = vmatmul.mubr.msk.f32.gmra.mrb[88].mxu0 %vm470_vm0, %v5467_v7  ;;  %v619_v7 = vld [vmem:[#allocation2 + $0x181] sm:$0xff] }
 0x136   : > { %4973 = vmatmul.mubr.msk.f32.gmra.mrb[40].mxu1 %vm470_vm0, %v5744_v8  ;;  %4775 = vmatprep.mubr.msk.f32.mxu0 %vm470_vm0, %v5486_v16  ;;  %v6754_v16 = vld [vmem:[#allocation9_spill] sm:$0xff] }
 0x137   : > { %4975 = vmatprep.mubr.msk.f32.mxu1 %vm470_vm0, %v5746_v11 }
 0x139   : > { %4776 = vmatmul.mubr.msk.f32.gmra.mrb[90].mxu0 %vm470_vm0, %v5512_v37  ;;  %v620_v37 = vld [vmem:[#allocation2 + $0x189] sm:$0xff] }
 0x13a   : > { %4976 = vmatmul.mubr.msk.f32.gmra.mrb[42].mxu1 %vm470_vm0, %v5756_v12  ;;  %4778 = vmatprep.mubr.msk.f32.mxu0 %vm470_vm0, %v6751_v43 }
 0x13b   : > { %4978 = vmatprep.mubr.msk.f32.mxu1 %vm470_vm0, %v6752_v63 }
 0x13d   : > { %4779 = vmatmul.mubr.msk.f32.gmra.mrb[92].mxu0 %vm470_vm0, %v6753_v30 }
 0x13e   : > { %4979 = vmatmul.mubr.msk.f32.gmra.mrb[44].mxu1 %vm470_vm0, %v6754_v16  ;;  %4781 = vmatprep.mubr.msk.f32.mxu0 %vm470_vm0, %v6755_v31 }
 0x13f   : > { %4981 = vmatprep.mubr.msk.f32.mxu1 %vm470_vm0, %v619_v7 }
 0x141   : > { %4782 = vmatmul.mubr.msk.f32.gmra.mrb[94].mxu0 %vm470_vm0, %v6756_v32 }
 0x142   : > { %4982 = vmatmul.mubr.msk.f32.gmra.mrb[46].mxu1 %vm470_vm0, %v620_v37 }
 0x158   : > { %v4612_v35 = vpop.f32.mrb[48].mxu0 }
 0x159   : > { %v1421_v40 = vadd.f32 %v6757_v36, %v4612_v35  ;;  %v1190_v45 = vpop.f32.mrb[49].mxu0 }
 0x15a   : > { %v1416_v49 = vadd.f32 %v6758_v48, %v1190_v45 }
 0x15b   : > { %3177 = vrot.lane.b32.xlu1 %v1421_v40, %s5167_s27 }
 0x15c   : > { %3175 = vrot.lane.b32.xlu0 %v1416_v49, %s5167_s27  ;;  %v4615_v51 = vpop.f32.mrb[50].mxu0 }
 0x15d   : > { %v1431_v57 = vadd.f32 %v6759_v54, %v4615_v51  ;;  %v1200_v1 = vpop.f32.mrb[51].mxu0 }
 0x15e   : > { %v1426_v61 = vadd.f32 %v6760_v60, %v1200_v1 }
 0x15f   : > { %3181 = vrot.lane.b32.xlu1 %v1431_v57, %s5167_s27 }
 0x160   : > { %3179 = vrot.lane.b32.xlu0 %v1426_v61, %s5167_s27  ;;  %v4618_v5 = vpop.f32.mrb[52].mxu0 }
 0x161   : > { %v1441_v3 = vadd.f32 %v6761_v2, %v4618_v5  ;;  %v1210_v8 = vpop.f32.mrb[53].mxu0 }
 0x162   : > { %v1436_v11 = vadd.f32 %v5994_v62, %v1210_v8 }
 0x163   : > { %3185 = vrot.lane.b32.xlu1 %v1441_v3, %s5167_s27 }
 0x164   : > { %3183 = vrot.lane.b32.xlu0 %v1436_v11, %s5167_s27  ;;  %v4621_v12 = vpop.f32.mrb[54].mxu0 }
 0x165   : > { %v1451_v4 = vadd.f32 %v6002_v6, %v4621_v12  ;;  %v1220_v43 = vpop.f32.mrb[55].mxu0 }
 0x166   : > { %v1446_v63 = vadd.f32 %v6006_v20, %v1220_v43 }
 0x167   : > { %3189 = vrot.lane.b32.xlu1 %v1451_v4, %s5167_s27 }
 0x168   : > { %3187 = vrot.lane.b32.xlu0 %v1446_v63, %s5167_s27  ;;  %v4624_v7 = vpop.f32.mrb[56].mxu0 }
 0x169   : > { %v1461_v30 = vadd.f32 %v6018_v13, %v4624_v7  ;;  %v1230_v16 = vpop.f32.mrb[57].mxu0 }
 0x16a   : > { %v1456_v62 = vadd.f32 %v6026_v17, %v1230_v16 }
 0x16b   : > { %3193 = vrot.lane.b32.xlu1 %v1461_v30, %s5167_s27 }
 0x16c   : > { %3191 = vrot.lane.b32.xlu0 %v1456_v62, %s5167_s27  ;;  %v4627_v31 = vpop.f32.mrb[58].mxu0 }
 0x16d   : > { %v1471_v6 = vadd.f32 %v6042_v41, %v4627_v31  ;;  %v1240_v37 = vpop.f32.mrb[59].mxu0 }
 0x16e   : > { %v1466_v20 = vadd.f32 %v6044_v21, %v1240_v37 }
 0x170   : > { %3197 = vrot.lane.b32.xlu0 %v1471_v6, %s5167_s27  ;;  %v4630_v32 = vpop.f32.mrb[60].mxu0 }
 0x171   : > { %v1481_v35 = vadd.f32 %v6058_v23, %v4630_v32  ;;  %v1250_v36 = vpop.f32.mrb[61].mxu0 }
 0x172   : > { %v1476_v13 = vadd.f32 %v6060_v24, %v1250_v36 }
 0x174   : > { %3195 = vrot.lane.b32.xlu0 %v1466_v20, %s5167_s27  ;;  %3199 = vrot.lane.b32.xlu1 %v1476_v13, %s5167_s27  ;;  %v4633_v17 = vpop.f32.mrb[62].mxu0 }
 0x175   : > { %v1491_v40 = vadd.f32 %v6076_v27, %v4633_v17  ;;  %v1260_v45 = vpop.f32.mrb[63].mxu0 }
 0x176   : > { %v1486_v41 = vadd.f32 %v6080_v42, %v1260_v45 }
 0x178   : > { %3201 = vrot.lane.b32.xlu0 %v1481_v35, %s5167_s27  ;;  %3203 = vrot.lane.b32.xlu1 %v1486_v41, %s5167_s27  ;;  %v4638_v21 = vpop.f32.mrb[32].mxu0 }
 0x179   : > { %v1335_v48 = vpop.f32.mrb[33].mxu0 }
 0x17c   : > { %3205 = vrot.lane.b32.xlu0 %v1491_v40, %s5167_s27  ;;  %v4641_v23 = vpop.f32.mrb[34].mxu0 }
 0x17d   : > { %3149 = vrot.lane.b32.xlu1 %v4641_v23, %s5167_s27  ;;  %v1345_v24 = vpop.f32.mrb[35].mxu0 }
 0x180   : > { %3145 = vrot.lane.b32.xlu0 %v4638_v21, %s5167_s27  ;;  %v4644_v49 = vpop.f32.mrb[36].mxu0 }
 0x181   : > { %3147 = vrot.lane.b32.xlu1 %v1345_v24, %s5167_s27  ;;  %v1355_v27 = vpop.f32.mrb[37].mxu0 }
 0x184   : > { %3143 = vrot.lane.b32.xlu0 %v1335_v48, %s5167_s27  ;;  %v4647_v42 = vpop.f32.mrb[38].mxu0 }
 0x185   : > { %3153 = vrot.lane.b32.xlu1 %v4644_v49, %s5167_s27  ;;  %v1365_v51 = vpop.f32.mrb[39].mxu0 }
 0x188   : > { %3151 = vrot.lane.b32.xlu0 %v1355_v27, %s5167_s27  ;;  %v4650_v54 = vpop.f32.mrb[40].mxu0 }
 0x189   : > { %3157 = vrot.lane.b32.xlu1 %v4647_v42, %s5167_s27  ;;  %v1375_v57 = vpop.f32.mrb[41].mxu0 }
 0x18c   : > { %3155 = vrot.lane.b32.xlu0 %v1365_v51, %s5167_s27  ;;  %v4653_v1 = vpop.f32.mrb[42].mxu0 }
 0x18d   : > { %3161 = vrot.lane.b32.xlu1 %v4650_v54, %s5167_s27  ;;  %v1385_v60 = vpop.f32.mrb[43].mxu0 }
 0x190   : > { %3159 = vrot.lane.b32.xlu0 %v1375_v57, %s5167_s27  ;;  %v4656_v61 = vpop.f32.mrb[44].mxu0 }
 0x191   : > { %3165 = vrot.lane.b32.xlu1 %v4653_v1, %s5167_s27  ;;  %v1395_v5 = vpop.f32.mrb[45].mxu0 }
 0x194   : > { %3163 = vrot.lane.b32.xlu0 %v1385_v60, %s5167_s27  ;;  %v4659_v2 = vpop.f32.mrb[46].mxu0 }
 0x195   : > { %3169 = vrot.lane.b32.xlu1 %v4656_v61, %s5167_s27  ;;  %v1405_v3 = vpop.f32.mrb[47].mxu0 }
 0x198   : > { %3167 = vrot.lane.b32.xlu0 %v1395_v5, %s5167_s27 }
 0x199   : > { %3173 = vrot.lane.b32.xlu1 %v4659_v2, %s5167_s27 }
 0x19c   : > { %3171 = vrot.lane.b32.xlu0 %v1405_v3, %s5167_s27 }
 0x1cd   : > { %v3178_v8 = vpop.permute.xlu1 %3177 }
 0x1ce   : > { %v6250_v11 = vsel %vm3495_vm4, %v6086_v55, %v3178_v8  ;;  %v3176_v12 = vpop.permute.xlu0 %3175 }
 0x1cf   : > { %v6254_v4 = vsel %vm3495_vm4, %v6088_v28, %v3176_v12 }
 0x1d1   : > { %v3182_v43 = vpop.permute.xlu1 %3181 }
 0x1d2   : > { %v6258_v63 = vsel %vm3495_vm4, %v6098_v15, %v3182_v43  ;;  %v3180_v7 = vpop.permute.xlu0 %3179 }
 0x1d3   : > { %v6262_v30 = vsel %vm3495_vm4, %v6100_v46, %v3180_v7 }
 0x1d5   : > { %v3186_v16 = vpop.permute.xlu1 %3185 }
 0x1d6   : > { %v6266_v55 = vsel %vm3495_vm4, %v6110_v29, %v3186_v16  ;;  %v3184_v62 = vpop.permute.xlu0 %3183 }
 0x1d7   : > { %v6270_v28 = vsel %vm3495_vm4, %v6112_v50, %v3184_v62 }
 0x1d8   : > { %v4738_v31 = vpop.f32.mrb[64].mxu0 }
 0x1d9   : > { %v4938_v6 = vpop.f32.mrb[16].mxu1  ;;  %v3190_v37 = vpop.permute.xlu1 %3189  ;;  %3273 = vrot.lane.b32.xlu0 %v4738_v31, %s5168_s28 }
 0x1da   : > { %v2920_v15 = vpop.f32.mrb[17].mxu1  ;;  %v6275_v46 = vsel %vm3495_vm4, %v6122_v56, %v3190_v37  ;;  %v1885_v20 = vpop.f32.mrb[65].mxu0 }
 0x1db   : > { %v3188_v32 = vpop.permute.xlu0 %3187  ;;  %3271 = vrot.lane.b32.xlu1 %v1885_v20, %s5168_s28 }
 0x1dc   : > { %v6280_v29 = vsel %vm3495_vm4, %v6124_v0, %v3188_v32  ;;  %v4741_v50 = vpop.f32.mrb[66].mxu0 }
 0x1dd   : > { %v4941_v35 = vpop.f32.mrb[18].mxu1  ;;  %v3194_v36 = vpop.permute.xlu1 %3193  ;;  %3401 = vrot.lane.b32.xlu0 %v4938_v6, %s5169_s29 }
 0x1de   : > { %v2930_v13 = vpop.f32.mrb[19].mxu1  ;;  %v6285_v17 = vsel %vm3495_vm4, %v6134_v34, %v3194_v36  ;;  %v1895_v56 = vpop.f32.mrb[67].mxu0 }
 0x1df   : > { %6762 = vst [vmem:[#allocation7_spill] sm:$0xff] %v6285_v17  ;;  %v3192_v40 = vpop.permute.xlu0 %3191  ;;  %3399 = vrot.lane.b32.xlu1 %v2920_v15, %s5169_s29 }
 0x1e0   : > { %v6290_v45 = vsel %vm3495_vm4, %v6136_v14, %v3192_v40  ;;  %v4744_v0 = vpop.f32.mrb[68].mxu0 }
 0x1e1   : > { %6763 = vst [vmem:[#allocation3_spill] sm:$0xff] %v6290_v45  ;;  %v4944_v41 = vpop.f32.mrb[20].mxu1  ;;  %3405 = vrot.lane.b32.xlu0 %v4941_v35, %s5169_s29  ;;  %v1905_v21 = vpop.f32.mrb[69].mxu0 }
 0x1e2   : > { %v2940_v48 = vpop.f32.mrb[21].mxu1 }
 0x1e3   : > { %v3198_v23 = vpop.permute.xlu0 %3197  ;;  %3277 = vrot.lane.b32.xlu1 %v4741_v50, %s5168_s28 }
 0x1e4   : > { %v6296_v34 = vsel %vm3495_vm4, %v6146_v39, %v3198_v23  ;;  %v4747_v24 = vpop.f32.mrb[70].mxu0 }
 0x1e5   : > { %6764 = vst [vmem:[#allocation8_spill] sm:$0xff] %v6296_v34  ;;  %v4947_v49 = vpop.f32.mrb[22].mxu1  ;;  %3403 = vrot.lane.b32.xlu0 %v2930_v13, %s5169_s29  ;;  %v1915_v27 = vpop.f32.mrb[71].mxu0 }
 0x1e6   : > { %v2950_v14 = vpop.f32.mrb[23].mxu1  ;;  %v3200_v42 = vpop.permute.xlu1 %3199 }
 0x1e7   : > { %v3196_v51 = vpop.permute.xlu0 %3195  ;;  %v6301_v54 = vsel %vm3495_vm4, %v6160_v10, %v3200_v42  ;;  %3275 = vrot.lane.b32.xlu1 %v1895_v56, %s5168_s28 }
 0x1e8   : > { %6765 = vst [vmem:[#allocation4_spill] sm:$0xff] %v6301_v54  ;;  %v6306_v57 = vsel %vm3495_vm4, %v6148_v47, %v3196_v51  ;;  %v4750_v39 = vpop.f32.mrb[72].mxu0 }
 0x1e9   : > { %6766 = vst [vmem:[#allocation9_spill] sm:$0xff] %v6306_v57  ;;  %v4950_v1 = vpop.f32.mrb[24].mxu1  ;;  %3409 = vrot.lane.b32.xlu0 %v4944_v41, %s5169_s29  ;;  %v1925_v60 = vpop.f32.mrb[73].mxu0 }
 0x1ea   : > { %v2960_v61 = vpop.f32.mrb[25].mxu1  ;;  %v3204_v5 = vpop.permute.xlu1 %3203 }
 0x1eb   : > { %v3202_v2 = vpop.permute.xlu0 %3201  ;;  %v6311_v3 = vsel %vm3495_vm4, %v6172_v26, %v3204_v5  ;;  %3281 = vrot.lane.b32.xlu1 %v4744_v0, %s5168_s28 }
 0x1ec   : > { %6767 = vst [vmem:[#allocation5_spill] sm:$0xff] %v6311_v3  ;;  %v6316_v10 = vsel %vm3495_vm4, %v6158_v59, %v3202_v2  ;;  %v4753_v47 = vpop.f32.mrb[74].mxu0 }
 0x1ed   : > { %6768 = vst [vmem:[#allocation6_spill] sm:$0xff] %v6316_v10  ;;  %v4953_v8 = vpop.f32.mrb[26].mxu1  ;;  %3407 = vrot.lane.b32.xlu0 %v2940_v48, %s5169_s29  ;;  %v1935_v12 = vpop.f32.mrb[75].mxu0 }
 0x1ee   : > { %v2970_v43 = vpop.f32.mrb[27].mxu1 }
 0x1ef   : > { %v3206_v7 = vpop.permute.xlu0 %3205  ;;  %3279 = vrot.lane.b32.xlu1 %v1905_v21, %s5168_s28 }
 0x1f0   : > { %v6322_v16 = vsel %vm3495_vm4, %v6170_v19, %v3206_v7  ;;  %v4756_v26 = vpop.f32.mrb[76].mxu0 }
 0x1f1   : > { %6769 = vst [vmem:[#allocation11_spill] sm:$0xff] %v6322_v16  ;;  %v4956_v62 = vpop.f32.mrb[28].mxu1  ;;  %3413 = vrot.lane.b32.xlu0 %v4947_v49, %s5169_s29  ;;  %v1945_v31 = vpop.f32.mrb[77].mxu0 }
 0x1f2   : > { %v2980_v59 = vpop.f32.mrb[29].mxu1 }
 0x1f3   : > { %v6325_v6 = vpop.permute.xlu0 %3145  ;;  %3285 = vrot.lane.b32.xlu1 %v4747_v24, %s5168_s28 }
 0x1f4   : > { %v4759_v37 = vpop.f32.mrb[78].mxu0 }
 0x1f5   : > { %v4959_v15 = vpop.f32.mrb[30].mxu1  ;;  %3411 = vrot.lane.b32.xlu0 %v2950_v14, %s5169_s29  ;;  %v1955_v20 = vpop.f32.mrb[79].mxu0 }
 0x1f6   : > { %v2990_v32 = vpop.f32.mrb[31].mxu1 }
 0x1f7   : > { %v6329_v50 = vpop.permute.xlu0 %3143  ;;  %3283 = vrot.lane.b32.xlu1 %v1915_v27, %s5168_s28 }
 0x1f8   : > { %v4762_v19 = vpop.f32.mrb[80].mxu0 }
 0x1f9   : > { %v4962_v35 = vpop.f32.mrb[32].mxu1  ;;  %3417 = vrot.lane.b32.xlu0 %v4950_v1, %s5169_s29  ;;  %v1965_v36 = vpop.f32.mrb[81].mxu0 }
 0x1fa   : > { %v3000_v13 = vpop.f32.mrb[33].mxu1 }
 0x1fb   : > { %v6333_v56 = vpop.permute.xlu0 %3151  ;;  %3289 = vrot.lane.b32.xlu1 %v4750_v39, %s5168_s28 }
 0x1fc   : > { %v4765_v40 = vpop.f32.mrb[82].mxu0 }
 0x1fd   : > { %v4965_v0 = vpop.f32.mrb[34].mxu1  ;;  %3415 = vrot.lane.b32.xlu0 %v2960_v61, %s5169_s29  ;;  %v1975_v41 = vpop.f32.mrb[83].mxu0 }
 0x1fe   : > { %v3010_v21 = vpop.f32.mrb[35].mxu1 }
 0x1ff   : > { %v6337_v48 = vpop.permute.xlu0 %3155  ;;  %3287 = vrot.lane.b32.xlu1 %v1925_v60, %s5168_s28 }
 0x200   : > { %v4768_v23 = vpop.f32.mrb[84].mxu0 }
 0x201   : > { %v4968_v24 = vpop.f32.mrb[36].mxu1  ;;  %3421 = vrot.lane.b32.xlu0 %v4953_v8, %s5169_s29  ;;  %v1985_v49 = vpop.f32.mrb[85].mxu0 }
 0x202   : > { %v3020_v27 = vpop.f32.mrb[37].mxu1 }
 0x203   : > { %v6341_v14 = vpop.permute.xlu0 %3159  ;;  %3293 = vrot.lane.b32.xlu1 %v4753_v47, %s5168_s28 }
 0x204   : > { %v4771_v42 = vpop.f32.mrb[86].mxu0 }
 0x205   : > { %v4971_v51 = vpop.f32.mrb[38].mxu1  ;;  %3419 = vrot.lane.b32.xlu0 %v2970_v43, %s5169_s29  ;;  %v1995_v39 = vpop.f32.mrb[87].mxu0 }
 0x206   : > { %v3030_v1 = vpop.f32.mrb[39].mxu1 }
 0x207   : > { %v6345_v61 = vpop.permute.xlu0 %3163  ;;  %3291 = vrot.lane.b32.xlu1 %v1935_v12, %s5168_s28 }
 0x208   : > { %v4774_v60 = vpop.f32.mrb[88].mxu0 }
 0x209   : > { %v4974_v5 = vpop.f32.mrb[40].mxu1  ;;  %3425 = vrot.lane.b32.xlu0 %v4956_v62, %s5169_s29  ;;  %v2005_v2 = vpop.f32.mrb[89].mxu0 }
 0x20a   : > { %v3040_v8 = vpop.f32.mrb[41].mxu1 }
 0x20b   : > { %v6349_v7 = vpop.permute.xlu0 %3167  ;;  %3297 = vrot.lane.b32.xlu1 %v4756_v26, %s5168_s28 }
 0x20c   : > { %v4777_v47 = vpop.f32.mrb[90].mxu0 }
 0x20d   : > { %v4977_v16 = vpop.f32.mrb[42].mxu1  ;;  %3423 = vrot.lane.b32.xlu0 %v2980_v59, %s5169_s29  ;;  %v2015_v43 = vpop.f32.mrb[91].mxu0 }
 0x20e   : > { %v3050_v3 = vpop.f32.mrb[43].mxu1 }
 0x20f   : > { %v3172_v54 = vpop.permute.xlu0 %3171  ;;  %3295 = vrot.lane.b32.xlu1 %v1945_v31, %s5168_s28 }
 0x210   : > { %v6356_v12 = vsel %vm3495_vm4, %v6072_v25, %v3172_v54  ;;  %v4780_v62 = vpop.f32.mrb[92].mxu0  ;;  %v3150_v25 = vpop.permute.xlu1 %3149 }
 0x211   : > { %v4980_v10 = vpop.f32.mrb[44].mxu1  ;;  %3429 = vrot.lane.b32.xlu0 %v4959_v15, %s5169_s29  ;;  %v2025_v57 = vpop.f32.mrb[93].mxu0 }
 0x212   : > { %v3060_v34 = vpop.f32.mrb[45].mxu1 }
 0x213   : > { %3301 = vrot.lane.b32.xlu1 %v4759_v37, %s5168_s28 }
 0x214   : > { %v4783_v26 = vpop.f32.mrb[94].mxu0  ;;  %v6372_v54 = vpop.permute.xlu1 %3147 }
 0x215   : > { %v6360_v45 = vpop.f32.mrb[46].mxu1  ;;  %3427 = vrot.lane.b32.xlu0 %v2990_v32, %s5169_s29  ;;  %v2035_v59 = vpop.f32.mrb[95].mxu0 }
 0x216   : > { %v6363_v17 = vpop.f32.mrb[47].mxu1 }
 0x217   : > { %3299 = vrot.lane.b32.xlu1 %v1955_v20, %s5168_s28 }
 0x218   : > { %v6377_v31 = vpop.permute.xlu1 %3153 }
 0x219   : > { %3433 = vrot.lane.b32.xlu0 %v4962_v35, %s5169_s29 }
 0x21b   : > { %3305 = vrot.lane.b32.xlu1 %v4762_v19, %s5168_s28 }
 0x21c   : > { %v6382_v37 = vpop.permute.xlu1 %3157 }
 0x21d   : > { %3431 = vrot.lane.b32.xlu0 %v3000_v13, %s5169_s29  ;;  %v6770_v13 = vld [vmem:[#allocation10_spill] sm:$0xff] }
 0x21f   : > { %3303 = vrot.lane.b32.xlu1 %v1965_v36, %s5168_s28 }
 0x220   : > { %v6387_v15 = vpop.permute.xlu1 %3161 }
 0x221   : > { %3437 = vrot.lane.b32.xlu0 %v4965_v0, %s5169_s29 }
 0x223   : > { %3309 = vrot.lane.b32.xlu1 %v4765_v40, %s5168_s28  ;;  %v3497_v40 = vsel %vm3495_vm4, %v6770_v13, %v6325_v6 }
 0x224   : > { %v6392_v20 = vpop.permute.xlu1 %3165 }
 0x225   : > { %3435 = vrot.lane.b32.xlu0 %v3010_v21, %s5169_s29 }
 0x227   : > { %3307 = vrot.lane.b32.xlu1 %v1975_v41, %s5168_s28 }
 0x228   : > { %v6397_v32 = vpop.permute.xlu1 %3169 }
 0x229   : > { %3441 = vrot.lane.b32.xlu0 %v4968_v24, %s5169_s29 }
 0x22b   : > { %3313 = vrot.lane.b32.xlu1 %v4768_v23, %s5168_s28 }
 0x22c   : > { %v6402_v19 = vpop.permute.xlu1 %3173 }
 0x22d   : > { %3439 = vrot.lane.b32.xlu0 %v3020_v27, %s5169_s29 }
 0x22f   : > { %3311 = vrot.lane.b32.xlu1 %v1985_v49, %s5168_s28 }
 0x231   : > { %3445 = vrot.lane.b32.xlu0 %v4971_v51, %s5169_s29 }
 0x233   : > { %3317 = vrot.lane.b32.xlu1 %v4771_v42, %s5168_s28  ;;  %v6772_v42 = vld [vmem:[#allocation14_spill] sm:$0xff] }
 0x234   : > { %v3499_v51 = vsel %vm3495_vm4, %v6772_v42, %v3150_v25  ;;  %v6773_v25 = vld [vmem:[#allocation16_spill] sm:$0xff] }
 0x235   : > { %3443 = vrot.lane.b32.xlu0 %v3030_v1, %s5169_s29 }
 0x237   : > { %3315 = vrot.lane.b32.xlu1 %v1995_v39, %s5168_s28 }
 0x239   : > { %3449 = vrot.lane.b32.xlu0 %v4974_v5, %s5169_s29 }
 0x23b   : > { %3321 = vrot.lane.b32.xlu1 %v4774_v60, %s5168_s28 }
 0x23d   : > { %3447 = vrot.lane.b32.xlu0 %v3040_v8, %s5169_s29 }
 0x23f   : > { %3319 = vrot.lane.b32.xlu1 %v2005_v2, %s5168_s28 }
 0x241   : > { %3325 = vrot.lane.b32.xlu0 %v4777_v47, %s5168_s28 }
 0x243   : > { %3323 = vrot.lane.b32.xlu1 %v2015_v43, %s5168_s28 }
 0x245   : > { %3453 = vrot.lane.b32.xlu0 %v4977_v16, %s5169_s29  ;;  %v6413_v16 = vld [vmem:[%s6722_s4] ss:$0 sm:$0xff] }
 0x247   : > { %3451 = vrot.lane.b32.xlu1 %v3050_v3, %s5169_s29 }
 0x249   : > { %3329 = vrot.lane.b32.xlu0 %v4780_v62, %s5168_s28 }
 0x24b   : > { %3327 = vrot.lane.b32.xlu1 %v2025_v57, %s5168_s28  ;;  %v3274_v35 = vpop.permute.xlu0 %3273  ;;  %v6771_v57 = vld [vmem:[#allocation12_spill] sm:$0xff] }
 0x24c   : > { %v3529_v3 = vsel %vm470_vm0, %v3497_v40, %v3274_v35  ;;  %v3496_v41 = vsel %vm3495_vm4, %v6771_v57, %v6329_v50  ;;  %v3498_v35 = vsel %vm3495_vm4, %v6773_v25, %v6372_v54 }
 0x24d   : > { %v3272_v36 = vpop.permute.xlu1 %3271  ;;  %3457 = vrot.lane.b32.xlu0 %v4980_v10, %s5169_s29 }
 0x24e   : > { %v3528_v6 = vsel %vm470_vm0, %v3496_v41, %v3272_v36 }
 0x24f   : > { %3455 = vrot.lane.b32.xlu1 %v3060_v34, %s5169_s29  ;;  %v3402_v0 = vpop.permute.xlu0 %3401 }
 0x250   : > { %v3562_v10 = vsel %vm3560_vm5, %v3529_v3, %v3402_v0  ;;  %v6774_v0 = vld [vmem:[#allocation18_spill] sm:$0xff] }
 0x251   : > { %v3601_v34 = vadd.f32 %v6413_v16, %v3562_v10  ;;  %v3400_v21 = vpop.permute.xlu1 %3399  ;;  %3333 = vrot.lane.b32.xlu0 %v4783_v26, %s5168_s28  ;;  %v3501_v57 = vsel %vm3495_vm4, %v6774_v0, %v6377_v31 }
 0x252   : > { %v3561_v50 = vsel %vm3560_vm5, %v3528_v6, %v3400_v21 }
 0x253   : > { %v3634_v23 = vsel %vm3632_vm6, %v3601_v34, 0.0  ;;  %v3705_v24 = vmul.f32 %v3601_v34, %v3601_v34  ;;  %3807 = vst.msk [vmem:[%s6425_s11 + $0x8] sm:$0xff] %vm3632_vm6, %v3601_v34  ;;  %v3600_v49 = vadd.f32 %v6413_v16, %v3561_v50  ;;  %3331 = vrot.lane.b32.xlu1 %v2035_v59, %s5168_s28  ;;  %v3406_v27 = vpop.permute.xlu0 %3405 }
 0x255   : > { %v3737_v39 = vsel %vm3632_vm6, %v3705_v24, 0.0  ;;  %v3633_v1 = vsel %vm3632_vm6, %v3600_v49, 0.0  ;;  %v3704_v60 = vmul.f32 %v3600_v49, %v3600_v49  ;;  %3806 = vst.msk [vmem:[%s6425_s11] sm:$0xff] %vm3632_vm6, %v3600_v49  ;;  %v3278_v5 = vpop.permute.xlu1 %3277  ;;  %v3500_v49 = vsel %vm3495_vm4, %v5992_v22, %v6333_v56 }
 0x256   : > { %v3635_v2 = vadd.f32 %v3634_v23, %v3633_v1  ;;  %v3531_v8 = vsel %vm470_vm0, %v3499_v51, %v3278_v5  ;;  %v3503_v22 = vsel %vm3495_vm4, %v6000_v53, %v6382_v37  ;;  %v6775_v37 = vld [vmem:[#allocation20_spill] sm:$0xff] }
 0x257   : > { %v3736_v47 = vsel %vm3632_vm6, %v3704_v60, 0.0  ;;  %v3564_v43 = vsel %vm3560_vm5, %v3531_v8, %v3406_v27  ;;  %3459 = vrot.lane.b32.xlu1 %v6363_v17, %s5169_s29  ;;  %v3404_v62 = vpop.permute.xlu0 %3403 }
 0x258   : > { %v3738_v26 = vadd.f32 %v3737_v39, %v3736_v47  ;;  %v3603_v59 = vadd.f32 %v6413_v16, %v3564_v43 }
 0x259   : > { %v3276_v36 = vpop.permute.xlu1 %3275 }
 0x25a   : > { %3809 = vst.msk [vmem:[%s6425_s11 + $0x18] sm:$0xff] %vm3632_vm6, %v3603_v59  ;;  %v3530_v13 = vsel %vm470_vm0, %v3498_v35, %v3276_v36  ;;  %v3707_v10 = vmul.f32 %v3603_v59, %v3603_v59  ;;  %v3638_v23 = vsel %vm3632_vm6, %v3603_v59, 0.0 }
 0x25b   : > { %v3563_v40 = vsel %vm3560_vm5, %v3530_v13, %v3404_v62  ;;  %3461 = vrot.lane.b32.xlu1 %v6360_v45, %s5169_s29  ;;  %v3410_v17 = vpop.permute.xlu0 %3409 }
 0x25c   : > { %v3602_v3 = vadd.f32 %v6413_v16, %v3563_v40  ;;  %v3741_v39 = vsel %vm3632_vm6, %v3707_v10, 0.0  ;;  %v3502_v40 = vsel %vm3495_vm4, %v6775_v37, %v6337_v48  ;;  %v3505_v48 = vsel %vm3495_vm4, %v6016_v44, %v6387_v15 }
 0x25d   : > { %v3282_v41 = vpop.permute.xlu1 %3281  ;;  %v3504_v15 = vsel %vm3495_vm4, %v6024_v52, %v6341_v14  ;;  %v3507_v52 = vsel %vm3495_vm4, %v6032_v33, %v6392_v20  ;;  %v3506_v20 = vsel %vm3495_vm4, %v6038_v38, %v6345_v61  ;;  %v3509_v38 = vsel %vm3495_vm4, %v6050_v58, %v6397_v32 }
 0x25e   : > { %v3636_v54 = vsel %vm3632_vm6, %v3602_v3, 0.0  ;;  %v3706_v6 = vmul.f32 %v3602_v3, %v3602_v3  ;;  %3808 = vst.msk [vmem:[%s6425_s11 + $0x10] sm:$0xff] %vm3632_vm6, %v3602_v3  ;;  %v3533_v34 = vsel %vm470_vm0, %v3501_v57, %v3282_v41  ;;  %v3508_v32 = vsel %vm3495_vm4, %v6056_v9, %v6349_v7 }
 0x25f   : > { %v3637_v21 = vadd.f32 %v3636_v54, %v3635_v2  ;;  %v3566_v45 = vsel %vm3560_vm5, %v3533_v34, %v3410_v17  ;;  %v3408_v50 = vpop.permute.xlu0 %3407  ;;  %v3511_v9 = vsel %vm3495_vm4, %v6070_v18, %v6402_v19 }
 0x260   : > { %v3739_v24 = vsel %vm3632_vm6, %v3706_v6, 0.0  ;;  %v3605_v31 = vadd.f32 %v6413_v16, %v3566_v45 }
 0x261   : > { %v3740_v27 = vadd.f32 %v3739_v24, %v3738_v26  ;;  %v3639_v42 = vadd.f32 %v3638_v23, %v3637_v21  ;;  %v3280_v51 = vpop.permute.xlu1 %3279 }
 0x262   : > { %3811 = vst.msk [vmem:[%s6425_s11 + $0x28] sm:$0xff] %vm3632_vm6, %v3605_v31  ;;  %v3532_v1 = vsel %vm470_vm0, %v3500_v49, %v3280_v51  ;;  %v3709_v47 = vmul.f32 %v3605_v31, %v3605_v31  ;;  %v3642_v36 = vsel %vm3632_vm6, %v3605_v31, 0.0 }
 0x263   : > { %v3742_v60 = vadd.f32 %v3741_v39, %v3740_v27  ;;  %v3565_v5 = vsel %vm3560_vm5, %v3532_v1, %v3408_v50  ;;  %v3414_v2 = vpop.permute.xlu0 %3413 }
 0x264   : > { %v3604_v8 = vadd.f32 %v6413_v16, %v3565_v5  ;;  %v3745_v57 = vsel %vm3632_vm6, %v3709_v47, 0.0 }
 0x265   : > { %v3286_v56 = vpop.permute.xlu1 %3285 }
 0x266   : > { %v3640_v43 = vsel %vm3632_vm6, %v3604_v8, 0.0  ;;  %v3708_v62 = vmul.f32 %v3604_v8, %v3604_v8  ;;  %3810 = vst.msk [vmem:[%s6425_s11 + $0x20] sm:$0xff] %vm3632_vm6, %v3604_v8  ;;  %v3535_v26 = vsel %vm470_vm0, %v3503_v22, %v3286_v56 }
 0x267   : > { %v3641_v59 = vadd.f32 %v3640_v43, %v3639_v42  ;;  %v3568_v25 = vsel %vm3560_vm5, %v3535_v26, %v3414_v2  ;;  %v3412_v35 = vpop.permute.xlu0 %3411 }
 0x268   : > { %v3743_v13 = vsel %vm3632_vm6, %v3708_v62, 0.0  ;;  %v3607_v53 = vadd.f32 %v6413_v16, %v3568_v25 }
 0x269   : > { %v3744_v17 = vadd.f32 %v3743_v13, %v3742_v60  ;;  %v3643_v3 = vadd.f32 %v3642_v36, %v3641_v59  ;;  %v3284_v0 = vpop.permute.xlu1 %3283 }
 0x26a   : > { %3813 = vst.msk [vmem:[%s6425_s11 + $0x38] sm:$0xff] %vm3632_vm6, %v3607_v53  ;;  %v3534_v41 = vsel %vm470_vm0, %v3502_v40, %v3284_v0  ;;  %v3711_v45 = vmul.f32 %v3607_v53, %v3607_v53  ;;  %v3646_v42 = vsel %vm3632_vm6, %v3607_v53, 0.0 }
 0x26b   : > { %v3746_v10 = vadd.f32 %v3745_v57, %v3744_v17  ;;  %v3567_v54 = vsel %vm3560_vm5, %v3534_v41, %v3412_v35  ;;  %v3418_v6 = vpop.permute.xlu0 %3417 }
 0x26c   : > { %v3606_v34 = vadd.f32 %v6413_v16, %v3567_v54  ;;  %v3749_v5 = vsel %vm3632_vm6, %v3711_v45, 0.0 }
 0x26d   : > { %v3290_v21 = vpop.permute.xlu1 %3289 }
 0x26e   : > { %v3644_v50 = vsel %vm3632_vm6, %v3606_v34, 0.0  ;;  %v3710_v23 = vmul.f32 %v3606_v34, %v3606_v34  ;;  %3812 = vst.msk [vmem:[%s6425_s11 + $0x30] sm:$0xff] %vm3632_vm6, %v3606_v34  ;;  %v3537_v24 = vsel %vm470_vm0, %v3505_v48, %v3290_v21 }
 0x26f   : > { %v3645_v31 = vadd.f32 %v3644_v50, %v3643_v3  ;;  %v3570_v49 = vsel %vm3560_vm5, %v3537_v24, %v3418_v6  ;;  %v3416_v27 = vpop.permute.xlu0 %3415 }
 0x270   : > { %v3747_v51 = vsel %vm3632_vm6, %v3710_v23, 0.0  ;;  %v3609_v44 = vadd.f32 %v6413_v16, %v3570_v49 }
 0x271   : > { %v3748_v39 = vadd.f32 %v3747_v51, %v3746_v10  ;;  %v3647_v1 = vadd.f32 %v3646_v42, %v3645_v31  ;;  %v3288_v60 = vpop.permute.xlu1 %3287 }
 0x272   : > { %3815 = vst.msk [vmem:[%s6425_s11 + $0x48] sm:$0xff] %vm3632_vm6, %v3609_v44  ;;  %v3536_v2 = vsel %vm470_vm0, %v3504_v15, %v3288_v60  ;;  %v3713_v43 = vmul.f32 %v3609_v44, %v3609_v44  ;;  %v3650_v13 = vsel %vm3632_vm6, %v3609_v44, 0.0 }
 0x273   : > { %v3750_v8 = vadd.f32 %v3749_v5, %v3748_v39  ;;  %v3569_v22 = vsel %vm3560_vm5, %v3536_v2, %v3416_v27  ;;  %v3422_v56 = vpop.permute.xlu0 %3421 }
 0x274   : > { %v3608_v47 = vadd.f32 %v6413_v16, %v3569_v22  ;;  %v3753_v3 = vsel %vm3632_vm6, %v3713_v43, 0.0 }
 0x275   : > { %v3294_v14 = vpop.permute.xlu1 %3293 }
 0x276   : > { %v3648_v62 = vsel %vm3632_vm6, %v3608_v47, 0.0  ;;  %v3712_v26 = vmul.f32 %v3608_v47, %v3608_v47  ;;  %3814 = vst.msk [vmem:[%s6425_s11 + $0x40] sm:$0xff] %vm3632_vm6, %v3608_v47  ;;  %v3539_v59 = vsel %vm470_vm0, %v3507_v52, %v3294_v14 }
 0x277   : > { %v3649_v25 = vadd.f32 %v3648_v62, %v3647_v1  ;;  %v3572_v35 = vsel %vm3560_vm5, %v3539_v59, %v3422_v56  ;;  %v3420_v36 = vpop.permute.xlu0 %3419 }
 0x278   : > { %v3751_v53 = vsel %vm3632_vm6, %v3712_v26, 0.0  ;;  %v3611_v33 = vadd.f32 %v6413_v16, %v3572_v35 }
 0x279   : > { %v3752_v37 = vadd.f32 %v3751_v53, %v3750_v8  ;;  %v3651_v40 = vadd.f32 %v3650_v13, %v3649_v25  ;;  %v3292_v17 = vpop.permute.xlu1 %3291 }
 0x27a   : > { %3817 = vst.msk [vmem:[%s6425_s11 + $0x58] sm:$0xff] %vm3632_vm6, %v3611_v33  ;;  %v3538_v0 = vsel %vm470_vm0, %v3506_v20, %v3292_v17  ;;  %v3715_v6 = vmul.f32 %v3611_v33, %v3611_v33  ;;  %v3654_v24 = vsel %vm3632_vm6, %v3611_v33, 0.0 }
 0x27b   : > { %v3754_v57 = vadd.f32 %v3753_v3, %v3752_v37  ;;  %v3571_v41 = vsel %vm3560_vm5, %v3538_v0, %v3420_v36  ;;  %v3426_v10 = vpop.permute.xlu0 %3425 }
 0x27c   : > { %v3610_v54 = vadd.f32 %v6413_v16, %v3571_v41  ;;  %v3757_v51 = vsel %vm3632_vm6, %v3715_v6, 0.0 }
 0x27d   : > { %v3298_v61 = vpop.permute.xlu1 %3297 }
 0x27e   : > { %v3652_v34 = vsel %vm3632_vm6, %v3610_v54, 0.0  ;;  %v3714_v48 = vmul.f32 %v3610_v54, %v3610_v54  ;;  %3816 = vst.msk [vmem:[%s6425_s11 + $0x50] sm:$0xff] %vm3632_vm6, %v3610_v54  ;;  %v3541_v21 = vsel %vm470_vm0, %v3509_v38, %v3298_v61 }
 0x27f   : > { %v3653_v45 = vadd.f32 %v3652_v34, %v3651_v40  ;;  %v3574_v50 = vsel %vm3560_vm5, %v3541_v21, %v3426_v10  ;;  %v3424_v23 = vpop.permute.xlu0 %3423 }
 0x280   : > { %v3755_v31 = vsel %vm3632_vm6, %v3714_v48, 0.0  ;;  %v3613_v58 = vadd.f32 %v6413_v16, %v3574_v50 }
 0x281   : > { %v3756_v49 = vadd.f32 %v3755_v31, %v3754_v57  ;;  %v3655_v27 = vadd.f32 %v3654_v24, %v3653_v45  ;;  %v3296_v42 = vpop.permute.xlu1 %3295 }
 0x282   : > { %3819 = vst.msk [vmem:[%s6425_s11 + $0x68] sm:$0xff] %vm3632_vm6, %v3613_v58  ;;  %v3540_v44 = vsel %vm470_vm0, %v3508_v32, %v3296_v42  ;;  %v3717_v5 = vmul.f32 %v3613_v58, %v3613_v58  ;;  %v3658_v14 = vsel %vm3632_vm6, %v3613_v58, 0.0 }
 0x283   : > { %v3758_v15 = vadd.f32 %v3757_v51, %v3756_v49  ;;  %v3573_v39 = vsel %vm3560_vm5, %v3540_v44, %v3424_v23  ;;  %v3430_v1 = vpop.permute.xlu0 %3429 }
 0x284   : > { %v3612_v60 = vadd.f32 %v6413_v16, %v3573_v39  ;;  %v3761_v59 = vsel %vm3632_vm6, %v3717_v5, 0.0 }
 0x285   : > { %v3302_v7 = vpop.permute.xlu1 %3301 }
 0x286   : > { %v3656_v2 = vsel %vm3632_vm6, %v3612_v60, 0.0  ;;  %v3716_v8 = vmul.f32 %v3612_v60, %v3612_v60  ;;  %3818 = vst.msk [vmem:[%s6425_s11 + $0x60] sm:$0xff] %vm3632_vm6, %v3612_v60  ;;  %v3543_v22 = vsel %vm470_vm0, %v3511_v9, %v3302_v7 }
 0x287   : > { %v3657_v56 = vadd.f32 %v3656_v2, %v3655_v27  ;;  %v3576_v47 = vsel %vm3560_vm5, %v3543_v22, %v3430_v1  ;;  %v3428_v52 = vpop.permute.xlu0 %3427 }
 0x288   : > { %v3759_v43 = vsel %vm3632_vm6, %v3716_v8, 0.0  ;;  %v3615_v18 = vadd.f32 %v6413_v16, %v3576_v47 }
 0x289   : > { %v3760_v19 = vadd.f32 %v3759_v43, %v3758_v15  ;;  %v3659_v62 = vadd.f32 %v3658_v14, %v3657_v56  ;;  %v3300_v26 = vpop.permute.xlu1 %3299 }
 0x28a   : > { %3821 = vst.msk [vmem:[%s6425_s11 + $0x78] sm:$0xff] %vm3632_vm6, %v3615_v18  ;;  %v3542_v25 = vsel %vm470_vm0, %v6356_v12, %v3300_v26  ;;  %v3719_v20 = vmul.f32 %v3615_v18, %v3615_v18  ;;  %v3662_v57 = vsel %vm3632_vm6, %v3615_v18, 0.0 }
 0x28b   : > { %v3762_v35 = vadd.f32 %v3761_v59, %v3760_v19  ;;  %v3575_v36 = vsel %vm3560_vm5, %v3542_v25, %v3428_v52  ;;  %v3434_v13 = vpop.permute.xlu0 %3433 }
 0x28c   : > { %v3614_v53 = vadd.f32 %v6413_v16, %v3575_v36  ;;  %v3765_v6 = vsel %vm3632_vm6, %v3719_v20, 0.0 }
 0x28d   : > { %v3306_v33 = vpop.permute.xlu1 %3305 }
 0x28e   : > { %v3660_v37 = vsel %vm3632_vm6, %v3614_v53, 0.0  ;;  %v3718_v40 = vmul.f32 %v3614_v53, %v3614_v53  ;;  %3820 = vst.msk [vmem:[%s6425_s11 + $0x70] sm:$0xff] %vm3632_vm6, %v3614_v53  ;;  %v3545_v17 = vsel %vm470_vm0, %v6250_v11, %v3306_v33 }
 0x28f   : > { %v3661_v3 = vadd.f32 %v3660_v37, %v3659_v62  ;;  %v3578_v12 = vsel %vm3560_vm5, %v3545_v17, %v3434_v13  ;;  %v3432_v0 = vpop.permute.xlu0 %3431 }
 0x290   : > { %v3763_v41 = vsel %vm3632_vm6, %v3718_v40, 0.0  ;;  %v3617_v10 = vadd.f32 %v6413_v16, %v3578_v12 }
 0x291   : > { %v3764_v54 = vadd.f32 %v3763_v41, %v3762_v35  ;;  %v3663_v38 = vadd.f32 %v3662_v57, %v3661_v3  ;;  %v3304_v61 = vpop.permute.xlu1 %3303 }
 0x292   : > { %3823 = vst.msk [vmem:[%s6425_s11 + $0x88] sm:$0xff] %vm3632_vm6, %v3617_v10  ;;  %v3544_v11 = vsel %vm470_vm0, %v6254_v4, %v3304_v61  ;;  %v3721_v23 = vmul.f32 %v3617_v10, %v3617_v10  ;;  %v3666_v27 = vsel %vm3632_vm6, %v3617_v10, 0.0 }
 0x293   : > { %v3766_v34 = vadd.f32 %v3765_v6, %v3764_v54  ;;  %v3577_v48 = vsel %vm3560_vm5, %v3544_v11, %v3432_v0  ;;  %v3438_v21 = vpop.permute.xlu0 %3437 }
 0x294   : > { %v3616_v45 = vadd.f32 %v6413_v16, %v3577_v48  ;;  %v3769_v1 = vsel %vm3632_vm6, %v3721_v23, 0.0 }
 0x295   : > { %v3310_v50 = vpop.permute.xlu1 %3309 }
 0x296   : > { %v3664_v24 = vsel %vm3632_vm6, %v3616_v45, 0.0  ;;  %v3720_v31 = vmul.f32 %v3616_v45, %v3616_v45  ;;  %3822 = vst.msk [vmem:[%s6425_s11 + $0x80] sm:$0xff] %vm3632_vm6, %v3616_v45  ;;  %v3547_v58 = vsel %vm470_vm0, %v6258_v63, %v3310_v50 }
 0x297   : > { %v3665_v32 = vadd.f32 %v3664_v24, %v3663_v38  ;;  %v3580_v4 = vsel %vm3560_vm5, %v3547_v58, %v3438_v21  ;;  %v3436_v49 = vpop.permute.xlu0 %3435  ;;  %v6776_v24 = vld [vmem:[#allocation7_spill] sm:$0xff] }
 0x298   : > { %v3767_v42 = vsel %vm3632_vm6, %v3720_v31, 0.0  ;;  %v3619_v51 = vadd.f32 %v6413_v16, %v3580_v4 }
 0x299   : > { %v3768_v44 = vadd.f32 %v3767_v42, %v3766_v34  ;;  %v3667_v15 = vadd.f32 %v3666_v27, %v3665_v32  ;;  %v3308_v39 = vpop.permute.xlu1 %3307 }
 0x29a   : > { %3825 = vst.msk [vmem:[%s6425_s11 + $0x98] sm:$0xff] %vm3632_vm6, %v3619_v51  ;;  %v3546_v63 = vsel %vm470_vm0, %v6262_v30, %v3308_v39  ;;  %v3723_v8 = vmul.f32 %v3619_v51, %v3619_v51  ;;  %v3670_v43 = vsel %vm3632_vm6, %v3619_v51, 0.0  ;;  %v6777_v39 = vld [vmem:[#allocation3_spill] sm:$0xff] }
 0x29b   : > { %v3770_v60 = vadd.f32 %v3769_v1, %v3768_v44  ;;  %v3579_v9 = vsel %vm3560_vm5, %v3546_v63, %v3436_v49  ;;  %v3442_v7 = vpop.permute.xlu0 %3441 }
 0x29c   : > { %v3618_v5 = vadd.f32 %v6413_v16, %v3579_v9  ;;  %v3773_v25 = vsel %vm3632_vm6, %v3723_v8, 0.0 }
 0x29d   : > { %v3314_v2 = vpop.permute.xlu1 %3313 }
 0x29e   : > { %v3668_v22 = vsel %vm3632_vm6, %v3618_v5, 0.0  ;;  %v3722_v56 = vmul.f32 %v3618_v5, %v3618_v5  ;;  %3824 = vst.msk [vmem:[%s6425_s11 + $0x90] sm:$0xff] %vm3632_vm6, %v3618_v5  ;;  %v3549_v47 = vsel %vm470_vm0, %v6266_v55, %v3314_v2 }
 0x29f   : > { %v3669_v52 = vadd.f32 %v3668_v22, %v3667_v15  ;;  %v3582_v30 = vsel %vm3560_vm5, %v3549_v47, %v3442_v7  ;;  %v3440_v14 = vpop.permute.xlu0 %3439  ;;  %v6778_v47 = vld [vmem:[#allocation8_spill] sm:$0xff] }
 0x2a0   : > { %v3771_v18 = vsel %vm3632_vm6, %v3722_v56, 0.0  ;;  %v3621_v19 = vadd.f32 %v6413_v16, %v3582_v30 }
 0x2a1   : > { %v3772_v62 = vadd.f32 %v3771_v18, %v3770_v60  ;;  %v3671_v26 = vadd.f32 %v3670_v43, %v3669_v52  ;;  %v3312_v59 = vpop.permute.xlu1 %3311 }
 0x2a2   : > { %3827 = vst.msk [vmem:[%s6425_s11 + $0xa8] sm:$0xff] %vm3632_vm6, %v3621_v19  ;;  %v3548_v55 = vsel %vm470_vm0, %v6270_v28, %v3312_v59  ;;  %v3725_v20 = vmul.f32 %v3621_v19, %v3621_v19  ;;  %v3674_v0 = vsel %vm3632_vm6, %v3621_v19, 0.0 }
 0x2a3   : > { %v3774_v35 = vadd.f32 %v3773_v25, %v3772_v62  ;;  %v3581_v36 = vsel %vm3560_vm5, %v3548_v55, %v3440_v14  ;;  %v3446_v13 = vpop.permute.xlu0 %3445  ;;  %v6779_v62 = vld [vmem:[#allocation9_spill] sm:$0xff] }
 0x2a4   : > { %v3620_v53 = vadd.f32 %v6413_v16, %v3581_v36  ;;  %v3777_v61 = vsel %vm3632_vm6, %v3725_v20, 0.0 }
 0x2a5   : > { %v3318_v33 = vpop.permute.xlu1 %3317 }
 0x2a6   : > { %v3672_v37 = vsel %vm3632_vm6, %v3620_v53, 0.0  ;;  %v3724_v40 = vmul.f32 %v3620_v53, %v3620_v53  ;;  %3826 = vst.msk [vmem:[%s6425_s11 + $0xa0] sm:$0xff] %vm3632_vm6, %v3620_v53  ;;  %v3551_v17 = vsel %vm470_vm0, %v6275_v46, %v3318_v33 }
 0x2a7   : > { %v3673_v3 = vadd.f32 %v3672_v37, %v3671_v26  ;;  %v3584_v28 = vsel %vm3560_vm5, %v3551_v17, %v3446_v13  ;;  %v3444_v12 = vpop.permute.xlu0 %3443 }
 0x2a8   : > { %v3775_v57 = vsel %vm3632_vm6, %v3724_v40, 0.0  ;;  %v3623_v41 = vadd.f32 %v6413_v16, %v3584_v28 }
 0x2a9   : > { %v3776_v10 = vadd.f32 %v3775_v57, %v3774_v35  ;;  %v3675_v54 = vadd.f32 %v3674_v0, %v3673_v3  ;;  %v3316_v38 = vpop.permute.xlu1 %3315  ;;  %v6780_v0 = vld [vmem:[#allocation6_spill] sm:$0xff] }
 0x2aa   : > { %3829 = vst.msk [vmem:[%s6425_s11 + $0xb8] sm:$0xff] %vm3632_vm6, %v3623_v41  ;;  %v3550_v46 = vsel %vm470_vm0, %v6280_v29, %v3316_v38  ;;  %v3727_v45 = vmul.f32 %v3623_v41, %v3623_v41  ;;  %v3678_v4 = vsel %vm3632_vm6, %v3623_v41, 0.0 }
 0x2ab   : > { %v3778_v6 = vadd.f32 %v3777_v61, %v3776_v10  ;;  %v3583_v11 = vsel %vm3560_vm5, %v3550_v46, %v3444_v12  ;;  %v3450_v34 = vpop.permute.xlu0 %3449  ;;  %v6781_v46 = vld [vmem:[#allocation4_spill] sm:$0xff] }
 0x2ac   : > { %v3622_v48 = vadd.f32 %v6413_v16, %v3583_v11  ;;  %v3781_v15 = vsel %vm3632_vm6, %v3727_v45, 0.0 }
 0x2ad   : > { %v3322_v21 = vpop.permute.xlu1 %3321 }
 0x2ae   : > { %v3676_v50 = vsel %vm3632_vm6, %v3622_v48, 0.0  ;;  %v3726_v23 = vmul.f32 %v3622_v48, %v3622_v48  ;;  %3828 = vst.msk [vmem:[%s6425_s11 + $0xb0] sm:$0xff] %vm3632_vm6, %v3622_v48  ;;  %v3553_v31 = vsel %vm470_vm0, %v6776_v24, %v3322_v21 }
 0x2af   : > { %v3677_v58 = vadd.f32 %v3676_v50, %v3675_v54  ;;  %v3586_v29 = vsel %vm3560_vm5, %v3553_v31, %v3450_v34  ;;  %v3448_v32 = vpop.permute.xlu0 %3447 }
 0x2b0   : > { %v3779_v49 = vsel %vm3632_vm6, %v3726_v23, 0.0  ;;  %v3625_v27 = vadd.f32 %v6413_v16, %v3586_v29 }
 0x2b1   : > { %v3780_v42 = vadd.f32 %v3779_v49, %v3778_v6  ;;  %v3679_v51 = vadd.f32 %v3678_v4, %v3677_v58  ;;  %v3320_v44 = vpop.permute.xlu1 %3319 }
 0x2b2   : > { %3831 = vst.msk [vmem:[%s6425_s11 + $0xc8] sm:$0xff] %vm3632_vm6, %v3625_v27  ;;  %v3552_v1 = vsel %vm470_vm0, %v6777_v39, %v3320_v44  ;;  %v3729_v2 = vmul.f32 %v3625_v27, %v3625_v27  ;;  %v3682_v14 = vsel %vm3632_vm6, %v3625_v27, 0.0 }
 0x2b3   : > { %v3782_v63 = vadd.f32 %v3781_v15, %v3780_v42  ;;  %v3585_v60 = vsel %vm3560_vm5, %v3552_v1, %v3448_v32  ;;  %v3326_v9 = vpop.permute.xlu0 %3325  ;;  %v6782_v42 = vld [vmem:[#allocation5_spill] sm:$0xff] }
 0x2b4   : > { %v3624_v7 = vadd.f32 %v6413_v16, %v3585_v60  ;;  %v3555_v52 = vsel %vm470_vm0, %v6778_v47, %v3326_v9  ;;  %v3785_v35 = vsel %vm3632_vm6, %v3729_v2, 0.0  ;;  %v6783_v60 = vld [vmem:[#allocation11_spill] sm:$0xff] }
 0x2b5   : > { %v3324_v5 = vpop.permute.xlu1 %3323 }
 0x2b6   : > { %v3680_v8 = vsel %vm3632_vm6, %v3624_v7, 0.0  ;;  %v3728_v22 = vmul.f32 %v3624_v7, %v3624_v7  ;;  %3830 = vst.msk [vmem:[%s6425_s11 + $0xc0] sm:$0xff] %vm3632_vm6, %v3624_v7  ;;  %v3554_v26 = vsel %vm470_vm0, %v6779_v62, %v3324_v5 }
 0x2b7   : > { %v3681_v56 = vadd.f32 %v3680_v8, %v3679_v51  ;;  %v3454_v30 = vpop.permute.xlu0 %3453 }
 0x2b8   : > { %v3783_v43 = vsel %vm3632_vm6, %v3728_v22, 0.0  ;;  %v3588_v18 = vsel %vm3560_vm5, %v3555_v52, %v3454_v30 }
 0x2b9   : > { %v3784_v19 = vadd.f32 %v3783_v43, %v3782_v63  ;;  %v3627_v59 = vadd.f32 %v6413_v16, %v3588_v18  ;;  %v3683_v25 = vadd.f32 %v3682_v14, %v3681_v56  ;;  %v3452_v55 = vpop.permute.xlu1 %3451 }
 0x2ba   : > { %v3587_v36 = vsel %vm3560_vm5, %v3554_v26, %v3452_v55 }
 0x2bb   : > { %3833 = vst.msk [vmem:[%s6425_s11 + $0xd8] sm:$0xff] %vm3632_vm6, %v3627_v59  ;;  %v3786_v13 = vadd.f32 %v3785_v35, %v3784_v19  ;;  %v3626_v53 = vadd.f32 %v6413_v16, %v3587_v36  ;;  %v3330_v33 = vpop.permute.xlu0 %3329  ;;  %v3731_v20 = vmul.f32 %v3627_v59, %v3627_v59  ;;  %v3686_v28 = vsel %vm3632_vm6, %v3627_v59, 0.0 }
 0x2bc   : > { %v3557_v57 = vsel %vm470_vm0, %v6780_v0, %v3330_v33 }
 0x2bd   : > { %v3684_v37 = vsel %vm3632_vm6, %v3626_v53, 0.0  ;;  %v3730_v40 = vmul.f32 %v3626_v53, %v3626_v53  ;;  %3832 = vst.msk [vmem:[%s6425_s11 + $0xd0] sm:$0xff] %vm3632_vm6, %v3626_v53  ;;  %v3328_v17 = vpop.permute.xlu1 %3327  ;;  %v3789_v61 = vsel %vm3632_vm6, %v3731_v20, 0.0 }
 0x2be   : > { %v3685_v3 = vadd.f32 %v3684_v37, %v3683_v25  ;;  %v3556_v6 = vsel %vm470_vm0, %v6781_v46, %v3328_v17 }
 0x2bf   : > { %v3787_v12 = vsel %vm3632_vm6, %v3730_v40, 0.0  ;;  %v3458_v41 = vpop.permute.xlu0 %3457 }
 0x2c0   : > { %v3788_v10 = vadd.f32 %v3787_v12, %v3786_v13  ;;  %v3590_v54 = vsel %vm3560_vm5, %v3557_v57, %v3458_v41  ;;  %v3687_v38 = vadd.f32 %v3686_v28, %v3685_v3 }
 0x2c1   : > { %v3629_v11 = vadd.f32 %v6413_v16, %v3590_v54  ;;  %v3456_v34 = vpop.permute.xlu1 %3455 }
 0x2c2   : > { %v3790_v48 = vadd.f32 %v3789_v61, %v3788_v10  ;;  %v3589_v21 = vsel %vm3560_vm5, %v3556_v6, %v3456_v34 }
 0x2c3   : > { %3835 = vst.msk [vmem:[%s6425_s11 + $0xe8] sm:$0xff] %vm3632_vm6, %v3629_v11  ;;  %v3628_v45 = vadd.f32 %v6413_v16, %v3589_v21  ;;  %v3733_v50 = vmul.f32 %v3629_v11, %v3629_v11  ;;  %v3690_v29 = vsel %vm3632_vm6, %v3629_v11, 0.0  ;;  %v3334_v15 = vpop.permute.xlu0 %3333 }
 0x2c4   : > { %v3559_v9 = vsel %vm470_vm0, %v6783_v60, %v3334_v15 }
 0x2c5   : > { %v3688_v23 = vsel %vm3632_vm6, %v3628_v45, 0.0  ;;  %v3732_v24 = vmul.f32 %v3628_v45, %v3628_v45  ;;  %3834 = vst.msk [vmem:[%s6425_s11 + $0xe0] sm:$0xff] %vm3632_vm6, %v3628_v45  ;;  %v3332_v31 = vpop.permute.xlu1 %3331  ;;  %v3793_v27 = vsel %vm3632_vm6, %v3733_v50, 0.0 }
 0x2c6   : > { %v3689_v58 = vadd.f32 %v3688_v23, %v3687_v38  ;;  %v3558_v51 = vsel %vm470_vm0, %v6782_v42, %v3332_v31  ;;  %vm3702_vm0 = vcmask 122880  }
 0x2c7   : > { %v3791_v32 = vsel %vm3632_vm6, %v3732_v24, 0.0 }
 0x2c8   : > { %v3792_v4 = vadd.f32 %v3791_v32, %v3790_v48  ;;  %v3691_v49 = vadd.f32 %v3690_v29, %v3689_v58 }
 0x2c9   : > { %v3460_v44 = vpop.permute.xlu1 %3459 }
 0x2ca   : > { %v3794_v39 = vadd.f32 %v3793_v27, %v3792_v4  ;;  %v3591_v1 = vsel %vm3560_vm5, %v3558_v51, %v3460_v44 }
 0x2cb   : > { %v3630_v63 = vadd.f32 %v6413_v16, %v3591_v1 }
 0x2cd   : > { %v3692_v7 = vsel %vm3632_vm6, %v3630_v63, 0.0  ;;  %v3734_v5 = vmul.f32 %v3630_v63, %v3630_v63  ;;  %3836 = vst.msk [vmem:[%s6425_s11 + $0xf0] sm:$0xff] %vm3632_vm6, %v3630_v63  ;;  %v3462_v2 = vpop.permute.xlu1 %3461 }
 0x2ce   : > { %v3693_v8 = vadd.f32 %v3692_v7, %v3691_v49  ;;  %v3592_v22 = vsel %vm3560_vm5, %v3559_v9, %v3462_v2 }
 0x2cf   : > { %v3795_v56 = vsel %vm3632_vm6, %v3734_v5, 0.0  ;;  %v3631_v47 = vadd.f32 %v6413_v16, %v3592_v22 }
 0x2d0   : > { %v3796_v52 = vadd.f32 %v3795_v56, %v3794_v39 }
 0x2d1   : > { %v3694_v30 = vsel %vm3632_vm6, %v3631_v47, 0.0  ;;  %v3735_v14 = vmul.f32 %v3631_v47, %v3631_v47  ;;  %3837 = vst.msk [vmem:[%s6425_s11 + $0xf8] sm:$0xff] %vm3632_vm6, %v3631_v47 }
 0x2d2   : > { %v3695_v43 = vadd.f32 %v3694_v30, %v3693_v8 }
 0x2d3   : > { %v3797_v18 = vsel %vm3632_vm6, %v3735_v14, 0.0 }
 0x2d4   : > { %v3696_v19 = vrot.slane %v3695_v43, 4  ;;  %v3798_v62 = vadd.f32 %v3797_v18, %v3796_v52 }
 0x2d6   : > { %v3697_v26 = vadd.f32 %v3696_v19, %v3695_v43  ;;  %v3799_v59 = vrot.slane %v3798_v62, 4 }
 0x2d8   : > { %v3698_v25 = vrot.slane %v3697_v26, 2  ;;  %v3800_v55 = vadd.f32 %v3799_v59, %v3798_v62 }
 0x2da   : > { %v3699_v35 = vadd.f32 %v3698_v25, %v3697_v26  ;;  %v3801_v36 = vrot.slane %v3800_v55, 2 }
 0x2dc   : > { %v3700_v13 = vrot.slane %v3699_v35, 1  ;;  %v3802_v16 = vadd.f32 %v3801_v36, %v3800_v55 }
 0x2de   : > { %v3701_v53 = vadd.f32 %v3700_v13, %v3699_v35  ;;  %v3803_v33 = vrot.slane %v3802_v16, 1 }
 0x2e0   : > { %3703 = vst.msk [vmem:[%s262_s14] sm:$0x1] %vm3702_vm0, %v3701_v53  ;;  %v3804_v20 = vadd.f32 %v3803_v33, %v3802_v16 }
 0x2e2   : > { %3805 = vst.msk [vmem:[%s262_s14 + $0x1] sm:$0x1] %vm3702_vm0, %v3804_v20 }
 0x2e3 PF: > { %s17_s21 = sadd.s32 1, %s5164_s21  }
 0x2e4   : > { %p14_p4 = scmp.ge.s32.totalorder %s17_s21, 4  }
 0x2e6   :  { %16 = sbr.rel (!%p14_p4) target bundleno = 1 (0x1), region = 92 }

// kernel: upsample_layer_forward.4
= control target key start
LH: loop header
LB: loop body
LE: loop exit
PB: predicated region body
PF: predicated region fallthrough
CT: control target
= control target key end

     0   :  { %s5610_s21 = smov 0   ;;  %s6843_s0 = inlined_call_operand.vmem [shape: f32[2,16,16,4], index: 0, kind: input, shape index: {}]   ;;  %s6844_s1 = inlined_call_operand.vmem [shape: f32[1,4], index: 1, kind: input, shape index: {}]   ;;  %s6845_s2 = inlined_call_operand.vmem [shape: f32[1,4], index: 2, kind: input, shape index: {}]   ;;  %s6846_s3 = inlined_call_operand.vmem [shape: f32[9,4,8], index: 3, kind: input, shape index: {}]   ;;  %s6847_s4 = inlined_call_operand.vmem [shape: f32[1,8], index: 4, kind: input, shape index: {}]   ;;  %s6848_s5 = inlined_call_operand.vmem [shape: f32[2,16,16,8], index: 5, kind: output, shape index: {0}]   ;;  %s6849_s6 = inlined_call_operand.vmem [shape: f32[2,2,8], index: 6, kind: output, shape index: {1}]  }
   0x1 LB: > { %s4230_s22 = sadd.s32 4294967295, %s5572_s21   ;;  %p4234_p0 = scmp.ge.s32.totalorder %s5572_s21, 1  ;;  %s5572_s21 = sphi %s5610_s21, %s17_s21  }
   0x2   : > { %p215_p1 = scmp.lt.s32.totalorder %s5572_s21, 3 }
   0x4   : > { %p216_p2 = pnand %p4234_p0, %p215_p1 }
   0x6   : > { %219 = sbr.rel (%p216_p2) target bundleno = 565 (0x235), region = 40 }
   0xd   : > { %v4242_v0 = vld [vmem:[%s6846_s3 + $0x4] sm:$0xf]  ;;  %vm615_vm0 = vcmask 1043456   ;;  %vm373_vm1 = vcmask 31744   ;;  %vm376_vm2 = vcmask 25600   ;;  %v5574_v1 = vmov 0.0  }
   0xe   : > { %4849 = vmatprep.subr.msk.mxu1 %vm615_vm0, %v4242_v0  ;;  %374 = vst.msk [vmem:[#allocation2] sm:$0xff] %vm373_vm1, %v5574_v1  ;;  %375 = vst.msk [vmem:[#allocation2 + $0x8] sm:$0xff] %vm373_vm1, %v5574_v1  ;;  %vm382_vm3 = vcmask 24576   ;;  %v5629_v2 = vld [vmem:[%s6846_s3 + $0x10] sm:$0xf]  ;;  %p5633_p3 = scmp.lt.s32.totalorder %s4230_s22, 1 }
   0xf   : > { %379 = vst.msk [vmem:[#allocation2 + $0x198] sm:$0xff] %vm373_vm1, %v5574_v1  ;;  %380 = vst.msk [vmem:[#allocation2 + $0x1a0] sm:$0xff] %vm373_vm1, %v5574_v1  ;;  %4850 = vmatpush3.msk.msra.mxu1 %vm615_vm0, %v4242_v0  ;;  %5049 = vmatprep.subr.msk.mxu0 %vm615_vm0, %v5629_v2  ;;  %v484_v3 = vld [vmem:[%s6846_s3] sm:$0xf]  ;;  %v5682_v4 = vld [vmem:[%s6846_s3 + $0x14] sm:$0xf] }
  0x10   : > { %377 = vst.msk [vmem:[#allocation2 + $0x10] sm:$0x3] %vm376_vm2, %v5574_v1  ;;  %381 = vst.msk [vmem:[#allocation2 + $0x1a8] sm:$0x3] %vm376_vm2, %v5574_v1  ;;  %5050 = vmatpush3.msk.msra.mxu0 %vm615_vm0, %v5629_v2  ;;  %s6959_s22 = smov (!%p5633_p3, %s4230_s22), 1  ;;  %4899 = vmatprep.subr.msk.mxu1 %vm615_vm0, %v484_v3  ;;  %vm3938_vm4 = vcmask 64512  }
  0x11   : > { %401 = vst.msk [vmem:[#allocation2 + $0x11] sm:$0x1] %vm382_vm3, %v5574_v1  ;;  %383 = vst.msk [vmem:[#allocation2] sm:$0x1] %vm382_vm3, %v5574_v1  ;;  %5099 = vmatprep.subr.msk.mxu0 %vm615_vm0, %v5682_v4  ;;  %s4550_s8 = sshll.u32 %s6959_s22, 8  ;;  %vm4008_vm5 = vcmask 57344  }
  0x12   : > { %384 = vst.msk [vmem:[#allocation2 + $0x18] sm:$0x1] %vm382_vm3, %v5574_v1  ;;  %385 = vst.msk [vmem:[#allocation2 + $0x30] sm:$0x1] %vm382_vm3, %v5574_v1  ;;  %v5699_v5 = vld [vmem:[%s6844_s1] ss:$0 sm:$0xff]  ;;  %s5706_s13 = scalar_lea.vmem %s6843_s0, %s4550_s8  ;;  %s6666_s9 = scalar_lea.vmem %s6848_s5, %s4550_s8 }
  0x13   : > { %386 = vst.msk [vmem:[#allocation2 + $0x48] sm:$0x1] %vm382_vm3, %v5574_v1  ;;  %387 = vst.msk [vmem:[#allocation2 + $0x60] sm:$0x1] %vm382_vm3, %v5574_v1  ;;  %v5711_v6 = vld [vmem:[%s6845_s2] ss:$0 sm:$0xff] }
  0x14   : > { %388 = vst.msk [vmem:[#allocation2 + $0x78] sm:$0x1] %vm382_vm3, %v5574_v1  ;;  %389 = vst.msk [vmem:[#allocation2 + $0x90] sm:$0x1] %vm382_vm3, %v5574_v1  ;;  %v263_v7 = vld [vmem:[%s5706_s13] sm:$0xff]  ;;  %v264_v8 = vld [vmem:[%s5706_s13 + $0x8] sm:$0xff] }
  0x15   : > { %390 = vst.msk [vmem:[#allocation2 + $0xa8] sm:$0x1] %vm382_vm3, %v5574_v1  ;;  %391 = vst.msk [vmem:[#allocation2 + $0xc0] sm:$0x1] %vm382_vm3, %v5574_v1  ;;  %v265_v9 = vld [vmem:[%s5706_s13 + $0x10] sm:$0xff]  ;;  %v485_v11 = vld [vmem:[#allocation2 + $0x1] sm:$0xff]  ;;  %v302_v13 = vmul.f32 %v5699_v5, %v263_v7  ;;  %v303_v14 = vmul.f32 %v5699_v5, %v264_v8 }
  0x16   : > { %392 = vst.msk [vmem:[#allocation2 + $0xd8] sm:$0x1] %vm382_vm3, %v5574_v1  ;;  %393 = vst.msk [vmem:[#allocation2 + $0xf0] sm:$0x1] %vm382_vm3, %v5574_v1  ;;  %v5719_v10 = vld [vmem:[%s6846_s3 + $0x8] sm:$0xf]  ;;  %v304_v15 = vmul.f32 %v5699_v5, %v265_v9  ;;  %4851 = vmatprep.mubr.msk.f32.mxu1 %vm373_vm1, %v485_v11 }
  0x17   : > { %394 = vst.msk [vmem:[#allocation2 + $0x108] sm:$0x1] %vm382_vm3, %v5574_v1  ;;  %395 = vst.msk [vmem:[#allocation2 + $0x120] sm:$0x1] %vm382_vm3, %v5574_v1  ;;  %v486_v12 = vld [vmem:[#allocation2 + $0x9] sm:$0xff]  ;;  %v266_v16 = vld [vmem:[%s5706_s13 + $0x18] sm:$0xff]  ;;  %v341_v21 = vadd.f32 %v5711_v6, %v302_v13  ;;  %v342_v22 = vadd.f32 %v5711_v6, %v303_v14 }
  0x18   : > { %396 = vst.msk [vmem:[#allocation2 + $0x138] sm:$0x1] %vm382_vm3, %v5574_v1  ;;  %397 = vst.msk [vmem:[#allocation2 + $0x150] sm:$0x1] %vm382_vm3, %v5574_v1  ;;  %v305_v17 = vmul.f32 %v5699_v5, %v266_v16  ;;  %v267_v18 = vld [vmem:[%s5706_s13 + $0x20] sm:$0xff]  ;;  %v268_v19 = vld [vmem:[%s5706_s13 + $0x28] sm:$0xff]  ;;  %4852 = vmatmul.mubr.msk.f32.vlgmr.msra.gmra.mrb[0].mxu1 %vm373_vm1, %v486_v12  ;;  %v343_v23 = vadd.f32 %v5711_v6, %v304_v15 }
  0x19   : > { %398 = vst.msk [vmem:[#allocation2 + $0x168] sm:$0x1] %vm382_vm3, %v5574_v1  ;;  %399 = vst.msk [vmem:[#allocation2 + $0x180] sm:$0x1] %vm382_vm3, %v5574_v1  ;;  %v269_v20 = vld [vmem:[%s5706_s13 + $0x30] sm:$0xff]  ;;  %v306_v24 = vmul.f32 %v5699_v5, %v267_v18  ;;  %v270_v25 = vld [vmem:[%s5706_s13 + $0x38] sm:$0xff]  ;;  %4900 = vmatpush3.msk.msra.mxu1 %vm615_vm0, %v484_v3  ;;  %v307_v29 = vmul.f32 %v5699_v5, %v268_v19 }
  0x1a   : > { %400 = vst.msk [vmem:[#allocation2 + $0x198] sm:$0x1] %vm382_vm3, %v5574_v1  ;;  %402 = vst.msk [vmem:[#allocation2 + $0x29] sm:$0x1] %vm382_vm3, %v5574_v1  ;;  %v271_v26 = vld [vmem:[%s5706_s13 + $0x40] sm:$0xff]  ;;  %v272_v27 = vld [vmem:[%s5706_s13 + $0x48] sm:$0xff]  ;;  %v344_v28 = vadd.f32 %v5711_v6, %v305_v17  ;;  %v308_v30 = vmul.f32 %v5699_v5, %v269_v20  ;;  %v309_v31 = vmul.f32 %v5699_v5, %v270_v25  ;;  %4949 = vmatprep.subr.msk.mxu1 %vm615_vm0, %v5719_v10 }
  0x1b   : > { %403 = vst.msk [vmem:[#allocation2 + $0x41] sm:$0x1] %vm382_vm3, %v5574_v1  ;;  %404 = vst.msk [vmem:[#allocation2 + $0x59] sm:$0x1] %vm382_vm3, %v5574_v1  ;;  %v273_v32 = vld [vmem:[%s5706_s13 + $0x50] sm:$0xff]  ;;  %v274_v33 = vld [vmem:[%s5706_s13 + $0x58] sm:$0xff]  ;;  %v345_v35 = vadd.f32 %v5711_v6, %v306_v24  ;;  %v310_v36 = vmul.f32 %v5699_v5, %v271_v26  ;;  %v311_v37 = vmul.f32 %v5699_v5, %v272_v27 }
  0x1c   : > { %405 = vst.msk [vmem:[#allocation2 + $0x71] sm:$0x1] %vm382_vm3, %v5574_v1  ;;  %406 = vst.msk [vmem:[#allocation2 + $0x89] sm:$0x1] %vm382_vm3, %v5574_v1  ;;  %v275_v34 = vld [vmem:[%s5706_s13 + $0x60] sm:$0xff]  ;;  %v312_v38 = vmul.f32 %v5699_v5, %v273_v32  ;;  %v276_v39 = vld [vmem:[%s5706_s13 + $0x68] sm:$0xff]  ;;  %v346_v42 = vadd.f32 %v5711_v6, %v307_v29  ;;  %v347_v43 = vadd.f32 %v5711_v6, %v308_v30 }
  0x1d   : > { %407 = vst.msk [vmem:[#allocation2 + $0xa1] sm:$0x1] %vm382_vm3, %v5574_v1  ;;  %408 = vst.msk [vmem:[#allocation2 + $0xb9] sm:$0x1] %vm382_vm3, %v5574_v1  ;;  %v277_v40 = vld [vmem:[%s5706_s13 + $0x70] sm:$0xff]  ;;  %v278_v41 = vld [vmem:[%s5706_s13 + $0x78] sm:$0xff]  ;;  %v348_v44 = vadd.f32 %v5711_v6, %v309_v31  ;;  %v313_v45 = vmul.f32 %v5699_v5, %v274_v33  ;;  %v349_v49 = vadd.f32 %v5711_v6, %v310_v36 }
  0x1e   : > { %409 = vst.msk [vmem:[#allocation2 + $0xd1] sm:$0x1] %vm382_vm3, %v5574_v1  ;;  %410 = vst.msk [vmem:[#allocation2 + $0xe9] sm:$0x1] %vm382_vm3, %v5574_v1  ;;  %v279_v46 = vld [vmem:[%s5706_s13 + $0x80] sm:$0xff]  ;;  %v280_v47 = vld [vmem:[%s5706_s13 + $0x88] sm:$0xff]  ;;  %v350_v50 = vadd.f32 %v5711_v6, %v311_v37  ;;  %v351_v51 = vadd.f32 %v5711_v6, %v312_v38  ;;  %v314_v52 = vmul.f32 %v5699_v5, %v275_v34 }
  0x1f   : > { %411 = vst.msk [vmem:[#allocation2 + $0x101] sm:$0x1] %vm382_vm3, %v5574_v1  ;;  %412 = vst.msk [vmem:[#allocation2 + $0x119] sm:$0x1] %vm382_vm3, %v5574_v1  ;;  %v281_v48 = vld [vmem:[%s5706_s13 + $0x90] sm:$0xff]  ;;  %v282_v53 = vld [vmem:[%s5706_s13 + $0x98] sm:$0xff]  ;;  %v352_v54 = vadd.f32 %v5711_v6, %v313_v45  ;;  %v315_v55 = vmul.f32 %v5699_v5, %v276_v39  ;;  %v316_v56 = vmul.f32 %v5699_v5, %v277_v40 }
  0x20   : > { %413 = vst.msk [vmem:[#allocation2 + $0x131] sm:$0x1] %vm382_vm3, %v5574_v1  ;;  %414 = vst.msk [vmem:[#allocation2 + $0x149] sm:$0x1] %vm382_vm3, %v5574_v1  ;;  %v317_v57 = vmul.f32 %v5699_v5, %v278_v41  ;;  %v283_v58 = vld [vmem:[%s5706_s13 + $0xa0] sm:$0xff]  ;;  %v353_v59 = vadd.f32 %v5711_v6, %v314_v52  ;;  %v318_v60 = vmul.f32 %v5699_v5, %v279_v46  ;;  %v284_v63 = vld [vmem:[%s5706_s13 + $0xa8] sm:$0xff] }
  0x21   : > { %415 = vst.msk [vmem:[#allocation2 + $0x161] sm:$0x1] %vm382_vm3, %v5574_v1  ;;  %416 = vst.msk [vmem:[#allocation2 + $0x179] sm:$0x1] %vm382_vm3, %v5574_v1  ;;  %v319_v61 = vmul.f32 %v5699_v5, %v280_v47  ;;  %v320_v62 = vmul.f32 %v5699_v5, %v281_v48  ;;  %v285_v0 = vld [vmem:[%s5706_s13 + $0xb0] sm:$0xff]  ;;  %v354_v3 = vadd.f32 %v5711_v6, %v315_v55  ;;  %v287_v11 = vld [vmem:[%s5706_s13 + $0xc0] sm:$0xff] }
  0x22   : > { %417 = vst.msk [vmem:[#allocation2 + $0x191] sm:$0x1] %vm382_vm3, %v5574_v1  ;;  %418 = vst.msk [vmem:[#allocation2 + $0x1a9] sm:$0x1] %vm382_vm3, %v5574_v1  ;;  %v286_v1 = vld [vmem:[%s5706_s13 + $0xb8] sm:$0xff]  ;;  %v355_v7 = vadd.f32 %v5711_v6, %v316_v56  ;;  %v356_v8 = vadd.f32 %v5711_v6, %v317_v57  ;;  %v321_v9 = vmul.f32 %v5699_v5, %v282_v53  ;;  %v288_v12 = vld [vmem:[%s5706_s13 + $0xc8] sm:$0xff] }
  0x23   : > { %420 = vst.msk [vmem:[#allocation2 + $0x19] sm:$0xff] %vm373_vm1, %v341_v21  ;;  %421 = vst.msk [vmem:[#allocation2 + $0x21] sm:$0xff] %vm373_vm1, %v342_v22  ;;  %v357_v13 = vadd.f32 %v5711_v6, %v318_v60  ;;  %v5802_v14 = vld [vmem:[%s6846_s3 + $0x18] sm:$0xf]  ;;  %v358_v15 = vadd.f32 %v5711_v6, %v319_v61  ;;  %v359_v16 = vadd.f32 %v5711_v6, %v320_v62  ;;  %v289_v18 = vld [vmem:[%s5706_s13 + $0xd0] sm:$0xff]  ;;  %s4239_s8 = sshll.u32 %s6959_s22, 1 }
  0x24   : > { %422 = vst.msk [vmem:[#allocation2 + $0x31] sm:$0xff] %vm373_vm1, %v343_v23  ;;  %423 = vst.msk [vmem:[#allocation2 + $0x39] sm:$0xff] %vm373_vm1, %v344_v28  ;;  %v322_v17 = vmul.f32 %v5699_v5, %v283_v58  ;;  %v360_v22 = vadd.f32 %v5711_v6, %v321_v9  ;;  %v323_v23 = vmul.f32 %v5699_v5, %v284_v63  ;;  %v290_v29 = vld [vmem:[%s5706_s13 + $0xd8] sm:$0xff]  ;;  %v291_v30 = vld [vmem:[%s5706_s13 + $0xe0] sm:$0xff]  ;;  %s262_s12 = scalar_lea.vmem %s6849_s6, %s4239_s8 }
  0x25   : > { %424 = vst.msk [vmem:[#allocation2 + $0x49] sm:$0xff] %vm373_vm1, %v345_v35  ;;  %425 = vst.msk [vmem:[#allocation2 + $0x51] sm:$0xff] %vm373_vm1, %v346_v42  ;;  %v324_v24 = vmul.f32 %v5699_v5, %v285_v0  ;;  %v325_v25 = vmul.f32 %v5699_v5, %v286_v1  ;;  %v326_v27 = vmul.f32 %v5699_v5, %v287_v11  ;;  %v292_v31 = vld [vmem:[%s5706_s13 + $0xe8] sm:$0xff]  ;;  %v293_v35 = vld [vmem:[%s5706_s13 + $0xf0] sm:$0xff] }
  0x26   : > { %426 = vst.msk [vmem:[#allocation2 + $0x61] sm:$0xff] %vm373_vm1, %v347_v43  ;;  %427 = vst.msk [vmem:[#allocation2 + $0x69] sm:$0xff] %vm373_vm1, %v348_v44  ;;  %v361_v26 = vadd.f32 %v5711_v6, %v322_v17  ;;  %v327_v28 = vmul.f32 %v5699_v5, %v288_v12  ;;  %v362_v32 = vadd.f32 %v5711_v6, %v323_v23  ;;  %v294_v36 = vld [vmem:[%s5706_s13 + $0xf8] sm:$0xff] }
  0x27   : > { %428 = vst.msk [vmem:[#allocation2 + $0x79] sm:$0xff] %vm373_vm1, %v349_v49  ;;  %429 = vst.msk [vmem:[#allocation2 + $0x81] sm:$0xff] %vm373_vm1, %v350_v50  ;;  %v363_v33 = vadd.f32 %v5711_v6, %v324_v24  ;;  %v364_v34 = vadd.f32 %v5711_v6, %v325_v25  ;;  %v365_v38 = vadd.f32 %v5711_v6, %v326_v27 }
  0x28   : > { %430 = vst.msk [vmem:[#allocation2 + $0x91] sm:$0xff] %vm373_vm1, %v351_v51  ;;  %431 = vst.msk [vmem:[#allocation2 + $0x99] sm:$0xff] %vm373_vm1, %v352_v54  ;;  %v366_v39 = vadd.f32 %v5711_v6, %v327_v28  ;;  %v328_v40 = vmul.f32 %v5699_v5, %v289_v18  ;;  %v330_v42 = vmul.f32 %v5699_v5, %v291_v30 }
  0x29   : > { %432 = vst.msk [vmem:[#allocation2 + $0xa9] sm:$0xff] %vm373_vm1, %v353_v59  ;;  %433 = vst.msk [vmem:[#allocation2 + $0xb1] sm:$0xff] %vm373_vm1, %v354_v3  ;;  %v331_v43 = vmul.f32 %v5699_v5, %v292_v31  ;;  %v332_v45 = vmul.f32 %v5699_v5, %v293_v35  ;;  %v333_v46 = vmul.f32 %v5699_v5, %v294_v36 }
  0x2a   : > { %v487_v19 = vld [vmem:[#allocation2 + $0x19] sm:$0xff]  ;;  %v488_v20 = vld [vmem:[#allocation2 + $0x21] sm:$0xff]  ;;  %434 = vst.msk [vmem:[#allocation2 + $0xc1] sm:$0xff] %vm373_vm1, %v355_v7  ;;  %435 = vst.msk [vmem:[#allocation2 + $0xc9] sm:$0xff] %vm373_vm1, %v356_v8  ;;  %v367_v44 = vadd.f32 %v5711_v6, %v328_v40  ;;  %v369_v48 = vadd.f32 %v5711_v6, %v330_v42 }
  0x2b   : > { %v5808_v21 = vld [vmem:[#allocation2 + $0x31] sm:$0xff]  ;;  %4854 = vmatprep.mubr.msk.f32.mxu1 %vm373_vm1, %v487_v19  ;;  %5051 = vmatprep.mubr.msk.f32.mxu0 %vm373_vm1, %v487_v19  ;;  %436 = vst.msk [vmem:[#allocation2 + $0xd9] sm:$0xff] %vm373_vm1, %v357_v13  ;;  %437 = vst.msk [vmem:[#allocation2 + $0xe1] sm:$0xff] %vm373_vm1, %v358_v15  ;;  %v5840_v37 = vld [vmem:[#allocation2 + $0x39] sm:$0xff]  ;;  %v370_v49 = vadd.f32 %v5711_v6, %v331_v43  ;;  %v372_v51 = vadd.f32 %v5711_v6, %v333_v46 }
  0x2c   : > { %438 = vst.msk [vmem:[#allocation2 + $0xf1] sm:$0xff] %vm373_vm1, %v359_v16  ;;  %4855 = vmatmul.mubr.msk.f32.gmra.mrb[2].mxu1 %vm373_vm1, %v488_v20  ;;  %5052 = vmatmul.mubr.msk.f32.vlgmr.msra.gmra.mrb[0].mxu0 %vm373_vm1, %v488_v20  ;;  %439 = vst.msk [vmem:[#allocation2 + $0xf9] sm:$0xff] %vm373_vm1, %v360_v22  ;;  %v5848_v41 = vld [vmem:[#allocation2 + $0x49] sm:$0xff]  ;;  %v5874_v50 = vld [vmem:[#allocation2 + $0x51] sm:$0xff] }
  0x2d   : > { %5100 = vmatpush3.msk.msra.mxu0 %vm615_vm0, %v5682_v4  ;;  %4857 = vmatprep.mubr.msk.f32.mxu1 %vm373_vm1, %v5808_v21  ;;  %440 = vst.msk [vmem:[#allocation2 + $0x109] sm:$0xff] %vm373_vm1, %v361_v26  ;;  %441 = vst.msk [vmem:[#allocation2 + $0x111] sm:$0xff] %vm373_vm1, %v362_v32  ;;  %v329_v4 = vmul.f32 %v5699_v5, %v290_v29  ;;  %v371_v5 = vadd.f32 %v5711_v6, %v332_v45  ;;  %v5879_v52 = vld [vmem:[#allocation2 + $0x61] sm:$0xff]  ;;  %v5962_v3 = vld [vmem:[#allocation2 + $0x32] sm:$0xff] }
  0x2e   : > { %5054 = vmatprep.mubr.msk.f32.mxu0 %vm373_vm1, %v5808_v21  ;;  %5149 = vmatprep.subr.msk.mxu0 %vm615_vm0, %v5802_v14  ;;  %442 = vst.msk [vmem:[#allocation2 + $0x121] sm:$0xff] %vm373_vm1, %v363_v33  ;;  %443 = vst.msk [vmem:[#allocation2 + $0x129] sm:$0xff] %vm373_vm1, %v364_v34  ;;  %v5896_v53 = vld [vmem:[#allocation2 + $0x79] sm:$0xff]  ;;  %v5906_v54 = vld [vmem:[#allocation2 + $0x81] sm:$0xff] }
  0x2f   : > { %444 = vst.msk [vmem:[#allocation2 + $0x139] sm:$0xff] %vm373_vm1, %v365_v38  ;;  %445 = vst.msk [vmem:[#allocation2 + $0x141] sm:$0xff] %vm373_vm1, %v366_v39  ;;  %v368_v47 = vadd.f32 %v5711_v6, %v329_v4  ;;  %v5894_v6 = vld [vmem:[#allocation2 + $0x69] sm:$0xff]  ;;  %v5908_v55 = vld [vmem:[#allocation2 + $0x91] sm:$0xff] }
  0x30   : > { %4858 = vmatmul.mubr.msk.f32.gmra.mrb[4].mxu1 %vm373_vm1, %v5840_v37  ;;  %5055 = vmatmul.mubr.msk.f32.gmra.mrb[2].mxu0 %vm373_vm1, %v5840_v37  ;;  %446 = vst.msk [vmem:[#allocation2 + $0x151] sm:$0xff] %vm373_vm1, %v367_v44  ;;  %448 = vst.msk [vmem:[#allocation2 + $0x169] sm:$0xff] %vm373_vm1, %v369_v48  ;;  %v5918_v56 = vld [vmem:[#allocation2 + $0x99] sm:$0xff]  ;;  %v5920_v57 = vld [vmem:[#allocation2 + $0xa9] sm:$0xff] }
  0x31   : > { %4860 = vmatprep.mubr.msk.f32.mxu1 %vm373_vm1, %v5848_v41  ;;  %5057 = vmatprep.mubr.msk.f32.mxu0 %vm373_vm1, %v5848_v41  ;;  %447 = vst.msk [vmem:[#allocation2 + $0x159] sm:$0xff] %vm373_vm1, %v368_v47  ;;  %449 = vst.msk [vmem:[#allocation2 + $0x171] sm:$0xff] %vm373_vm1, %v370_v49  ;;  %v5930_v58 = vld [vmem:[#allocation2 + $0xb1] sm:$0xff]  ;;  %v5932_v59 = vld [vmem:[#allocation2 + $0xc1] sm:$0xff] }
  0x32   : > { %450 = vst.msk [vmem:[#allocation2 + $0x181] sm:$0xff] %vm373_vm1, %v371_v5  ;;  %451 = vst.msk [vmem:[#allocation2 + $0x189] sm:$0xff] %vm373_vm1, %v372_v51  ;;  %v5942_v60 = vld [vmem:[#allocation2 + $0xc9] sm:$0xff]  ;;  %v5944_v61 = vld [vmem:[#allocation2 + $0xd9] sm:$0xff] }
  0x33   : > { %6896 = vst [vmem:[#allocation3_spill] sm:$0xff] %v5942_v60  ;;  %6897 = vst [vmem:[#allocation4_spill] sm:$0xff] %v5944_v61  ;;  %v5946_v62 = vld [vmem:[#allocation2 + $0x1a] sm:$0xff]  ;;  %v5958_v0 = vld [vmem:[#allocation2 + $0x22] sm:$0xff] }
  0x34   : > { %4861 = vmatmul.mubr.msk.f32.gmra.mrb[6].mxu1 %vm373_vm1, %v5874_v50  ;;  %5058 = vmatmul.mubr.msk.f32.gmra.mrb[4].mxu0 %vm373_vm1, %v5874_v50  ;;  %v5956_v63 = vld [vmem:[#allocation2 + $0xe1] sm:$0xff]  ;;  %v5960_v1 = vld [vmem:[#allocation2 + $0xf1] sm:$0xff]  ;;  %v5967_v7 = vld [vmem:[%s6846_s3 + $0x1c] sm:$0xf] }
  0x35   : > { %4863 = vmatprep.mubr.msk.f32.mxu1 %vm373_vm1, %v5879_v52  ;;  %5060 = vmatprep.mubr.msk.f32.mxu0 %vm373_vm1, %v5879_v52  ;;  %6898 = vst [vmem:[#allocation5_spill] sm:$0xff] %v5956_v63  ;;  %6899 = vst [vmem:[#allocation6_spill] sm:$0xff] %v5960_v1  ;;  %v5977_v8 = vld [vmem:[#allocation2 + $0xf9] sm:$0xff]  ;;  %v5983_v11 = vld [vmem:[#allocation2 + $0x109] sm:$0xff] }
  0x36   : > { %6900 = vst [vmem:[#allocation7_spill] sm:$0xff] %v5977_v8  ;;  %v5979_v9 = vld [vmem:[#allocation2 + $0x3a] sm:$0xff]  ;;  %6901 = vst [vmem:[#allocation8_spill] sm:$0xff] %v5983_v11  ;;  %v5985_v12 = vld [vmem:[#allocation2 + $0x4a] sm:$0xff] }
  0x37   : > { %v5997_v13 = vld [vmem:[#allocation2 + $0x111] sm:$0xff]  ;;  %v6001_v15 = vld [vmem:[#allocation2 + $0x121] sm:$0xff]  ;;  %v6013_v17 = vld [vmem:[#allocation2 + $0x129] sm:$0xff] }
  0x38   : > { %4864 = vmatmul.mubr.msk.f32.gmra.mrb[8].mxu1 %vm373_vm1, %v5894_v6  ;;  %5061 = vmatmul.mubr.msk.f32.gmra.mrb[6].mxu0 %vm373_vm1, %v5894_v6  ;;  %6902 = vst [vmem:[#allocation9_spill] sm:$0xff] %v5997_v13  ;;  %6903 = vst [vmem:[#allocation10_spill] sm:$0xff] %v6001_v15  ;;  %v6003_v16 = vld [vmem:[#allocation2 + $0x62] sm:$0xff]  ;;  %v6015_v18 = vld [vmem:[#allocation2 + $0x6a] sm:$0xff] }
  0x39   : > { %4866 = vmatprep.mubr.msk.f32.mxu1 %vm373_vm1, %v5896_v53  ;;  %5063 = vmatprep.mubr.msk.f32.mxu0 %vm373_vm1, %v5896_v53  ;;  %6904 = vst [vmem:[#allocation11_spill] sm:$0xff] %v6013_v17  ;;  %v6017_v19 = vld [vmem:[#allocation2 + $0x139] sm:$0xff]  ;;  %v6029_v22 = vld [vmem:[#allocation2 + $0x141] sm:$0xff]  ;;  %v6033_v24 = vld [vmem:[#allocation2 + $0x151] sm:$0xff] }
  0x3a   : > { %6905 = vst [vmem:[#allocation12_spill] sm:$0xff] %v6017_v19  ;;  %v6019_v20 = vld [vmem:[#allocation2 + $0x7a] sm:$0xff]  ;;  %6906 = vst [vmem:[#allocation13_spill] sm:$0xff] %v6029_v22  ;;  %v6031_v23 = vld [vmem:[#allocation2 + $0x82] sm:$0xff] }
  0x3b   : > { %6907 = vst [vmem:[#allocation14_spill] sm:$0xff] %v6033_v24  ;;  %v6035_v25 = vld [vmem:[#allocation2 + $0x92] sm:$0xff]  ;;  %v6047_v27 = vld [vmem:[#allocation2 + $0x9a] sm:$0xff]  ;;  %v6049_v28 = vld [vmem:[#allocation2 + $0x169] sm:$0xff] }
  0x3c   : > { %4867 = vmatmul.mubr.msk.f32.gmra.mrb[10].mxu1 %vm373_vm1, %v5906_v54  ;;  %5064 = vmatmul.mubr.msk.f32.gmra.mrb[8].mxu0 %vm373_vm1, %v5906_v54  ;;  %v6045_v26 = vld [vmem:[#allocation2 + $0x159] sm:$0xff]  ;;  %6909 = vst [vmem:[#allocation16_spill] sm:$0xff] %v6049_v28  ;;  %v6051_v29 = vld [vmem:[#allocation2 + $0xaa] sm:$0xff]  ;;  %v6065_v33 = vld [vmem:[#allocation2 + $0xc2] sm:$0xff] }
  0x3d   : > { %4869 = vmatprep.mubr.msk.f32.mxu1 %vm373_vm1, %v5908_v55  ;;  %5066 = vmatprep.mubr.msk.f32.mxu0 %vm373_vm1, %v5908_v55  ;;  %6908 = vst [vmem:[#allocation15_spill] sm:$0xff] %v6045_v26  ;;  %v6061_v30 = vld [vmem:[#allocation2 + $0x171] sm:$0xff]  ;;  %v452_v32 = vld [vmem:[#allocation2] sm:$0xff]  ;;  %v453_v34 = vld [vmem:[#allocation2 + $0x8] sm:$0xff] }
  0x3e   : > { %6910 = vst [vmem:[#allocation17_spill] sm:$0xff] %v6061_v30  ;;  %v6063_v31 = vld [vmem:[#allocation2 + $0xb2] sm:$0xff]  ;;  %v6074_v35 = vld [vmem:[#allocation2 + $0xca] sm:$0xff]  ;;  %v6078_v38 = vld [vmem:[#allocation2 + $0xda] sm:$0xff] }
  0x3f   : > { %v6076_v36 = vld [vmem:[#allocation2 + $0x18] sm:$0xff]  ;;  %v6086_v39 = vld [vmem:[%s6846_s3 + $0xc] sm:$0xf]  ;;  %v6092_v40 = vld [vmem:[#allocation2 + $0x20] sm:$0xff] }
  0x40   : > { %4870 = vmatmul.mubr.msk.f32.gmra.mrb[12].mxu1 %vm373_vm1, %v5918_v56  ;;  %5067 = vmatmul.mubr.msk.f32.gmra.mrb[10].mxu0 %vm373_vm1, %v5918_v56  ;;  %6911 = vst [vmem:[#allocation18_spill] sm:$0xff] %v6076_v36  ;;  %6912 = vst [vmem:[#allocation19_spill] sm:$0xff] %v6092_v40  ;;  %v6094_v4 = vld [vmem:[#allocation2 + $0xe2] sm:$0xff]  ;;  %v6098_v42 = vld [vmem:[#allocation2 + $0x30] sm:$0xff] }
  0x41   : > { %4872 = vmatprep.mubr.msk.f32.mxu1 %vm373_vm1, %v5920_v57  ;;  %5069 = vmatprep.mubr.msk.f32.mxu0 %vm373_vm1, %v5920_v57  ;;  %6913 = vst [vmem:[#allocation20_spill] sm:$0xff] %v6098_v42  ;;  %v6100_v43 = vld [vmem:[#allocation2 + $0xf2] sm:$0xff]  ;;  %v6114_v44 = vld [vmem:[#allocation2 + $0xfa] sm:$0xff]  ;;  %v6116_v45 = vld [vmem:[#allocation2 + $0x48] sm:$0xff] }
  0x42   : > { %6915 = vst [vmem:[#allocation22_spill] sm:$0xff] %v6116_v45  ;;  %v6118_v46 = vld [vmem:[#allocation2 + $0x10a] sm:$0xff]  ;;  %v6130_v48 = vld [vmem:[#allocation2 + $0x112] sm:$0xff]  ;;  %v6132_v49 = vld [vmem:[#allocation2 + $0x60] sm:$0xff] }
  0x43   : > { %v6128_v47 = vld [vmem:[#allocation2 + $0x50] sm:$0xff]  ;;  %6917 = vst [vmem:[#allocation24_spill] sm:$0xff] %v6132_v49  ;;  %v6134_v5 = vld [vmem:[#allocation2 + $0x122] sm:$0xff] }
  0x44   : > { %4873 = vmatmul.mubr.msk.f32.gmra.mrb[14].mxu1 %vm373_vm1, %v5930_v58  ;;  %5070 = vmatmul.mubr.msk.f32.gmra.mrb[12].mxu0 %vm373_vm1, %v5930_v58  ;;  %6916 = vst [vmem:[#allocation23_spill] sm:$0xff] %v6128_v47  ;;  %v6144_v51 = vld [vmem:[#allocation2 + $0x68] sm:$0xff] }
  0x45   : > { %4875 = vmatprep.mubr.msk.f32.mxu1 %vm373_vm1, %v5932_v59  ;;  %5072 = vmatprep.mubr.msk.f32.mxu0 %vm373_vm1, %v5932_v59  ;;  %6918 = vst [vmem:[#allocation25_spill] sm:$0xff] %v6144_v51 }
  0x48   : > { %4876 = vmatmul.mubr.msk.f32.gmra.mrb[16].mxu1 %vm373_vm1, %v5942_v60  ;;  %5073 = vmatmul.mubr.msk.f32.gmra.mrb[14].mxu0 %vm373_vm1, %v5942_v60  ;;  %v6222_v60 = vld [vmem:[#allocation2 + $0xe0] sm:$0xff] }
  0x49   : > { %4878 = vmatprep.mubr.msk.f32.mxu1 %vm373_vm1, %v5944_v61  ;;  %5101 = vmatprep.mubr.msk.f32.mxu0 %vm373_vm1, %v5946_v62  ;;  %v6210_v61 = vld [vmem:[#allocation2 + $0x18a] sm:$0xff] }
  0x4a   : > { %6926 = vst [vmem:[#allocation33_spill] sm:$0xff] %v6210_v61 }
  0x4c   : > { %4879 = vmatmul.mubr.msk.f32.gmra.mrb[18].mxu1 %vm373_vm1, %v5956_v63  ;;  %5102 = vmatmul.mubr.msk.f32.vlgmr.msra.gmra.mrb[0].mxu0 %vm373_vm1, %v5958_v0  ;;  %v6198_v63 = vld [vmem:[#allocation2 + $0x182] sm:$0xff] }
  0x4d   : > { %5150 = vmatpush3.msk.msra.mxu0 %vm615_vm0, %v5802_v14  ;;  %4881 = vmatprep.mubr.msk.f32.mxu1 %vm373_vm1, %v5960_v1  ;;  %v5999_v14 = vld [vmem:[#allocation2 + $0x52] sm:$0xff]  ;;  %v6196_v1 = vld [vmem:[#allocation2 + $0xc0] sm:$0xff]  ;;  %6925 = vst [vmem:[#allocation32_spill] sm:$0xff] %v6198_v63 }
  0x4e   : > { %5104 = vmatprep.mubr.msk.f32.mxu0 %vm373_vm1, %v5962_v3  ;;  %5199 = vmatprep.subr.msk.mxu0 %vm615_vm0, %v5967_v7 }
  0x50   : > { %4882 = vmatmul.mubr.msk.f32.gmra.mrb[20].mxu1 %vm373_vm1, %v5977_v8  ;;  %5105 = vmatmul.mubr.msk.f32.gmra.mrb[2].mxu0 %vm373_vm1, %v5979_v9  ;;  %v6194_v8 = vld [vmem:[#allocation2 + $0x172] sm:$0xff] }
  0x51   : > { %4884 = vmatprep.mubr.msk.f32.mxu1 %vm373_vm1, %v5983_v11  ;;  %5107 = vmatprep.mubr.msk.f32.mxu0 %vm373_vm1, %v5985_v12  ;;  %v6192_v11 = vld [vmem:[#allocation2 + $0xb0] sm:$0xff]  ;;  %6924 = vst [vmem:[#allocation31_spill] sm:$0xff] %v6194_v8 }
  0x52   : > { %6923 = vst [vmem:[#allocation30_spill] sm:$0xff] %v6192_v11 }
  0x54   : > { %4885 = vmatmul.mubr.msk.f32.gmra.mrb[22].mxu1 %vm373_vm1, %v5997_v13  ;;  %5108 = vmatmul.mubr.msk.f32.gmra.mrb[4].mxu0 %vm373_vm1, %v5999_v14  ;;  %v6182_v13 = vld [vmem:[#allocation2 + $0x16a] sm:$0xff] }
  0x55   : > { %4887 = vmatprep.mubr.msk.f32.mxu1 %vm373_vm1, %v6001_v15  ;;  %5110 = vmatprep.mubr.msk.f32.mxu0 %vm373_vm1, %v6003_v16  ;;  %v6180_v15 = vld [vmem:[#allocation2 + $0xa8] sm:$0xff] }
  0x58   : > { %4888 = vmatmul.mubr.msk.f32.gmra.mrb[24].mxu1 %vm373_vm1, %v6013_v17  ;;  %5111 = vmatmul.mubr.msk.f32.gmra.mrb[6].mxu0 %vm373_vm1, %v6015_v18  ;;  %v6178_v17 = vld [vmem:[#allocation2 + $0x15a] sm:$0xff] }
  0x59   : > { %4890 = vmatprep.mubr.msk.f32.mxu1 %vm373_vm1, %v6017_v19  ;;  %5113 = vmatprep.mubr.msk.f32.mxu0 %vm373_vm1, %v6019_v20  ;;  %v6176_v19 = vld [vmem:[#allocation2 + $0x98] sm:$0xff] }
  0x5a   : > { %6922 = vst [vmem:[#allocation29_spill] sm:$0xff] %v6176_v19 }
  0x5c   : > { %4891 = vmatmul.mubr.msk.f32.gmra.mrb[26].mxu1 %vm373_vm1, %v6029_v22  ;;  %5114 = vmatmul.mubr.msk.f32.gmra.mrb[8].mxu0 %vm373_vm1, %v6031_v23  ;;  %v6166_v22 = vld [vmem:[#allocation2 + $0x152] sm:$0xff] }
  0x5d   : > { %4893 = vmatprep.mubr.msk.f32.mxu1 %vm373_vm1, %v6033_v24  ;;  %5116 = vmatprep.mubr.msk.f32.mxu0 %vm373_vm1, %v6035_v25  ;;  %v6164_v24 = vld [vmem:[#allocation2 + $0x90] sm:$0xff] }
  0x5e   : > { %6921 = vst [vmem:[#allocation28_spill] sm:$0xff] %v6164_v24 }
  0x60   : > { %4894 = vmatmul.mubr.msk.f32.gmra.mrb[28].mxu1 %vm373_vm1, %v6045_v26  ;;  %5117 = vmatmul.mubr.msk.f32.gmra.mrb[10].mxu0 %vm373_vm1, %v6047_v27  ;;  %v6162_v26 = vld [vmem:[#allocation2 + $0x142] sm:$0xff] }
  0x61   : > { %4896 = vmatprep.mubr.msk.f32.mxu1 %vm373_vm1, %v6049_v28  ;;  %5119 = vmatprep.mubr.msk.f32.mxu0 %vm373_vm1, %v6051_v29  ;;  %v6160_v28 = vld [vmem:[#allocation2 + $0x80] sm:$0xff] }
  0x62   : > { %6920 = vst [vmem:[#allocation27_spill] sm:$0xff] %v6160_v28 }
  0x64   : > { %4897 = vmatmul.mubr.msk.f32.gmra.mrb[30].mxu1 %vm373_vm1, %v6061_v30  ;;  %5120 = vmatmul.mubr.msk.f32.gmra.mrb[12].mxu0 %vm373_vm1, %v6063_v31  ;;  %v6150_v30 = vld [vmem:[#allocation2 + $0x13a] sm:$0xff] }
  0x65   : > { %4901 = vmatprep.mubr.msk.f32.mxu1 %vm373_vm1, %v452_v32  ;;  %5122 = vmatprep.mubr.msk.f32.mxu0 %vm373_vm1, %v6065_v33  ;;  %v6146_v32 = vld [vmem:[#allocation2 + $0x12a] sm:$0xff] }
  0x68   : > { %4902 = vmatmul.mubr.msk.f32.vlgmr.msra.gmra.mrb[0].mxu1 %vm373_vm1, %v453_v34  ;;  %5123 = vmatmul.mubr.msk.f32.gmra.mrb[14].mxu0 %vm373_vm1, %v6074_v35  ;;  %v6148_v34 = vld [vmem:[#allocation2 + $0x78] sm:$0xff] }
  0x69   : > { %4904 = vmatprep.mubr.msk.f32.mxu1 %vm373_vm1, %v6076_v36  ;;  %5125 = vmatprep.mubr.msk.f32.mxu0 %vm373_vm1, %v6078_v38  ;;  %6919 = vst [vmem:[#allocation26_spill] sm:$0xff] %v6148_v34  ;;  %v6212_v36 = vld [vmem:[#allocation2 + $0xd8] sm:$0xff] }
  0x6a   : > { %4950 = vmatpush3.msk.msra.mxu1 %vm615_vm0, %v5719_v10  ;;  %v6112_v10 = vld [vmem:[#allocation2 + $0x38] sm:$0xff] }
  0x6b   : > { %4999 = vmatprep.subr.msk.mxu1 %vm615_vm0, %v6086_v39  ;;  %6914 = vst [vmem:[#allocation21_spill] sm:$0xff] %v6112_v10 }
  0x6c   : > { %4905 = vmatmul.mubr.msk.f32.gmra.mrb[2].mxu1 %vm373_vm1, %v6092_v40  ;;  %5126 = vmatmul.mubr.msk.f32.gmra.mrb[16].mxu0 %vm373_vm1, %v6094_v4  ;;  %v6208_v40 = vld [vmem:[#allocation2 + $0xc8] sm:$0xff] }
  0x6d   : > { %4907 = vmatprep.mubr.msk.f32.mxu1 %vm373_vm1, %v6098_v42  ;;  %5128 = vmatprep.mubr.msk.f32.mxu0 %vm373_vm1, %v6100_v43 }
  0x70   : > { %4908 = vmatmul.mubr.msk.f32.gmra.mrb[4].mxu1 %vm373_vm1, %v6112_v10  ;;  %5129 = vmatmul.mubr.msk.f32.gmra.mrb[18].mxu0 %vm373_vm1, %v6114_v44 }
  0x71   : > { %4910 = vmatprep.mubr.msk.f32.mxu1 %vm373_vm1, %v6116_v45  ;;  %5131 = vmatprep.mubr.msk.f32.mxu0 %vm373_vm1, %v6118_v46 }
  0x74   : > { %4911 = vmatmul.mubr.msk.f32.gmra.mrb[6].mxu1 %vm373_vm1, %v6128_v47  ;;  %5132 = vmatmul.mubr.msk.f32.gmra.mrb[20].mxu0 %vm373_vm1, %v6130_v48 }
  0x75   : > { %4913 = vmatprep.mubr.msk.f32.mxu1 %vm373_vm1, %v6132_v49  ;;  %5134 = vmatprep.mubr.msk.f32.mxu0 %vm373_vm1, %v6134_v5 }
  0x78   : > { %4914 = vmatmul.mubr.msk.f32.gmra.mrb[8].mxu1 %vm373_vm1, %v6144_v51  ;;  %5135 = vmatmul.mubr.msk.f32.gmra.mrb[22].mxu0 %vm373_vm1, %v6146_v32 }
  0x79   : > { %4916 = vmatprep.mubr.msk.f32.mxu1 %vm373_vm1, %v6148_v34  ;;  %5137 = vmatprep.mubr.msk.f32.mxu0 %vm373_vm1, %v6150_v30 }
  0x7c   : > { %4917 = vmatmul.mubr.msk.f32.gmra.mrb[10].mxu1 %vm373_vm1, %v6160_v28  ;;  %5138 = vmatmul.mubr.msk.f32.gmra.mrb[24].mxu0 %vm373_vm1, %v6162_v26 }
  0x7d   : > { %4919 = vmatprep.mubr.msk.f32.mxu1 %vm373_vm1, %v6164_v24  ;;  %5140 = vmatprep.mubr.msk.f32.mxu0 %vm373_vm1, %v6166_v22 }
  0x80   : > { %4920 = vmatmul.mubr.msk.f32.gmra.mrb[12].mxu1 %vm373_vm1, %v6176_v19  ;;  %5141 = vmatmul.mubr.msk.f32.gmra.mrb[26].mxu0 %vm373_vm1, %v6178_v17 }
  0x81   : > { %4922 = vmatprep.mubr.msk.f32.mxu1 %vm373_vm1, %v6180_v15  ;;  %5143 = vmatprep.mubr.msk.f32.mxu0 %vm373_vm1, %v6182_v13 }
  0x84   : > { %4923 = vmatmul.mubr.msk.f32.gmra.mrb[14].mxu1 %vm373_vm1, %v6192_v11  ;;  %5144 = vmatmul.mubr.msk.f32.gmra.mrb[28].mxu0 %vm373_vm1, %v6194_v8  ;;  %v6229_v8 = vld [vmem:[%s6846_s3 + $0x20] sm:$0xf] }
  0x85   : > { %4925 = vmatprep.mubr.msk.f32.mxu1 %vm373_vm1, %v6196_v1  ;;  %5146 = vmatprep.mubr.msk.f32.mxu0 %vm373_vm1, %v6198_v63  ;;  %v6224_v63 = vld [vmem:[#allocation2 + $0xf0] sm:$0xff] }
  0x88   : > { %4926 = vmatmul.mubr.msk.f32.gmra.mrb[16].mxu1 %vm373_vm1, %v6208_v40  ;;  %5147 = vmatmul.mubr.msk.f32.gmra.mrb[30].mxu0 %vm373_vm1, %v6210_v61  ;;  %v6239_v61 = vld [vmem:[#allocation2 + $0xf8] sm:$0xff] }
  0x89   : > { %4928 = vmatprep.mubr.msk.f32.mxu1 %vm373_vm1, %v6212_v36  ;;  %5151 = vmatprep.mubr.msk.f32.mxu0 %vm373_vm1, %v6098_v42  ;;  %v6243_v42 = vld [vmem:[#allocation2 + $0x108] sm:$0xff] }
  0x8c   : > { %4929 = vmatmul.mubr.msk.f32.gmra.mrb[18].mxu1 %vm373_vm1, %v6222_v60  ;;  %5152 = vmatmul.mubr.msk.f32.vlgmr.msra.gmra.mrb[0].mxu0 %vm373_vm1, %v6112_v10  ;;  %v6269_v10 = vld [vmem:[#allocation2 + $0x138] sm:$0xff] }
  0x8d   : > { %5200 = vmatpush3.msk.msra.mxu0 %vm615_vm0, %v5967_v7  ;;  %4931 = vmatprep.mubr.msk.f32.mxu1 %vm373_vm1, %v6224_v63  ;;  %v6255_v7 = vld [vmem:[#allocation2 + $0x110] sm:$0xff] }
  0x8e   : > { %5154 = vmatprep.mubr.msk.f32.mxu0 %vm373_vm1, %v6116_v45  ;;  %5249 = vmatprep.subr.msk.mxu0 %vm615_vm0, %v6229_v8  ;;  %v6257_v45 = vld [vmem:[#allocation2 + $0x120] sm:$0xff] }
  0x90   : > { %4932 = vmatmul.mubr.msk.f32.gmra.mrb[20].mxu1 %vm373_vm1, %v6239_v61  ;;  %5155 = vmatmul.mubr.msk.f32.gmra.mrb[2].mxu0 %vm373_vm1, %v6128_v47  ;;  %v6267_v47 = vld [vmem:[#allocation2 + $0x128] sm:$0xff] }
  0x91   : > { %4934 = vmatprep.mubr.msk.f32.mxu1 %vm373_vm1, %v6243_v42  ;;  %5157 = vmatprep.mubr.msk.f32.mxu0 %vm373_vm1, %v6132_v49  ;;  %v6281_v49 = vld [vmem:[#allocation2 + $0x150] sm:$0xff] }
  0x94   : > { %4935 = vmatmul.mubr.msk.f32.gmra.mrb[22].mxu1 %vm373_vm1, %v6255_v7  ;;  %5158 = vmatmul.mubr.msk.f32.gmra.mrb[4].mxu0 %vm373_vm1, %v6144_v51  ;;  %v6279_v51 = vld [vmem:[#allocation2 + $0x140] sm:$0xff] }
  0x95   : > { %4937 = vmatprep.mubr.msk.f32.mxu1 %vm373_vm1, %v6257_v45  ;;  %5160 = vmatprep.mubr.msk.f32.mxu0 %vm373_vm1, %v6148_v34  ;;  %v6293_v34 = vld [vmem:[#allocation2 + $0x168] sm:$0xff] }
  0x98   : > { %4938 = vmatmul.mubr.msk.f32.gmra.mrb[24].mxu1 %vm373_vm1, %v6267_v47  ;;  %5161 = vmatmul.mubr.msk.f32.gmra.mrb[6].mxu0 %vm373_vm1, %v6160_v28  ;;  %v6291_v28 = vld [vmem:[#allocation2 + $0x158] sm:$0xff] }
  0x99   : > { %4940 = vmatprep.mubr.msk.f32.mxu1 %vm373_vm1, %v6269_v10  ;;  %5163 = vmatprep.mubr.msk.f32.mxu0 %vm373_vm1, %v6164_v24  ;;  %v1168_v24 = vld [vmem:[#allocation2 + $0x2] sm:$0xff] }
  0x9c   : > { %4941 = vmatmul.mubr.msk.f32.gmra.mrb[26].mxu1 %vm373_vm1, %v6279_v51  ;;  %5164 = vmatmul.mubr.msk.f32.gmra.mrb[8].mxu0 %vm373_vm1, %v6176_v19  ;;  %v6303_v19 = vld [vmem:[#allocation2 + $0x170] sm:$0xff] }
  0x9d   : > { %4943 = vmatprep.mubr.msk.f32.mxu1 %vm373_vm1, %v6281_v49  ;;  %5166 = vmatprep.mubr.msk.f32.mxu0 %vm373_vm1, %v6180_v15 }
  0xa0   : > { %4944 = vmatmul.mubr.msk.f32.gmra.mrb[28].mxu1 %vm373_vm1, %v6291_v28  ;;  %5167 = vmatmul.mubr.msk.f32.gmra.mrb[10].mxu0 %vm373_vm1, %v6192_v11  ;;  %v1169_v11 = vld [vmem:[#allocation2 + $0xa] sm:$0xff] }
  0xa1   : > { %4946 = vmatprep.mubr.msk.f32.mxu1 %vm373_vm1, %v6293_v34  ;;  %5169 = vmatprep.mubr.msk.f32.mxu0 %vm373_vm1, %v6196_v1 }
  0xa4   : > { %4947 = vmatmul.mubr.msk.f32.gmra.mrb[30].mxu1 %vm373_vm1, %v6303_v19  ;;  %5170 = vmatmul.mubr.msk.f32.gmra.mrb[12].mxu0 %vm373_vm1, %v6208_v40 }
  0xa5   : > { %4951 = vmatprep.mubr.msk.f32.mxu1 %vm373_vm1, %v1168_v24  ;;  %5172 = vmatprep.mubr.msk.f32.mxu0 %vm373_vm1, %v6212_v36  ;;  %v2760_v24 = vld [vmem:[#allocation2 + $0x1a0] sm:$0xff] }
  0xa8   : > { %4952 = vmatmul.mubr.msk.f32.vlgmr.msra.gmra.mrb[0].mxu1 %vm373_vm1, %v1169_v11  ;;  %5173 = vmatmul.mubr.msk.f32.gmra.mrb[14].mxu0 %vm373_vm1, %v6222_v60  ;;  %v2759_v11 = vld [vmem:[#allocation2 + $0x198] sm:$0xff] }
  0xa9   : > { %4954 = vmatprep.mubr.msk.f32.mxu1 %vm373_vm1, %v5946_v62  ;;  %5175 = vmatprep.mubr.msk.f32.mxu0 %vm373_vm1, %v6224_v63  ;;  %v6363_v62 = vld [vmem:[#allocation2 + $0x180] sm:$0xff] }
  0xaa   : > { %5000 = vmatpush3.msk.msra.mxu1 %vm615_vm0, %v6086_v39  ;;  %v6941_v39 = vld [vmem:[#allocation24_spill] sm:$0xff] }
  0xab   : > { %5299 = vmatprep.subr.msk.mxu1 %vm615_vm0, %v5629_v2 }
  0xac   : > { %4955 = vmatmul.mubr.msk.f32.gmra.mrb[2].mxu1 %vm373_vm1, %v5958_v0  ;;  %5176 = vmatmul.mubr.msk.f32.gmra.mrb[16].mxu0 %vm373_vm1, %v6239_v61  ;;  %v6373_v0 = vld [vmem:[#allocation2 + $0x188] sm:$0xff] }
  0xad   : > { %4957 = vmatprep.mubr.msk.f32.mxu1 %vm373_vm1, %v5962_v3  ;;  %5178 = vmatprep.mubr.msk.f32.mxu0 %vm373_vm1, %v6243_v42 }
  0xb0   : > { %4958 = vmatmul.mubr.msk.f32.gmra.mrb[4].mxu1 %vm373_vm1, %v5979_v9  ;;  %5179 = vmatmul.mubr.msk.f32.gmra.mrb[18].mxu0 %vm373_vm1, %v6255_v7 }
  0xb1   : > { %4960 = vmatprep.mubr.msk.f32.mxu1 %vm373_vm1, %v5985_v12  ;;  %5181 = vmatprep.mubr.msk.f32.mxu0 %vm373_vm1, %v6257_v45 }
  0xb4   : > { %4961 = vmatmul.mubr.msk.f32.gmra.mrb[6].mxu1 %vm373_vm1, %v5999_v14  ;;  %5182 = vmatmul.mubr.msk.f32.gmra.mrb[20].mxu0 %vm373_vm1, %v6267_v47 }
  0xb5   : > { %4963 = vmatprep.mubr.msk.f32.mxu1 %vm373_vm1, %v6003_v16  ;;  %5184 = vmatprep.mubr.msk.f32.mxu0 %vm373_vm1, %v6269_v10 }
  0xb8   : > { %4964 = vmatmul.mubr.msk.f32.gmra.mrb[8].mxu1 %vm373_vm1, %v6015_v18  ;;  %5185 = vmatmul.mubr.msk.f32.gmra.mrb[22].mxu0 %vm373_vm1, %v6279_v51 }
  0xb9   : > { %4966 = vmatprep.mubr.msk.f32.mxu1 %vm373_vm1, %v6019_v20  ;;  %5187 = vmatprep.mubr.msk.f32.mxu0 %vm373_vm1, %v6281_v49 }
  0xbc   : > { %4967 = vmatmul.mubr.msk.f32.gmra.mrb[10].mxu1 %vm373_vm1, %v6031_v23  ;;  %5188 = vmatmul.mubr.msk.f32.gmra.mrb[24].mxu0 %vm373_vm1, %v6291_v28 }
  0xbd   : > { %4969 = vmatprep.mubr.msk.f32.mxu1 %vm373_vm1, %v6035_v25  ;;  %5190 = vmatprep.mubr.msk.f32.mxu0 %vm373_vm1, %v6293_v34 }
  0xc0   : > { %4970 = vmatmul.mubr.msk.f32.gmra.mrb[12].mxu1 %vm373_vm1, %v6047_v27  ;;  %5191 = vmatmul.mubr.msk.f32.gmra.mrb[26].mxu0 %vm373_vm1, %v6303_v19 }
  0xc1   : > { %4972 = vmatprep.mubr.msk.f32.mxu1 %vm373_vm1, %v6051_v29  ;;  %5193 = vmatprep.mubr.msk.f32.mxu0 %vm373_vm1, %v6363_v62 }
  0xc4   : > { %4973 = vmatmul.mubr.msk.f32.gmra.mrb[14].mxu1 %vm373_vm1, %v6063_v31  ;;  %5194 = vmatmul.mubr.msk.f32.gmra.mrb[28].mxu0 %vm373_vm1, %v6373_v0 }
  0xc5   : > { %4975 = vmatprep.mubr.msk.f32.mxu1 %vm373_vm1, %v6065_v33  ;;  %5196 = vmatprep.mubr.msk.f32.mxu0 %vm373_vm1, %v2759_v11  ;;  %v6943_v11 = vld [vmem:[#allocation25_spill] sm:$0xff] }
  0xc8   : > { %4976 = vmatmul.mubr.msk.f32.gmra.mrb[16].mxu1 %vm373_vm1, %v6074_v35  ;;  %5197 = vmatmul.mubr.msk.f32.gmra.mrb[30].mxu0 %vm373_vm1, %v2760_v24  ;;  %v6944_v24 = vld [vmem:[#allocation11_spill] sm:$0xff] }
  0xc9   : > { %4978 = vmatprep.mubr.msk.f32.mxu1 %vm373_vm1, %v6078_v38  ;;  %5201 = vmatprep.mubr.msk.f32.mxu0 %vm373_vm1, %v5808_v21  ;;  %v6927_v21 = vld [vmem:[#allocation31_spill] sm:$0xff] }
  0xcc   : > { %4979 = vmatmul.mubr.msk.f32.gmra.mrb[18].mxu1 %vm373_vm1, %v6094_v4  ;;  %5202 = vmatmul.mubr.msk.f32.vlgmr.msra.gmra.mrb[0].mxu0 %vm373_vm1, %v5840_v37  ;;  %v6928_v37 = vld [vmem:[#allocation3_spill] sm:$0xff] }
  0xcd   : > { %5250 = vmatpush3.msk.msra.mxu0 %vm615_vm0, %v6229_v8  ;;  %4981 = vmatprep.mubr.msk.f32.mxu1 %vm373_vm1, %v6100_v43  ;;  %v6940_v8 = vld [vmem:[#allocation9_spill] sm:$0xff] }
  0xce   : > { %5204 = vmatprep.mubr.msk.f32.mxu0 %vm373_vm1, %v5848_v41  ;;  %v6929_v41 = vld [vmem:[#allocation18_spill] sm:$0xff] }
  0xd0   : > { %4982 = vmatmul.mubr.msk.f32.gmra.mrb[20].mxu1 %vm373_vm1, %v6114_v44  ;;  %5205 = vmatmul.mubr.msk.f32.gmra.mrb[2].mxu0 %vm373_vm1, %v5874_v50  ;;  %v6930_v50 = vld [vmem:[#allocation4_spill] sm:$0xff] }
  0xd1   : > { %4984 = vmatprep.mubr.msk.f32.mxu1 %vm373_vm1, %v6118_v46  ;;  %5207 = vmatprep.mubr.msk.f32.mxu0 %vm373_vm1, %v5879_v52  ;;  %v6931_v52 = vld [vmem:[#allocation19_spill] sm:$0xff] }
  0xd4   : > { %4985 = vmatmul.mubr.msk.f32.gmra.mrb[22].mxu1 %vm373_vm1, %v6130_v48  ;;  %5208 = vmatmul.mubr.msk.f32.gmra.mrb[4].mxu0 %vm373_vm1, %v5894_v6  ;;  %v6932_v6 = vld [vmem:[#allocation5_spill] sm:$0xff] }
  0xd5   : > { %4987 = vmatprep.mubr.msk.f32.mxu1 %vm373_vm1, %v6134_v5  ;;  %5210 = vmatprep.mubr.msk.f32.mxu0 %vm373_vm1, %v5896_v53  ;;  %v6933_v53 = vld [vmem:[#allocation20_spill] sm:$0xff] }
  0xd8   : > { %4988 = vmatmul.mubr.msk.f32.gmra.mrb[24].mxu1 %vm373_vm1, %v6146_v32  ;;  %5211 = vmatmul.mubr.msk.f32.gmra.mrb[6].mxu0 %vm373_vm1, %v5906_v54  ;;  %v6934_v54 = vld [vmem:[#allocation6_spill] sm:$0xff] }
  0xd9   : > { %4990 = vmatprep.mubr.msk.f32.mxu1 %vm373_vm1, %v6150_v30  ;;  %5213 = vmatprep.mubr.msk.f32.mxu0 %vm373_vm1, %v5908_v55  ;;  %v6935_v55 = vld [vmem:[#allocation21_spill] sm:$0xff] }
  0xdc   : > { %4991 = vmatmul.mubr.msk.f32.gmra.mrb[26].mxu1 %vm373_vm1, %v6162_v26  ;;  %5214 = vmatmul.mubr.msk.f32.gmra.mrb[8].mxu0 %vm373_vm1, %v5918_v56  ;;  %v6936_v56 = vld [vmem:[#allocation7_spill] sm:$0xff] }
  0xdd   : > { %4993 = vmatprep.mubr.msk.f32.mxu1 %vm373_vm1, %v6166_v22  ;;  %5216 = vmatprep.mubr.msk.f32.mxu0 %vm373_vm1, %v5920_v57  ;;  %v6937_v57 = vld [vmem:[#allocation22_spill] sm:$0xff] }
  0xe0   : > { %4994 = vmatmul.mubr.msk.f32.gmra.mrb[28].mxu1 %vm373_vm1, %v6178_v17  ;;  %5217 = vmatmul.mubr.msk.f32.gmra.mrb[10].mxu0 %vm373_vm1, %v5930_v58  ;;  %v6938_v58 = vld [vmem:[#allocation8_spill] sm:$0xff] }
  0xe1   : > { %4996 = vmatprep.mubr.msk.f32.mxu1 %vm373_vm1, %v6182_v13  ;;  %5219 = vmatprep.mubr.msk.f32.mxu0 %vm373_vm1, %v5932_v59  ;;  %v6939_v59 = vld [vmem:[#allocation23_spill] sm:$0xff] }
  0xe4   : > { %4997 = vmatmul.mubr.msk.f32.gmra.mrb[30].mxu1 %vm373_vm1, %v6927_v21  ;;  %5220 = vmatmul.mubr.msk.f32.gmra.mrb[12].mxu0 %vm373_vm1, %v6928_v37  ;;  %v6945_v37 = vld [vmem:[#allocation26_spill] sm:$0xff] }
  0xe5   : > { %5001 = vmatprep.mubr.msk.f32.mxu1 %vm373_vm1, %v6929_v41  ;;  %5222 = vmatprep.mubr.msk.f32.mxu0 %vm373_vm1, %v6930_v50  ;;  %v6946_v41 = vld [vmem:[#allocation12_spill] sm:$0xff]  ;;  %v6947_v50 = vld [vmem:[#allocation27_spill] sm:$0xff] }
  0xe8   : > { %5002 = vmatmul.mubr.msk.f32.vlgmr.msra.gmra.mrb[0].mxu1 %vm373_vm1, %v6931_v52  ;;  %5223 = vmatmul.mubr.msk.f32.gmra.mrb[14].mxu0 %vm373_vm1, %v6932_v6  ;;  %v6948_v52 = vld [vmem:[#allocation13_spill] sm:$0xff] }
  0xe9   : > { %5004 = vmatprep.mubr.msk.f32.mxu1 %vm373_vm1, %v6933_v53  ;;  %5225 = vmatprep.mubr.msk.f32.mxu0 %vm373_vm1, %v6934_v54  ;;  %v6949_v53 = vld [vmem:[#allocation28_spill] sm:$0xff] }
  0xea   : > { %5300 = vmatpush3.msk.msra.mxu1 %vm615_vm0, %v5629_v2  ;;  %v6942_v2 = vld [vmem:[#allocation10_spill] sm:$0xff] }
  0xec   : > { %5005 = vmatmul.mubr.msk.f32.gmra.mrb[2].mxu1 %vm373_vm1, %v6935_v55  ;;  %5226 = vmatmul.mubr.msk.f32.gmra.mrb[16].mxu0 %vm373_vm1, %v6936_v56  ;;  %v6950_v55 = vld [vmem:[#allocation14_spill] sm:$0xff] }
  0xed   : > { %5007 = vmatprep.mubr.msk.f32.mxu1 %vm373_vm1, %v6937_v57  ;;  %5228 = vmatprep.mubr.msk.f32.mxu0 %vm373_vm1, %v6938_v58  ;;  %v6951_v57 = vld [vmem:[#allocation29_spill] sm:$0xff] }
  0xf0   : > { %5008 = vmatmul.mubr.msk.f32.gmra.mrb[4].mxu1 %vm373_vm1, %v6939_v59  ;;  %5229 = vmatmul.mubr.msk.f32.gmra.mrb[18].mxu0 %vm373_vm1, %v6940_v8  ;;  %v6952_v59 = vld [vmem:[#allocation15_spill] sm:$0xff] }
  0xf1   : > { %5010 = vmatprep.mubr.msk.f32.mxu1 %vm373_vm1, %v6941_v39  ;;  %5231 = vmatprep.mubr.msk.f32.mxu0 %vm373_vm1, %v6942_v2  ;;  %v6953_v39 = vld [vmem:[#allocation16_spill] sm:$0xff] }
  0xf4   : > { %5011 = vmatmul.mubr.msk.f32.gmra.mrb[6].mxu1 %vm373_vm1, %v6943_v11  ;;  %5232 = vmatmul.mubr.msk.f32.gmra.mrb[20].mxu0 %vm373_vm1, %v6944_v24  ;;  %v6497_v11 = vld [vmem:[#allocation2 + $0x181] sm:$0xff] }
  0xf5   : > { %5013 = vmatprep.mubr.msk.f32.mxu1 %vm373_vm1, %v6945_v37  ;;  %5234 = vmatprep.mubr.msk.f32.mxu0 %vm373_vm1, %v6946_v41  ;;  %v6954_v37 = vld [vmem:[#allocation30_spill] sm:$0xff] }
  0xf8   : > { %5014 = vmatmul.mubr.msk.f32.gmra.mrb[8].mxu1 %vm373_vm1, %v6947_v50  ;;  %5235 = vmatmul.mubr.msk.f32.gmra.mrb[22].mxu0 %vm373_vm1, %v6948_v52  ;;  %v6955_v50 = vld [vmem:[#allocation17_spill] sm:$0xff] }
  0xf9   : > { %5016 = vmatprep.mubr.msk.f32.mxu1 %vm373_vm1, %v6949_v53  ;;  %5237 = vmatprep.mubr.msk.f32.mxu0 %vm373_vm1, %v6950_v55  ;;  %v6507_v53 = vld [vmem:[#allocation2 + $0x189] sm:$0xff] }
  0xfc   : > { %5017 = vmatmul.mubr.msk.f32.gmra.mrb[10].mxu1 %vm373_vm1, %v6951_v57  ;;  %5238 = vmatmul.mubr.msk.f32.gmra.mrb[24].mxu0 %vm373_vm1, %v6952_v59  ;;  %v3150_v57 = vld [vmem:[#allocation2 + $0x1a1] sm:$0xff] }
  0xfd   : > { %5019 = vmatprep.mubr.msk.f32.mxu1 %vm373_vm1, %v6180_v15  ;;  %5240 = vmatprep.mubr.msk.f32.mxu0 %vm373_vm1, %v6953_v39  ;;  %v3149_v15 = vld [vmem:[#allocation2 + $0x199] sm:$0xff] }
 0x100   : > { %5020 = vmatmul.mubr.msk.f32.gmra.mrb[12].mxu1 %vm373_vm1, %v6954_v37  ;;  %5241 = vmatmul.mubr.msk.f32.gmra.mrb[26].mxu0 %vm373_vm1, %v6955_v50 }
 0x101   : > { %5022 = vmatprep.mubr.msk.f32.mxu1 %vm373_vm1, %v6196_v1  ;;  %5243 = vmatprep.mubr.msk.f32.mxu0 %vm373_vm1, %v6497_v11  ;;  %v6957_v1 = vld [vmem:[#allocation33_spill] sm:$0xff] }
 0x104   : > { %5023 = vmatmul.mubr.msk.f32.gmra.mrb[14].mxu1 %vm373_vm1, %v6208_v40  ;;  %5244 = vmatmul.mubr.msk.f32.gmra.mrb[28].mxu0 %vm373_vm1, %v6507_v53 }
 0x105   : > { %5025 = vmatprep.mubr.msk.f32.mxu1 %vm373_vm1, %v6212_v36  ;;  %5246 = vmatprep.mubr.msk.f32.mxu0 %vm373_vm1, %v3149_v15 }
 0x108   : > { %5026 = vmatmul.mubr.msk.f32.gmra.mrb[16].mxu1 %vm373_vm1, %v6222_v60  ;;  %5247 = vmatmul.mubr.msk.f32.gmra.mrb[30].mxu0 %vm373_vm1, %v3150_v57  ;;  %v1964_v60 = vld [vmem:[#allocation2 + $0xd9] sm:$0xff] }
 0x109   : > { %5028 = vmatprep.mubr.msk.f32.mxu1 %vm373_vm1, %v6224_v63  ;;  %5251 = vmatprep.mubr.msk.f32.mxu0 %vm373_vm1, %v5962_v3  ;;  %v3539_v63 = vld [vmem:[#allocation2 + $0x19a] sm:$0xff]  ;;  %v3540_v3 = vld [vmem:[#allocation2 + $0x1a2] sm:$0xff] }
 0x10c   : > { %5029 = vmatmul.mubr.msk.f32.gmra.mrb[18].mxu1 %vm373_vm1, %v6239_v61  ;;  %5252 = vmatmul.mubr.msk.f32.vlgmr.msra.gmra.mrb[0].mxu0 %vm373_vm1, %v5979_v9  ;;  %v6956_v61 = vld [vmem:[#allocation32_spill] sm:$0xff] }
 0x10d   : > { %5031 = vmatprep.mubr.msk.f32.mxu1 %vm373_vm1, %v6243_v42  ;;  %5254 = vmatprep.mubr.msk.f32.mxu0 %vm373_vm1, %v5985_v12 }
 0x110   : > { %5032 = vmatmul.mubr.msk.f32.gmra.mrb[20].mxu1 %vm373_vm1, %v6255_v7  ;;  %5255 = vmatmul.mubr.msk.f32.gmra.mrb[2].mxu0 %vm373_vm1, %v5999_v14 }
 0x111   : > { %5034 = vmatprep.mubr.msk.f32.mxu1 %vm373_vm1, %v6257_v45  ;;  %5257 = vmatprep.mubr.msk.f32.mxu0 %vm373_vm1, %v6003_v16 }
 0x114   : > { %5035 = vmatmul.mubr.msk.f32.gmra.mrb[22].mxu1 %vm373_vm1, %v6267_v47  ;;  %5258 = vmatmul.mubr.msk.f32.gmra.mrb[4].mxu0 %vm373_vm1, %v6015_v18 }
 0x115   : > { %5037 = vmatprep.mubr.msk.f32.mxu1 %vm373_vm1, %v6269_v10  ;;  %5260 = vmatprep.mubr.msk.f32.mxu0 %vm373_vm1, %v6019_v20 }
 0x118   : > { %5038 = vmatmul.mubr.msk.f32.gmra.mrb[24].mxu1 %vm373_vm1, %v6279_v51  ;;  %5261 = vmatmul.mubr.msk.f32.gmra.mrb[6].mxu0 %vm373_vm1, %v6031_v23 }
 0x119   : > { %5040 = vmatprep.mubr.msk.f32.mxu1 %vm373_vm1, %v6281_v49  ;;  %5263 = vmatprep.mubr.msk.f32.mxu0 %vm373_vm1, %v6035_v25 }
 0x11c   : > { %5041 = vmatmul.mubr.msk.f32.gmra.mrb[26].mxu1 %vm373_vm1, %v6291_v28  ;;  %5264 = vmatmul.mubr.msk.f32.gmra.mrb[8].mxu0 %vm373_vm1, %v6047_v27 }
 0x11d   : > { %5043 = vmatprep.mubr.msk.f32.mxu1 %vm373_vm1, %v6293_v34  ;;  %5266 = vmatprep.mubr.msk.f32.mxu0 %vm373_vm1, %v6051_v29 }
 0x120   : > { %5044 = vmatmul.mubr.msk.f32.gmra.mrb[28].mxu1 %vm373_vm1, %v6303_v19  ;;  %5267 = vmatmul.mubr.msk.f32.gmra.mrb[10].mxu0 %vm373_vm1, %v6063_v31  ;;  %v6659_v31 = vld [vmem:[%s6847_s4] ss:$0 sm:$0xff] }
 0x121   : > { %5046 = vmatprep.mubr.msk.f32.mxu1 %vm373_vm1, %v6363_v62  ;;  %5269 = vmatprep.mubr.msk.f32.mxu0 %vm373_vm1, %v6065_v33 }
 0x124   : > { %5047 = vmatmul.mubr.msk.f32.gmra.mrb[30].mxu1 %vm373_vm1, %v6373_v0  ;;  %5270 = vmatmul.mubr.msk.f32.gmra.mrb[12].mxu0 %vm373_vm1, %v6074_v35 }
 0x125   : > { %5075 = vmatprep.mubr.msk.f32.mxu1 %vm373_vm1, %v1964_v60  ;;  %5272 = vmatprep.mubr.msk.f32.mxu0 %vm373_vm1, %v6078_v38 }
 0x128   : > { %5076 = vmatmul.mubr.msk.f32.vlgmr.msra.gmra.mrb[16].mxu1 %vm373_vm1, %v6932_v6  ;;  %5273 = vmatmul.mubr.msk.f32.gmra.mrb[14].mxu0 %vm373_vm1, %v6094_v4 }
 0x129   : > { %5078 = vmatprep.mubr.msk.f32.mxu1 %vm373_vm1, %v6934_v54  ;;  %5275 = vmatprep.mubr.msk.f32.mxu0 %vm373_vm1, %v6100_v43 }
 0x12c   : > { %5079 = vmatmul.mubr.msk.f32.gmra.mrb[18].mxu1 %vm373_vm1, %v6936_v56  ;;  %5276 = vmatmul.mubr.msk.f32.gmra.mrb[16].mxu0 %vm373_vm1, %v6114_v44 }
 0x12d   : > { %5081 = vmatprep.mubr.msk.f32.mxu1 %vm373_vm1, %v6938_v58  ;;  %5278 = vmatprep.mubr.msk.f32.mxu0 %vm373_vm1, %v6118_v46 }
 0x130   : > { %5082 = vmatmul.mubr.msk.f32.gmra.mrb[20].mxu1 %vm373_vm1, %v6940_v8  ;;  %5279 = vmatmul.mubr.msk.f32.gmra.mrb[18].mxu0 %vm373_vm1, %v6130_v48 }
 0x131   : > { %5084 = vmatprep.mubr.msk.f32.mxu1 %vm373_vm1, %v6942_v2  ;;  %5281 = vmatprep.mubr.msk.f32.mxu0 %vm373_vm1, %v6134_v5 }
 0x134   : > { %5085 = vmatmul.mubr.msk.f32.gmra.mrb[22].mxu1 %vm373_vm1, %v6944_v24  ;;  %5282 = vmatmul.mubr.msk.f32.gmra.mrb[20].mxu0 %vm373_vm1, %v6146_v32 }
 0x135   : > { %5087 = vmatprep.mubr.msk.f32.mxu1 %vm373_vm1, %v6946_v41  ;;  %5284 = vmatprep.mubr.msk.f32.mxu0 %vm373_vm1, %v6150_v30 }
 0x138   : > { %5088 = vmatmul.mubr.msk.f32.gmra.mrb[24].mxu1 %vm373_vm1, %v6948_v52  ;;  %5285 = vmatmul.mubr.msk.f32.gmra.mrb[22].mxu0 %vm373_vm1, %v6162_v26 }
 0x139   : > { %5090 = vmatprep.mubr.msk.f32.mxu1 %vm373_vm1, %v6950_v55  ;;  %5287 = vmatprep.mubr.msk.f32.mxu0 %vm373_vm1, %v6166_v22 }
 0x13c   : > { %5091 = vmatmul.mubr.msk.f32.gmra.mrb[26].mxu1 %vm373_vm1, %v6952_v59  ;;  %5288 = vmatmul.mubr.msk.f32.gmra.mrb[24].mxu0 %vm373_vm1, %v6178_v17 }
 0x13d   : > { %5093 = vmatprep.mubr.msk.f32.mxu1 %vm373_vm1, %v6953_v39  ;;  %5290 = vmatprep.mubr.msk.f32.mxu0 %vm373_vm1, %v6182_v13 }
 0x140   : > { %5094 = vmatmul.mubr.msk.f32.gmra.mrb[28].mxu1 %vm373_vm1, %v6955_v50  ;;  %5291 = vmatmul.mubr.msk.f32.gmra.mrb[26].mxu0 %vm373_vm1, %v6927_v21 }
 0x141   : > { %5096 = vmatprep.mubr.msk.f32.mxu1 %vm373_vm1, %v6497_v11  ;;  %5293 = vmatprep.mubr.msk.f32.mxu0 %vm373_vm1, %v6956_v61 }
 0x144   : > { %5097 = vmatmul.mubr.msk.f32.gmra.mrb[30].mxu1 %vm373_vm1, %v6507_v53  ;;  %5294 = vmatmul.mubr.msk.f32.gmra.mrb[28].mxu0 %vm373_vm1, %v6957_v1 }
 0x145   : > { %5296 = vmatprep.mubr.msk.f32.mxu0 %vm373_vm1, %v3539_v63 }
 0x148   : > { %5297 = vmatmul.mubr.msk.f32.gmra.mrb[30].mxu0 %vm373_vm1, %v3540_v3 }
 0x1bb   : > { %v5003_v9 = vpop.f32.mrb[0].mxu1 }
 0x1bc   : > { %v1757_v12 = vpop.f32.mrb[1].mxu1 }
 0x1bf   : > { %v5006_v13 = vpop.f32.mrb[2].mxu1 }
 0x1c0   : > { %v1767_v14 = vpop.f32.mrb[3].mxu1 }
 0x1c3   : > { %v5009_v16 = vpop.f32.mrb[4].mxu1 }
 0x1c4   : > { %v1777_v17 = vpop.f32.mrb[5].mxu1 }
 0x1c7   : > { %v5012_v18 = vpop.f32.mrb[6].mxu1 }
 0x1c8   : > { %v1787_v19 = vpop.f32.mrb[7].mxu1 }
 0x1cb   : > { %v6640_v20 = vpop.f32.mrb[8].mxu1 }
 0x1cc   : > { %v6642_v22 = vpop.f32.mrb[9].mxu1 }
 0x1cf   : > { %v6644_v23 = vpop.f32.mrb[10].mxu1 }
 0x1d0   : > { %v6646_v25 = vpop.f32.mrb[11].mxu1 }
 0x1d3   : > { %v6648_v26 = vpop.f32.mrb[12].mxu1 }
 0x1d4   : > { %v6650_v27 = vpop.f32.mrb[13].mxu1 }
 0x1d7   : > { %v6652_v28 = vpop.f32.mrb[14].mxu1 }
 0x1d8   : > { %v6654_v29 = vpop.f32.mrb[15].mxu1 }
 0x1df   : > { %v5253_v30 = vpop.f32.mrb[0].mxu0 }
 0x1e0   : > { %v5301_v33 = vadd.f32 %v5253_v30, %v5003_v9  ;;  %v3708_v35 = vpop.f32.mrb[1].mxu0 }
 0x1e1   : > { %v5302_v36 = vadd.f32 %v3708_v35, %v1757_v12 }
 0x1e2   : > { %v3907_v38 = vadd.f32 %v5301_v33, %v6659_v31 }
 0x1e3   : > { %v3906_v40 = vadd.f32 %v5302_v36, %v6659_v31  ;;  %v5256_v4 = vpop.f32.mrb[2].mxu0 }
 0x1e4   : > { %v3940_v42 = vsel %vm3938_vm4, %v3907_v38, 0.0  ;;  %v4011_v43 = vmul.f32 %v3907_v38, %v3907_v38  ;;  %4113 = vst.msk [vmem:[%s6666_s9 + $0x8] sm:$0xff] %vm3938_vm4, %v3907_v38  ;;  %v5303_v10 = vadd.f32 %v5256_v4, %v5006_v13  ;;  %v3718_v44 = vpop.f32.mrb[3].mxu0 }
 0x1e5   : > { %v3939_v45 = vsel %vm3938_vm4, %v3906_v40, 0.0  ;;  %v4010_v46 = vmul.f32 %v3906_v40, %v3906_v40  ;;  %4112 = vst.msk [vmem:[%s6666_s9] sm:$0xff] %vm3938_vm4, %v3906_v40  ;;  %v5304_v47 = vadd.f32 %v3718_v44, %v1767_v14 }
 0x1e6   : > { %v4043_v48 = vsel %vm3938_vm4, %v4011_v43, 0.0  ;;  %v3941_v49 = vadd.f32 %v3940_v42, %v3939_v45  ;;  %v3909_v5 = vadd.f32 %v5303_v10, %v6659_v31 }
 0x1e7   : > { %v4042_v51 = vsel %vm3938_vm4, %v4010_v46, 0.0  ;;  %v3908_v32 = vadd.f32 %v5304_v47, %v6659_v31  ;;  %v5259_v34 = vpop.f32.mrb[4].mxu0 }
 0x1e8   : > { %v4044_v7 = vadd.f32 %v4043_v48, %v4042_v51  ;;  %v4013_v62 = vmul.f32 %v3909_v5, %v3909_v5  ;;  %4115 = vst.msk [vmem:[%s6666_s9 + $0x18] sm:$0xff] %vm3938_vm4, %v3909_v5  ;;  %v5305_v0 = vadd.f32 %v5259_v34, %v5009_v16  ;;  %v3728_v21 = vpop.f32.mrb[5].mxu0  ;;  %v3944_v2 = vsel %vm3938_vm4, %v3909_v5, 0.0 }
 0x1e9   : > { %v3942_v6 = vsel %vm3938_vm4, %v3908_v32, 0.0  ;;  %v4012_v54 = vmul.f32 %v3908_v32, %v3908_v32  ;;  %4114 = vst.msk [vmem:[%s6666_s9 + $0x10] sm:$0xff] %vm3938_vm4, %v3908_v32  ;;  %v5306_v56 = vadd.f32 %v3728_v21, %v1777_v17 }
 0x1ea   : > { %v3943_v58 = vadd.f32 %v3942_v6, %v3941_v49  ;;  %v3911_v8 = vadd.f32 %v5305_v0, %v6659_v31  ;;  %v4047_v55 = vsel %vm3938_vm4, %v4013_v62, 0.0 }
 0x1eb   : > { %v4045_v24 = vsel %vm3938_vm4, %v4012_v54, 0.0  ;;  %v3910_v41 = vadd.f32 %v5306_v56, %v6659_v31  ;;  %v5262_v52 = vpop.f32.mrb[6].mxu0 }
 0x1ec   : > { %v4046_v59 = vadd.f32 %v4045_v24, %v4044_v7  ;;  %v4015_v39 = vmul.f32 %v3911_v8, %v3911_v8  ;;  %4117 = vst.msk [vmem:[%s6666_s9 + $0x28] sm:$0xff] %vm3938_vm4, %v3911_v8  ;;  %v3945_v11 = vadd.f32 %v3944_v2, %v3943_v58  ;;  %v3738_v37 = vpop.f32.mrb[7].mxu0  ;;  %v5307_v15 = vadd.f32 %v5262_v52, %v5012_v18 }
 0x1ed   : > { %v3946_v50 = vsel %vm3938_vm4, %v3910_v41, 0.0  ;;  %v4014_v53 = vmul.f32 %v3910_v41, %v3910_v41  ;;  %4116 = vst.msk [vmem:[%s6666_s9 + $0x20] sm:$0xff] %vm3938_vm4, %v3910_v41  ;;  %v5308_v57 = vadd.f32 %v3738_v37, %v1787_v19  ;;  %v3948_v63 = vsel %vm3938_vm4, %v3911_v8, 0.0 }
 0x1ee   : > { %v3947_v60 = vadd.f32 %v3946_v50, %v3945_v11  ;;  %v4048_v61 = vadd.f32 %v4047_v55, %v4046_v59  ;;  %v3913_v3 = vadd.f32 %v5307_v15, %v6659_v31  ;;  %v4051_v18 = vsel %vm3938_vm4, %v4015_v39, 0.0 }
 0x1ef   : > { %v4049_v1 = vsel %vm3938_vm4, %v4014_v53, 0.0  ;;  %v3912_v9 = vadd.f32 %v5308_v57, %v6659_v31  ;;  %v5265_v12 = vpop.f32.mrb[8].mxu0 }
 0x1f0   : > { %v4050_v13 = vadd.f32 %v4049_v1, %v4048_v61  ;;  %v3949_v14 = vadd.f32 %v3948_v63, %v3947_v60  ;;  %v5309_v16 = vadd.f32 %v5265_v12, %v6640_v20  ;;  %v3748_v17 = vpop.f32.mrb[9].mxu0  ;;  %v4017_v19 = vmul.f32 %v3913_v3, %v3913_v3  ;;  %4119 = vst.msk [vmem:[%s6666_s9 + $0x38] sm:$0xff] %vm3938_vm4, %v3913_v3 }
 0x1f1   : > { %v3950_v30 = vsel %vm3938_vm4, %v3912_v9, 0.0  ;;  %v4016_v33 = vmul.f32 %v3912_v9, %v3912_v9  ;;  %4118 = vst.msk [vmem:[%s6666_s9 + $0x30] sm:$0xff] %vm3938_vm4, %v3912_v9  ;;  %v5310_v40 = vadd.f32 %v3748_v17, %v6642_v22  ;;  %v3952_v42 = vsel %vm3938_vm4, %v3913_v3, 0.0 }
 0x1f2   : > { %v3951_v35 = vadd.f32 %v3950_v30, %v3949_v14  ;;  %v4052_v36 = vadd.f32 %v4051_v18, %v4050_v13  ;;  %v3915_v38 = vadd.f32 %v5309_v16, %v6659_v31  ;;  %v4055_v43 = vsel %vm3938_vm4, %v4017_v19, 0.0 }
 0x1f3   : > { %v4053_v20 = vsel %vm3938_vm4, %v4016_v33, 0.0  ;;  %v5268_v4 = vpop.f32.mrb[10].mxu0  ;;  %v3914_v44 = vadd.f32 %v5310_v40, %v6659_v31 }
 0x1f4   : > { %v4054_v10 = vadd.f32 %v4053_v20, %v4052_v36  ;;  %4121 = vst.msk [vmem:[%s6666_s9 + $0x48] sm:$0xff] %vm3938_vm4, %v3915_v38  ;;  %v3758_v45 = vpop.f32.mrb[11].mxu0  ;;  %v4019_v46 = vmul.f32 %v3915_v38, %v3915_v38  ;;  %v3953_v47 = vadd.f32 %v3952_v42, %v3951_v35  ;;  %v5311_v48 = vadd.f32 %v5268_v4, %v6644_v23 }
 0x1f5   : > { %v5312_v22 = vadd.f32 %v3758_v45, %v6646_v25  ;;  %v3954_v49 = vsel %vm3938_vm4, %v3914_v44, 0.0  ;;  %v4018_v5 = vmul.f32 %v3914_v44, %v3914_v44  ;;  %4120 = vst.msk [vmem:[%s6666_s9 + $0x40] sm:$0xff] %vm3938_vm4, %v3914_v44  ;;  %v3956_v0 = vsel %vm3938_vm4, %v3915_v38, 0.0 }
 0x1f6   : > { %v4056_v51 = vadd.f32 %v4055_v43, %v4054_v10  ;;  %v3955_v32 = vadd.f32 %v3954_v49, %v3953_v47  ;;  %v3917_v34 = vadd.f32 %v5311_v48, %v6659_v31  ;;  %v4059_v6 = vsel %vm3938_vm4, %v4019_v46, 0.0 }
 0x1f7   : > { %v3916_v7 = vadd.f32 %v5312_v22, %v6659_v31  ;;  %v5271_v62 = vpop.f32.mrb[12].mxu0  ;;  %v4057_v23 = vsel %vm3938_vm4, %v4018_v5, 0.0 }
 0x1f8   : > { %v5313_v25 = vadd.f32 %v5271_v62, %v6648_v26  ;;  %v3768_v21 = vpop.f32.mrb[13].mxu0  ;;  %v4058_v54 = vadd.f32 %v4057_v23, %v4056_v51  ;;  %v4021_v56 = vmul.f32 %v3917_v34, %v3917_v34  ;;  %4123 = vst.msk [vmem:[%s6666_s9 + $0x58] sm:$0xff] %vm3938_vm4, %v3917_v34  ;;  %v3957_v58 = vadd.f32 %v3956_v0, %v3955_v32 }
 0x1f9   : > { %4122 = vst.msk [vmem:[%s6666_s9 + $0x50] sm:$0xff] %vm3938_vm4, %v3916_v7  ;;  %v3958_v8 = vsel %vm3938_vm4, %v3916_v7, 0.0  ;;  %v4020_v2 = vmul.f32 %v3916_v7, %v3916_v7  ;;  %v5314_v41 = vadd.f32 %v3768_v21, %v6650_v27  ;;  %v3960_v39 = vsel %vm3938_vm4, %v3917_v34, 0.0 }
 0x1fa   : > { %v3919_v24 = vadd.f32 %v5313_v25, %v6659_v31  ;;  %v3959_v52 = vadd.f32 %v3958_v8, %v3957_v58  ;;  %v4060_v26 = vadd.f32 %v4059_v6, %v4058_v54  ;;  %v4063_v63 = vsel %vm3938_vm4, %v4021_v56, 0.0 }
 0x1fb   : > { %v5077_v55 = vpop.f32.mrb[16].mxu1  ;;  %v5274_v59 = vpop.f32.mrb[14].mxu0  ;;  %v4061_v11 = vsel %vm3938_vm4, %v4020_v2, 0.0  ;;  %v3918_v50 = vadd.f32 %v5314_v41, %v6659_v31 }
 0x1fc   : > { %v4023_v37 = vmul.f32 %v3919_v24, %v3919_v24  ;;  %4125 = vst.msk [vmem:[%s6666_s9 + $0x68] sm:$0xff] %vm3938_vm4, %v3919_v24  ;;  %v2227_v53 = vpop.f32.mrb[17].mxu1  ;;  %v3778_v15 = vpop.f32.mrb[15].mxu0  ;;  %v4062_v57 = vadd.f32 %v4061_v11, %v4060_v26  ;;  %v3961_v60 = vadd.f32 %v3960_v39, %v3959_v52  ;;  %v5315_v27 = vadd.f32 %v5274_v59, %v6652_v28 }
 0x1fd   : > { %v5316_v61 = vadd.f32 %v3778_v15, %v6654_v29  ;;  %v3962_v1 = vsel %vm3938_vm4, %v3918_v50, 0.0  ;;  %v4022_v3 = vmul.f32 %v3918_v50, %v3918_v50  ;;  %4124 = vst.msk [vmem:[%s6666_s9 + $0x60] sm:$0xff] %vm3938_vm4, %v3918_v50  ;;  %v3964_v28 = vsel %vm3938_vm4, %v3919_v24, 0.0 }
 0x1fe   : > { %v3963_v9 = vadd.f32 %v3962_v1, %v3961_v60  ;;  %v4064_v12 = vadd.f32 %v4063_v63, %v4062_v57  ;;  %v3921_v13 = vadd.f32 %v5315_v27, %v6659_v31  ;;  %v4067_v33 = vsel %vm3938_vm4, %v4023_v37, 0.0 }
 0x1ff   : > { %v3920_v14 = vadd.f32 %v5316_v61, %v6659_v31  ;;  %v5080_v16 = vpop.f32.mrb[18].mxu1  ;;  %v5277_v17 = vpop.f32.mrb[16].mxu0  ;;  %v4065_v29 = vsel %vm3938_vm4, %v4022_v3, 0.0 }
 0x200   : > { %v5317_v18 = vadd.f32 %v5277_v17, %v5077_v55  ;;  %v2237_v19 = vpop.f32.mrb[19].mxu1  ;;  %v3788_v30 = vpop.f32.mrb[17].mxu0  ;;  %v4066_v35 = vadd.f32 %v4065_v29, %v4064_v12  ;;  %v4025_v36 = vmul.f32 %v3921_v13, %v3921_v13  ;;  %4127 = vst.msk [vmem:[%s6666_s9 + $0x78] sm:$0xff] %vm3938_vm4, %v3921_v13  ;;  %v3965_v38 = vadd.f32 %v3964_v28, %v3963_v9 }
 0x201   : > { %4126 = vst.msk [vmem:[%s6666_s9 + $0x70] sm:$0xff] %vm3938_vm4, %v3920_v14  ;;  %v3966_v40 = vsel %vm3938_vm4, %v3920_v14, 0.0  ;;  %v4024_v20 = vmul.f32 %v3920_v14, %v3920_v14  ;;  %v5318_v42 = vadd.f32 %v3788_v30, %v2227_v53  ;;  %v3968_v46 = vsel %vm3938_vm4, %v3921_v13, 0.0 }
 0x202   : > { %v3923_v4 = vadd.f32 %v5317_v18, %v6659_v31  ;;  %v3967_v43 = vadd.f32 %v3966_v40, %v3965_v38  ;;  %v4068_v10 = vadd.f32 %v4067_v33, %v4066_v35  ;;  %v4071_v62 = vsel %vm3938_vm4, %v4025_v36, 0.0 }
 0x203   : > { %v5083_v44 = vpop.f32.mrb[20].mxu1  ;;  %v5280_v45 = vpop.f32.mrb[18].mxu0  ;;  %v4069_v47 = vsel %vm3938_vm4, %v4024_v20, 0.0  ;;  %v3922_v22 = vadd.f32 %v5318_v42, %v6659_v31 }
 0x204   : > { %v4027_v48 = vmul.f32 %v3923_v4, %v3923_v4  ;;  %4129 = vst.msk [vmem:[%s6666_s9 + $0x88] sm:$0xff] %vm3938_vm4, %v3923_v4  ;;  %v2247_v49 = vpop.f32.mrb[21].mxu1  ;;  %v3798_v5 = vpop.f32.mrb[19].mxu0  ;;  %v4070_v51 = vadd.f32 %v4069_v47, %v4068_v10  ;;  %v3969_v32 = vadd.f32 %v3968_v46, %v3967_v43  ;;  %v5319_v34 = vadd.f32 %v5280_v45, %v5080_v16 }
 0x205   : > { %v5320_v7 = vadd.f32 %v3798_v5, %v2237_v19  ;;  %v3970_v0 = vsel %vm3938_vm4, %v3922_v22, 0.0  ;;  %v4026_v23 = vmul.f32 %v3922_v22, %v3922_v22  ;;  %4128 = vst.msk [vmem:[%s6666_s9 + $0x80] sm:$0xff] %vm3938_vm4, %v3922_v22  ;;  %v3972_v8 = vsel %vm3938_vm4, %v3923_v4, 0.0 }
 0x206   : > { %v3971_v25 = vadd.f32 %v3970_v0, %v3969_v32  ;;  %v4072_v21 = vadd.f32 %v4071_v62, %v4070_v51  ;;  %v3925_v6 = vadd.f32 %v5319_v34, %v6659_v31  ;;  %v4075_v26 = vsel %vm3938_vm4, %v4027_v48, 0.0 }
 0x207   : > { %v3924_v54 = vadd.f32 %v5320_v7, %v6659_v31  ;;  %v5086_v56 = vpop.f32.mrb[22].mxu1  ;;  %v5283_v58 = vpop.f32.mrb[20].mxu0  ;;  %v4073_v2 = vsel %vm3938_vm4, %v4026_v23, 0.0 }
 0x208   : > { %v5321_v24 = vadd.f32 %v5283_v58, %v5083_v44  ;;  %v2257_v41 = vpop.f32.mrb[23].mxu1  ;;  %v3808_v52 = vpop.f32.mrb[21].mxu0  ;;  %v4074_v55 = vadd.f32 %v4073_v2, %v4072_v21  ;;  %v4029_v59 = vmul.f32 %v3925_v6, %v3925_v6  ;;  %4131 = vst.msk [vmem:[%s6666_s9 + $0x98] sm:$0xff] %vm3938_vm4, %v3925_v6  ;;  %v3973_v39 = vadd.f32 %v3972_v8, %v3971_v25 }
 0x209   : > { %4130 = vst.msk [vmem:[%s6666_s9 + $0x90] sm:$0xff] %vm3938_vm4, %v3924_v54  ;;  %v3974_v11 = vsel %vm3938_vm4, %v3924_v54, 0.0  ;;  %v4028_v37 = vmul.f32 %v3924_v54, %v3924_v54  ;;  %v5322_v53 = vadd.f32 %v3808_v52, %v2247_v49  ;;  %v3976_v61 = vsel %vm3938_vm4, %v3925_v6, 0.0 }
 0x20a   : > { %v3927_v50 = vadd.f32 %v5321_v24, %v6659_v31  ;;  %v3975_v15 = vadd.f32 %v3974_v11, %v3973_v39  ;;  %v4076_v57 = vadd.f32 %v4075_v26, %v4074_v55  ;;  %v4079_v28 = vsel %vm3938_vm4, %v4029_v59, 0.0 }
 0x20b   : > { %v5089_v60 = vpop.f32.mrb[24].mxu1  ;;  %v5286_v27 = vpop.f32.mrb[22].mxu0  ;;  %v4077_v63 = vsel %vm3938_vm4, %v4028_v37, 0.0  ;;  %v3926_v3 = vadd.f32 %v5322_v53, %v6659_v31 }
 0x20c   : > { %v4031_v1 = vmul.f32 %v3927_v50, %v3927_v50  ;;  %4133 = vst.msk [vmem:[%s6666_s9 + $0xa8] sm:$0xff] %vm3938_vm4, %v3927_v50  ;;  %v2267_v9 = vpop.f32.mrb[25].mxu1  ;;  %v3818_v12 = vpop.f32.mrb[23].mxu0  ;;  %v4078_v13 = vadd.f32 %v4077_v63, %v4076_v57  ;;  %v3977_v14 = vadd.f32 %v3976_v61, %v3975_v15  ;;  %v5323_v16 = vadd.f32 %v5286_v27, %v5086_v56 }
 0x20d   : > { %v5324_v17 = vadd.f32 %v3818_v12, %v2257_v41  ;;  %v3978_v29 = vsel %vm3938_vm4, %v3926_v3, 0.0  ;;  %v4030_v18 = vmul.f32 %v3926_v3, %v3926_v3  ;;  %4132 = vst.msk [vmem:[%s6666_s9 + $0xa0] sm:$0xff] %vm3938_vm4, %v3926_v3  ;;  %v3980_v40 = vsel %vm3938_vm4, %v3927_v50, 0.0 }
 0x20e   : > { %v3979_v19 = vadd.f32 %v3978_v29, %v3977_v14  ;;  %v4080_v30 = vadd.f32 %v4079_v28, %v4078_v13  ;;  %v3929_v33 = vadd.f32 %v5323_v16, %v6659_v31  ;;  %v4083_v10 = vsel %vm3938_vm4, %v4031_v1, 0.0 }
 0x20f   : > { %v3928_v35 = vadd.f32 %v5324_v17, %v6659_v31  ;;  %v5092_v36 = vpop.f32.mrb[26].mxu1  ;;  %v5289_v38 = vpop.f32.mrb[24].mxu0  ;;  %v4081_v20 = vsel %vm3938_vm4, %v4030_v18, 0.0 }
 0x210   : > { %v5325_v4 = vadd.f32 %v5289_v38, %v5089_v60  ;;  %v2277_v42 = vpop.f32.mrb[27].mxu1  ;;  %v3828_v43 = vpop.f32.mrb[25].mxu0  ;;  %v4082_v44 = vadd.f32 %v4081_v20, %v4080_v30  ;;  %v4033_v45 = vmul.f32 %v3929_v33, %v3929_v33  ;;  %4135 = vst.msk [vmem:[%s6666_s9 + $0xb8] sm:$0xff] %vm3938_vm4, %v3929_v33  ;;  %v3981_v46 = vadd.f32 %v3980_v40, %v3979_v19 }
 0x211   : > { %4134 = vst.msk [vmem:[%s6666_s9 + $0xb0] sm:$0xff] %vm3938_vm4, %v3928_v35  ;;  %v3982_v47 = vsel %vm3938_vm4, %v3928_v35, 0.0  ;;  %v4032_v48 = vmul.f32 %v3928_v35, %v3928_v35  ;;  %v5326_v49 = vadd.f32 %v3828_v43, %v2267_v9  ;;  %v3984_v7 = vsel %vm3938_vm4, %v3929_v33, 0.0 }
 0x212   : > { %v3931_v22 = vadd.f32 %v5325_v4, %v6659_v31  ;;  %v3983_v5 = vadd.f32 %v3982_v47, %v3981_v46  ;;  %v4084_v51 = vadd.f32 %v4083_v10, %v4082_v44  ;;  %v4087_v8 = vsel %vm3938_vm4, %v4033_v45, 0.0 }
 0x213   : > { %v5095_v32 = vpop.f32.mrb[28].mxu1  ;;  %v5292_v34 = vpop.f32.mrb[26].mxu0  ;;  %v4085_v62 = vsel %vm3938_vm4, %v4032_v48, 0.0  ;;  %v3930_v23 = vadd.f32 %v5326_v49, %v6659_v31 }
 0x214   : > { %v4035_v0 = vmul.f32 %v3931_v22, %v3931_v22  ;;  %4137 = vst.msk [vmem:[%s6666_s9 + $0xc8] sm:$0xff] %vm3938_vm4, %v3931_v22  ;;  %v2287_v25 = vpop.f32.mrb[29].mxu1  ;;  %v3838_v21 = vpop.f32.mrb[27].mxu0  ;;  %v4086_v6 = vadd.f32 %v4085_v62, %v4084_v51  ;;  %v3985_v54 = vadd.f32 %v3984_v7, %v3983_v5  ;;  %v5327_v56 = vadd.f32 %v5292_v34, %v5092_v36 }
 0x215   : > { %v5328_v58 = vadd.f32 %v3838_v21, %v2277_v42  ;;  %v3986_v2 = vsel %vm3938_vm4, %v3930_v23, 0.0  ;;  %v4034_v24 = vmul.f32 %v3930_v23, %v3930_v23  ;;  %4136 = vst.msk [vmem:[%s6666_s9 + $0xc0] sm:$0xff] %vm3938_vm4, %v3930_v23  ;;  %v3988_v11 = vsel %vm3938_vm4, %v3931_v22, 0.0 }
 0x216   : > { %v3987_v41 = vadd.f32 %v3986_v2, %v3985_v54  ;;  %v4088_v52 = vadd.f32 %v4087_v8, %v4086_v6  ;;  %v3933_v26 = vadd.f32 %v5327_v56, %v6659_v31  ;;  %v4091_v57 = vsel %vm3938_vm4, %v4035_v0, 0.0 }
 0x217   : > { %v3932_v55 = vadd.f32 %v5328_v58, %v6659_v31  ;;  %v5098_v59 = vpop.f32.mrb[30].mxu1  ;;  %v5295_v39 = vpop.f32.mrb[28].mxu0  ;;  %v4089_v37 = vsel %vm3938_vm4, %v4034_v24, 0.0 }
 0x218   : > { %v5329_v50 = vadd.f32 %v5295_v39, %v5095_v32  ;;  %v2297_v53 = vpop.f32.mrb[31].mxu1  ;;  %v3848_v15 = vpop.f32.mrb[29].mxu0  ;;  %v4090_v60 = vadd.f32 %v4089_v37, %v4088_v52  ;;  %v4037_v27 = vmul.f32 %v3933_v26, %v3933_v26  ;;  %4139 = vst.msk [vmem:[%s6666_s9 + $0xd8] sm:$0xff] %vm3938_vm4, %v3933_v26  ;;  %v3989_v61 = vadd.f32 %v3988_v11, %v3987_v41 }
 0x219   : > { %4138 = vst.msk [vmem:[%s6666_s9 + $0xd0] sm:$0xff] %vm3938_vm4, %v3932_v55  ;;  %v3990_v63 = vsel %vm3938_vm4, %v3932_v55, 0.0  ;;  %v4036_v1 = vmul.f32 %v3932_v55, %v3932_v55  ;;  %v5330_v9 = vadd.f32 %v3848_v15, %v2287_v25  ;;  %v3992_v16 = vsel %vm3938_vm4, %v3933_v26, 0.0 }
 0x21a   : > { %v3935_v3 = vadd.f32 %v5329_v50, %v6659_v31  ;;  %v3991_v12 = vadd.f32 %v3990_v63, %v3989_v61  ;;  %v4092_v13 = vadd.f32 %v4091_v57, %v4090_v60  ;;  %v4095_v35 = vsel %vm3938_vm4, %v4037_v27, 0.0 }
 0x21b   : > { %v5298_v14 = vpop.f32.mrb[30].mxu0  ;;  %v4093_v17 = vsel %vm3938_vm4, %v4036_v1, 0.0  ;;  %v3934_v28 = vadd.f32 %v5330_v9, %v6659_v31 }
 0x21c   : > { %4141 = vst.msk [vmem:[%s6666_s9 + $0xe8] sm:$0xff] %vm3938_vm4, %v3935_v3  ;;  %v3858_v29 = vpop.f32.mrb[31].mxu0  ;;  %v4094_v18 = vadd.f32 %v4093_v17, %v4092_v13  ;;  %v3993_v19 = vadd.f32 %v3992_v16, %v3991_v12  ;;  %v5331_v30 = vadd.f32 %v5298_v14, %v5098_v59  ;;  %v4039_v36 = vmul.f32 %v3935_v3, %v3935_v3 }
 0x21d   : > { %v5332_v33 = vadd.f32 %v3858_v29, %v2297_v53  ;;  %v3994_v38 = vsel %vm3938_vm4, %v3934_v28, 0.0  ;;  %v4038_v40 = vmul.f32 %v3934_v28, %v3934_v28  ;;  %4140 = vst.msk [vmem:[%s6666_s9 + $0xe0] sm:$0xff] %vm3938_vm4, %v3934_v28  ;;  %v3996_v10 = vsel %vm3938_vm4, %v3935_v3, 0.0 }
 0x21e   : > { %v3995_v20 = vadd.f32 %v3994_v38, %v3993_v19  ;;  %v4096_v4 = vadd.f32 %v4095_v35, %v4094_v18  ;;  %v3937_v42 = vadd.f32 %v5331_v30, %v6659_v31  ;;  %v4099_v22 = vsel %vm3938_vm4, %v4039_v36, 0.0 }
 0x21f   : > { %v3936_v43 = vadd.f32 %v5332_v33, %v6659_v31  ;;  %v4097_v44 = vsel %vm3938_vm4, %v4038_v40, 0.0 }
 0x220   : > { %v4098_v45 = vadd.f32 %v4097_v44, %v4096_v4  ;;  %v4000_v46 = vsel %vm3938_vm4, %v3937_v42, 0.0  ;;  %v4041_v47 = vmul.f32 %v3937_v42, %v3937_v42  ;;  %4143 = vst.msk [vmem:[%s6666_s9 + $0xf8] sm:$0xff] %vm3938_vm4, %v3937_v42  ;;  %v3997_v48 = vadd.f32 %v3996_v10, %v3995_v20 }
 0x221   : > { %4142 = vst.msk [vmem:[%s6666_s9 + $0xf0] sm:$0xff] %vm3938_vm4, %v3936_v43  ;;  %v3998_v49 = vsel %vm3938_vm4, %v3936_v43, 0.0  ;;  %v4040_v5 = vmul.f32 %v3936_v43, %v3936_v43 }
 0x222   : > { %v4103_v31 = vsel %vm3938_vm4, %v4041_v47, 0.0  ;;  %v3999_v51 = vadd.f32 %v3998_v49, %v3997_v48  ;;  %v4100_v32 = vadd.f32 %v4099_v22, %v4098_v45 }
 0x223   : > { %v4101_v34 = vsel %vm3938_vm4, %v4040_v5, 0.0 }
 0x224   : > { %v4001_v7 = vadd.f32 %v4000_v46, %v3999_v51  ;;  %v4102_v62 = vadd.f32 %v4101_v34, %v4100_v32 }
 0x226   : > { %v4002_v0 = vrot.slane %v4001_v7, 4  ;;  %v4104_v23 = vadd.f32 %v4103_v31, %v4102_v62 }
 0x228   : > { %v4003_v25 = vadd.f32 %v4002_v0, %v4001_v7  ;;  %v4105_v21 = vrot.slane %v4104_v23, 4 }
 0x22a   : > { %v4004_v6 = vrot.slane %v4003_v25, 2  ;;  %v4106_v54 = vadd.f32 %v4105_v21, %v4104_v23 }
 0x22c   : > { %v4005_v56 = vadd.f32 %v4004_v6, %v4003_v25  ;;  %v4107_v58 = vrot.slane %v4106_v54, 2 }
 0x22e   : > { %v4006_v8 = vrot.slane %v4005_v56, 1  ;;  %v4108_v2 = vadd.f32 %v4107_v58, %v4106_v54 }
 0x230   : > { %v4007_v24 = vadd.f32 %v4006_v8, %v4005_v56  ;;  %v4109_v41 = vrot.slane %v4108_v2, 1 }
 0x232   : > { %4009 = vst.msk [vmem:[%s262_s12] sm:$0x1] %vm4008_vm5, %v4007_v24  ;;  %v4110_v52 = vadd.f32 %v4109_v41, %v4108_v2 }
 0x234   : > { %4111 = vst.msk [vmem:[%s262_s12 + $0x1] sm:$0x1] %vm4008_vm5, %v4110_v52 }
 0x235 PF: > { %s17_s21 = sadd.s32 1, %s5572_s21  }
 0x236   : > { %p14_p4 = scmp.ge.s32.totalorder %s17_s21, 4  }
 0x238   :  { %16 = sbr.rel (!%p14_p4) target bundleno = 1 (0x1), region = 93 }

// kernel: upsample_layer_forward.5
= control target key start
LH: loop header
LB: loop body
LE: loop exit
PB: predicated region body
PF: predicated region fallthrough
CT: control target
= control target key end

     0   :  { %s5668_s21 = smov 0   ;;  %s6864_s0 = inlined_call_operand.vmem [shape: f32[2,16,16,8], index: 0, kind: input, shape index: {}]   ;;  %s6865_s1 = inlined_call_operand.vmem [shape: f32[1,8], index: 1, kind: input, shape index: {}]   ;;  %s6866_s2 = inlined_call_operand.vmem [shape: f32[1,8], index: 2, kind: input, shape index: {}]   ;;  %s6867_s3 = inlined_call_operand.vmem [shape: f32[9,8,8], index: 3, kind: input, shape index: {}]   ;;  %s6868_s4 = inlined_call_operand.vmem [shape: f32[1,8], index: 4, kind: input, shape index: {}]   ;;  %s6869_s5 = inlined_call_operand.vmem [shape: f32[2,16,16,8], index: 5, kind: output, shape index: {0}]   ;;  %s6870_s6 = inlined_call_operand.vmem [shape: f32[2,2,8], index: 6, kind: output, shape index: {1}]  }
   0x1 LB: > { %s4296_s22 = sadd.s32 4294967295, %s5630_s21   ;;  %p4300_p0 = scmp.ge.s32.totalorder %s5630_s21, 1  ;;  %s5630_s21 = sphi %s5668_s21, %s17_s21  }
   0x2   : > { %p215_p1 = scmp.lt.s32.totalorder %s5630_s21, 3 }
   0x4   : > { %p216_p2 = pnand %p4300_p0, %p215_p1 }
   0x6   : > { %219 = sbr.rel (%p216_p2) target bundleno = 565 (0x235), region = 40 }
   0xd   : > { %v4308_v0 = vld [vmem:[%s6867_s3 + $0x8] sm:$0xff]  ;;  %vm469_vm0 = vcmask 64512   ;;  %vm472_vm1 = vcmask 58368   ;;  %vm478_vm2 = vcmask 57344   ;;  %v4439_v1 = vld [vmem:[%s6867_s3 + $0x20] sm:$0xff]  ;;  %v5632_v2 = vmov 0.0  }
   0xe   : > { %4906 = vmatprep.subr.mxu1 %v4308_v0  ;;  %470 = vst.msk [vmem:[#allocation2] sm:$0xff] %vm469_vm0, %v5632_v2  ;;  %471 = vst.msk [vmem:[#allocation2 + $0x8] sm:$0xff] %vm469_vm0, %v5632_v2  ;;  %5106 = vmatprep.subr.mxu0 %v4439_v1  ;;  %p249_p3 = scmp.lt.s32.totalorder %s4296_s22, 1  ;;  %v580_v3 = vld [vmem:[%s6867_s3] sm:$0xff]  ;;  %v5730_v4 = vld [vmem:[%s6867_s3 + $0x28] sm:$0xff] }
   0xf   : > { %475 = vst.msk [vmem:[#allocation2 + $0x198] sm:$0xff] %vm469_vm0, %v5632_v2  ;;  %476 = vst.msk [vmem:[#allocation2 + $0x1a0] sm:$0xff] %vm469_vm0, %v5632_v2  ;;  %4907 = vmatpush3.msra.mxu1 %v4308_v0  ;;  %5107 = vmatpush3.msra.mxu0 %v4439_v1  ;;  %v5741_v5 = vld [vmem:[%s6865_s1] ss:$0 sm:$0xff]  ;;  %v5761_v10 = vld [vmem:[%s6867_s3 + $0x10] sm:$0xff] }
  0x10   : > { %473 = vst.msk [vmem:[#allocation2 + $0x10] sm:$0x3] %vm472_vm1, %v5632_v2  ;;  %477 = vst.msk [vmem:[#allocation2 + $0x1a8] sm:$0x3] %vm472_vm1, %v5632_v2  ;;  %s6969_s22 = smov (!%p249_p3, %s4296_s22), 1  ;;  %4956 = vmatprep.subr.mxu1 %v580_v3  ;;  %5156 = vmatprep.subr.mxu0 %v5730_v4 }
  0x11   : > { %480 = vst.msk [vmem:[#allocation2 + $0x18] sm:$0x1] %vm478_vm2, %v5632_v2  ;;  %481 = vst.msk [vmem:[#allocation2 + $0x30] sm:$0x1] %vm478_vm2, %v5632_v2  ;;  %s4607_s7 = sshll.u32 %s6969_s22, 8 }
  0x12   : > { %482 = vst.msk [vmem:[#allocation2 + $0x48] sm:$0x1] %vm478_vm2, %v5632_v2  ;;  %483 = vst.msk [vmem:[#allocation2 + $0x60] sm:$0x1] %vm478_vm2, %v5632_v2  ;;  %s5748_s12 = scalar_lea.vmem %s6864_s0, %s4607_s7  ;;  %v5753_v6 = vld [vmem:[%s6866_s2] ss:$0 sm:$0xff]  ;;  %s6685_s10 = scalar_lea.vmem %s6869_s5, %s4607_s7 }
  0x13   : > { %484 = vst.msk [vmem:[#allocation2 + $0x78] sm:$0x1] %vm478_vm2, %v5632_v2  ;;  %485 = vst.msk [vmem:[#allocation2 + $0x90] sm:$0x1] %vm478_vm2, %v5632_v2  ;;  %v263_v7 = vld [vmem:[%s5748_s12] sm:$0xff]  ;;  %v264_v8 = vld [vmem:[%s5748_s12 + $0x8] sm:$0xff] }
  0x14   : > { %486 = vst.msk [vmem:[#allocation2 + $0xa8] sm:$0x1] %vm478_vm2, %v5632_v2  ;;  %487 = vst.msk [vmem:[#allocation2 + $0xc0] sm:$0x1] %vm478_vm2, %v5632_v2  ;;  %v265_v9 = vld [vmem:[%s5748_s12 + $0x10] sm:$0xff]  ;;  %v302_v13 = vmul.f32 %v5741_v5, %v263_v7  ;;  %v303_v14 = vmul.f32 %v5741_v5, %v264_v8  ;;  %v266_v16 = vld [vmem:[%s5748_s12 + $0x18] sm:$0xff] }
  0x15   : > { %488 = vst.msk [vmem:[#allocation2 + $0xd8] sm:$0x1] %vm478_vm2, %v5632_v2  ;;  %489 = vst.msk [vmem:[#allocation2 + $0xf0] sm:$0x1] %vm478_vm2, %v5632_v2  ;;  %v581_v11 = vld [vmem:[#allocation2 + $0x1] sm:$0xff]  ;;  %v304_v15 = vmul.f32 %v5741_v5, %v265_v9  ;;  %v305_v17 = vmul.f32 %v5741_v5, %v266_v16  ;;  %v269_v20 = vld [vmem:[%s5748_s12 + $0x30] sm:$0xff] }
  0x16   : > { %490 = vst.msk [vmem:[#allocation2 + $0x108] sm:$0x1] %vm478_vm2, %v5632_v2  ;;  %491 = vst.msk [vmem:[#allocation2 + $0x120] sm:$0x1] %vm478_vm2, %v5632_v2  ;;  %4908 = vmatprep.mubr.msk.f32.mxu1 %vm469_vm0, %v581_v11  ;;  %v267_v18 = vld [vmem:[%s5748_s12 + $0x20] sm:$0xff]  ;;  %v268_v19 = vld [vmem:[%s5748_s12 + $0x28] sm:$0xff]  ;;  %v341_v21 = vadd.f32 %v5753_v6, %v302_v13  ;;  %v342_v22 = vadd.f32 %v5753_v6, %v303_v14  ;;  %v308_v28 = vmul.f32 %v5741_v5, %v269_v20 }
  0x17   : > { %492 = vst.msk [vmem:[#allocation2 + $0x138] sm:$0x1] %vm478_vm2, %v5632_v2  ;;  %493 = vst.msk [vmem:[#allocation2 + $0x150] sm:$0x1] %vm478_vm2, %v5632_v2  ;;  %v582_v12 = vld [vmem:[#allocation2 + $0x9] sm:$0xff]  ;;  %v343_v23 = vadd.f32 %v5753_v6, %v304_v15  ;;  %v306_v24 = vmul.f32 %v5741_v5, %v267_v18  ;;  %v270_v25 = vld [vmem:[%s5748_s12 + $0x38] sm:$0xff]  ;;  %v344_v26 = vadd.f32 %v5753_v6, %v305_v17 }
  0x18   : > { %494 = vst.msk [vmem:[#allocation2 + $0x168] sm:$0x1] %vm478_vm2, %v5632_v2  ;;  %495 = vst.msk [vmem:[#allocation2 + $0x180] sm:$0x1] %vm478_vm2, %v5632_v2  ;;  %4909 = vmatmul.mubr.msk.f32.vlgmr.msra.gmra.mrb[0].mxu1 %vm469_vm0, %v582_v12  ;;  %v307_v27 = vmul.f32 %v5741_v5, %v268_v19  ;;  %v309_v29 = vmul.f32 %v5741_v5, %v270_v25  ;;  %vm373_vm3 = vcmp.gt.f32.partialorder %v341_v21, 0.0  ;;  %vm374_vm4 = vcmp.gt.f32.partialorder %v342_v22, 0.0 }
  0x19   : > { %498 = vst.msk [vmem:[#allocation2 + $0x29] sm:$0x1] %vm478_vm2, %v5632_v2  ;;  %499 = vst.msk [vmem:[#allocation2 + $0x41] sm:$0x1] %vm478_vm2, %v5632_v2  ;;  %4957 = vmatpush3.msra.mxu1 %v580_v3  ;;  %v405_v30 = vmul.f32 0.01, %v341_v21  ;;  %v345_v36 = vadd.f32 %v5753_v6, %v306_v24  ;;  %v347_v43 = vadd.f32 %v5753_v6, %v308_v28 }
  0x1a   : > { %500 = vst.msk [vmem:[#allocation2 + $0x59] sm:$0x1] %vm478_vm2, %v5632_v2  ;;  %501 = vst.msk [vmem:[#allocation2 + $0x71] sm:$0x1] %vm478_vm2, %v5632_v2  ;;  %v406_v31 = vmul.f32 0.01, %v342_v22  ;;  %5006 = vmatprep.subr.mxu1 %v5761_v10  ;;  %v346_v37 = vadd.f32 %v5753_v6, %v307_v27  ;;  %v348_v44 = vadd.f32 %v5753_v6, %v309_v29 }
  0x1b   : > { %502 = vst.msk [vmem:[#allocation2 + $0x89] sm:$0x1] %vm478_vm2, %v5632_v2  ;;  %503 = vst.msk [vmem:[#allocation2 + $0xa1] sm:$0x1] %vm478_vm2, %v5632_v2  ;;  %vm375_vm5 = vcmp.gt.f32.partialorder %v343_v23, 0.0  ;;  %vm376_vm6 = vcmp.gt.f32.partialorder %v344_v26, 0.0  ;;  %v437_v34 = vsel %vm373_vm3, %v341_v21, %v405_v30 }
  0x1c   : > { %504 = vst.msk [vmem:[#allocation2 + $0xb9] sm:$0x1] %vm478_vm2, %v5632_v2  ;;  %505 = vst.msk [vmem:[#allocation2 + $0xd1] sm:$0x1] %vm478_vm2, %v5632_v2  ;;  %v407_v32 = vmul.f32 0.01, %v343_v23  ;;  %v438_v35 = vsel %vm374_vm4, %v342_v22, %v406_v31 }
  0x1d   : > { %506 = vst.msk [vmem:[#allocation2 + $0xe9] sm:$0x1] %vm478_vm2, %v5632_v2  ;;  %507 = vst.msk [vmem:[#allocation2 + $0x101] sm:$0x1] %vm478_vm2, %v5632_v2  ;;  %v408_v33 = vmul.f32 0.01, %v344_v26 }
  0x1e   : > { %508 = vst.msk [vmem:[#allocation2 + $0x119] sm:$0x1] %vm478_vm2, %v5632_v2  ;;  %509 = vst.msk [vmem:[#allocation2 + $0x131] sm:$0x1] %vm478_vm2, %v5632_v2  ;;  %v271_v38 = vld [vmem:[%s5748_s12 + $0x40] sm:$0xff]  ;;  %v272_v39 = vld [vmem:[%s5748_s12 + $0x48] sm:$0xff]  ;;  %v439_v41 = vsel %vm375_vm5, %v343_v23, %v407_v32 }
  0x1f   : > { %510 = vst.msk [vmem:[#allocation2 + $0x149] sm:$0x1] %vm478_vm2, %v5632_v2  ;;  %511 = vst.msk [vmem:[#allocation2 + $0x161] sm:$0x1] %vm478_vm2, %v5632_v2  ;;  %v273_v40 = vld [vmem:[%s5748_s12 + $0x50] sm:$0xff]  ;;  %v440_v42 = vsel %vm376_vm6, %v344_v26, %v408_v33  ;;  %v274_v45 = vld [vmem:[%s5748_s12 + $0x58] sm:$0xff]  ;;  %v310_v54 = vmul.f32 %v5741_v5, %v271_v38  ;;  %v311_v55 = vmul.f32 %v5741_v5, %v272_v39 }
  0x20   : > { %512 = vst.msk [vmem:[#allocation2 + $0x179] sm:$0x1] %vm478_vm2, %v5632_v2  ;;  %513 = vst.msk [vmem:[#allocation2 + $0x191] sm:$0x1] %vm478_vm2, %v5632_v2  ;;  %v275_v46 = vld [vmem:[%s5748_s12 + $0x60] sm:$0xff]  ;;  %v276_v47 = vld [vmem:[%s5748_s12 + $0x68] sm:$0xff]  ;;  %v312_v60 = vmul.f32 %v5741_v5, %v273_v40  ;;  %v313_v61 = vmul.f32 %v5741_v5, %v274_v45 }
  0x21   : > { %497 = vst.msk [vmem:[#allocation2 + $0x11] sm:$0x1] %vm478_vm2, %v5632_v2  ;;  %479 = vst.msk [vmem:[#allocation2] sm:$0x1] %vm478_vm2, %v5632_v2  ;;  %vm377_vm7 = vcmp.gt.f32.partialorder %v345_v36, 0.0  ;;  %vm378_vm8 = vcmp.gt.f32.partialorder %v346_v37, 0.0  ;;  %v349_v62 = vadd.f32 %v5753_v6, %v310_v54  ;;  %v350_v63 = vadd.f32 %v5753_v6, %v311_v55 }
  0x22   : > { %496 = vst.msk [vmem:[#allocation2 + $0x198] sm:$0x1] %vm478_vm2, %v5632_v2  ;;  %514 = vst.msk [vmem:[#allocation2 + $0x1a9] sm:$0x1] %vm478_vm2, %v5632_v2  ;;  %v409_v48 = vmul.f32 0.01, %v345_v36  ;;  %v314_v0 = vmul.f32 %v5741_v5, %v275_v46  ;;  %v315_v1 = vmul.f32 %v5741_v5, %v276_v47  ;;  %v351_v2 = vadd.f32 %v5753_v6, %v312_v60 }
  0x23   : > { %516 = vst.msk [vmem:[#allocation2 + $0x19] sm:$0xff] %vm469_vm0, %v437_v34  ;;  %517 = vst.msk [vmem:[#allocation2 + $0x21] sm:$0xff] %vm469_vm0, %v438_v35  ;;  %v410_v49 = vmul.f32 0.01, %v346_v37  ;;  %vm379_vm9 = vcmp.gt.f32.partialorder %v347_v43, 0.0  ;;  %vm380_vm10 = vcmp.gt.f32.partialorder %v348_v44, 0.0  ;;  %v352_v3 = vadd.f32 %v5753_v6, %v313_v61 }
  0x24   : > { %518 = vst.msk [vmem:[#allocation2 + $0x31] sm:$0xff] %vm469_vm0, %v439_v41  ;;  %519 = vst.msk [vmem:[#allocation2 + $0x39] sm:$0xff] %vm469_vm0, %v440_v42  ;;  %v411_v50 = vmul.f32 0.01, %v347_v43  ;;  %v412_v51 = vmul.f32 0.01, %v348_v44  ;;  %v441_v52 = vsel %vm377_vm7, %v345_v36, %v409_v48  ;;  %v353_v13 = vadd.f32 %v5753_v6, %v314_v0 }
  0x25   : > { %v442_v53 = vsel %vm378_vm8, %v346_v37, %v410_v49  ;;  %v277_v56 = vld [vmem:[%s5748_s12 + $0x70] sm:$0xff]  ;;  %v278_v57 = vld [vmem:[%s5748_s12 + $0x78] sm:$0xff]  ;;  %520 = vst.msk [vmem:[#allocation2 + $0x49] sm:$0xff] %vm469_vm0, %v441_v52  ;;  %vm381_vm11 = vcmp.gt.f32.partialorder %v349_v62, 0.0  ;;  %v413_v12 = vmul.f32 0.01, %v349_v62  ;;  %v354_v17 = vadd.f32 %v5753_v6, %v315_v1 }
  0x26   : > { %521 = vst.msk [vmem:[#allocation2 + $0x51] sm:$0xff] %vm469_vm0, %v442_v53  ;;  %v443_v58 = vsel %vm379_vm9, %v347_v43, %v411_v50  ;;  %v444_v59 = vsel %vm380_vm10, %v348_v44, %v412_v51  ;;  %v316_v7 = vmul.f32 %v5741_v5, %v277_v56  ;;  %v317_v8 = vmul.f32 %v5741_v5, %v278_v57  ;;  %v5819_v14 = vld [vmem:[%s6867_s3 + $0x30] sm:$0xff]  ;;  %v279_v18 = vld [vmem:[%s5748_s12 + $0x80] sm:$0xff]  ;;  %v280_v22 = vld [vmem:[%s5748_s12 + $0x88] sm:$0xff]  ;;  %s4305_s7 = sshll.u32 %s6969_s22, 1 }
  0x27   : > { %522 = vst.msk [vmem:[#allocation2 + $0x61] sm:$0xff] %vm469_vm0, %v443_v58  ;;  %523 = vst.msk [vmem:[#allocation2 + $0x69] sm:$0xff] %vm469_vm0, %v444_v59  ;;  %vm382_vm12 = vcmp.gt.f32.partialorder %v350_v63, 0.0  ;;  %v414_v16 = vmul.f32 0.01, %v350_v63  ;;  %vm383_vm13 = vcmp.gt.f32.partialorder %v351_v2, 0.0  ;;  %v445_v19 = vsel %vm381_vm11, %v349_v62, %v413_v12  ;;  %s262_s13 = scalar_lea.vmem %s6870_s6, %s4305_s7 }
  0x28   : > { %vm384_vm14 = vcmp.gt.f32.partialorder %v352_v3, 0.0  ;;  %v415_v20 = vmul.f32 0.01, %v351_v2  ;;  %v416_v21 = vmul.f32 0.01, %v352_v3  ;;  %vm385_vm15 = vcmp.gt.f32.partialorder %v353_v13, 0.0 }
  0x29   : > { %524 = vst.msk [vmem:[#allocation2 + $0x79] sm:$0xff] %vm469_vm0, %v445_v19  ;;  %v446_v24 = vsel %vm382_vm12, %v350_v63, %v414_v16  ;;  %v417_v25 = vmul.f32 0.01, %v353_v13  ;;  %vm386_vm1 = vcmp.gt.f32.partialorder %v354_v17, 0.0  ;;  %v418_v26 = vmul.f32 0.01, %v354_v17 }
  0x2a   : > { %v583_v9 = vld [vmem:[#allocation2 + $0x19] sm:$0xff]  ;;  %v584_v11 = vld [vmem:[#allocation2 + $0x21] sm:$0xff]  ;;  %525 = vst.msk [vmem:[#allocation2 + $0x81] sm:$0xff] %vm469_vm0, %v446_v24  ;;  %v447_v28 = vsel %vm383_vm13, %v351_v2, %v415_v20  ;;  %v355_v29 = vadd.f32 %v5753_v6, %v316_v7  ;;  %v356_v30 = vadd.f32 %v5753_v6, %v317_v8  ;;  %v281_v31 = vld [vmem:[%s5748_s12 + $0x90] sm:$0xff]  ;;  %v318_v34 = vmul.f32 %v5741_v5, %v279_v18 }
  0x2b   : > { %4911 = vmatprep.mubr.msk.f32.mxu1 %vm469_vm0, %v583_v9  ;;  %5108 = vmatprep.mubr.msk.f32.mxu0 %vm469_vm0, %v583_v9  ;;  %v585_v15 = vld [vmem:[#allocation2 + $0x31] sm:$0xff]  ;;  %v586_v23 = vld [vmem:[#allocation2 + $0x39] sm:$0xff]  ;;  %526 = vst.msk [vmem:[#allocation2 + $0x91] sm:$0xff] %vm469_vm0, %v447_v28  ;;  %v449_v32 = vsel %vm385_vm15, %v353_v13, %v417_v25  ;;  %v450_v33 = vsel %vm386_vm1, %v354_v17, %v418_v26  ;;  %v284_v49 = vld [vmem:[%s5748_s12 + $0xa8] sm:$0xff] }
  0x2c   : > { %4912 = vmatmul.mubr.msk.f32.gmra.mrb[2].mxu1 %vm469_vm0, %v584_v11  ;;  %5109 = vmatmul.mubr.msk.f32.vlgmr.msra.gmra.mrb[0].mxu0 %vm469_vm0, %v584_v11  ;;  %v587_v27 = vld [vmem:[#allocation2 + $0x49] sm:$0xff]  ;;  %v319_v35 = vmul.f32 %v5741_v5, %v280_v22  ;;  %v282_v36 = vld [vmem:[%s5748_s12 + $0x98] sm:$0xff]  ;;  %v283_v37 = vld [vmem:[%s5748_s12 + $0xa0] sm:$0xff]  ;;  %528 = vst.msk [vmem:[#allocation2 + $0xa9] sm:$0xff] %vm469_vm0, %v449_v32  ;;  %vm387_vm3 = vcmp.gt.f32.partialorder %v355_v29, 0.0  ;;  %vm388_vm4 = vcmp.gt.f32.partialorder %v356_v30, 0.0  ;;  %v357_v41 = vadd.f32 %v5753_v6, %v318_v34 }
  0x2d   : > { %5157 = vmatpush3.msra.mxu0 %v5730_v4  ;;  %4914 = vmatprep.mubr.msk.f32.mxu1 %vm469_vm0, %v585_v15  ;;  %v448_v4 = vsel %vm384_vm14, %v352_v3, %v416_v21  ;;  %529 = vst.msk [vmem:[#allocation2 + $0xb1] sm:$0xff] %vm469_vm0, %v450_v33  ;;  %v419_v38 = vmul.f32 0.01, %v355_v29  ;;  %v420_v39 = vmul.f32 0.01, %v356_v30  ;;  %v5853_v40 = vld [vmem:[#allocation2 + $0x51] sm:$0xff]  ;;  %v320_v43 = vmul.f32 %v5741_v5, %v281_v31 }
  0x2e   : > { %5111 = vmatprep.mubr.msk.f32.mxu0 %vm469_vm0, %v585_v15  ;;  %527 = vst.msk [vmem:[#allocation2 + $0x99] sm:$0xff] %vm469_vm0, %v448_v4  ;;  %5206 = vmatprep.subr.mxu0 %v5819_v14  ;;  %v358_v42 = vadd.f32 %v5753_v6, %v319_v35  ;;  %v5858_v44 = vld [vmem:[#allocation2 + $0x61] sm:$0xff]  ;;  %v321_v47 = vmul.f32 %v5741_v5, %v282_v36  ;;  %v285_v50 = vld [vmem:[%s5748_s12 + $0xb0] sm:$0xff]  ;;  %vm389_vm5 = vcmp.gt.f32.partialorder %v357_v41, 0.0  ;;  %v421_v51 = vmul.f32 0.01, %v357_v41 }
  0x2f   : > { %v451_v45 = vsel %vm387_vm3, %v355_v29, %v419_v38  ;;  %v452_v46 = vsel %vm388_vm4, %v356_v30, %v420_v39  ;;  %v322_v48 = vmul.f32 %v5741_v5, %v283_v37  ;;  %v359_v53 = vadd.f32 %v5753_v6, %v320_v43  ;;  %v286_v56 = vld [vmem:[%s5748_s12 + $0xb8] sm:$0xff]  ;;  %v5878_v57 = vld [vmem:[#allocation2 + $0x69] sm:$0xff]  ;;  %v287_v61 = vld [vmem:[%s5748_s12 + $0xc0] sm:$0xff] }
  0x30   : > { %4915 = vmatmul.mubr.msk.f32.gmra.mrb[4].mxu1 %vm469_vm0, %v586_v23  ;;  %5112 = vmatmul.mubr.msk.f32.gmra.mrb[2].mxu0 %vm469_vm0, %v586_v23  ;;  %530 = vst.msk [vmem:[#allocation2 + $0xc1] sm:$0xff] %vm469_vm0, %v451_v45  ;;  %531 = vst.msk [vmem:[#allocation2 + $0xc9] sm:$0xff] %vm469_vm0, %v452_v46  ;;  %vm390_vm6 = vcmp.gt.f32.partialorder %v358_v42, 0.0  ;;  %v422_v52 = vmul.f32 0.01, %v358_v42  ;;  %v360_v54 = vadd.f32 %v5753_v6, %v321_v47  ;;  %v5882_v62 = vld [vmem:[#allocation2 + $0x79] sm:$0xff] }
  0x31   : > { %4917 = vmatprep.mubr.msk.f32.mxu1 %vm469_vm0, %v587_v27  ;;  %5114 = vmatprep.mubr.msk.f32.mxu0 %vm469_vm0, %v587_v27  ;;  %v361_v55 = vadd.f32 %v5753_v6, %v322_v48  ;;  %v453_v58 = vsel %vm389_vm5, %v357_v41, %v421_v51  ;;  %v323_v60 = vmul.f32 %v5741_v5, %v284_v49  ;;  %vm391_vm7 = vcmp.gt.f32.partialorder %v359_v53, 0.0  ;;  %v288_v12 = vld [vmem:[%s5748_s12 + $0xc8] sm:$0xff]  ;;  %v289_v18 = vld [vmem:[%s5748_s12 + $0xd0] sm:$0xff]  ;;  %v290_v23 = vld [vmem:[%s5748_s12 + $0xd8] sm:$0xff] }
  0x32   : > { %v454_v59 = vsel %vm390_vm6, %v358_v42, %v422_v52  ;;  %532 = vst.msk [vmem:[#allocation2 + $0xd9] sm:$0xff] %vm469_vm0, %v453_v58  ;;  %v423_v63 = vmul.f32 0.01, %v359_v53  ;;  %vm392_vm8 = vcmp.gt.f32.partialorder %v360_v54, 0.0  ;;  %v324_v0 = vmul.f32 %v5741_v5, %v285_v50  ;;  %v5900_v13 = vld [vmem:[#allocation2 + $0x81] sm:$0xff]  ;;  %v5906_v19 = vld [vmem:[#allocation2 + $0x91] sm:$0xff] }
  0x33   : > { %533 = vst.msk [vmem:[#allocation2 + $0xe1] sm:$0xff] %vm469_vm0, %v454_v59  ;;  %v424_v1 = vmul.f32 0.01, %v360_v54  ;;  %vm393_vm9 = vcmp.gt.f32.partialorder %v361_v55, 0.0  ;;  %v362_v2 = vadd.f32 %v5753_v6, %v323_v60  ;;  %v325_v3 = vmul.f32 %v5741_v5, %v286_v56  ;;  %v291_v27 = vld [vmem:[%s5748_s12 + $0xe0] sm:$0xff]  ;;  %v292_v28 = vld [vmem:[%s5748_s12 + $0xe8] sm:$0xff] }
  0x34   : > { %4918 = vmatmul.mubr.msk.f32.gmra.mrb[6].mxu1 %vm469_vm0, %v5853_v40  ;;  %5115 = vmatmul.mubr.msk.f32.gmra.mrb[4].mxu0 %vm469_vm0, %v5853_v40  ;;  %v455_v7 = vsel %vm391_vm7, %v359_v53, %v423_v63  ;;  %v425_v8 = vmul.f32 0.01, %v361_v55  ;;  %v363_v9 = vadd.f32 %v5753_v6, %v324_v0  ;;  %v326_v11 = vmul.f32 %v5741_v5, %v287_v61  ;;  %v5932_v35 = vld [vmem:[#allocation2 + $0xa9] sm:$0xff]  ;;  %v294_v48 = vld [vmem:[%s5748_s12 + $0xf8] sm:$0xff] }
  0x35   : > { %4920 = vmatprep.mubr.msk.f32.mxu1 %vm469_vm0, %v5858_v44  ;;  %5117 = vmatprep.mubr.msk.f32.mxu0 %vm469_vm0, %v5858_v44  ;;  %534 = vst.msk [vmem:[#allocation2 + $0xf1] sm:$0xff] %vm469_vm0, %v455_v7  ;;  %v456_v15 = vsel %vm392_vm8, %v360_v54, %v424_v1  ;;  %vm394_vm10 = vcmp.gt.f32.partialorder %v362_v2, 0.0  ;;  %v426_v16 = vmul.f32 0.01, %v362_v2  ;;  %v364_v17 = vadd.f32 %v5753_v6, %v325_v3  ;;  %v5926_v31 = vld [vmem:[#allocation2 + $0x99] sm:$0xff]  ;;  %v293_v43 = vld [vmem:[%s5748_s12 + $0xf0] sm:$0xff] }
  0x36   : > { %535 = vst.msk [vmem:[#allocation2 + $0xf9] sm:$0xff] %vm469_vm0, %v456_v15  ;;  %v457_v20 = vsel %vm393_vm9, %v361_v55, %v425_v8  ;;  %vm395_vm11 = vcmp.gt.f32.partialorder %v363_v9, 0.0  ;;  %v427_v21 = vmul.f32 0.01, %v363_v9  ;;  %v365_v22 = vadd.f32 %v5753_v6, %v326_v11  ;;  %v5952_v49 = vld [vmem:[#allocation2 + $0xb1] sm:$0xff]  ;;  %v5976_v3 = vld [vmem:[#allocation2 + $0x1a] sm:$0xff] }
  0x37   : > { %536 = vst.msk [vmem:[#allocation2 + $0x109] sm:$0xff] %vm469_vm0, %v457_v20  ;;  %v458_v24 = vsel %vm394_vm10, %v362_v2, %v426_v16  ;;  %vm396_vm12 = vcmp.gt.f32.partialorder %v364_v17, 0.0  ;;  %v428_v25 = vmul.f32 0.01, %v364_v17  ;;  %v327_v26 = vmul.f32 %v5741_v5, %v288_v12  ;;  %v5955_v53 = vld [vmem:[#allocation2 + $0xc1] sm:$0xff]  ;;  %v5970_v63 = vld [vmem:[#allocation2 + $0xc9] sm:$0xff] }
  0x38   : > { %4921 = vmatmul.mubr.msk.f32.gmra.mrb[8].mxu1 %vm469_vm0, %v5878_v57  ;;  %5118 = vmatmul.mubr.msk.f32.gmra.mrb[6].mxu0 %vm469_vm0, %v5878_v57  ;;  %537 = vst.msk [vmem:[#allocation2 + $0x111] sm:$0xff] %vm469_vm0, %v458_v24  ;;  %v459_v4 = vsel %vm395_vm11, %v363_v9, %v427_v21  ;;  %vm397_vm13 = vcmp.gt.f32.partialorder %v365_v22, 0.0  ;;  %v429_v29 = vmul.f32 0.01, %v365_v22  ;;  %v328_v30 = vmul.f32 %v5741_v5, %v289_v18  ;;  %v5990_v9 = vld [vmem:[#allocation2 + $0x22] sm:$0xff]  ;;  %v5995_v15 = vld [vmem:[#allocation2 + $0x32] sm:$0xff] }
  0x39   : > { %4923 = vmatprep.mubr.msk.f32.mxu1 %vm469_vm0, %v5882_v62  ;;  %5120 = vmatprep.mubr.msk.f32.mxu0 %vm469_vm0, %v5882_v62  ;;  %538 = vst.msk [vmem:[#allocation2 + $0x121] sm:$0xff] %vm469_vm0, %v459_v4  ;;  %v460_v32 = vsel %vm396_vm12, %v364_v17, %v428_v25  ;;  %v366_v33 = vadd.f32 %v5753_v6, %v327_v26  ;;  %v5974_v2 = vld [vmem:[#allocation2 + $0xd9] sm:$0xff]  ;;  %v6017_v21 = vld [vmem:[#allocation2 + $0x4a] sm:$0xff]  ;;  %v6034_v24 = vld [vmem:[#allocation2 + $0x62] sm:$0xff] }
  0x3a   : > { %v329_v34 = vmul.f32 %v5741_v5, %v290_v23  ;;  %539 = vst.msk [vmem:[#allocation2 + $0x129] sm:$0xff] %vm469_vm0, %v460_v32  ;;  %v461_v36 = vsel %vm397_vm13, %v365_v22, %v429_v29  ;;  %v367_v37 = vadd.f32 %v5753_v6, %v328_v30  ;;  %v330_v38 = vmul.f32 %v5741_v5, %v291_v27  ;;  %v6000_v16 = vld [vmem:[%s6867_s3 + $0x38] sm:$0xff]  ;;  %v6046_v26 = vld [vmem:[#allocation2 + $0x6a] sm:$0xff]  ;;  %v6062_v29 = vld [vmem:[#allocation2 + $0x82] sm:$0xff] }
  0x3b   : > { %v331_v39 = vmul.f32 %v5741_v5, %v292_v28  ;;  %540 = vst.msk [vmem:[#allocation2 + $0x139] sm:$0xff] %vm469_vm0, %v461_v36  ;;  %vm398_vm14 = vcmp.gt.f32.partialorder %v366_v33, 0.0  ;;  %v430_v41 = vmul.f32 0.01, %v366_v33  ;;  %v332_v52 = vmul.f32 %v5741_v5, %v293_v43  ;;  %v6011_v18 = vld [vmem:[#allocation2 + $0x3a] sm:$0xff]  ;;  %v6030_v22 = vld [vmem:[#allocation2 + $0x52] sm:$0xff] }
  0x3c   : > { %4924 = vmatmul.mubr.msk.f32.gmra.mrb[10].mxu1 %vm469_vm0, %v5900_v13  ;;  %5121 = vmatmul.mubr.msk.f32.gmra.mrb[8].mxu0 %vm469_vm0, %v5900_v13  ;;  %v368_v42 = vadd.f32 %v5753_v6, %v329_v34  ;;  %vm399_vm15 = vcmp.gt.f32.partialorder %v367_v37, 0.0  ;;  %v431_v45 = vmul.f32 0.01, %v367_v37  ;;  %v369_v46 = vadd.f32 %v5753_v6, %v330_v38  ;;  %v5992_v12 = vld [vmem:[#allocation2 + $0xf1] sm:$0xff]  ;;  %v6050_v28 = vld [vmem:[#allocation2 + $0x7a] sm:$0xff]  ;;  %v549_v43 = vld [vmem:[#allocation2 + $0x8] sm:$0xff] }
  0x3d   : > { %4926 = vmatprep.mubr.msk.f32.mxu1 %vm469_vm0, %v5906_v19  ;;  %5123 = vmatprep.mubr.msk.f32.mxu0 %vm469_vm0, %v5906_v19  ;;  %v370_v47 = vadd.f32 %v5753_v6, %v331_v39  ;;  %v462_v50 = vsel %vm398_vm14, %v366_v33, %v430_v41  ;;  %v333_v59 = vmul.f32 %v5741_v5, %v294_v48  ;;  %v6009_v17 = vld [vmem:[#allocation2 + $0xf9] sm:$0xff] }
  0x3e   : > { %vm400_vm1 = vcmp.gt.f32.partialorder %v368_v42, 0.0  ;;  %v432_v51 = vmul.f32 0.01, %v368_v42  ;;  %541 = vst.msk [vmem:[#allocation2 + $0x141] sm:$0xff] %vm469_vm0, %v462_v50  ;;  %v463_v54 = vsel %vm399_vm15, %v367_v37, %v431_v45  ;;  %vm401_vm3 = vcmp.gt.f32.partialorder %v369_v46, 0.0  ;;  %6909 = vst [vmem:[#allocation4_spill] sm:$0xff] %v5992_v12 }
  0x3f   : > { %v433_v55 = vmul.f32 0.01, %v369_v46  ;;  %vm402_vm4 = vcmp.gt.f32.partialorder %v370_v47, 0.0  ;;  %542 = vst.msk [vmem:[#allocation2 + $0x151] sm:$0xff] %vm469_vm0, %v463_v54  ;;  %v434_v58 = vmul.f32 0.01, %v370_v47  ;;  %v371_v60 = vadd.f32 %v5753_v6, %v332_v52 }
  0x40   : > { %4927 = vmatmul.mubr.msk.f32.gmra.mrb[12].mxu1 %vm469_vm0, %v5926_v31  ;;  %5124 = vmatmul.mubr.msk.f32.gmra.mrb[10].mxu0 %vm469_vm0, %v5926_v31  ;;  %v464_v56 = vsel %vm400_vm1, %v368_v42, %v432_v51  ;;  %v372_v0 = vadd.f32 %v5753_v6, %v333_v59  ;;  %v5988_v6 = vld [vmem:[#allocation2 + $0xe1] sm:$0xff]  ;;  %6910 = vst [vmem:[#allocation5_spill] sm:$0xff] %v6009_v17  ;;  %v6015_v20 = vld [vmem:[#allocation2 + $0x109] sm:$0xff]  ;;  %v6066_v32 = vld [vmem:[#allocation2 + $0x92] sm:$0xff] }
  0x41   : > { %4929 = vmatprep.mubr.msk.f32.mxu1 %vm469_vm0, %v5932_v35  ;;  %5126 = vmatprep.mubr.msk.f32.mxu0 %vm469_vm0, %v5932_v35  ;;  %543 = vst.msk [vmem:[#allocation2 + $0x159] sm:$0xff] %vm469_vm0, %v464_v56  ;;  %v465_v61 = vsel %vm401_vm3, %v369_v46, %v433_v55  ;;  %v466_v5 = vsel %vm402_vm4, %v370_v47, %v434_v58  ;;  %vm403_vm5 = vcmp.gt.f32.partialorder %v371_v60, 0.0  ;;  %v435_v1 = vmul.f32 0.01, %v371_v60  ;;  %v6032_v23 = vld [vmem:[#allocation2 + $0x121] sm:$0xff]  ;;  %v6044_v25 = vld [vmem:[#allocation2 + $0x129] sm:$0xff] }
  0x42   : > { %544 = vst.msk [vmem:[#allocation2 + $0x169] sm:$0xff] %vm469_vm0, %v465_v61  ;;  %545 = vst.msk [vmem:[#allocation2 + $0x171] sm:$0xff] %vm469_vm0, %v466_v5  ;;  %vm404_vm6 = vcmp.gt.f32.partialorder %v372_v0, 0.0  ;;  %v436_v7 = vmul.f32 0.01, %v372_v0  ;;  %v6048_v27 = vld [vmem:[#allocation2 + $0x139] sm:$0xff] }
  0x43   : > { %v467_v8 = vsel %vm403_vm5, %v371_v60, %v435_v1  ;;  %6908 = vst [vmem:[#allocation3_spill] sm:$0xff] %v5988_v6  ;;  %6911 = vst [vmem:[#allocation6_spill] sm:$0xff] %v6015_v20  ;;  %v6078_v34 = vld [vmem:[#allocation2 + $0x9a] sm:$0xff]  ;;  %v6082_v37 = vld [vmem:[#allocation2 + $0xaa] sm:$0xff] }
  0x44   : > { %4930 = vmatmul.mubr.msk.f32.gmra.mrb[14].mxu1 %vm469_vm0, %v5952_v49  ;;  %5127 = vmatmul.mubr.msk.f32.gmra.mrb[12].mxu0 %vm469_vm0, %v5952_v49  ;;  %546 = vst.msk [vmem:[#allocation2 + $0x181] sm:$0xff] %vm469_vm0, %v467_v8  ;;  %v468_v11 = vsel %vm404_vm6, %v372_v0, %v436_v7  ;;  %6913 = vst [vmem:[#allocation8_spill] sm:$0xff] %v6032_v23  ;;  %v6094_v39 = vld [vmem:[#allocation2 + $0xb2] sm:$0xff]  ;;  %v548_v41 = vld [vmem:[#allocation2] sm:$0xff] }
  0x45   : > { %4932 = vmatprep.mubr.msk.f32.mxu1 %vm469_vm0, %v5955_v53  ;;  %5129 = vmatprep.mubr.msk.f32.mxu0 %vm469_vm0, %v5955_v53  ;;  %547 = vst.msk [vmem:[#allocation2 + $0x189] sm:$0xff] %vm469_vm0, %v468_v11  ;;  %6914 = vst [vmem:[#allocation9_spill] sm:$0xff] %v6044_v25  ;;  %v6060_v4 = vld [vmem:[#allocation2 + $0x141] sm:$0xff]  ;;  %v6105_v45 = vld [vmem:[#allocation2 + $0xca] sm:$0xff] }
  0x46   : > { %6915 = vst [vmem:[#allocation10_spill] sm:$0xff] %v6048_v27  ;;  %6916 = vst [vmem:[#allocation11_spill] sm:$0xff] %v6060_v4  ;;  %v6064_v30 = vld [vmem:[#allocation2 + $0x151] sm:$0xff]  ;;  %v6096_v42 = vld [vmem:[#allocation2 + $0xc2] sm:$0xff] }
  0x47   : > { %6917 = vst [vmem:[#allocation12_spill] sm:$0xff] %v6064_v30  ;;  %6921 = vst [vmem:[#allocation16_spill] sm:$0xff] %v6094_v39  ;;  %v6107_v46 = vld [vmem:[#allocation2 + $0x18] sm:$0xff]  ;;  %v6123_v50 = vld [vmem:[#allocation2 + $0x20] sm:$0xff] }
  0x48   : > { %4933 = vmatmul.mubr.msk.f32.gmra.mrb[16].mxu1 %vm469_vm0, %v5970_v63  ;;  %5130 = vmatmul.mubr.msk.f32.gmra.mrb[14].mxu0 %vm469_vm0, %v5970_v63  ;;  %v6076_v33 = vld [vmem:[#allocation2 + $0x159] sm:$0xff]  ;;  %6922 = vst [vmem:[#allocation17_spill] sm:$0xff] %v6123_v50  ;;  %v6125_v51 = vld [vmem:[#allocation2 + $0xe2] sm:$0xff]  ;;  %v6128_v52 = vld [vmem:[#allocation2 + $0x30] sm:$0xff] }
  0x49   : > { %4935 = vmatprep.mubr.msk.f32.mxu1 %vm469_vm0, %v5974_v2  ;;  %5158 = vmatprep.mubr.msk.f32.mxu0 %vm469_vm0, %v5976_v3  ;;  %6918 = vst [vmem:[#allocation13_spill] sm:$0xff] %v6076_v33  ;;  %v6080_v36 = vld [vmem:[#allocation2 + $0x169] sm:$0xff]  ;;  %v6092_v38 = vld [vmem:[#allocation2 + $0x171] sm:$0xff]  ;;  %v6109_v47 = vld [vmem:[#allocation2 + $0xda] sm:$0xff] }
  0x4a   : > { %6919 = vst [vmem:[#allocation14_spill] sm:$0xff] %v6080_v36  ;;  %6920 = vst [vmem:[#allocation15_spill] sm:$0xff] %v6092_v38  ;;  %v6117_v48 = vld [vmem:[%s6867_s3 + $0x18] sm:$0xff]  ;;  %v6145_v56 = vld [vmem:[#allocation2 + $0x48] sm:$0xff] }
  0x4b   : > { %6923 = vst [vmem:[#allocation18_spill] sm:$0xff] %v6128_v52  ;;  %v6130_v54 = vld [vmem:[#allocation2 + $0xf2] sm:$0xff]  ;;  %6925 = vst [vmem:[#allocation20_spill] sm:$0xff] %v6145_v56  ;;  %v6147_v58 = vld [vmem:[#allocation2 + $0x10a] sm:$0xff] }
  0x4c   : > { %4936 = vmatmul.mubr.msk.f32.gmra.mrb[18].mxu1 %vm469_vm0, %v5988_v6  ;;  %5159 = vmatmul.mubr.msk.f32.vlgmr.msra.gmra.mrb[0].mxu0 %vm469_vm0, %v5990_v9  ;;  %v6141_v55 = vld [vmem:[#allocation2 + $0x38] sm:$0xff]  ;;  %v6157_v59 = vld [vmem:[#allocation2 + $0x50] sm:$0xff]  ;;  %v6161_v61 = vld [vmem:[#allocation2 + $0x60] sm:$0xff] }
  0x4d   : > { %5207 = vmatpush3.msra.mxu0 %v5819_v14  ;;  %4938 = vmatprep.mubr.msk.f32.mxu1 %vm469_vm0, %v5992_v12  ;;  %v6028_v14 = vld [vmem:[#allocation2 + $0x111] sm:$0xff]  ;;  %6924 = vst [vmem:[#allocation19_spill] sm:$0xff] %v6141_v55  ;;  %6926 = vst [vmem:[#allocation21_spill] sm:$0xff] %v6157_v59  ;;  %v6163_v5 = vld [vmem:[#allocation2 + $0x122] sm:$0xff] }
  0x4e   : > { %5161 = vmatprep.mubr.msk.f32.mxu0 %vm469_vm0, %v5995_v15  ;;  %5256 = vmatprep.subr.mxu0 %v6000_v16  ;;  %6912 = vst [vmem:[#allocation7_spill] sm:$0xff] %v6028_v14  ;;  %v6159_v60 = vld [vmem:[#allocation2 + $0x112] sm:$0xff]  ;;  %6927 = vst [vmem:[#allocation22_spill] sm:$0xff] %v6161_v61  ;;  %v6173_v0 = vld [vmem:[#allocation2 + $0x68] sm:$0xff] }
  0x4f   : > { %6928 = vst [vmem:[#allocation23_spill] sm:$0xff] %v6173_v0  ;;  %v6175_v1 = vld [vmem:[#allocation2 + $0x12a] sm:$0xff]  ;;  %v6177_v7 = vld [vmem:[#allocation2 + $0x78] sm:$0xff]  ;;  %v6189_v11 = vld [vmem:[#allocation2 + $0x80] sm:$0xff] }
  0x50   : > { %4939 = vmatmul.mubr.msk.f32.gmra.mrb[20].mxu1 %vm469_vm0, %v6009_v17  ;;  %5162 = vmatmul.mubr.msk.f32.gmra.mrb[2].mxu0 %vm469_vm0, %v6011_v18  ;;  %6929 = vst [vmem:[#allocation24_spill] sm:$0xff] %v6177_v7  ;;  %v6179_v8 = vld [vmem:[#allocation2 + $0x13a] sm:$0xff]  ;;  %6930 = vst [vmem:[#allocation25_spill] sm:$0xff] %v6189_v11  ;;  %v6239_v17 = vld [vmem:[#allocation2 + $0x18a] sm:$0xff] }
  0x51   : > { %4941 = vmatprep.mubr.msk.f32.mxu1 %vm469_vm0, %v6015_v20  ;;  %5164 = vmatprep.mubr.msk.f32.mxu0 %vm469_vm0, %v6017_v21  ;;  %v6237_v20 = vld [vmem:[#allocation2 + $0xc8] sm:$0xff]  ;;  %6935 = vst [vmem:[#allocation30_spill] sm:$0xff] %v6239_v17  ;;  %v6241_v12 = vld [vmem:[#allocation2 + $0xd8] sm:$0xff]  ;;  %v6251_v6 = vld [vmem:[#allocation2 + $0xe0] sm:$0xff] }
  0x54   : > { %4942 = vmatmul.mubr.msk.f32.gmra.mrb[22].mxu1 %vm469_vm0, %v6028_v14  ;;  %5165 = vmatmul.mubr.msk.f32.gmra.mrb[4].mxu0 %vm469_vm0, %v6030_v22  ;;  %v6227_v14 = vld [vmem:[#allocation2 + $0x182] sm:$0xff] }
  0x55   : > { %4944 = vmatprep.mubr.msk.f32.mxu1 %vm469_vm0, %v6032_v23  ;;  %5167 = vmatprep.mubr.msk.f32.mxu0 %vm469_vm0, %v6034_v24  ;;  %v6225_v23 = vld [vmem:[#allocation2 + $0xc0] sm:$0xff]  ;;  %6934 = vst [vmem:[#allocation29_spill] sm:$0xff] %v6227_v14 }
  0x58   : > { %4945 = vmatmul.mubr.msk.f32.gmra.mrb[24].mxu1 %vm469_vm0, %v6044_v25  ;;  %5168 = vmatmul.mubr.msk.f32.gmra.mrb[6].mxu0 %vm469_vm0, %v6046_v26  ;;  %v6223_v25 = vld [vmem:[#allocation2 + $0x172] sm:$0xff] }
  0x59   : > { %4947 = vmatprep.mubr.msk.f32.mxu1 %vm469_vm0, %v6048_v27  ;;  %5170 = vmatprep.mubr.msk.f32.mxu0 %vm469_vm0, %v6050_v28  ;;  %v6221_v27 = vld [vmem:[#allocation2 + $0xb0] sm:$0xff] }
  0x5a   : > { %6933 = vst [vmem:[#allocation28_spill] sm:$0xff] %v6221_v27 }
  0x5c   : > { %4948 = vmatmul.mubr.msk.f32.gmra.mrb[26].mxu1 %vm469_vm0, %v6060_v4  ;;  %5171 = vmatmul.mubr.msk.f32.gmra.mrb[8].mxu0 %vm469_vm0, %v6062_v29  ;;  %v6211_v4 = vld [vmem:[#allocation2 + $0x16a] sm:$0xff] }
  0x5d   : > { %4950 = vmatprep.mubr.msk.f32.mxu1 %vm469_vm0, %v6064_v30  ;;  %5173 = vmatprep.mubr.msk.f32.mxu0 %vm469_vm0, %v6066_v32  ;;  %v6209_v30 = vld [vmem:[#allocation2 + $0xa8] sm:$0xff] }
  0x60   : > { %4951 = vmatmul.mubr.msk.f32.gmra.mrb[28].mxu1 %vm469_vm0, %v6076_v33  ;;  %5174 = vmatmul.mubr.msk.f32.gmra.mrb[10].mxu0 %vm469_vm0, %v6078_v34  ;;  %v6207_v33 = vld [vmem:[#allocation2 + $0x15a] sm:$0xff] }
  0x61   : > { %4953 = vmatprep.mubr.msk.f32.mxu1 %vm469_vm0, %v6080_v36  ;;  %5176 = vmatprep.mubr.msk.f32.mxu0 %vm469_vm0, %v6082_v37  ;;  %v6205_v36 = vld [vmem:[#allocation2 + $0x98] sm:$0xff] }
  0x62   : > { %6932 = vst [vmem:[#allocation27_spill] sm:$0xff] %v6205_v36 }
  0x64   : > { %4954 = vmatmul.mubr.msk.f32.gmra.mrb[30].mxu1 %vm469_vm0, %v6092_v38  ;;  %5177 = vmatmul.mubr.msk.f32.gmra.mrb[12].mxu0 %vm469_vm0, %v6094_v39  ;;  %v6195_v38 = vld [vmem:[#allocation2 + $0x152] sm:$0xff] }
  0x65   : > { %4958 = vmatprep.mubr.msk.f32.mxu1 %vm469_vm0, %v548_v41  ;;  %5179 = vmatprep.mubr.msk.f32.mxu0 %vm469_vm0, %v6096_v42  ;;  %v6191_v41 = vld [vmem:[#allocation2 + $0x142] sm:$0xff] }
  0x68   : > { %4959 = vmatmul.mubr.msk.f32.vlgmr.msra.gmra.mrb[0].mxu1 %vm469_vm0, %v549_v43  ;;  %5180 = vmatmul.mubr.msk.f32.gmra.mrb[14].mxu0 %vm469_vm0, %v6105_v45  ;;  %v6193_v43 = vld [vmem:[#allocation2 + $0x90] sm:$0xff] }
  0x69   : > { %4961 = vmatprep.mubr.msk.f32.mxu1 %vm469_vm0, %v6107_v46  ;;  %5182 = vmatprep.mubr.msk.f32.mxu0 %vm469_vm0, %v6109_v47  ;;  %6931 = vst [vmem:[#allocation26_spill] sm:$0xff] %v6193_v43 }
  0x6a   : > { %5007 = vmatpush3.msra.mxu1 %v5761_v10  ;;  %v6143_v10 = vld [vmem:[#allocation2 + $0xfa] sm:$0xff] }
  0x6b   : > { %5056 = vmatprep.subr.mxu1 %v6117_v48 }
  0x6c   : > { %4962 = vmatmul.mubr.msk.f32.gmra.mrb[2].mxu1 %vm469_vm0, %v6123_v50  ;;  %5183 = vmatmul.mubr.msk.f32.gmra.mrb[16].mxu0 %vm469_vm0, %v6125_v51  ;;  %v6258_v50 = vld [vmem:[%s6867_s3 + $0x40] sm:$0xff] }
  0x6d   : > { %4964 = vmatprep.mubr.msk.f32.mxu1 %vm469_vm0, %v6128_v52  ;;  %5185 = vmatprep.mubr.msk.f32.mxu0 %vm469_vm0, %v6130_v54 }
  0x70   : > { %4965 = vmatmul.mubr.msk.f32.gmra.mrb[4].mxu1 %vm469_vm0, %v6141_v55  ;;  %5186 = vmatmul.mubr.msk.f32.gmra.mrb[18].mxu0 %vm469_vm0, %v6143_v10 }
  0x71   : > { %4967 = vmatprep.mubr.msk.f32.mxu1 %vm469_vm0, %v6145_v56  ;;  %5188 = vmatprep.mubr.msk.f32.mxu0 %vm469_vm0, %v6147_v58 }
  0x74   : > { %4968 = vmatmul.mubr.msk.f32.gmra.mrb[6].mxu1 %vm469_vm0, %v6157_v59  ;;  %5189 = vmatmul.mubr.msk.f32.gmra.mrb[20].mxu0 %vm469_vm0, %v6159_v60 }
  0x75   : > { %4970 = vmatprep.mubr.msk.f32.mxu1 %vm469_vm0, %v6161_v61  ;;  %5191 = vmatprep.mubr.msk.f32.mxu0 %vm469_vm0, %v6163_v5 }
  0x78   : > { %4971 = vmatmul.mubr.msk.f32.gmra.mrb[8].mxu1 %vm469_vm0, %v6173_v0  ;;  %5192 = vmatmul.mubr.msk.f32.gmra.mrb[22].mxu0 %vm469_vm0, %v6175_v1 }
  0x79   : > { %4973 = vmatprep.mubr.msk.f32.mxu1 %vm469_vm0, %v6177_v7  ;;  %5194 = vmatprep.mubr.msk.f32.mxu0 %vm469_vm0, %v6179_v8 }
  0x7c   : > { %4974 = vmatmul.mubr.msk.f32.gmra.mrb[10].mxu1 %vm469_vm0, %v6189_v11  ;;  %5195 = vmatmul.mubr.msk.f32.gmra.mrb[24].mxu0 %vm469_vm0, %v6191_v41 }
  0x7d   : > { %4976 = vmatprep.mubr.msk.f32.mxu1 %vm469_vm0, %v6193_v43  ;;  %5197 = vmatprep.mubr.msk.f32.mxu0 %vm469_vm0, %v6195_v38 }
  0x80   : > { %4977 = vmatmul.mubr.msk.f32.gmra.mrb[12].mxu1 %vm469_vm0, %v6205_v36  ;;  %5198 = vmatmul.mubr.msk.f32.gmra.mrb[26].mxu0 %vm469_vm0, %v6207_v33 }
  0x81   : > { %4979 = vmatprep.mubr.msk.f32.mxu1 %vm469_vm0, %v6209_v30  ;;  %5200 = vmatprep.mubr.msk.f32.mxu0 %vm469_vm0, %v6211_v4 }
  0x84   : > { %4980 = vmatmul.mubr.msk.f32.gmra.mrb[14].mxu1 %vm469_vm0, %v6221_v27  ;;  %5201 = vmatmul.mubr.msk.f32.gmra.mrb[28].mxu0 %vm469_vm0, %v6223_v25 }
  0x85   : > { %4982 = vmatprep.mubr.msk.f32.mxu1 %vm469_vm0, %v6225_v23  ;;  %5203 = vmatprep.mubr.msk.f32.mxu0 %vm469_vm0, %v6227_v14  ;;  %v6253_v14 = vld [vmem:[#allocation2 + $0xf0] sm:$0xff] }
  0x88   : > { %4983 = vmatmul.mubr.msk.f32.gmra.mrb[16].mxu1 %vm469_vm0, %v6237_v20  ;;  %5204 = vmatmul.mubr.msk.f32.gmra.mrb[30].mxu0 %vm469_vm0, %v6239_v17  ;;  %v6267_v17 = vld [vmem:[#allocation2 + $0xf8] sm:$0xff] }
  0x89   : > { %4985 = vmatprep.mubr.msk.f32.mxu1 %vm469_vm0, %v6241_v12  ;;  %5208 = vmatprep.mubr.msk.f32.mxu0 %vm469_vm0, %v6128_v52  ;;  %v6271_v52 = vld [vmem:[#allocation2 + $0x108] sm:$0xff] }
  0x8c   : > { %4986 = vmatmul.mubr.msk.f32.gmra.mrb[18].mxu1 %vm469_vm0, %v6251_v6  ;;  %5209 = vmatmul.mubr.msk.f32.vlgmr.msra.gmra.mrb[0].mxu0 %vm469_vm0, %v6141_v55  ;;  %v6284_v55 = vld [vmem:[#allocation2 + $0x120] sm:$0xff] }
  0x8d   : > { %5257 = vmatpush3.msra.mxu0 %v6000_v16  ;;  %4988 = vmatprep.mubr.msk.f32.mxu1 %vm469_vm0, %v6253_v14  ;;  %v6282_v16 = vld [vmem:[#allocation2 + $0x110] sm:$0xff] }
  0x8e   : > { %5211 = vmatprep.mubr.msk.f32.mxu0 %vm469_vm0, %v6145_v56  ;;  %5306 = vmatprep.subr.mxu0 %v6258_v50  ;;  %v6296_v56 = vld [vmem:[#allocation2 + $0x138] sm:$0xff] }
  0x90   : > { %4989 = vmatmul.mubr.msk.f32.gmra.mrb[20].mxu1 %vm469_vm0, %v6267_v17  ;;  %5212 = vmatmul.mubr.msk.f32.gmra.mrb[2].mxu0 %vm469_vm0, %v6157_v59  ;;  %v6294_v59 = vld [vmem:[#allocation2 + $0x128] sm:$0xff] }
  0x91   : > { %4991 = vmatprep.mubr.msk.f32.mxu1 %vm469_vm0, %v6271_v52  ;;  %5214 = vmatprep.mubr.msk.f32.mxu0 %vm469_vm0, %v6161_v61  ;;  %v6308_v61 = vld [vmem:[#allocation2 + $0x150] sm:$0xff] }
  0x94   : > { %4992 = vmatmul.mubr.msk.f32.gmra.mrb[22].mxu1 %vm469_vm0, %v6282_v16  ;;  %5215 = vmatmul.mubr.msk.f32.gmra.mrb[4].mxu0 %vm469_vm0, %v6173_v0  ;;  %v6306_v0 = vld [vmem:[#allocation2 + $0x140] sm:$0xff] }
  0x95   : > { %4994 = vmatprep.mubr.msk.f32.mxu1 %vm469_vm0, %v6284_v55  ;;  %5217 = vmatprep.mubr.msk.f32.mxu0 %vm469_vm0, %v6177_v7  ;;  %v6320_v7 = vld [vmem:[#allocation2 + $0x168] sm:$0xff] }
  0x98   : > { %4995 = vmatmul.mubr.msk.f32.gmra.mrb[24].mxu1 %vm469_vm0, %v6294_v59  ;;  %5218 = vmatmul.mubr.msk.f32.gmra.mrb[6].mxu0 %vm469_vm0, %v6189_v11  ;;  %v6318_v11 = vld [vmem:[#allocation2 + $0x158] sm:$0xff] }
  0x99   : > { %4997 = vmatprep.mubr.msk.f32.mxu1 %vm469_vm0, %v6296_v56  ;;  %5220 = vmatprep.mubr.msk.f32.mxu0 %vm469_vm0, %v6193_v43  ;;  %v1257_v43 = vld [vmem:[#allocation2 + $0x2] sm:$0xff] }
  0x9c   : > { %4998 = vmatmul.mubr.msk.f32.gmra.mrb[26].mxu1 %vm469_vm0, %v6306_v0  ;;  %5221 = vmatmul.mubr.msk.f32.gmra.mrb[8].mxu0 %vm469_vm0, %v6205_v36  ;;  %v6330_v36 = vld [vmem:[#allocation2 + $0x170] sm:$0xff] }
  0x9d   : > { %5000 = vmatprep.mubr.msk.f32.mxu1 %vm469_vm0, %v6308_v61  ;;  %5223 = vmatprep.mubr.msk.f32.mxu0 %vm469_vm0, %v6209_v30  ;;  %6936 = vst [vmem:[#allocation31_spill] sm:$0xff] %v6330_v36 }
  0xa0   : > { %5001 = vmatmul.mubr.msk.f32.gmra.mrb[28].mxu1 %vm469_vm0, %v6318_v11  ;;  %5224 = vmatmul.mubr.msk.f32.gmra.mrb[10].mxu0 %vm469_vm0, %v6221_v27  ;;  %v1258_v27 = vld [vmem:[#allocation2 + $0xa] sm:$0xff] }
  0xa1   : > { %5003 = vmatprep.mubr.msk.f32.mxu1 %vm469_vm0, %v6320_v7  ;;  %5226 = vmatprep.mubr.msk.f32.mxu0 %vm469_vm0, %v6225_v23 }
  0xa4   : > { %5004 = vmatmul.mubr.msk.f32.gmra.mrb[30].mxu1 %vm469_vm0, %v6330_v36  ;;  %5227 = vmatmul.mubr.msk.f32.gmra.mrb[12].mxu0 %vm469_vm0, %v6237_v20 }
  0xa5   : > { %5008 = vmatprep.mubr.msk.f32.mxu1 %vm469_vm0, %v1257_v43  ;;  %5229 = vmatprep.mubr.msk.f32.mxu0 %vm469_vm0, %v6241_v12  ;;  %v6350_v43 = vld [vmem:[%s6867_s3 + $0x20] sm:$0xff] }
  0xa8   : > { %5009 = vmatmul.mubr.msk.f32.vlgmr.msra.gmra.mrb[0].mxu1 %vm469_vm0, %v1258_v27  ;;  %5230 = vmatmul.mubr.msk.f32.gmra.mrb[14].mxu0 %vm469_vm0, %v6251_v6  ;;  %v2836_v27 = vld [vmem:[#allocation2 + $0x198] sm:$0xff] }
  0xa9   : > { %5011 = vmatprep.mubr.msk.f32.mxu1 %vm469_vm0, %v5976_v3  ;;  %5232 = vmatprep.mubr.msk.f32.mxu0 %vm469_vm0, %v6253_v14  ;;  %v6393_v3 = vld [vmem:[#allocation2 + $0x180] sm:$0xff] }
  0xaa   : > { %5057 = vmatpush3.msra.mxu1 %v6117_v48  ;;  %6937 = vst [vmem:[#allocation32_spill] sm:$0xff] %v6393_v3  ;;  %v2837_v48 = vld [vmem:[#allocation2 + $0x1a0] sm:$0xff] }
  0xab   : > { %5356 = vmatprep.subr.mxu1 %v6350_v43 }
  0xac   : > { %5012 = vmatmul.mubr.msk.f32.gmra.mrb[2].mxu1 %vm469_vm0, %v5990_v9  ;;  %5233 = vmatmul.mubr.msk.f32.gmra.mrb[16].mxu0 %vm469_vm0, %v6267_v17  ;;  %v6403_v9 = vld [vmem:[#allocation2 + $0x188] sm:$0xff] }
  0xad   : > { %5014 = vmatprep.mubr.msk.f32.mxu1 %vm469_vm0, %v5995_v15  ;;  %5235 = vmatprep.mubr.msk.f32.mxu0 %vm469_vm0, %v6271_v52 }
  0xb0   : > { %5015 = vmatmul.mubr.msk.f32.gmra.mrb[4].mxu1 %vm469_vm0, %v6011_v18  ;;  %5236 = vmatmul.mubr.msk.f32.gmra.mrb[18].mxu0 %vm469_vm0, %v6282_v16 }
  0xb1   : > { %5017 = vmatprep.mubr.msk.f32.mxu1 %vm469_vm0, %v6017_v21  ;;  %5238 = vmatprep.mubr.msk.f32.mxu0 %vm469_vm0, %v6284_v55 }
  0xb4   : > { %5018 = vmatmul.mubr.msk.f32.gmra.mrb[6].mxu1 %vm469_vm0, %v6030_v22  ;;  %5239 = vmatmul.mubr.msk.f32.gmra.mrb[20].mxu0 %vm469_vm0, %v6294_v59 }
  0xb5   : > { %5020 = vmatprep.mubr.msk.f32.mxu1 %vm469_vm0, %v6034_v24  ;;  %5241 = vmatprep.mubr.msk.f32.mxu0 %vm469_vm0, %v6296_v56 }
  0xb8   : > { %5021 = vmatmul.mubr.msk.f32.gmra.mrb[8].mxu1 %vm469_vm0, %v6046_v26  ;;  %5242 = vmatmul.mubr.msk.f32.gmra.mrb[22].mxu0 %vm469_vm0, %v6306_v0 }
  0xb9   : > { %5023 = vmatprep.mubr.msk.f32.mxu1 %vm469_vm0, %v6050_v28  ;;  %5244 = vmatprep.mubr.msk.f32.mxu0 %vm469_vm0, %v6308_v61 }
  0xbc   : > { %5024 = vmatmul.mubr.msk.f32.gmra.mrb[10].mxu1 %vm469_vm0, %v6062_v29  ;;  %5245 = vmatmul.mubr.msk.f32.gmra.mrb[24].mxu0 %vm469_vm0, %v6318_v11 }
  0xbd   : > { %5026 = vmatprep.mubr.msk.f32.mxu1 %vm469_vm0, %v6066_v32  ;;  %5247 = vmatprep.mubr.msk.f32.mxu0 %vm469_vm0, %v6320_v7 }
  0xc0   : > { %5027 = vmatmul.mubr.msk.f32.gmra.mrb[12].mxu1 %vm469_vm0, %v6078_v34  ;;  %5248 = vmatmul.mubr.msk.f32.gmra.mrb[26].mxu0 %vm469_vm0, %v6330_v36  ;;  %v3193_v36 = vld [vmem:[#allocation2 + $0x31] sm:$0xff] }
  0xc1   : > { %5029 = vmatprep.mubr.msk.f32.mxu1 %vm469_vm0, %v6082_v37  ;;  %5250 = vmatprep.mubr.msk.f32.mxu0 %vm469_vm0, %v6393_v3  ;;  %v3194_v3 = vld [vmem:[#allocation2 + $0x39] sm:$0xff] }
  0xc4   : > { %5030 = vmatmul.mubr.msk.f32.gmra.mrb[14].mxu1 %vm469_vm0, %v6094_v39  ;;  %5251 = vmatmul.mubr.msk.f32.gmra.mrb[28].mxu0 %vm469_vm0, %v6403_v9  ;;  %v3195_v39 = vld [vmem:[#allocation2 + $0x49] sm:$0xff] }
  0xc5   : > { %5032 = vmatprep.mubr.msk.f32.mxu1 %vm469_vm0, %v6096_v42  ;;  %5253 = vmatprep.mubr.msk.f32.mxu0 %vm469_vm0, %v2836_v27  ;;  %v6956_v27 = vld [vmem:[#allocation26_spill] sm:$0xff] }
  0xc8   : > { %5033 = vmatmul.mubr.msk.f32.gmra.mrb[16].mxu1 %vm469_vm0, %v6105_v45  ;;  %5254 = vmatmul.mubr.msk.f32.gmra.mrb[30].mxu0 %vm469_vm0, %v2837_v48  ;;  %v6957_v48 = vld [vmem:[#allocation12_spill] sm:$0xff] }
  0xc9   : > { %5035 = vmatprep.mubr.msk.f32.mxu1 %vm469_vm0, %v6109_v47  ;;  %5258 = vmatprep.mubr.msk.f32.mxu0 %vm469_vm0, %v3193_v36  ;;  %v6950_v36 = vld [vmem:[#allocation23_spill] sm:$0xff] }
  0xcc   : > { %5036 = vmatmul.mubr.msk.f32.gmra.mrb[18].mxu1 %vm469_vm0, %v6125_v51  ;;  %5259 = vmatmul.mubr.msk.f32.vlgmr.msra.gmra.mrb[0].mxu0 %vm469_vm0, %v3194_v3  ;;  %v6955_v3 = vld [vmem:[#allocation11_spill] sm:$0xff] }
  0xcd   : > { %5307 = vmatpush3.msra.mxu0 %v6258_v50  ;;  %5038 = vmatprep.mubr.msk.f32.mxu1 %vm469_vm0, %v6130_v54  ;;  %v6953_v50 = vld [vmem:[#allocation10_spill] sm:$0xff] }
  0xce   : > { %5261 = vmatprep.mubr.msk.f32.mxu0 %vm469_vm0, %v3195_v39  ;;  %v6951_v39 = vld [vmem:[#allocation9_spill] sm:$0xff] }
  0xd0   : > { %5039 = vmatmul.mubr.msk.f32.gmra.mrb[20].mxu1 %vm469_vm0, %v6143_v10  ;;  %5262 = vmatmul.mubr.msk.f32.gmra.mrb[2].mxu0 %vm469_vm0, %v5853_v40  ;;  %v6938_v40 = vld [vmem:[#allocation17_spill] sm:$0xff] }
  0xd1   : > { %5041 = vmatprep.mubr.msk.f32.mxu1 %vm469_vm0, %v6147_v58  ;;  %5264 = vmatprep.mubr.msk.f32.mxu0 %vm469_vm0, %v5858_v44  ;;  %v6939_v44 = vld [vmem:[#allocation3_spill] sm:$0xff] }
  0xd4   : > { %5042 = vmatmul.mubr.msk.f32.gmra.mrb[22].mxu1 %vm469_vm0, %v6159_v60  ;;  %5265 = vmatmul.mubr.msk.f32.gmra.mrb[4].mxu0 %vm469_vm0, %v5878_v57  ;;  %v6940_v57 = vld [vmem:[#allocation18_spill] sm:$0xff] }
  0xd5   : > { %5044 = vmatprep.mubr.msk.f32.mxu1 %vm469_vm0, %v6163_v5  ;;  %5267 = vmatprep.mubr.msk.f32.mxu0 %vm469_vm0, %v5882_v62  ;;  %v6941_v62 = vld [vmem:[#allocation4_spill] sm:$0xff] }
  0xd8   : > { %5045 = vmatmul.mubr.msk.f32.gmra.mrb[24].mxu1 %vm469_vm0, %v6175_v1  ;;  %5268 = vmatmul.mubr.msk.f32.gmra.mrb[6].mxu0 %vm469_vm0, %v5900_v13  ;;  %v6942_v13 = vld [vmem:[#allocation19_spill] sm:$0xff] }
  0xd9   : > { %5047 = vmatprep.mubr.msk.f32.mxu1 %vm469_vm0, %v6179_v8  ;;  %5270 = vmatprep.mubr.msk.f32.mxu0 %vm469_vm0, %v5906_v19  ;;  %v6943_v19 = vld [vmem:[#allocation5_spill] sm:$0xff] }
  0xdc   : > { %5048 = vmatmul.mubr.msk.f32.gmra.mrb[26].mxu1 %vm469_vm0, %v6191_v41  ;;  %5271 = vmatmul.mubr.msk.f32.gmra.mrb[8].mxu0 %vm469_vm0, %v5926_v31  ;;  %v6944_v31 = vld [vmem:[#allocation20_spill] sm:$0xff] }
  0xdd   : > { %5050 = vmatprep.mubr.msk.f32.mxu1 %vm469_vm0, %v6195_v38  ;;  %5273 = vmatprep.mubr.msk.f32.mxu0 %vm469_vm0, %v5932_v35  ;;  %v6945_v35 = vld [vmem:[#allocation6_spill] sm:$0xff] }
  0xe0   : > { %5051 = vmatmul.mubr.msk.f32.gmra.mrb[28].mxu1 %vm469_vm0, %v6207_v33  ;;  %5274 = vmatmul.mubr.msk.f32.gmra.mrb[10].mxu0 %vm469_vm0, %v5952_v49  ;;  %v6946_v49 = vld [vmem:[#allocation21_spill] sm:$0xff] }
  0xe1   : > { %5053 = vmatprep.mubr.msk.f32.mxu1 %vm469_vm0, %v6211_v4  ;;  %5276 = vmatprep.mubr.msk.f32.mxu0 %vm469_vm0, %v5955_v53  ;;  %v6947_v53 = vld [vmem:[#allocation7_spill] sm:$0xff] }
  0xe4   : > { %5054 = vmatmul.mubr.msk.f32.gmra.mrb[30].mxu1 %vm469_vm0, %v6223_v25  ;;  %5277 = vmatmul.mubr.msk.f32.gmra.mrb[12].mxu0 %vm469_vm0, %v5970_v63  ;;  %v6948_v63 = vld [vmem:[#allocation22_spill] sm:$0xff] }
  0xe5   : > { %5058 = vmatprep.mubr.msk.f32.mxu1 %vm469_vm0, %v6107_v46  ;;  %5279 = vmatprep.mubr.msk.f32.mxu0 %vm469_vm0, %v5974_v2  ;;  %v6949_v2 = vld [vmem:[#allocation8_spill] sm:$0xff] }
  0xe6   : > { %v6952_v46 = vld [vmem:[#allocation24_spill] sm:$0xff] }
  0xe8   : > { %5059 = vmatmul.mubr.msk.f32.vlgmr.msra.gmra.mrb[0].mxu1 %vm469_vm0, %v6938_v40  ;;  %5280 = vmatmul.mubr.msk.f32.gmra.mrb[14].mxu0 %vm469_vm0, %v6939_v44  ;;  %v6958_v40 = vld [vmem:[#allocation27_spill] sm:$0xff]  ;;  %v6959_v44 = vld [vmem:[#allocation13_spill] sm:$0xff] }
  0xe9   : > { %5061 = vmatprep.mubr.msk.f32.mxu1 %vm469_vm0, %v6940_v57  ;;  %5282 = vmatprep.mubr.msk.f32.mxu0 %vm469_vm0, %v6941_v62  ;;  %v6960_v57 = vld [vmem:[#allocation14_spill] sm:$0xff] }
  0xea   : > { %5357 = vmatpush3.msra.mxu1 %v6350_v43  ;;  %v6954_v43 = vld [vmem:[#allocation25_spill] sm:$0xff] }
  0xeb   : > { %v6522_v62 = vld [vmem:[#allocation2 + $0x181] sm:$0xff] }
  0xec   : > { %5062 = vmatmul.mubr.msk.f32.gmra.mrb[2].mxu1 %vm469_vm0, %v6942_v13  ;;  %5283 = vmatmul.mubr.msk.f32.gmra.mrb[16].mxu0 %vm469_vm0, %v6943_v19  ;;  %v6961_v13 = vld [vmem:[#allocation28_spill] sm:$0xff]  ;;  %v6962_v19 = vld [vmem:[#allocation15_spill] sm:$0xff] }
  0xed   : > { %5064 = vmatprep.mubr.msk.f32.mxu1 %vm469_vm0, %v6944_v31  ;;  %5285 = vmatprep.mubr.msk.f32.mxu0 %vm469_vm0, %v6945_v35  ;;  %v6532_v31 = vld [vmem:[#allocation2 + $0x189] sm:$0xff]  ;;  %v3224_v35 = vld [vmem:[#allocation2 + $0x1a1] sm:$0xff] }
  0xf0   : > { %5065 = vmatmul.mubr.msk.f32.gmra.mrb[4].mxu1 %vm469_vm0, %v6946_v49  ;;  %5286 = vmatmul.mubr.msk.f32.gmra.mrb[18].mxu0 %vm469_vm0, %v6947_v53 }
  0xf1   : > { %5067 = vmatprep.mubr.msk.f32.mxu1 %vm469_vm0, %v6948_v63  ;;  %5288 = vmatprep.mubr.msk.f32.mxu0 %vm469_vm0, %v6949_v2 }
  0xf4   : > { %5068 = vmatmul.mubr.msk.f32.gmra.mrb[6].mxu1 %vm469_vm0, %v6950_v36  ;;  %5289 = vmatmul.mubr.msk.f32.gmra.mrb[20].mxu0 %vm469_vm0, %v6951_v39 }
  0xf5   : > { %5070 = vmatprep.mubr.msk.f32.mxu1 %vm469_vm0, %v6952_v46  ;;  %5291 = vmatprep.mubr.msk.f32.mxu0 %vm469_vm0, %v6953_v50 }
  0xf8   : > { %5071 = vmatmul.mubr.msk.f32.gmra.mrb[8].mxu1 %vm469_vm0, %v6954_v43  ;;  %5292 = vmatmul.mubr.msk.f32.gmra.mrb[22].mxu0 %vm469_vm0, %v6955_v3 }
  0xf9   : > { %5073 = vmatprep.mubr.msk.f32.mxu1 %vm469_vm0, %v6956_v27  ;;  %5294 = vmatprep.mubr.msk.f32.mxu0 %vm469_vm0, %v6957_v48 }
  0xfc   : > { %5074 = vmatmul.mubr.msk.f32.gmra.mrb[10].mxu1 %vm469_vm0, %v6958_v40  ;;  %5295 = vmatmul.mubr.msk.f32.gmra.mrb[24].mxu0 %vm469_vm0, %v6959_v44 }
  0xfd   : > { %5076 = vmatprep.mubr.msk.f32.mxu1 %vm469_vm0, %v6209_v30  ;;  %5297 = vmatprep.mubr.msk.f32.mxu0 %vm469_vm0, %v6960_v57  ;;  %v3223_v30 = vld [vmem:[#allocation2 + $0x199] sm:$0xff] }
 0x100   : > { %5077 = vmatmul.mubr.msk.f32.gmra.mrb[12].mxu1 %vm469_vm0, %v6961_v13  ;;  %5298 = vmatmul.mubr.msk.f32.gmra.mrb[26].mxu0 %vm469_vm0, %v6962_v19 }
 0x101   : > { %5079 = vmatprep.mubr.msk.f32.mxu1 %vm469_vm0, %v6225_v23  ;;  %5300 = vmatprep.mubr.msk.f32.mxu0 %vm469_vm0, %v6522_v62  ;;  %v2053_v23 = vld [vmem:[#allocation2 + $0x121] sm:$0xff] }
 0x104   : > { %5080 = vmatmul.mubr.msk.f32.gmra.mrb[14].mxu1 %vm469_vm0, %v6237_v20  ;;  %5301 = vmatmul.mubr.msk.f32.gmra.mrb[28].mxu0 %vm469_vm0, %v6532_v31  ;;  %v2049_v20 = vld [vmem:[#allocation2 + $0xf1] sm:$0xff] }
 0x105   : > { %5082 = vmatprep.mubr.msk.f32.mxu1 %vm469_vm0, %v6241_v12  ;;  %5303 = vmatprep.mubr.msk.f32.mxu0 %vm469_vm0, %v3223_v30  ;;  %v6964_v12 = vld [vmem:[#allocation16_spill] sm:$0xff] }
 0x108   : > { %5083 = vmatmul.mubr.msk.f32.gmra.mrb[16].mxu1 %vm469_vm0, %v6251_v6  ;;  %5304 = vmatmul.mubr.msk.f32.gmra.mrb[30].mxu0 %vm469_vm0, %v3224_v35  ;;  %v6963_v6 = vld [vmem:[#allocation31_spill] sm:$0xff] }
 0x109   : > { %5085 = vmatprep.mubr.msk.f32.mxu1 %vm469_vm0, %v6253_v14  ;;  %5308 = vmatprep.mubr.msk.f32.mxu0 %vm469_vm0, %v5995_v15  ;;  %v6965_v15 = vld [vmem:[#allocation32_spill] sm:$0xff]  ;;  %v2051_v14 = vld [vmem:[#allocation2 + $0x109] sm:$0xff] }
 0x10c   : > { %5086 = vmatmul.mubr.msk.f32.gmra.mrb[18].mxu1 %vm469_vm0, %v6267_v17  ;;  %5309 = vmatmul.mubr.msk.f32.vlgmr.msra.gmra.mrb[0].mxu0 %vm469_vm0, %v6011_v18  ;;  %v2047_v17 = vld [vmem:[#allocation2 + $0xd9] sm:$0xff]  ;;  %v2048_v18 = vld [vmem:[#allocation2 + $0xe1] sm:$0xff] }
 0x10d   : > { %5088 = vmatprep.mubr.msk.f32.mxu1 %vm469_vm0, %v6271_v52  ;;  %5311 = vmatprep.mubr.msk.f32.mxu0 %vm469_vm0, %v6017_v21  ;;  %v2050_v21 = vld [vmem:[#allocation2 + $0xf9] sm:$0xff] }
 0x110   : > { %5089 = vmatmul.mubr.msk.f32.gmra.mrb[20].mxu1 %vm469_vm0, %v6282_v16  ;;  %5312 = vmatmul.mubr.msk.f32.gmra.mrb[2].mxu0 %vm469_vm0, %v6030_v22  ;;  %v2052_v22 = vld [vmem:[#allocation2 + $0x111] sm:$0xff] }
 0x111   : > { %5091 = vmatprep.mubr.msk.f32.mxu1 %vm469_vm0, %v6284_v55  ;;  %5314 = vmatprep.mubr.msk.f32.mxu0 %vm469_vm0, %v6034_v24  ;;  %v6966_v24 = vld [vmem:[#allocation29_spill] sm:$0xff] }
 0x114   : > { %5092 = vmatmul.mubr.msk.f32.gmra.mrb[22].mxu1 %vm469_vm0, %v6294_v59  ;;  %5315 = vmatmul.mubr.msk.f32.gmra.mrb[4].mxu0 %vm469_vm0, %v6046_v26  ;;  %v3610_v26 = vld [vmem:[#allocation2 + $0x19a] sm:$0xff] }
 0x115   : > { %5094 = vmatprep.mubr.msk.f32.mxu1 %vm469_vm0, %v6296_v56  ;;  %5317 = vmatprep.mubr.msk.f32.mxu0 %vm469_vm0, %v6050_v28  ;;  %v6967_v28 = vld [vmem:[#allocation30_spill] sm:$0xff]  ;;  %v6678_v59 = vld [vmem:[%s6868_s4] ss:$0 sm:$0xff] }
 0x118   : > { %5095 = vmatmul.mubr.msk.f32.gmra.mrb[24].mxu1 %vm469_vm0, %v6306_v0  ;;  %5318 = vmatmul.mubr.msk.f32.gmra.mrb[6].mxu0 %vm469_vm0, %v6062_v29 }
 0x119   : > { %5097 = vmatprep.mubr.msk.f32.mxu1 %vm469_vm0, %v6308_v61  ;;  %5320 = vmatprep.mubr.msk.f32.mxu0 %vm469_vm0, %v6066_v32 }
 0x11c   : > { %5098 = vmatmul.mubr.msk.f32.gmra.mrb[26].mxu1 %vm469_vm0, %v6318_v11  ;;  %5321 = vmatmul.mubr.msk.f32.gmra.mrb[8].mxu0 %vm469_vm0, %v6078_v34 }
 0x11d   : > { %5100 = vmatprep.mubr.msk.f32.mxu1 %vm469_vm0, %v6320_v7  ;;  %5323 = vmatprep.mubr.msk.f32.mxu0 %vm469_vm0, %v6082_v37 }
 0x120   : > { %5101 = vmatmul.mubr.msk.f32.gmra.mrb[28].mxu1 %vm469_vm0, %v6963_v6  ;;  %5324 = vmatmul.mubr.msk.f32.gmra.mrb[10].mxu0 %vm469_vm0, %v6964_v12 }
 0x121   : > { %5103 = vmatprep.mubr.msk.f32.mxu1 %vm469_vm0, %v6965_v15  ;;  %5326 = vmatprep.mubr.msk.f32.mxu0 %vm469_vm0, %v6096_v42 }
 0x124   : > { %5104 = vmatmul.mubr.msk.f32.gmra.mrb[30].mxu1 %vm469_vm0, %v6403_v9  ;;  %5327 = vmatmul.mubr.msk.f32.gmra.mrb[12].mxu0 %vm469_vm0, %v6105_v45 }
 0x125   : > { %5132 = vmatprep.mubr.msk.f32.mxu1 %vm469_vm0, %v2047_v17  ;;  %5329 = vmatprep.mubr.msk.f32.mxu0 %vm469_vm0, %v6109_v47 }
 0x128   : > { %5133 = vmatmul.mubr.msk.f32.vlgmr.msra.gmra.mrb[16].mxu1 %vm469_vm0, %v2048_v18  ;;  %5330 = vmatmul.mubr.msk.f32.gmra.mrb[14].mxu0 %vm469_vm0, %v6125_v51 }
 0x129   : > { %5135 = vmatprep.mubr.msk.f32.mxu1 %vm469_vm0, %v2049_v20  ;;  %5332 = vmatprep.mubr.msk.f32.mxu0 %vm469_vm0, %v6130_v54 }
 0x12c   : > { %5136 = vmatmul.mubr.msk.f32.gmra.mrb[18].mxu1 %vm469_vm0, %v2050_v21  ;;  %5333 = vmatmul.mubr.msk.f32.gmra.mrb[16].mxu0 %vm469_vm0, %v6143_v10 }
 0x12d   : > { %5138 = vmatprep.mubr.msk.f32.mxu1 %vm469_vm0, %v2051_v14  ;;  %5335 = vmatprep.mubr.msk.f32.mxu0 %vm469_vm0, %v6147_v58 }
 0x130   : > { %5139 = vmatmul.mubr.msk.f32.gmra.mrb[20].mxu1 %vm469_vm0, %v2052_v22  ;;  %5336 = vmatmul.mubr.msk.f32.gmra.mrb[18].mxu0 %vm469_vm0, %v6159_v60 }
 0x131   : > { %5141 = vmatprep.mubr.msk.f32.mxu1 %vm469_vm0, %v2053_v23  ;;  %5338 = vmatprep.mubr.msk.f32.mxu0 %vm469_vm0, %v6163_v5 }
 0x134   : > { %5142 = vmatmul.mubr.msk.f32.gmra.mrb[22].mxu1 %vm469_vm0, %v6951_v39  ;;  %5339 = vmatmul.mubr.msk.f32.gmra.mrb[20].mxu0 %vm469_vm0, %v6175_v1 }
 0x135   : > { %5144 = vmatprep.mubr.msk.f32.mxu1 %vm469_vm0, %v6953_v50  ;;  %5341 = vmatprep.mubr.msk.f32.mxu0 %vm469_vm0, %v6179_v8 }
 0x138   : > { %5145 = vmatmul.mubr.msk.f32.gmra.mrb[24].mxu1 %vm469_vm0, %v6955_v3  ;;  %5342 = vmatmul.mubr.msk.f32.gmra.mrb[22].mxu0 %vm469_vm0, %v6191_v41 }
 0x139   : > { %5147 = vmatprep.mubr.msk.f32.mxu1 %vm469_vm0, %v6957_v48  ;;  %5344 = vmatprep.mubr.msk.f32.mxu0 %vm469_vm0, %v6195_v38 }
 0x13c   : > { %5148 = vmatmul.mubr.msk.f32.gmra.mrb[26].mxu1 %vm469_vm0, %v6959_v44  ;;  %5345 = vmatmul.mubr.msk.f32.gmra.mrb[24].mxu0 %vm469_vm0, %v6207_v33 }
 0x13d   : > { %5150 = vmatprep.mubr.msk.f32.mxu1 %vm469_vm0, %v6960_v57  ;;  %5347 = vmatprep.mubr.msk.f32.mxu0 %vm469_vm0, %v6211_v4  ;;  %v3611_v4 = vld [vmem:[#allocation2 + $0x1a2] sm:$0xff] }
 0x140   : > { %5151 = vmatmul.mubr.msk.f32.gmra.mrb[28].mxu1 %vm469_vm0, %v6962_v19  ;;  %5348 = vmatmul.mubr.msk.f32.gmra.mrb[26].mxu0 %vm469_vm0, %v6223_v25 }
 0x141   : > { %5153 = vmatprep.mubr.msk.f32.mxu1 %vm469_vm0, %v6522_v62  ;;  %5350 = vmatprep.mubr.msk.f32.mxu0 %vm469_vm0, %v6966_v24 }
 0x144   : > { %5154 = vmatmul.mubr.msk.f32.gmra.mrb[30].mxu1 %vm469_vm0, %v6532_v31  ;;  %5351 = vmatmul.mubr.msk.f32.gmra.mrb[28].mxu0 %vm469_vm0, %v6967_v28 }
 0x145   : > { %5353 = vmatprep.mubr.msk.f32.mxu0 %vm469_vm0, %v3610_v26 }
 0x148   : > { %5354 = vmatmul.mubr.msk.f32.gmra.mrb[30].mxu0 %vm469_vm0, %v3611_v4 }
 0x1bb   : > { %v5060_v29 = vpop.f32.mrb[0].mxu1 }
 0x1bc   : > { %v1840_v25 = vpop.f32.mrb[1].mxu1 }
 0x1bf   : > { %v5063_v32 = vpop.f32.mrb[2].mxu1 }
 0x1c0   : > { %v1850_v33 = vpop.f32.mrb[3].mxu1 }
 0x1c3   : > { %v5066_v34 = vpop.f32.mrb[4].mxu1 }
 0x1c4   : > { %v1860_v37 = vpop.f32.mrb[5].mxu1 }
 0x1c7   : > { %v5069_v38 = vpop.f32.mrb[6].mxu1 }
 0x1c8   : > { %v1870_v42 = vpop.f32.mrb[7].mxu1 }
 0x1cb   : > { %v6659_v45 = vpop.f32.mrb[8].mxu1 }
 0x1cc   : > { %v6661_v47 = vpop.f32.mrb[9].mxu1 }
 0x1cf   : > { %v6663_v51 = vpop.f32.mrb[10].mxu1 }
 0x1d0   : > { %v6665_v52 = vpop.f32.mrb[11].mxu1 }
 0x1d3   : > { %v6667_v54 = vpop.f32.mrb[12].mxu1 }
 0x1d4   : > { %v6669_v55 = vpop.f32.mrb[13].mxu1 }
 0x1d7   : > { %v6671_v10 = vpop.f32.mrb[14].mxu1 }
 0x1d8   : > { %v6673_v56 = vpop.f32.mrb[15].mxu1 }
 0x1df   : > { %v5310_v58 = vpop.f32.mrb[0].mxu0 }
 0x1e0   : > { %v5358_v60 = vadd.f32 %v5310_v58, %v5060_v29  ;;  %v3776_v61 = vpop.f32.mrb[1].mxu0 }
 0x1e1   : > { %v5359_v5 = vadd.f32 %v3776_v61, %v1840_v25 }
 0x1e2   : > { %v3975_v0 = vadd.f32 %v5358_v60, %v6678_v59 }
 0x1e3   : > { %v3974_v1 = vadd.f32 %v5359_v5, %v6678_v59  ;;  %v5313_v7 = vpop.f32.mrb[2].mxu0 }
 0x1e4   : > { %v4007_v8 = vsel %vm469_vm0, %v3975_v0, 0.0  ;;  %v4077_v11 = vmul.f32 %v3975_v0, %v3975_v0  ;;  %4179 = vst.msk [vmem:[%s6685_s10 + $0x8] sm:$0xff] %vm469_vm0, %v3975_v0  ;;  %v5360_v41 = vadd.f32 %v5313_v7, %v5063_v32  ;;  %v3786_v16 = vpop.f32.mrb[3].mxu0 }
 0x1e5   : > { %v4006_v9 = vsel %vm469_vm0, %v3974_v1, 0.0  ;;  %v4076_v49 = vmul.f32 %v3974_v1, %v3974_v1  ;;  %4178 = vst.msk [vmem:[%s6685_s10] sm:$0xff] %vm469_vm0, %v3974_v1  ;;  %v5361_v53 = vadd.f32 %v3786_v16, %v1850_v33 }
 0x1e6   : > { %v4109_v63 = vsel %vm469_vm0, %v4077_v11, 0.0  ;;  %v4008_v2 = vadd.f32 %v4007_v8, %v4006_v9  ;;  %v3977_v36 = vadd.f32 %v5360_v41, %v6678_v59 }
 0x1e7   : > { %v4108_v39 = vsel %vm469_vm0, %v4076_v49, 0.0  ;;  %v3976_v46 = vadd.f32 %v5361_v53, %v6678_v59  ;;  %v5316_v50 = vpop.f32.mrb[4].mxu0 }
 0x1e8   : > { %v4110_v43 = vadd.f32 %v4109_v63, %v4108_v39  ;;  %v4079_v3 = vmul.f32 %v3977_v36, %v3977_v36  ;;  %4181 = vst.msk [vmem:[%s6685_s10 + $0x18] sm:$0xff] %vm469_vm0, %v3977_v36  ;;  %v5362_v27 = vadd.f32 %v5316_v50, %v5066_v34  ;;  %v3796_v48 = vpop.f32.mrb[5].mxu0  ;;  %v4011_v19 = vsel %vm469_vm0, %v3977_v36, 0.0 }
 0x1e9   : > { %v4009_v40 = vsel %vm469_vm0, %v3976_v46, 0.0  ;;  %v4078_v44 = vmul.f32 %v3976_v46, %v3976_v46  ;;  %4180 = vst.msk [vmem:[%s6685_s10 + $0x10] sm:$0xff] %vm469_vm0, %v3976_v46  ;;  %v5363_v57 = vadd.f32 %v3796_v48, %v1860_v37 }
 0x1ea   : > { %v4010_v62 = vadd.f32 %v4009_v40, %v4008_v2  ;;  %v3979_v13 = vadd.f32 %v5362_v27, %v6678_v59  ;;  %v4113_v6 = vsel %vm469_vm0, %v4079_v3, 0.0 }
 0x1eb   : > { %v4111_v31 = vsel %vm469_vm0, %v4078_v44, 0.0  ;;  %v3978_v30 = vadd.f32 %v5363_v57, %v6678_v59  ;;  %v5319_v35 = vpop.f32.mrb[6].mxu0 }
 0x1ec   : > { %v4112_v12 = vadd.f32 %v4111_v31, %v4110_v43  ;;  %v4081_v15 = vmul.f32 %v3979_v13, %v3979_v13  ;;  %4183 = vst.msk [vmem:[%s6685_s10 + $0x28] sm:$0xff] %vm469_vm0, %v3979_v13  ;;  %v4012_v17 = vadd.f32 %v4011_v19, %v4010_v62  ;;  %v3806_v18 = vpop.f32.mrb[7].mxu0  ;;  %v5364_v14 = vadd.f32 %v5319_v35, %v5069_v38 }
 0x1ed   : > { %v4013_v20 = vsel %vm469_vm0, %v3978_v30, 0.0  ;;  %v4080_v21 = vmul.f32 %v3978_v30, %v3978_v30  ;;  %4182 = vst.msk [vmem:[%s6685_s10 + $0x20] sm:$0xff] %vm469_vm0, %v3978_v30  ;;  %v5365_v22 = vadd.f32 %v3806_v18, %v1870_v42  ;;  %v4015_v26 = vsel %vm469_vm0, %v3979_v13, 0.0 }
 0x1ee   : > { %v4014_v23 = vadd.f32 %v4013_v20, %v4012_v17  ;;  %v4114_v24 = vadd.f32 %v4113_v6, %v4112_v12  ;;  %v3981_v4 = vadd.f32 %v5364_v14, %v6678_v59  ;;  %v4117_v38 = vsel %vm469_vm0, %v4081_v15, 0.0 }
 0x1ef   : > { %v4115_v28 = vsel %vm469_vm0, %v4080_v21, 0.0  ;;  %v3980_v29 = vadd.f32 %v5365_v22, %v6678_v59  ;;  %v5322_v25 = vpop.f32.mrb[8].mxu0 }
 0x1f0   : > { %v4116_v32 = vadd.f32 %v4115_v28, %v4114_v24  ;;  %v4016_v33 = vadd.f32 %v4015_v26, %v4014_v23  ;;  %v5366_v34 = vadd.f32 %v5322_v25, %v6659_v45  ;;  %v3816_v37 = vpop.f32.mrb[9].mxu0  ;;  %v4083_v42 = vmul.f32 %v3981_v4, %v3981_v4  ;;  %4185 = vst.msk [vmem:[%s6685_s10 + $0x38] sm:$0xff] %vm469_vm0, %v3981_v4 }
 0x1f1   : > { %v4017_v58 = vsel %vm469_vm0, %v3980_v29, 0.0  ;;  %v4082_v60 = vmul.f32 %v3980_v29, %v3980_v29  ;;  %4184 = vst.msk [vmem:[%s6685_s10 + $0x30] sm:$0xff] %vm469_vm0, %v3980_v29  ;;  %v5367_v1 = vadd.f32 %v3816_v37, %v6661_v47  ;;  %v4019_v8 = vsel %vm469_vm0, %v3981_v4, 0.0 }
 0x1f2   : > { %v4018_v61 = vadd.f32 %v4017_v58, %v4016_v33  ;;  %v4118_v5 = vadd.f32 %v4117_v38, %v4116_v32  ;;  %v3983_v0 = vadd.f32 %v5366_v34, %v6678_v59  ;;  %v4121_v11 = vsel %vm469_vm0, %v4083_v42, 0.0 }
 0x1f3   : > { %v4119_v45 = vsel %vm469_vm0, %v4082_v60, 0.0  ;;  %v5325_v7 = vpop.f32.mrb[10].mxu0  ;;  %v3982_v16 = vadd.f32 %v5367_v1, %v6678_v59 }
 0x1f4   : > { %v4120_v41 = vadd.f32 %v4119_v45, %v4118_v5  ;;  %4187 = vst.msk [vmem:[%s6685_s10 + $0x48] sm:$0xff] %vm469_vm0, %v3983_v0  ;;  %v3826_v9 = vpop.f32.mrb[11].mxu0  ;;  %v4085_v49 = vmul.f32 %v3983_v0, %v3983_v0  ;;  %v4020_v53 = vadd.f32 %v4019_v8, %v4018_v61  ;;  %v5368_v63 = vadd.f32 %v5325_v7, %v6663_v51 }
 0x1f5   : > { %v5369_v47 = vadd.f32 %v3826_v9, %v6665_v52  ;;  %v4021_v2 = vsel %vm469_vm0, %v3982_v16, 0.0  ;;  %v4084_v36 = vmul.f32 %v3982_v16, %v3982_v16  ;;  %4186 = vst.msk [vmem:[%s6685_s10 + $0x40] sm:$0xff] %vm469_vm0, %v3982_v16  ;;  %v4023_v27 = vsel %vm469_vm0, %v3983_v0, 0.0 }
 0x1f6   : > { %v4122_v39 = vadd.f32 %v4121_v11, %v4120_v41  ;;  %v4022_v46 = vadd.f32 %v4021_v2, %v4020_v53  ;;  %v3985_v50 = vadd.f32 %v5368_v63, %v6678_v59  ;;  %v4125_v40 = vsel %vm469_vm0, %v4085_v49, 0.0 }
 0x1f7   : > { %v3984_v43 = vadd.f32 %v5369_v47, %v6678_v59  ;;  %v5328_v3 = vpop.f32.mrb[12].mxu0  ;;  %v4123_v51 = vsel %vm469_vm0, %v4084_v36, 0.0 }
 0x1f8   : > { %v5370_v52 = vadd.f32 %v5328_v3, %v6667_v54  ;;  %v3836_v48 = vpop.f32.mrb[13].mxu0  ;;  %v4124_v44 = vadd.f32 %v4123_v51, %v4122_v39  ;;  %v4087_v57 = vmul.f32 %v3985_v50, %v3985_v50  ;;  %4189 = vst.msk [vmem:[%s6685_s10 + $0x58] sm:$0xff] %vm469_vm0, %v3985_v50  ;;  %v4024_v62 = vadd.f32 %v4023_v27, %v4022_v46 }
 0x1f9   : > { %4188 = vst.msk [vmem:[%s6685_s10 + $0x50] sm:$0xff] %vm469_vm0, %v3984_v43  ;;  %v4025_v13 = vsel %vm469_vm0, %v3984_v43, 0.0  ;;  %v4086_v19 = vmul.f32 %v3984_v43, %v3984_v43  ;;  %v5371_v30 = vadd.f32 %v3836_v48, %v6669_v55  ;;  %v4027_v15 = vsel %vm469_vm0, %v3985_v50, 0.0 }
 0x1fa   : > { %v3987_v31 = vadd.f32 %v5370_v52, %v6678_v59  ;;  %v4026_v35 = vadd.f32 %v4025_v13, %v4024_v62  ;;  %v4126_v54 = vadd.f32 %v4125_v40, %v4124_v44  ;;  %v4129_v26 = vsel %vm469_vm0, %v4087_v57, 0.0 }
 0x1fb   : > { %v5134_v6 = vpop.f32.mrb[16].mxu1  ;;  %v5331_v12 = vpop.f32.mrb[14].mxu0  ;;  %v4127_v17 = vsel %vm469_vm0, %v4086_v19, 0.0  ;;  %v3986_v20 = vadd.f32 %v5371_v30, %v6678_v59 }
 0x1fc   : > { %v4089_v18 = vmul.f32 %v3987_v31, %v3987_v31  ;;  %4191 = vst.msk [vmem:[%s6685_s10 + $0x68] sm:$0xff] %vm469_vm0, %v3987_v31  ;;  %v2307_v21 = vpop.f32.mrb[17].mxu1  ;;  %v3846_v14 = vpop.f32.mrb[15].mxu0  ;;  %v4128_v22 = vadd.f32 %v4127_v17, %v4126_v54  ;;  %v4028_v23 = vadd.f32 %v4027_v15, %v4026_v35  ;;  %v5372_v55 = vadd.f32 %v5331_v12, %v6671_v10 }
 0x1fd   : > { %v5373_v24 = vadd.f32 %v3846_v14, %v6673_v56  ;;  %v4029_v28 = vsel %vm469_vm0, %v3986_v20, 0.0  ;;  %v4088_v4 = vmul.f32 %v3986_v20, %v3986_v20  ;;  %4190 = vst.msk [vmem:[%s6685_s10 + $0x60] sm:$0xff] %vm469_vm0, %v3986_v20  ;;  %v4031_v10 = vsel %vm469_vm0, %v3987_v31, 0.0 }
 0x1fe   : > { %v4030_v29 = vadd.f32 %v4029_v28, %v4028_v23  ;;  %v4130_v25 = vadd.f32 %v4129_v26, %v4128_v22  ;;  %v3989_v32 = vadd.f32 %v5372_v55, %v6678_v59  ;;  %v4133_v60 = vsel %vm469_vm0, %v4089_v18, 0.0 }
 0x1ff   : > { %v3988_v33 = vadd.f32 %v5373_v24, %v6678_v59  ;;  %v5137_v34 = vpop.f32.mrb[18].mxu1  ;;  %v5334_v37 = vpop.f32.mrb[16].mxu0  ;;  %v4131_v56 = vsel %vm469_vm0, %v4088_v4, 0.0 }
 0x200   : > { %v5374_v38 = vadd.f32 %v5334_v37, %v5134_v6  ;;  %v2317_v42 = vpop.f32.mrb[19].mxu1  ;;  %v3856_v58 = vpop.f32.mrb[17].mxu0  ;;  %v4132_v61 = vadd.f32 %v4131_v56, %v4130_v25  ;;  %v4091_v5 = vmul.f32 %v3989_v32, %v3989_v32  ;;  %4193 = vst.msk [vmem:[%s6685_s10 + $0x78] sm:$0xff] %vm469_vm0, %v3989_v32  ;;  %v4032_v0 = vadd.f32 %v4031_v10, %v4030_v29 }
 0x201   : > { %4192 = vst.msk [vmem:[%s6685_s10 + $0x70] sm:$0xff] %vm469_vm0, %v3988_v33  ;;  %v4033_v1 = vsel %vm469_vm0, %v3988_v33, 0.0  ;;  %v4090_v45 = vmul.f32 %v3988_v33, %v3988_v33  ;;  %v5375_v8 = vadd.f32 %v3856_v58, %v2307_v21  ;;  %v4035_v49 = vsel %vm469_vm0, %v3989_v32, 0.0 }
 0x202   : > { %v3991_v7 = vadd.f32 %v5374_v38, %v6678_v59  ;;  %v4034_v11 = vadd.f32 %v4033_v1, %v4032_v0  ;;  %v4134_v41 = vadd.f32 %v4133_v60, %v4132_v61  ;;  %v4137_v3 = vsel %vm469_vm0, %v4091_v5, 0.0 }
 0x203   : > { %v5140_v16 = vpop.f32.mrb[20].mxu1  ;;  %v5337_v9 = vpop.f32.mrb[18].mxu0  ;;  %v4135_v53 = vsel %vm469_vm0, %v4090_v45, 0.0  ;;  %v3990_v47 = vadd.f32 %v5375_v8, %v6678_v59 }
 0x204   : > { %v4093_v63 = vmul.f32 %v3991_v7, %v3991_v7  ;;  %4195 = vst.msk [vmem:[%s6685_s10 + $0x88] sm:$0xff] %vm469_vm0, %v3991_v7  ;;  %v2327_v2 = vpop.f32.mrb[21].mxu1  ;;  %v3866_v36 = vpop.f32.mrb[19].mxu0  ;;  %v4136_v39 = vadd.f32 %v4135_v53, %v4134_v41  ;;  %v4036_v46 = vadd.f32 %v4035_v49, %v4034_v11  ;;  %v5376_v50 = vadd.f32 %v5337_v9, %v5137_v34 }
 0x205   : > { %v5377_v43 = vadd.f32 %v3866_v36, %v2317_v42  ;;  %v4037_v27 = vsel %vm469_vm0, %v3990_v47, 0.0  ;;  %v4092_v51 = vmul.f32 %v3990_v47, %v3990_v47  ;;  %4194 = vst.msk [vmem:[%s6685_s10 + $0x80] sm:$0xff] %vm469_vm0, %v3990_v47  ;;  %v4039_v13 = vsel %vm469_vm0, %v3991_v7, 0.0 }
 0x206   : > { %v4038_v52 = vadd.f32 %v4037_v27, %v4036_v46  ;;  %v4138_v48 = vadd.f32 %v4137_v3, %v4136_v39  ;;  %v3993_v40 = vadd.f32 %v5376_v50, %v6678_v59  ;;  %v4141_v54 = vsel %vm469_vm0, %v4093_v63, 0.0 }
 0x207   : > { %v3992_v44 = vadd.f32 %v5377_v43, %v6678_v59  ;;  %v5143_v57 = vpop.f32.mrb[22].mxu1  ;;  %v5340_v62 = vpop.f32.mrb[20].mxu0  ;;  %v4139_v19 = vsel %vm469_vm0, %v4092_v51, 0.0 }
 0x208   : > { %v5378_v31 = vadd.f32 %v5340_v62, %v5140_v16  ;;  %v2337_v30 = vpop.f32.mrb[23].mxu1  ;;  %v3876_v35 = vpop.f32.mrb[21].mxu0  ;;  %v4140_v6 = vadd.f32 %v4139_v19, %v4138_v48  ;;  %v4095_v12 = vmul.f32 %v3993_v40, %v3993_v40  ;;  %4197 = vst.msk [vmem:[%s6685_s10 + $0x98] sm:$0xff] %vm469_vm0, %v3993_v40  ;;  %v4040_v15 = vadd.f32 %v4039_v13, %v4038_v52 }
 0x209   : > { %4196 = vst.msk [vmem:[%s6685_s10 + $0x90] sm:$0xff] %vm469_vm0, %v3992_v44  ;;  %v4041_v17 = vsel %vm469_vm0, %v3992_v44, 0.0  ;;  %v4094_v18 = vmul.f32 %v3992_v44, %v3992_v44  ;;  %v5379_v21 = vadd.f32 %v3876_v35, %v2327_v2  ;;  %v4043_v24 = vsel %vm469_vm0, %v3993_v40, 0.0 }
 0x20a   : > { %v3995_v20 = vadd.f32 %v5378_v31, %v6678_v59  ;;  %v4042_v14 = vadd.f32 %v4041_v17, %v4040_v15  ;;  %v4142_v22 = vadd.f32 %v4141_v54, %v4140_v6  ;;  %v4145_v10 = vsel %vm469_vm0, %v4095_v12, 0.0 }
 0x20b   : > { %v5146_v23 = vpop.f32.mrb[24].mxu1  ;;  %v5343_v55 = vpop.f32.mrb[22].mxu0  ;;  %v4143_v26 = vsel %vm469_vm0, %v4094_v18, 0.0  ;;  %v3994_v4 = vadd.f32 %v5379_v21, %v6678_v59 }
 0x20c   : > { %v4097_v28 = vmul.f32 %v3995_v20, %v3995_v20  ;;  %4199 = vst.msk [vmem:[%s6685_s10 + $0xa8] sm:$0xff] %vm469_vm0, %v3995_v20  ;;  %v2347_v29 = vpop.f32.mrb[25].mxu1  ;;  %v3886_v25 = vpop.f32.mrb[23].mxu0  ;;  %v4144_v32 = vadd.f32 %v4143_v26, %v4142_v22  ;;  %v4044_v33 = vadd.f32 %v4043_v24, %v4042_v14  ;;  %v5380_v34 = vadd.f32 %v5343_v55, %v5143_v57 }
 0x20d   : > { %v5381_v37 = vadd.f32 %v3886_v25, %v2337_v30  ;;  %v4045_v56 = vsel %vm469_vm0, %v3994_v4, 0.0  ;;  %v4096_v38 = vmul.f32 %v3994_v4, %v3994_v4  ;;  %4198 = vst.msk [vmem:[%s6685_s10 + $0xa0] sm:$0xff] %vm469_vm0, %v3994_v4  ;;  %v4047_v1 = vsel %vm469_vm0, %v3995_v20, 0.0 }
 0x20e   : > { %v4046_v42 = vadd.f32 %v4045_v56, %v4044_v33  ;;  %v4146_v58 = vadd.f32 %v4145_v10, %v4144_v32  ;;  %v3997_v60 = vadd.f32 %v5380_v34, %v6678_v59  ;;  %v4149_v41 = vsel %vm469_vm0, %v4097_v28, 0.0 }
 0x20f   : > { %v3996_v61 = vadd.f32 %v5381_v37, %v6678_v59  ;;  %v5149_v5 = vpop.f32.mrb[26].mxu1  ;;  %v5346_v0 = vpop.f32.mrb[24].mxu0  ;;  %v4147_v45 = vsel %vm469_vm0, %v4096_v38, 0.0 }
 0x210   : > { %v5382_v7 = vadd.f32 %v5346_v0, %v5146_v23  ;;  %v2357_v8 = vpop.f32.mrb[27].mxu1  ;;  %v3896_v11 = vpop.f32.mrb[25].mxu0  ;;  %v4148_v16 = vadd.f32 %v4147_v45, %v4146_v58  ;;  %v4099_v9 = vmul.f32 %v3997_v60, %v3997_v60  ;;  %4201 = vst.msk [vmem:[%s6685_s10 + $0xb8] sm:$0xff] %vm469_vm0, %v3997_v60  ;;  %v4048_v49 = vadd.f32 %v4047_v1, %v4046_v42 }
 0x211   : > { %4200 = vst.msk [vmem:[%s6685_s10 + $0xb0] sm:$0xff] %vm469_vm0, %v3996_v61  ;;  %v4049_v53 = vsel %vm469_vm0, %v3996_v61, 0.0  ;;  %v4098_v63 = vmul.f32 %v3996_v61, %v3996_v61  ;;  %v5383_v2 = vadd.f32 %v3896_v11, %v2347_v29  ;;  %v4051_v43 = vsel %vm469_vm0, %v3997_v60, 0.0 }
 0x212   : > { %v3999_v47 = vadd.f32 %v5382_v7, %v6678_v59  ;;  %v4050_v36 = vadd.f32 %v4049_v53, %v4048_v49  ;;  %v4150_v39 = vadd.f32 %v4149_v41, %v4148_v16  ;;  %v4153_v13 = vsel %vm469_vm0, %v4099_v9, 0.0 }
 0x213   : > { %v5152_v46 = vpop.f32.mrb[28].mxu1  ;;  %v5349_v50 = vpop.f32.mrb[26].mxu0  ;;  %v4151_v3 = vsel %vm469_vm0, %v4098_v63, 0.0  ;;  %v3998_v51 = vadd.f32 %v5383_v2, %v6678_v59 }
 0x214   : > { %v4101_v27 = vmul.f32 %v3999_v47, %v3999_v47  ;;  %4203 = vst.msk [vmem:[%s6685_s10 + $0xc8] sm:$0xff] %vm469_vm0, %v3999_v47  ;;  %v2367_v52 = vpop.f32.mrb[29].mxu1  ;;  %v3906_v48 = vpop.f32.mrb[27].mxu0  ;;  %v4152_v40 = vadd.f32 %v4151_v3, %v4150_v39  ;;  %v4052_v44 = vadd.f32 %v4051_v43, %v4050_v36  ;;  %v5384_v57 = vadd.f32 %v5349_v50, %v5149_v5 }
 0x215   : > { %v5385_v62 = vadd.f32 %v3906_v48, %v2357_v8  ;;  %v4053_v19 = vsel %vm469_vm0, %v3998_v51, 0.0  ;;  %v4100_v31 = vmul.f32 %v3998_v51, %v3998_v51  ;;  %4202 = vst.msk [vmem:[%s6685_s10 + $0xc0] sm:$0xff] %vm469_vm0, %v3998_v51  ;;  %v4055_v17 = vsel %vm469_vm0, %v3999_v47, 0.0 }
 0x216   : > { %v4054_v30 = vadd.f32 %v4053_v19, %v4052_v44  ;;  %v4154_v35 = vadd.f32 %v4153_v13, %v4152_v40  ;;  %v4001_v54 = vadd.f32 %v5384_v57, %v6678_v59  ;;  %v4157_v22 = vsel %vm469_vm0, %v4101_v27, 0.0 }
 0x217   : > { %v4000_v6 = vadd.f32 %v5385_v62, %v6678_v59  ;;  %v5155_v12 = vpop.f32.mrb[30].mxu1  ;;  %v5352_v15 = vpop.f32.mrb[28].mxu0  ;;  %v4155_v18 = vsel %vm469_vm0, %v4100_v31, 0.0 }
 0x218   : > { %v5386_v20 = vadd.f32 %v5352_v15, %v5152_v46  ;;  %v2377_v21 = vpop.f32.mrb[31].mxu1  ;;  %v3916_v14 = vpop.f32.mrb[29].mxu0  ;;  %v4156_v23 = vadd.f32 %v4155_v18, %v4154_v35  ;;  %v4103_v55 = vmul.f32 %v4001_v54, %v4001_v54  ;;  %4205 = vst.msk [vmem:[%s6685_s10 + $0xd8] sm:$0xff] %vm469_vm0, %v4001_v54  ;;  %v4056_v24 = vadd.f32 %v4055_v17, %v4054_v30 }
 0x219   : > { %4204 = vst.msk [vmem:[%s6685_s10 + $0xd0] sm:$0xff] %vm469_vm0, %v4000_v6  ;;  %v4057_v26 = vsel %vm469_vm0, %v4000_v6, 0.0  ;;  %v4102_v28 = vmul.f32 %v4000_v6, %v4000_v6  ;;  %v5387_v29 = vadd.f32 %v3916_v14, %v2367_v52  ;;  %v4059_v34 = vsel %vm469_vm0, %v4001_v54, 0.0 }
 0x21a   : > { %v4003_v4 = vadd.f32 %v5386_v20, %v6678_v59  ;;  %v4058_v25 = vadd.f32 %v4057_v26, %v4056_v24  ;;  %v4158_v32 = vadd.f32 %v4157_v22, %v4156_v23  ;;  %v4161_v61 = vsel %vm469_vm0, %v4103_v55, 0.0 }
 0x21b   : > { %v5355_v33 = vpop.f32.mrb[30].mxu0  ;;  %v4159_v37 = vsel %vm469_vm0, %v4102_v28, 0.0  ;;  %v4002_v10 = vadd.f32 %v5387_v29, %v6678_v59 }
 0x21c   : > { %4207 = vst.msk [vmem:[%s6685_s10 + $0xe8] sm:$0xff] %vm469_vm0, %v4003_v4  ;;  %v3926_v56 = vpop.f32.mrb[31].mxu0  ;;  %v4160_v38 = vadd.f32 %v4159_v37, %v4158_v32  ;;  %v4060_v42 = vadd.f32 %v4059_v34, %v4058_v25  ;;  %v5388_v58 = vadd.f32 %v5355_v33, %v5155_v12  ;;  %v4105_v5 = vmul.f32 %v4003_v4, %v4003_v4 }
 0x21d   : > { %v5389_v60 = vadd.f32 %v3926_v56, %v2377_v21  ;;  %v4061_v0 = vsel %vm469_vm0, %v4002_v10, 0.0  ;;  %v4104_v1 = vmul.f32 %v4002_v10, %v4002_v10  ;;  %4206 = vst.msk [vmem:[%s6685_s10 + $0xe0] sm:$0xff] %vm469_vm0, %v4002_v10  ;;  %v4063_v41 = vsel %vm469_vm0, %v4003_v4, 0.0 }
 0x21e   : > { %v4062_v45 = vadd.f32 %v4061_v0, %v4060_v42  ;;  %v4162_v7 = vadd.f32 %v4161_v61, %v4160_v38  ;;  %v4005_v8 = vadd.f32 %v5388_v58, %v6678_v59  ;;  %v4165_v53 = vsel %vm469_vm0, %v4105_v5, 0.0 }
 0x21f   : > { %v4004_v11 = vadd.f32 %v5389_v60, %v6678_v59  ;;  %v4163_v16 = vsel %vm469_vm0, %v4104_v1, 0.0 }
 0x220   : > { %v4164_v9 = vadd.f32 %v4163_v16, %v4162_v7  ;;  %4209 = vst.msk [vmem:[%s6685_s10 + $0xf8] sm:$0xff] %vm469_vm0, %v4005_v8  ;;  %v4064_v49 = vadd.f32 %v4063_v41, %v4062_v45  ;;  %v4107_v63 = vmul.f32 %v4005_v8, %v4005_v8  ;;  %v4067_v59 = vsel %vm469_vm0, %v4005_v8, 0.0 }
 0x221   : > { %4208 = vst.msk [vmem:[%s6685_s10 + $0xf0] sm:$0xff] %vm469_vm0, %v4004_v11  ;;  %v4065_v47 = vsel %vm469_vm0, %v4004_v11, 0.0  ;;  %v4106_v2 = vmul.f32 %v4004_v11, %v4004_v11 }
 0x222   : > { %v4066_v36 = vadd.f32 %v4065_v47, %v4064_v49  ;;  %v4166_v39 = vadd.f32 %v4165_v53, %v4164_v9  ;;  %v4169_v3 = vsel %vm469_vm0, %v4107_v63, 0.0 }
 0x223   : > { %v4167_v46 = vsel %vm469_vm0, %v4106_v2, 0.0 }
 0x224   : > { %v4068_v50 = vadd.f32 %v4067_v59, %v4066_v36  ;;  %v4168_v43 = vadd.f32 %v4167_v46, %v4166_v39 }
 0x226   : > { %v4069_v27 = vrot.slane %v4068_v50, 4  ;;  %v4170_v51 = vadd.f32 %v4169_v3, %v4168_v43 }
 0x228   : > { %v4070_v52 = vadd.f32 %v4069_v27, %v4068_v50  ;;  %v4171_v48 = vrot.slane %v4170_v51, 4 }
 0x22a   : > { %v4071_v40 = vrot.slane %v4070_v52, 2  ;;  %v4172_v44 = vadd.f32 %v4171_v48, %v4170_v51 }
 0x22c   : > { %v4072_v57 = vadd.f32 %v4071_v40, %v4070_v52  ;;  %v4173_v62 = vrot.slane %v4172_v44, 2 }
 0x22e   : > { %v4073_v13 = vrot.slane %v4072_v57, 1  ;;  %v4174_v19 = vadd.f32 %v4173_v62, %v4172_v44 }
 0x230   : > { %v4074_v31 = vadd.f32 %v4073_v13, %v4072_v57  ;;  %v4175_v30 = vrot.slane %v4174_v19, 1 }
 0x232   : > { %4075 = vst.msk [vmem:[%s262_s13] sm:$0x1] %vm478_vm2, %v4074_v31  ;;  %v4176_v35 = vadd.f32 %v4175_v30, %v4174_v19 }
 0x234   : > { %4177 = vst.msk [vmem:[%s262_s13 + $0x1] sm:$0x1] %vm478_vm2, %v4176_v35 }
 0x235 PF: > { %s17_s21 = sadd.s32 1, %s5630_s21  }
 0x236   : > { %p14_p4 = scmp.ge.s32.totalorder %s17_s21, 4  }
 0x238   :  { %16 = sbr.rel (!%p14_p4) target bundleno = 1 (0x1), region = 93 }

</bundles_post_ra>
